<compile_context>
chip_gen: v7x
topology: tpu7x:2x2x1
jax: 0.10.0
libtpu: 0.0.40
codegen_flags: <defaults>
</compile_context>

<pallas_src>
import functools
from typing import NamedTuple

import jax
import jax.numpy as jnp
from jax.experimental import pallas as pl
from jax.experimental.pallas import tpu as pltpu


class VQVAEOutput(NamedTuple):
    decoded_motion: jax.Array   # (B, T, motion_dim)
    indices: jax.Array          # (B, T_down, num_quantizers) int32
    commit_loss: jax.Array      # scalar
    perplexity: jax.Array       # scalar


# ----------------------------------------------------------------------------
# Single fused kernel: encoder -> residual VQ -> decoder, one batch element per
# grid step (grid axis "parallel" so megacore chips split batches across cores).
# ----------------------------------------------------------------------------
def _rvqvae_fused_kernel(x_ref, cb_ref, w_ref, b_ref,
                         dec_ref, idx_ref, sq_ref, cnt_ref,
                         pad_ref,
                         *, plan_enc, plan_dec, cmax, off):
    f32 = jnp.float32

    # ---- in-kernel Conv1d: zero-padded VMEM scratch + K shifted MXU matmuls ----
    def conv(x, widx, K, stride, pad, dil, pre_relu, post_relu):
        if pre_relu:
            x = jnp.maximum(x, 0.0)
        t_in = x.shape[0]
        t_full = t_in + 2 * pad - dil * (K - 1)     # stride-1 output length
        if K == 1 and pad == 0:
            acc = jnp.dot(x, w_ref[widx, 0, :, :], preferred_element_type=f32)
        else:
            # only the `pad` rows on each side of the data window need zeroing
            if pad > 0:
                zrows = jnp.zeros((pad, cmax), f32)
                pad_ref[off - pad:off, :] = zrows
                pad_ref[off + t_in:off + t_in + pad, :] = zrows
            pad_ref[off:off + t_in, :] = x
            acc = jnp.zeros((t_full, cmax), f32)
            for k in range(K):
                start = off - pad + k * dil
                win = pad_ref[start:start + t_full, :]            # (t_full, CMAX)
                acc = acc + jnp.dot(win, w_ref[widx, k, :, :],
                                    preferred_element_type=f32)
        if stride > 1:
            # decimate the stride-1 result with a tiny 0/1 selection matmul
            t_out = (t_in + 2 * pad - dil * (K - 1) - 1) // stride + 1
            r = jax.lax.broadcasted_iota(jnp.int32, (t_out, t_full), 0)
            c = jax.lax.broadcasted_iota(jnp.int32, (t_out, t_full), 1)
            sel = (c == stride * r).astype(f32)
            acc = jnp.dot(sel, acc, preferred_element_type=f32)
        out = acc + b_ref[widx, :, :]
        if post_relu:
            out = jnp.maximum(out, 0.0)
        return out

    # ---- in-kernel nearest-neighbour x2 upsample (selection matmul) ----
    def upsample2(x):
        t_in = x.shape[0]
        r = jax.lax.broadcasted_iota(jnp.int32, (2 * t_in, t_in), 0)
        c = jax.lax.broadcasted_iota(jnp.int32, (2 * t_in, t_in), 1)
        up = jnp.logical_or(r == 2 * c, r == 2 * c + 1).astype(f32)
        return jnp.dot(up, x, preferred_element_type=f32)

    def run_plan(x, plan):
        for op in plan:
            if op[0] == 'conv':
                _, widx, kw = op
                x = conv(x, widx, **kw)
            elif op[0] == 'res':
                # ResConv1DBlock (norm=None, relu): x + conv2(relu(conv1(relu(x))))
                _, w1, w2, dil = op
                h = conv(x, w1, K=3, stride=1, pad=dil, dil=dil,
                         pre_relu=True, post_relu=True)
                h = conv(h, w2, K=1, stride=1, pad=0, dil=1,
                         pre_relu=False, post_relu=False)
                x = x + h
            else:  # 'up'
                x = upsample2(x)
        return x

    # ---------------- encoder ----------------
    x0 = x_ref[0, :, :].astype(f32)        # (T, CMAX)
    enc = run_plan(x0, plan_enc)           # (Td, CMAX)

    # ---------------- residual VQ (eval: argmin, no dropout) ----------------
    n_q, n_code, _ = cb_ref.shape
    t_d = enc.shape[0]
    lane = jax.lax.broadcasted_iota(jnp.int32, (t_d, n_code), 1)
    resid = enc
    quant = jnp.zeros_like(enc)
    for q in range(n_q):
        cb = cb_ref[q]                                                  # (C, CMAX)
        xc = jnp.dot(resid, cb.T, preferred_element_type=f32)           # (Td, C)
        c2 = jnp.sum(cb * cb, axis=-1, keepdims=True).T                 # (1, C)
        dist = c2 - 2.0 * xc        # ||r||^2 dropped: constant per row, same argmin
        dmin = jnp.min(dist, axis=-1, keepdims=True)
        idx = jnp.min(jnp.where(dist <= dmin, lane, n_code),
                      axis=-1, keepdims=True)                           # (Td, 1) int32
        onehot = (lane == idx).astype(f32)                              # (Td, C)
        xd = jnp.dot(onehot, cb, preferred_element_type=f32)            # (Td, CMAX)

        idx_ref[0, :, q:q + 1] = idx
        diff = resid - xd
        sq_ref[0, q:q + 1, :] = jnp.full((1, 1), jnp.sum(diff * diff), f32)
        cnt_ref[0, q:q + 1, :] = jnp.sum(onehot, axis=0, keepdims=True)

        resid = resid - xd
        quant = quant + xd

    # ---------------- decoder ----------------
    dec = run_plan(quant, plan_dec)        # (T, CMAX)
    dec_ref[0, :, :] = dec


# ----------------------------------------------------------------------------
# Wrapper: one pallas_call for the whole forward; tiny scalar combines in XLA.
# ----------------------------------------------------------------------------
def rvqvae_forward(motion, codebooks, w_all, b_all, spec):
    B, T, cmot = motion.shape
    cmax = spec['cmax']
    n_q = spec['num_quantizers']
    n_code = spec['nb_code']
    code_dim = spec['code_dim']
    motion_dim = spec['motion_dim']
    assert cmot == motion_dim
    t_down = T // (spec['stride_t'] ** spec['down_t'])
    off = ((spec['padmax'] + 7) // 8) * 8        # 8-aligned data offset in scratch
    tpmax = ((2 * off + T + 7) // 8) * 8

    # preprocess: permute(0,2,1).float() absorbed by the channels-last layout
    x = jnp.zeros((B, T, cmax), jnp.float32).at[:, :, :motion_dim].set(
        motion.astype(jnp.float32))

    n_layers, kmax = int(w_all.shape[0]), int(w_all.shape[1])

    kernel = functools.partial(
        _rvqvae_fused_kernel,
        plan_enc=spec['plan_enc'], plan_dec=spec['plan_dec'],
        cmax=cmax, off=off)

    in_specs = [
        pl.BlockSpec((1, T, cmax), lambda i: (i, 0, 0)),
        pl.BlockSpec((n_q, n_code, cmax), lambda i: (0, 0, 0)),
        pl.BlockSpec((n_layers, kmax, cmax, cmax), lambda i: (0, 0, 0, 0)),
        pl.BlockSpec((n_layers, 1, cmax), lambda i: (0, 0, 0)),
    ]

    out_shape = (jax.ShapeDtypeStruct((B, T, cmax), jnp.float32),
                 jax.ShapeDtypeStruct((B, t_down, n_q), jnp.int32),
                 jax.ShapeDtypeStruct((B, n_q, 1), jnp.float32),
                 jax.ShapeDtypeStruct((B, n_q, n_code), jnp.float32))
    out_specs = (pl.BlockSpec((1, T, cmax), lambda i: (i, 0, 0)),
                 pl.BlockSpec((1, t_down, n_q), lambda i: (i, 0, 0)),
                 pl.BlockSpec((1, n_q, 1), lambda i: (i, 0, 0)),
                 pl.BlockSpec((1, n_q, n_code), lambda i: (i, 0, 0)))

    dec_pad, code_idx, sqerr, counts = pl.pallas_call(
        kernel,
        out_shape=out_shape,
        grid=(B,),
        in_specs=in_specs,
        out_specs=out_specs,
        scratch_shapes=[pltpu.VMEM((tpmax, cmax), jnp.float32)],
        compiler_params=pltpu.CompilerParams(dimension_semantics=("parallel",)),
    )(x, codebooks, w_all, b_all)

    # combine per-batch partial statistics (per-quantizer mean MSE summed over
    # quantizers; mean perplexity over quantizers).
    m_total = B * t_down
    commit_loss = jnp.sum(sqerr) / jnp.float32(m_total * code_dim)
    prob = jnp.sum(counts, axis=0) / jnp.float32(m_total)              # (Q, C)
    perp_q = jnp.exp(-jnp.sum(prob * jnp.log(prob + 1e-7), axis=-1))   # (Q,)
    perplexity = jnp.mean(perp_q)
    decoded = dec_pad[:, :, :motion_dim]                               # postprocess permute: no-op
    return VQVAEOutput(decoded_motion=decoded, indices=code_idx,
                       commit_loss=commit_loss, perplexity=perplexity)


# ----------------------------------------------------------------------------
# Deterministic parameter construction (mirrors PyTorch Conv1d default init) and
# the static op "plans" the fused kernel walks.
# ----------------------------------------------------------------------------
def build_rvqvae(key, args):
    motion_dim = args.motion_dim
    code_dim = args.codebook_dim
    width = args.dim
    depth = args.depth
    growth = 3
    down_t = args.down_sampling_ratio // 2
    stride_t = args.down_sampling_ratio // 2
    cmax = max(motion_dim, code_dim, width)
    cmax = ((cmax + 127) // 128) * 128          # pad channels to lane width (128)
    kmax = max(3, stride_t * 2, 1)

    w_list, b_list = [], []                     # padded (Kmax,CMAX,CMAX) / (1,CMAX)
    plan_enc, plan_dec = [], []
    keys = iter(jax.random.split(key, 256))

    def add_conv(K, cin, cout):
        kw, kb = jax.random.split(next(keys))
        scale = 1.0 / float(K * cin) ** 0.5
        w = jax.random.uniform(kw, (K, cin, cout), jnp.float32, -scale, scale)
        b = jax.random.uniform(kb, (cout,), jnp.float32, -scale, scale)
        w_list.append(jnp.zeros((kmax, cmax, cmax), jnp.float32).at[:K, :cin, :cout].set(w))
        b_list.append(jnp.zeros((1, cmax), jnp.float32).at[0, :cout].set(b))
        return len(w_list) - 1

    dilations = [growth ** d for d in range(depth)][::-1]   # reverse_dilation

    # ---- encoder ----
    plan_enc.append(('conv', add_conv(3, motion_dim, width),
                     dict(K=3, stride=1, pad=1, dil=1, pre_relu=False, post_relu=True)))
    for _ in range(down_t):
        plan_enc.append(('conv', add_conv(stride_t * 2, width, width),
                         dict(K=stride_t * 2, stride=stride_t, pad=stride_t // 2, dil=1,
                              pre_relu=False, post_relu=False)))
        for dil in dilations:
            plan_enc.append(('res', add_conv(3, width, width), add_conv(1, width, width), dil))
    plan_enc.append(('conv', add_conv(3, width, code_dim),
                     dict(K=3, stride=1, pad=1, dil=1, pre_relu=False, post_relu=False)))

    # ---- decoder ----
    plan_dec.append(('conv', add_conv(3, code_dim, width),
                     dict(K=3, stride=1, pad=1, dil=1, pre_relu=False, post_relu=True)))
    for _ in range(down_t):
        for dil in dilations:
            plan_dec.append(('res', add_conv(3, width, width), add_conv(1, width, width), dil))
        plan_dec.append(('up',))
        plan_dec.append(('conv', add_conv(3, width, width),
                         dict(K=3, stride=1, pad=1, dil=1, pre_relu=False, post_relu=False)))
    plan_dec.append(('conv', add_conv(3, width, width),
                     dict(K=3, stride=1, pad=1, dil=1, pre_relu=False, post_relu=True)))
    plan_dec.append(('conv', add_conv(3, width, motion_dim),
                     dict(K=3, stride=1, pad=1, dil=1, pre_relu=False, post_relu=False)))

    w_all = jnp.stack(w_list, axis=0)           # (L, Kmax, CMAX, CMAX)
    b_all = jnp.stack(b_list, axis=0)           # (L, 1, CMAX)

    # ---- codebooks (stacked (Q, C, CMAX), zero-padded channels) ----
    kcb = next(keys)
    cb_keys = jax.random.split(kcb, args.num_quantizers)
    if args.shared_codebook:
        cb_keys = [cb_keys[0]] * args.num_quantizers
    cbs = []
    for kq in cb_keys:
        c = jax.random.normal(kq, (args.codebook_size, code_dim), jnp.float32) * 0.5
        cbs.append(jnp.zeros((args.codebook_size, cmax), jnp.float32).at[:, :code_dim].set(c))
    codebooks = jnp.stack(cbs, axis=0)

    padmax = max([1, stride_t // 2] + dilations)
    spec = dict(plan_enc=tuple(plan_enc), plan_dec=tuple(plan_dec), cmax=cmax,
                num_quantizers=args.num_quantizers, nb_code=args.codebook_size,
                code_dim=code_dim, motion_dim=motion_dim,
                down_t=down_t, stride_t=stride_t, padmax=padmax)
    return spec, w_all, b_all, codebooks


# ----------------------------------------------------------------------------
if __name__ == "__main__":
    class Args:
        nb_joints = 22
        sample_codebook_temp = 0.0
        motion_dim = 16            # input_dim
        codebook_size = 32         # nb_code
        codebook_dim = 16          # code_dim
        down_sampling_ratio = 4    # -> down_t = stride_t = 2
        dim = 16                   # width
        depth = 2
        num_quantizers = 2
        quantize_dropout_prob = 0.2   # training-only, unused in eval forward
        shared_codebook = False

    args = Args()
    key = jax.random.PRNGKey(0)
    k_model, k_x = jax.random.split(key)

    spec, w_all, b_all, codebooks = build_rvqvae(k_model, args)

    B, T = 2, 16
    motion = jax.random.normal(k_x, (B, T, args.motion_dim), jnp.float32)

    forward = jax.jit(functools.partial(rvqvae_forward, spec=spec))
    out = forward(motion, codebooks, w_all, b_all)

    jax.block_until_ready(out.decoded_motion)
    jax.block_until_ready(out.indices)
    jax.block_until_ready(out.commit_loss)
    jax.block_until_ready(out.perplexity)

    assert out.decoded_motion.shape == (B, T, args.motion_dim)
    assert out.indices.shape == (B, T // args.down_sampling_ratio, args.num_quantizers)
    assert out.commit_loss.shape == () and out.perplexity.shape == ()
    assert bool(jnp.isfinite(out.decoded_motion).all())
    assert bool(jnp.isfinite(out.commit_loss)) and bool(jnp.isfinite(out.perplexity))
    print("KERNEL_OK")
</pallas_src>

<mosaic_0001>
module attributes {stable_mosaic.version = 11 : i64} {
  func.func @_rvqvae_fused_kernel(%arg0: i32, %arg1: memref<1x16x128xf32, #tpu.memory_space<vmem>>, %arg2: memref<2x32x128xf32, #tpu.memory_space<vmem>>, %arg3: memref<25x4x128x128xf32, #tpu.memory_space<vmem>>, %arg4: memref<25x1x128xf32, #tpu.memory_space<vmem>>, %arg5: memref<1x16x128xf32, #tpu.memory_space<vmem>>, %arg6: memref<1x4x2xi32, #tpu.memory_space<vmem>>, %arg7: memref<1x2x1xf32, #tpu.memory_space<vmem>>, %arg8: memref<1x2x32xf32, #tpu.memory_space<vmem>>, %arg9: memref<32x128xf32, #tpu.memory_space<vmem>>) attributes {dimension_semantics = [#tpu.dimension_semantics<parallel>], iteration_bounds = array<i64: 2>, scalar_prefetch = 0 : i64, scratch_operands = 1 : i64, tpu.core_type = #tpu.core_type<tc>, window_params = [{transform_indices = @transform_0, window_bounds = array<i64: 1, 16, 128>}, {pipeline_mode = #tpu.pipeline_mode<synchronous>, transform_indices = @transform_1, window_bounds = array<i64: 2, 32, 128>}, {pipeline_mode = #tpu.pipeline_mode<synchronous>, transform_indices = @transform_2, window_bounds = array<i64: 25, 4, 128, 128>}, {pipeline_mode = #tpu.pipeline_mode<synchronous>, transform_indices = @transform_3, window_bounds = array<i64: 25, 1, 128>}, {transform_indices = @transform_4, window_bounds = array<i64: 1, 16, 128>}, {transform_indices = @transform_5, window_bounds = array<i64: 1, 4, 2>}, {transform_indices = @transform_6, window_bounds = array<i64: 1, 2, 1>}, {transform_indices = @transform_7, window_bounds = array<i64: 1, 2, 32>}]} {
    %c0 = arith.constant 0 : index
    %c0_0 = arith.constant 0 : index
    %c0_1 = arith.constant 0 : index
    %0 = vector.load %arg1[%c0, %c0_0, %c0_1] : memref<1x16x128xf32, #tpu.memory_space<vmem>>, vector<1x16x128xf32>
    %1 = vector.shape_cast %0 : vector<1x16x128xf32> to vector<16x128xf32>
    %cst = arith.constant 0.000000e+00 : f32
    %2 = vector.broadcast %cst : f32 to vector<1x128xf32>
    %c7 = arith.constant 7 : index
    %c0_2 = arith.constant 0 : index
    %3 = vector.load %arg9[%c7, %c0_2] : memref<32x128xf32, #tpu.memory_space<vmem>>, vector<1x128xf32>
    tpu.vector_store %arg9[%c7, %c0_2], %2 {strides = array<i32>} : memref<32x128xf32, #tpu.memory_space<vmem>>, vector<1x128xf32>,
    %c24 = arith.constant 24 : index
    %c0_3 = arith.constant 0 : index
    %4 = vector.load %arg9[%c24, %c0_3] : memref<32x128xf32, #tpu.memory_space<vmem>>, vector<1x128xf32>
    tpu.vector_store %arg9[%c24, %c0_3], %2 {strides = array<i32>} : memref<32x128xf32, #tpu.memory_space<vmem>>, vector<1x128xf32>,
    %c8 = arith.constant 8 : index
    %c0_4 = arith.constant 0 : index
    %5 = vector.load %arg9[%c8, %c0_4] : memref<32x128xf32, #tpu.memory_space<vmem>>, vector<16x128xf32>
    tpu.vector_store %arg9[%c8, %c0_4], %1 {strides = array<i32>} : memref<32x128xf32, #tpu.memory_space<vmem>>, vector<16x128xf32>,
    %cst_5 = arith.constant 0.000000e+00 : f32
    %6 = vector.broadcast %cst_5 : f32 to vector<16x128xf32>
    %c7_6 = arith.constant 7 : index
    %c0_7 = arith.constant 0 : index
    %7 = vector.load %arg9[%c7_6, %c0_7] : memref<32x128xf32, #tpu.memory_space<vmem>>, vector<16x128xf32>
    %c0_8 = arith.constant 0 : index
    %c0_9 = arith.constant 0 : index
    %c0_10 = arith.constant 0 : index
    %c0_11 = arith.constant 0 : index
    %8 = vector.load %arg3[%c0_8, %c0_9, %c0_10, %c0_11] : memref<25x4x128x128xf32, #tpu.memory_space<vmem>>, vector<1x1x128x128xf32>
    %9 = vector.shape_cast %8 : vector<1x1x128x128xf32> to vector<128x128xf32>
    %cst_12 = arith.constant dense<0.000000e+00> : vector<16x128xf32>
    %10 = tpu.matmul %7, %9, %cst_12 {dimension_numbers = #tpu.dot_dimension_numbers<[1], [0], [0], [1], [0, 0, 1, 1], [], []>} : vector<16x128xf32>, vector<128x128xf32>, vector<16x128xf32> -> vector<16x128xf32>
    %11 = arith.addf %6, %10 : vector<16x128xf32>
    %c8_13 = arith.constant 8 : index
    %c0_14 = arith.constant 0 : index
    %12 = vector.load %arg9[%c8_13, %c0_14] : memref<32x128xf32, #tpu.memory_space<vmem>>, vector<16x128xf32>
    %c0_15 = arith.constant 0 : index
    %c1 = arith.constant 1 : index
    %c0_16 = arith.constant 0 : index
    %c0_17 = arith.constant 0 : index
    %13 = vector.load %arg3[%c0_15, %c1, %c0_16, %c0_17] : memref<25x4x128x128xf32, #tpu.memory_space<vmem>>, vector<1x1x128x128xf32>
    %14 = vector.shape_cast %13 : vector<1x1x128x128xf32> to vector<128x128xf32>
    %cst_18 = arith.constant dense<0.000000e+00> : vector<16x128xf32>
    %15 = tpu.matmul %12, %14, %cst_18 {dimension_numbers = #tpu.dot_dimension_numbers<[1], [0], [0], [1], [0, 0, 1, 1], [], []>} : vector<16x128xf32>, vector<128x128xf32>, vector<16x128xf32> -> vector<16x128xf32>
    %16 = arith.addf %11, %15 : vector<16x128xf32>
    %c9 = arith.constant 9 : index
    %c0_19 = arith.constant 0 : index
    %17 = vector.load %arg9[%c9, %c0_19] : memref<32x128xf32, #tpu.memory_space<vmem>>, vector<16x128xf32>
    %c0_20 = arith.constant 0 : index
    %c2 = arith.constant 2 : index
    %c0_21 = arith.constant 0 : index
    %c0_22 = arith.constant 0 : index
    %18 = vector.load %arg3[%c0_20, %c2, %c0_21, %c0_22] : memref<25x4x128x128xf32, #tpu.memory_space<vmem>>, vector<1x1x128x128xf32>
    %19 = vector.shape_cast %18 : vector<1x1x128x128xf32> to vector<128x128xf32>
    %cst_23 = arith.constant dense<0.000000e+00> : vector<16x128xf32>
    %20 = tpu.matmul %17, %19, %cst_23 {dimension_numbers = #tpu.dot_dimension_numbers<[1], [0], [0], [1], [0, 0, 1, 1], [], []>} : vector<16x128xf32>, vector<128x128xf32>, vector<16x128xf32> -> vector<16x128xf32>
    %21 = arith.addf %16, %20 : vector<16x128xf32>
    %c0_24 = arith.constant 0 : index
    %c0_25 = arith.constant 0 : index
    %c0_26 = arith.constant 0 : index
    %22 = vector.load %arg4[%c0_24, %c0_25, %c0_26] : memref<25x1x128xf32, #tpu.memory_space<vmem>>, vector<1x1x128xf32>
    %23 = vector.shape_cast %22 : vector<1x1x128xf32> to vector<1x128xf32>
    %24 = vector.broadcast %23 : vector<1x128xf32> to vector<16x128xf32>
    %25 = arith.addf %21, %24 : vector<16x128xf32>
    %cst_27 = arith.constant 0.000000e+00 : f32
    %26 = vector.broadcast %cst_27 : f32 to vector<16x128xf32>
    %27 = arith.maximumf %25, %26 : vector<16x128xf32>
    %cst_28 = arith.constant 0.000000e+00 : f32
    %28 = vector.broadcast %cst_28 : f32 to vector<1x128xf32>
    %c7_29 = arith.constant 7 : index
    %c0_30 = arith.constant 0 : index
    %29 = vector.load %arg9[%c7_29, %c0_30] : memref<32x128xf32, #tpu.memory_space<vmem>>, vector<1x128xf32>
    tpu.vector_store %arg9[%c7_29, %c0_30], %28 {strides = array<i32>} : memref<32x128xf32, #tpu.memory_space<vmem>>, vector<1x128xf32>,
    %c24_31 = arith.constant 24 : index
    %c0_32 = arith.constant 0 : index
    %30 = vector.load %arg9[%c24_31, %c0_32] : memref<32x128xf32, #tpu.memory_space<vmem>>, vector<1x128xf32>
    tpu.vector_store %arg9[%c24_31, %c0_32], %28 {strides = array<i32>} : memref<32x128xf32, #tpu.memory_space<vmem>>, vector<1x128xf32>,
    %c8_33 = arith.constant 8 : index
    %c0_34 = arith.constant 0 : index
    %31 = vector.load %arg9[%c8_33, %c0_34] : memref<32x128xf32, #tpu.memory_space<vmem>>, vector<16x128xf32>
    tpu.vector_store %arg9[%c8_33, %c0_34], %27 {strides = array<i32>} : memref<32x128xf32, #tpu.memory_space<vmem>>, vector<16x128xf32>,
    %cst_35 = arith.constant 0.000000e+00 : f32
    %32 = vector.broadcast %cst_35 : f32 to vector<15x128xf32>
    %c7_36 = arith.constant 7 : index
    %c0_37 = arith.constant 0 : index
    %33 = vector.load %arg9[%c7_36, %c0_37] : memref<32x128xf32, #tpu.memory_space<vmem>>, vector<15x128xf32>
    %c1_38 = arith.constant 1 : index
    %c0_39 = arith.constant 0 : index
    %c0_40 = arith.constant 0 : index
    %c0_41 = arith.constant 0 : index
    %34 = vector.load %arg3[%c1_38, %c0_39, %c0_40, %c0_41] : memref<25x4x128x128xf32, #tpu.memory_space<vmem>>, vector<1x1x128x128xf32>
    %35 = vector.shape_cast %34 : vector<1x1x128x128xf32> to vector<128x128xf32>
    %cst_42 = arith.constant dense<0.000000e+00> : vector<15x128xf32>
    %36 = tpu.matmul %33, %35, %cst_42 {dimension_numbers = #tpu.dot_dimension_numbers<[1], [0], [0], [1], [0, 0, 1, 1], [], []>} : vector<15x128xf32>, vector<128x128xf32>, vector<15x128xf32> -> vector<15x128xf32>
    %37 = arith.addf %32, %36 : vector<15x128xf32>
    %c8_43 = arith.constant 8 : index
    %c0_44 = arith.constant 0 : index
    %38 = vector.load %arg9[%c8_43, %c0_44] : memref<32x128xf32, #tpu.memory_space<vmem>>, vector<15x128xf32>
    %c1_45 = arith.constant 1 : index
    %c1_46 = arith.constant 1 : index
    %c0_47 = arith.constant 0 : index
    %c0_48 = arith.constant 0 : index
    %39 = vector.load %arg3[%c1_45, %c1_46, %c0_47, %c0_48] : memref<25x4x128x128xf32, #tpu.memory_space<vmem>>, vector<1x1x128x128xf32>
    %40 = vector.shape_cast %39 : vector<1x1x128x128xf32> to vector<128x128xf32>
    %cst_49 = arith.constant dense<0.000000e+00> : vector<15x128xf32>
    %41 = tpu.matmul %38, %40, %cst_49 {dimension_numbers = #tpu.dot_dimension_numbers<[1], [0], [0], [1], [0, 0, 1, 1], [], []>} : vector<15x128xf32>, vector<128x128xf32>, vector<15x128xf32> -> vector<15x128xf32>
    %42 = arith.addf %37, %41 : vector<15x128xf32>
    %c9_50 = arith.constant 9 : index
    %c0_51 = arith.constant 0 : index
    %43 = vector.load %arg9[%c9_50, %c0_51] : memref<32x128xf32, #tpu.memory_space<vmem>>, vector<15x128xf32>
    %c1_52 = arith.constant 1 : index
    %c2_53 = arith.constant 2 : index
    %c0_54 = arith.constant 0 : index
    %c0_55 = arith.constant 0 : index
    %44 = vector.load %arg3[%c1_52, %c2_53, %c0_54, %c0_55] : memref<25x4x128x128xf32, #tpu.memory_space<vmem>>, vector<1x1x128x128xf32>
    %45 = vector.shape_cast %44 : vector<1x1x128x128xf32> to vector<128x128xf32>
    %cst_56 = arith.constant dense<0.000000e+00> : vector<15x128xf32>
    %46 = tpu.matmul %43, %45, %cst_56 {dimension_numbers = #tpu.dot_dimension_numbers<[1], [0], [0], [1], [0, 0, 1, 1], [], []>} : vector<15x128xf32>, vector<128x128xf32>, vector<15x128xf32> -> vector<15x128xf32>
    %47 = arith.addf %42, %46 : vector<15x128xf32>
    %c10 = arith.constant 10 : index
    %c0_57 = arith.constant 0 : index
    %48 = vector.load %arg9[%c10, %c0_57] : memref<32x128xf32, #tpu.memory_space<vmem>>, vector<15x128xf32>
    %c1_58 = arith.constant 1 : index
    %c3 = arith.constant 3 : index
    %c0_59 = arith.constant 0 : index
    %c0_60 = arith.constant 0 : index
    %49 = vector.load %arg3[%c1_58, %c3, %c0_59, %c0_60] : memref<25x4x128x128xf32, #tpu.memory_space<vmem>>, vector<1x1x128x128xf32>
    %50 = vector.shape_cast %49 : vector<1x1x128x128xf32> to vector<128x128xf32>
    %cst_61 = arith.constant dense<0.000000e+00> : vector<15x128xf32>
    %51 = tpu.matmul %48, %50, %cst_61 {dimension_numbers = #tpu.dot_dimension_numbers<[1], [0], [0], [1], [0, 0, 1, 1], [], []>} : vector<15x128xf32>, vector<128x128xf32>, vector<15x128xf32> -> vector<15x128xf32>
    %52 = arith.addf %47, %51 : vector<15x128xf32>
    %53 = tpu.iota {dimensions = array<i32: 0>} : vector<8x15xi32>
    %54 = tpu.iota {dimensions = array<i32: 1>} : vector<8x15xi32>
    %c2_i32 = arith.constant 2 : i32
    %55 = vector.broadcast %c2_i32 : i32 to vector<8x15xi32>
    %56 = arith.muli %55, %53 : vector<8x15xi32>
    %57 = arith.cmpi eq, %54, %56 : vector<8x15xi32>
    %58 = arith.extui %57 : vector<8x15xi1> to vector<8x15xi32>
    %59 = arith.sitofp %58 : vector<8x15xi32> to vector<8x15xf32>
    %cst_62 = arith.constant dense<0.000000e+00> : vector<8x128xf32>
    %60 = tpu.matmul %59, %52, %cst_62 {dimension_numbers = #tpu.dot_dimension_numbers<[1], [0], [0], [1], [0, 0, 1, 1], [], []>} : vector<8x15xf32>, vector<15x128xf32>, vector<8x128xf32> -> vector<8x128xf32>
    %c1_63 = arith.constant 1 : index
    %c0_64 = arith.constant 0 : index
    %c0_65 = arith.constant 0 : index
    %61 = vector.load %arg4[%c1_63, %c0_64, %c0_65] : memref<25x1x128xf32, #tpu.memory_space<vmem>>, vector<1x1x128xf32>
    %62 = vector.shape_cast %61 : vector<1x1x128xf32> to vector<1x128xf32>
    %63 = vector.broadcast %62 : vector<1x128xf32> to vector<8x128xf32>
    %64 = arith.addf %60, %63 : vector<8x128xf32>
    %cst_66 = arith.constant 0.000000e+00 : f32
    %65 = vector.broadcast %cst_66 : f32 to vector<8x128xf32>
    %66 = arith.maximumf %64, %65 : vector<8x128xf32>
    %cst_67 = arith.constant 0.000000e+00 : f32
    %67 = vector.broadcast %cst_67 : f32 to vector<3x128xf32>
    %c5 = arith.constant 5 : index
    %c0_68 = arith.constant 0 : index
    %68 = vector.load %arg9[%c5, %c0_68] : memref<32x128xf32, #tpu.memory_space<vmem>>, vector<3x128xf32>
    tpu.vector_store %arg9[%c5, %c0_68], %67 {strides = array<i32>} : memref<32x128xf32, #tpu.memory_space<vmem>>, vector<3x128xf32>,
    %c16 = arith.constant 16 : index
    %c0_69 = arith.constant 0 : index
    %69 = vector.load %arg9[%c16, %c0_69] : memref<32x128xf32, #tpu.memory_space<vmem>>, vector<3x128xf32>
    tpu.vector_store %arg9[%c16, %c0_69], %67 {strides = array<i32>} : memref<32x128xf32, #tpu.memory_space<vmem>>, vector<3x128xf32>,
    %c8_70 = arith.constant 8 : index
    %c0_71 = arith.constant 0 : index
    %70 = vector.load %arg9[%c8_70, %c0_71] : memref<32x128xf32, #tpu.memory_space<vmem>>, vector<8x128xf32>
    tpu.vector_store %arg9[%c8_70, %c0_71], %66 {strides = array<i32>} : memref<32x128xf32, #tpu.memory_space<vmem>>, vector<8x128xf32>,
    %cst_72 = arith.constant 0.000000e+00 : f32
    %71 = vector.broadcast %cst_72 : f32 to vector<8x128xf32>
    %c5_73 = arith.constant 5 : index
    %c0_74 = arith.constant 0 : index
    %72 = vector.load %arg9[%c5_73, %c0_74] : memref<32x128xf32, #tpu.memory_space<vmem>>, vector<8x128xf32>
    %c2_75 = arith.constant 2 : index
    %c0_76 = arith.constant 0 : index
    %c0_77 = arith.constant 0 : index
    %c0_78 = arith.constant 0 : index
    %73 = vector.load %arg3[%c2_75, %c0_76, %c0_77, %c0_78] : memref<25x4x128x128xf32, #tpu.memory_space<vmem>>, vector<1x1x128x128xf32>
    %74 = vector.shape_cast %73 : vector<1x1x128x128xf32> to vector<128x128xf32>
    %cst_79 = arith.constant dense<0.000000e+00> : vector<8x128xf32>
    %75 = tpu.matmul %72, %74, %cst_79 {dimension_numbers = #tpu.dot_dimension_numbers<[1], [0], [0], [1], [0, 0, 1, 1], [], []>} : vector<8x128xf32>, vector<128x128xf32>, vector<8x128xf32> -> vector<8x128xf32>
    %76 = arith.addf %71, %75 : vector<8x128xf32>
    %c8_80 = arith.constant 8 : index
    %c0_81 = arith.constant 0 : index
    %77 = vector.load %arg9[%c8_80, %c0_81] : memref<32x128xf32, #tpu.memory_space<vmem>>, vector<8x128xf32>
    %c2_82 = arith.constant 2 : index
    %c1_83 = arith.constant 1 : index
    %c0_84 = arith.constant 0 : index
    %c0_85 = arith.constant 0 : index
    %78 = vector.load %arg3[%c2_82, %c1_83, %c0_84, %c0_85] : memref<25x4x128x128xf32, #tpu.memory_space<vmem>>, vector<1x1x128x128xf32>
    %79 = vector.shape_cast %78 : vector<1x1x128x128xf32> to vector<128x128xf32>
    %cst_86 = arith.constant dense<0.000000e+00> : vector<8x128xf32>
    %80 = tpu.matmul %77, %79, %cst_86 {dimension_numbers = #tpu.dot_dimension_numbers<[1], [0], [0], [1], [0, 0, 1, 1], [], []>} : vector<8x128xf32>, vector<128x128xf32>, vector<8x128xf32> -> vector<8x128xf32>
    %81 = arith.addf %76, %80 : vector<8x128xf32>
    %c11 = arith.constant 11 : index
    %c0_87 = arith.constant 0 : index
    %82 = vector.load %arg9[%c11, %c0_87] : memref<32x128xf32, #tpu.memory_space<vmem>>, vector<8x128xf32>
    %c2_88 = arith.constant 2 : index
    %c2_89 = arith.constant 2 : index
    %c0_90 = arith.constant 0 : index
    %c0_91 = arith.constant 0 : index
    %83 = vector.load %arg3[%c2_88, %c2_89, %c0_90, %c0_91] : memref<25x4x128x128xf32, #tpu.memory_space<vmem>>, vector<1x1x128x128xf32>
    %84 = vector.shape_cast %83 : vector<1x1x128x128xf32> to vector<128x128xf32>
    %cst_92 = arith.constant dense<0.000000e+00> : vector<8x128xf32>
    %85 = tpu.matmul %82, %84, %cst_92 {dimension_numbers = #tpu.dot_dimension_numbers<[1], [0], [0], [1], [0, 0, 1, 1], [], []>} : vector<8x128xf32>, vector<128x128xf32>, vector<8x128xf32> -> vector<8x128xf32>
    %86 = arith.addf %81, %85 : vector<8x128xf32>
    %c2_93 = arith.constant 2 : index
    %c0_94 = arith.constant 0 : index
    %c0_95 = arith.constant 0 : index
    %87 = vector.load %arg4[%c2_93, %c0_94, %c0_95] : memref<25x1x128xf32, #tpu.memory_space<vmem>>, vector<1x1x128xf32>
    %88 = vector.shape_cast %87 : vector<1x1x128xf32> to vector<1x128xf32>
    %89 = vector.broadcast %88 : vector<1x128xf32> to vector<8x128xf32>
    %90 = arith.addf %86, %89 : vector<8x128xf32>
    %cst_96 = arith.constant 0.000000e+00 : f32
    %91 = vector.broadcast %cst_96 : f32 to vector<8x128xf32>
    %92 = arith.maximumf %90, %91 : vector<8x128xf32>
    %c3_97 = arith.constant 3 : index
    %c0_98 = arith.constant 0 : index
    %c0_99 = arith.constant 0 : index
    %c0_100 = arith.constant 0 : index
    %93 = vector.load %arg3[%c3_97, %c0_98, %c0_99, %c0_100] : memref<25x4x128x128xf32, #tpu.memory_space<vmem>>, vector<1x1x128x128xf32>
    %94 = vector.shape_cast %93 : vector<1x1x128x128xf32> to vector<128x128xf32>
    %cst_101 = arith.constant dense<0.000000e+00> : vector<8x128xf32>
    %95 = tpu.matmul %92, %94, %cst_101 {dimension_numbers = #tpu.dot_dimension_numbers<[1], [0], [0], [1], [0, 0, 1, 1], [], []>} : vector<8x128xf32>, vector<128x128xf32>, vector<8x128xf32> -> vector<8x128xf32>
    %c3_102 = arith.constant 3 : index
    %c0_103 = arith.constant 0 : index
    %c0_104 = arith.constant 0 : index
    %96 = vector.load %arg4[%c3_102, %c0_103, %c0_104] : memref<25x1x128xf32, #tpu.memory_space<vmem>>, vector<1x1x128xf32>
    %97 = vector.shape_cast %96 : vector<1x1x128xf32> to vector<1x128xf32>
    %98 = vector.broadcast %97 : vector<1x128xf32> to vector<8x128xf32>
    %99 = arith.addf %95, %98 : vector<8x128xf32>
    %100 = arith.addf %64, %99 : vector<8x128xf32>
    %cst_105 = arith.constant 0.000000e+00 : f32
    %101 = vector.broadcast %cst_105 : f32 to vector<8x128xf32>
    %102 = arith.maximumf %100, %101 : vector<8x128xf32>
    %cst_106 = arith.constant 0.000000e+00 : f32
    %103 = vector.broadcast %cst_106 : f32 to vector<1x128xf32>
    %c7_107 = arith.constant 7 : index
    %c0_108 = arith.constant 0 : index
    %104 = vector.load %arg9[%c7_107, %c0_108] : memref<32x128xf32, #tpu.memory_space<vmem>>, vector<1x128xf32>
    tpu.vector_store %arg9[%c7_107, %c0_108], %103 {strides = array<i32>} : memref<32x128xf32, #tpu.memory_space<vmem>>, vector<1x128xf32>,
    %c16_109 = arith.constant 16 : index
    %c0_110 = arith.constant 0 : index
    %105 = vector.load %arg9[%c16_109, %c0_110] : memref<32x128xf32, #tpu.memory_space<vmem>>, vector<1x128xf32>
    tpu.vector_store %arg9[%c16_109, %c0_110], %103 {strides = array<i32>} : memref<32x128xf32, #tpu.memory_space<vmem>>, vector<1x128xf32>,
    %c8_111 = arith.constant 8 : index
    %c0_112 = arith.constant 0 : index
    %106 = vector.load %arg9[%c8_111, %c0_112] : memref<32x128xf32, #tpu.memory_space<vmem>>, vector<8x128xf32>
    tpu.vector_store %arg9[%c8_111, %c0_112], %102 {strides = array<i32>} : memref<32x128xf32, #tpu.memory_space<vmem>>, vector<8x128xf32>,
    %cst_113 = arith.constant 0.000000e+00 : f32
    %107 = vector.broadcast %cst_113 : f32 to vector<8x128xf32>
    %c7_114 = arith.constant 7 : index
    %c0_115 = arith.constant 0 : index
    %108 = vector.load %arg9[%c7_114, %c0_115] : memref<32x128xf32, #tpu.memory_space<vmem>>, vector<8x128xf32>
    %c4 = arith.constant 4 : index
    %c0_116 = arith.constant 0 : index
    %c0_117 = arith.constant 0 : index
    %c0_118 = arith.constant 0 : index
    %109 = vector.load %arg3[%c4, %c0_116, %c0_117, %c0_118] : memref<25x4x128x128xf32, #tpu.memory_space<vmem>>, vector<1x1x128x128xf32>
    %110 = vector.shape_cast %109 : vector<1x1x128x128xf32> to vector<128x128xf32>
    %cst_119 = arith.constant dense<0.000000e+00> : vector<8x128xf32>
    %111 = tpu.matmul %108, %110, %cst_119 {dimension_numbers = #tpu.dot_dimension_numbers<[1], [0], [0], [1], [0, 0, 1, 1], [], []>} : vector<8x128xf32>, vector<128x128xf32>, vector<8x128xf32> -> vector<8x128xf32>
    %112 = arith.addf %107, %111 : vector<8x128xf32>
    %c8_120 = arith.constant 8 : index
    %c0_121 = arith.constant 0 : index
    %113 = vector.load %arg9[%c8_120, %c0_121] : memref<32x128xf32, #tpu.memory_space<vmem>>, vector<8x128xf32>
    %c4_122 = arith.constant 4 : index
    %c1_123 = arith.constant 1 : index
    %c0_124 = arith.constant 0 : index
    %c0_125 = arith.constant 0 : index
    %114 = vector.load %arg3[%c4_122, %c1_123, %c0_124, %c0_125] : memref<25x4x128x128xf32, #tpu.memory_space<vmem>>, vector<1x1x128x128xf32>
    %115 = vector.shape_cast %114 : vector<1x1x128x128xf32> to vector<128x128xf32>
    %cst_126 = arith.constant dense<0.000000e+00> : vector<8x128xf32>
    %116 = tpu.matmul %113, %115, %cst_126 {dimension_numbers = #tpu.dot_dimension_numbers<[1], [0], [0], [1], [0, 0, 1, 1], [], []>} : vector<8x128xf32>, vector<128x128xf32>, vector<8x128xf32> -> vector<8x128xf32>
    %117 = arith.addf %112, %116 : vector<8x128xf32>
    %c9_127 = arith.constant 9 : index
    %c0_128 = arith.constant 0 : index
    %118 = vector.load %arg9[%c9_127, %c0_128] : memref<32x128xf32, #tpu.memory_space<vmem>>, vector<8x128xf32>
    %c4_129 = arith.constant 4 : index
    %c2_130 = arith.constant 2 : index
    %c0_131 = arith.constant 0 : index
    %c0_132 = arith.constant 0 : index
    %119 = vector.load %arg3[%c4_129, %c2_130, %c0_131, %c0_132] : memref<25x4x128x128xf32, #tpu.memory_space<vmem>>, vector<1x1x128x128xf32>
    %120 = vector.shape_cast %119 : vector<1x1x128x128xf32> to vector<128x128xf32>
    %cst_133 = arith.constant dense<0.000000e+00> : vector<8x128xf32>
    %121 = tpu.matmul %118, %120, %cst_133 {dimension_numbers = #tpu.dot_dimension_numbers<[1], [0], [0], [1], [0, 0, 1, 1], [], []>} : vector<8x128xf32>, vector<128x128xf32>, vector<8x128xf32> -> vector<8x128xf32>
    %122 = arith.addf %117, %121 : vector<8x128xf32>
    %c4_134 = arith.constant 4 : index
    %c0_135 = arith.constant 0 : index
    %c0_136 = arith.constant 0 : index
    %123 = vector.load %arg4[%c4_134, %c0_135, %c0_136] : memref<25x1x128xf32, #tpu.memory_space<vmem>>, vector<1x1x128xf32>
    %124 = vector.shape_cast %123 : vector<1x1x128xf32> to vector<1x128xf32>
    %125 = vector.broadcast %124 : vector<1x128xf32> to vector<8x128xf32>
    %126 = arith.addf %122, %125 : vector<8x128xf32>
    %cst_137 = arith.constant 0.000000e+00 : f32
    %127 = vector.broadcast %cst_137 : f32 to vector<8x128xf32>
    %128 = arith.maximumf %126, %127 : vector<8x128xf32>
    %c5_138 = arith.constant 5 : index
    %c0_139 = arith.constant 0 : index
    %c0_140 = arith.constant 0 : index
    %c0_141 = arith.constant 0 : index
    %129 = vector.load %arg3[%c5_138, %c0_139, %c0_140, %c0_141] : memref<25x4x128x128xf32, #tpu.memory_space<vmem>>, vector<1x1x128x128xf32>
    %130 = vector.shape_cast %129 : vector<1x1x128x128xf32> to vector<128x128xf32>
    %cst_142 = arith.constant dense<0.000000e+00> : vector<8x128xf32>
    %131 = tpu.matmul %128, %130, %cst_142 {dimension_numbers = #tpu.dot_dimension_numbers<[1], [0], [0], [1], [0, 0, 1, 1], [], []>} : vector<8x128xf32>, vector<128x128xf32>, vector<8x128xf32> -> vector<8x128xf32>
    %c5_143 = arith.constant 5 : index
    %c0_144 = arith.constant 0 : index
    %c0_145 = arith.constant 0 : index
    %132 = vector.load %arg4[%c5_143, %c0_144, %c0_145] : memref<25x1x128xf32, #tpu.memory_space<vmem>>, vector<1x1x128xf32>
    %133 = vector.shape_cast %132 : vector<1x1x128xf32> to vector<1x128xf32>
    %134 = vector.broadcast %133 : vector<1x128xf32> to vector<8x128xf32>
    %135 = arith.addf %131, %134 : vector<8x128xf32>
    %136 = arith.addf %100, %135 : vector<8x128xf32>
    %cst_146 = arith.constant 0.000000e+00 : f32
    %137 = vector.broadcast %cst_146 : f32 to vector<1x128xf32>
    %c7_147 = arith.constant 7 : index
    %c0_148 = arith.constant 0 : index
    %138 = vector.load %arg9[%c7_147, %c0_148] : memref<32x128xf32, #tpu.memory_space<vmem>>, vector<1x128xf32>
    tpu.vector_store %arg9[%c7_147, %c0_148], %137 {strides = array<i32>} : memref<32x128xf32, #tpu.memory_space<vmem>>, vector<1x128xf32>,
    %c16_149 = arith.constant 16 : index
    %c0_150 = arith.constant 0 : index
    %139 = vector.load %arg9[%c16_149, %c0_150] : memref<32x128xf32, #tpu.memory_space<vmem>>, vector<1x128xf32>
    tpu.vector_store %arg9[%c16_149, %c0_150], %137 {strides = array<i32>} : memref<32x128xf32, #tpu.memory_space<vmem>>, vector<1x128xf32>,
    %c8_151 = arith.constant 8 : index
    %c0_152 = arith.constant 0 : index
    %140 = vector.load %arg9[%c8_151, %c0_152] : memref<32x128xf32, #tpu.memory_space<vmem>>, vector<8x128xf32>
    tpu.vector_store %arg9[%c8_151, %c0_152], %136 {strides = array<i32>} : memref<32x128xf32, #tpu.memory_space<vmem>>, vector<8x128xf32>,
    %cst_153 = arith.constant 0.000000e+00 : f32
    %141 = vector.broadcast %cst_153 : f32 to vector<7x128xf32>
    %c7_154 = arith.constant 7 : index
    %c0_155 = arith.constant 0 : index
    %142 = vector.load %arg9[%c7_154, %c0_155] : memref<32x128xf32, #tpu.memory_space<vmem>>, vector<7x128xf32>
    %c6 = arith.constant 6 : index
    %c0_156 = arith.constant 0 : index
    %c0_157 = arith.constant 0 : index
    %c0_158 = arith.constant 0 : index
    %143 = vector.load %arg3[%c6, %c0_156, %c0_157, %c0_158] : memref<25x4x128x128xf32, #tpu.memory_space<vmem>>, vector<1x1x128x128xf32>
    %144 = vector.shape_cast %143 : vector<1x1x128x128xf32> to vector<128x128xf32>
    %cst_159 = arith.constant dense<0.000000e+00> : vector<7x128xf32>
    %145 = tpu.matmul %142, %144, %cst_159 {dimension_numbers = #tpu.dot_dimension_numbers<[1], [0], [0], [1], [0, 0, 1, 1], [], []>} : vector<7x128xf32>, vector<128x128xf32>, vector<7x128xf32> -> vector<7x128xf32>
    %146 = arith.addf %141, %145 : vector<7x128xf32>
    %c8_160 = arith.constant 8 : index
    %c0_161 = arith.constant 0 : index
    %147 = vector.load %arg9[%c8_160, %c0_161] : memref<32x128xf32, #tpu.memory_space<vmem>>, vector<7x128xf32>
    %c6_162 = arith.constant 6 : index
    %c1_163 = arith.constant 1 : index
    %c0_164 = arith.constant 0 : index
    %c0_165 = arith.constant 0 : index
    %148 = vector.load %arg3[%c6_162, %c1_163, %c0_164, %c0_165] : memref<25x4x128x128xf32, #tpu.memory_space<vmem>>, vector<1x1x128x128xf32>
    %149 = vector.shape_cast %148 : vector<1x1x128x128xf32> to vector<128x128xf32>
    %cst_166 = arith.constant dense<0.000000e+00> : vector<7x128xf32>
    %150 = tpu.matmul %147, %149, %cst_166 {dimension_numbers = #tpu.dot_dimension_numbers<[1], [0], [0], [1], [0, 0, 1, 1], [], []>} : vector<7x128xf32>, vector<128x128xf32>, vector<7x128xf32> -> vector<7x128xf32>
    %151 = arith.addf %146, %150 : vector<7x128xf32>
    %c9_167 = arith.constant 9 : index
    %c0_168 = arith.constant 0 : index
    %152 = vector.load %arg9[%c9_167, %c0_168] : memref<32x128xf32, #tpu.memory_space<vmem>>, vector<7x128xf32>
    %c6_169 = arith.constant 6 : index
    %c2_170 = arith.constant 2 : index
    %c0_171 = arith.constant 0 : index
    %c0_172 = arith.constant 0 : index
    %153 = vector.load %arg3[%c6_169, %c2_170, %c0_171, %c0_172] : memref<25x4x128x128xf32, #tpu.memory_space<vmem>>, vector<1x1x128x128xf32>
    %154 = vector.shape_cast %153 : vector<1x1x128x128xf32> to vector<128x128xf32>
    %cst_173 = arith.constant dense<0.000000e+00> : vector<7x128xf32>
    %155 = tpu.matmul %152, %154, %cst_173 {dimension_numbers = #tpu.dot_dimension_numbers<[1], [0], [0], [1], [0, 0, 1, 1], [], []>} : vector<7x128xf32>, vector<128x128xf32>, vector<7x128xf32> -> vector<7x128xf32>
    %156 = arith.addf %151, %155 : vector<7x128xf32>
    %c10_174 = arith.constant 10 : index
    %c0_175 = arith.constant 0 : index
    %157 = vector.load %arg9[%c10_174, %c0_175] : memref<32x128xf32, #tpu.memory_space<vmem>>, vector<7x128xf32>
    %c6_176 = arith.constant 6 : index
    %c3_177 = arith.constant 3 : index
    %c0_178 = arith.constant 0 : index
    %c0_179 = arith.constant 0 : index
    %158 = vector.load %arg3[%c6_176, %c3_177, %c0_178, %c0_179] : memref<25x4x128x128xf32, #tpu.memory_space<vmem>>, vector<1x1x128x128xf32>
    %159 = vector.shape_cast %158 : vector<1x1x128x128xf32> to vector<128x128xf32>
    %cst_180 = arith.constant dense<0.000000e+00> : vector<7x128xf32>
    %160 = tpu.matmul %157, %159, %cst_180 {dimension_numbers = #tpu.dot_dimension_numbers<[1], [0], [0], [1], [0, 0, 1, 1], [], []>} : vector<7x128xf32>, vector<128x128xf32>, vector<7x128xf32> -> vector<7x128xf32>
    %161 = arith.addf %156, %160 : vector<7x128xf32>
    %162 = tpu.iota {dimensions = array<i32: 0>} : vector<4x7xi32>
    %163 = tpu.iota {dimensions = array<i32: 1>} : vector<4x7xi32>
    %c2_i32_181 = arith.constant 2 : i32
    %164 = vector.broadcast %c2_i32_181 : i32 to vector<4x7xi32>
    %165 = arith.muli %164, %162 : vector<4x7xi32>
    %166 = arith.cmpi eq, %163, %165 : vector<4x7xi32>
    %167 = arith.extui %166 : vector<4x7xi1> to vector<4x7xi32>
    %168 = arith.sitofp %167 : vector<4x7xi32> to vector<4x7xf32>
    %cst_182 = arith.constant dense<0.000000e+00> : vector<4x128xf32>
    %169 = tpu.matmul %168, %161, %cst_182 {dimension_numbers = #tpu.dot_dimension_numbers<[1], [0], [0], [1], [0, 0, 1, 1], [], []>} : vector<4x7xf32>, vector<7x128xf32>, vector<4x128xf32> -> vector<4x128xf32>
    %c6_183 = arith.constant 6 : index
    %c0_184 = arith.constant 0 : index
    %c0_185 = arith.constant 0 : index
    %170 = vector.load %arg4[%c6_183, %c0_184, %c0_185] : memref<25x1x128xf32, #tpu.memory_space<vmem>>, vector<1x1x128xf32>
    %171 = vector.shape_cast %170 : vector<1x1x128xf32> to vector<1x128xf32>
    %172 = vector.broadcast %171 : vector<1x128xf32> to vector<4x128xf32>
    %173 = arith.addf %169, %172 : vector<4x128xf32>
    %cst_186 = arith.constant 0.000000e+00 : f32
    %174 = vector.broadcast %cst_186 : f32 to vector<4x128xf32>
    %175 = arith.maximumf %173, %174 : vector<4x128xf32>
    %cst_187 = arith.constant 0.000000e+00 : f32
    %176 = vector.broadcast %cst_187 : f32 to vector<3x128xf32>
    %c5_188 = arith.constant 5 : index
    %c0_189 = arith.constant 0 : index
    %177 = vector.load %arg9[%c5_188, %c0_189] : memref<32x128xf32, #tpu.memory_space<vmem>>, vector<3x128xf32>
    tpu.vector_store %arg9[%c5_188, %c0_189], %176 {strides = array<i32>} : memref<32x128xf32, #tpu.memory_space<vmem>>, vector<3x128xf32>,
    %c12 = arith.constant 12 : index
    %c0_190 = arith.constant 0 : index
    %178 = vector.load %arg9[%c12, %c0_190] : memref<32x128xf32, #tpu.memory_space<vmem>>, vector<3x128xf32>
    tpu.vector_store %arg9[%c12, %c0_190], %176 {strides = array<i32>} : memref<32x128xf32, #tpu.memory_space<vmem>>, vector<3x128xf32>,
    %c8_191 = arith.constant 8 : index
    %c0_192 = arith.constant 0 : index
    %179 = vector.load %arg9[%c8_191, %c0_192] : memref<32x128xf32, #tpu.memory_space<vmem>>, vector<4x128xf32>
    tpu.vector_store %arg9[%c8_191, %c0_192], %175 {strides = array<i32>} : memref<32x128xf32, #tpu.memory_space<vmem>>, vector<4x128xf32>,
    %cst_193 = arith.constant 0.000000e+00 : f32
    %180 = vector.broadcast %cst_193 : f32 to vector<4x128xf32>
    %c5_194 = arith.constant 5 : index
    %c0_195 = arith.constant 0 : index
    %181 = vector.load %arg9[%c5_194, %c0_195] : memref<32x128xf32, #tpu.memory_space<vmem>>, vector<4x128xf32>
    %c7_196 = arith.constant 7 : index
    %c0_197 = arith.constant 0 : index
    %c0_198 = arith.constant 0 : index
    %c0_199 = arith.constant 0 : index
    %182 = vector.load %arg3[%c7_196, %c0_197, %c0_198, %c0_199] : memref<25x4x128x128xf32, #tpu.memory_space<vmem>>, vector<1x1x128x128xf32>
    %183 = vector.shape_cast %182 : vector<1x1x128x128xf32> to vector<128x128xf32>
    %cst_200 = arith.constant dense<0.000000e+00> : vector<4x128xf32>
    %184 = tpu.matmul %181, %183, %cst_200 {dimension_numbers = #tpu.dot_dimension_numbers<[1], [0], [0], [1], [0, 0, 1, 1], [], []>} : vector<4x128xf32>, vector<128x128xf32>, vector<4x128xf32> -> vector<4x128xf32>
    %185 = arith.addf %180, %184 : vector<4x128xf32>
    %c8_201 = arith.constant 8 : index
    %c0_202 = arith.constant 0 : index
    %186 = vector.load %arg9[%c8_201, %c0_202] : memref<32x128xf32, #tpu.memory_space<vmem>>, vector<4x128xf32>
    %c7_203 = arith.constant 7 : index
    %c1_204 = arith.constant 1 : index
    %c0_205 = arith.constant 0 : index
    %c0_206 = arith.constant 0 : index
    %187 = vector.load %arg3[%c7_203, %c1_204, %c0_205, %c0_206] : memref<25x4x128x128xf32, #tpu.memory_space<vmem>>, vector<1x1x128x128xf32>
    %188 = vector.shape_cast %187 : vector<1x1x128x128xf32> to vector<128x128xf32>
    %cst_207 = arith.constant dense<0.000000e+00> : vector<4x128xf32>
    %189 = tpu.matmul %186, %188, %cst_207 {dimension_numbers = #tpu.dot_dimension_numbers<[1], [0], [0], [1], [0, 0, 1, 1], [], []>} : vector<4x128xf32>, vector<128x128xf32>, vector<4x128xf32> -> vector<4x128xf32>
    %190 = arith.addf %185, %189 : vector<4x128xf32>
    %c11_208 = arith.constant 11 : index
    %c0_209 = arith.constant 0 : index
    %191 = vector.load %arg9[%c11_208, %c0_209] : memref<32x128xf32, #tpu.memory_space<vmem>>, vector<4x128xf32>
    %c7_210 = arith.constant 7 : index
    %c2_211 = arith.constant 2 : index
    %c0_212 = arith.constant 0 : index
    %c0_213 = arith.constant 0 : index
    %192 = vector.load %arg3[%c7_210, %c2_211, %c0_212, %c0_213] : memref<25x4x128x128xf32, #tpu.memory_space<vmem>>, vector<1x1x128x128xf32>
    %193 = vector.shape_cast %192 : vector<1x1x128x128xf32> to vector<128x128xf32>
    %cst_214 = arith.constant dense<0.000000e+00> : vector<4x128xf32>
    %194 = tpu.matmul %191, %193, %cst_214 {dimension_numbers = #tpu.dot_dimension_numbers<[1], [0], [0], [1], [0, 0, 1, 1], [], []>} : vector<4x128xf32>, vector<128x128xf32>, vector<4x128xf32> -> vector<4x128xf32>
    %195 = arith.addf %190, %194 : vector<4x128xf32>
    %c7_215 = arith.constant 7 : index
    %c0_216 = arith.constant 0 : index
    %c0_217 = arith.constant 0 : index
    %196 = vector.load %arg4[%c7_215, %c0_216, %c0_217] : memref<25x1x128xf32, #tpu.memory_space<vmem>>, vector<1x1x128xf32>
    %197 = vector.shape_cast %196 : vector<1x1x128xf32> to vector<1x128xf32>
    %198 = vector.broadcast %197 : vector<1x128xf32> to vector<4x128xf32>
    %199 = arith.addf %195, %198 : vector<4x128xf32>
    %cst_218 = arith.constant 0.000000e+00 : f32
    %200 = vector.broadcast %cst_218 : f32 to vector<4x128xf32>
    %201 = arith.maximumf %199, %200 : vector<4x128xf32>
    %c8_219 = arith.constant 8 : index
    %c0_220 = arith.constant 0 : index
    %c0_221 = arith.constant 0 : index
    %c0_222 = arith.constant 0 : index
    %202 = vector.load %arg3[%c8_219, %c0_220, %c0_221, %c0_222] : memref<25x4x128x128xf32, #tpu.memory_space<vmem>>, vector<1x1x128x128xf32>
    %203 = vector.shape_cast %202 : vector<1x1x128x128xf32> to vector<128x128xf32>
    %cst_223 = arith.constant dense<0.000000e+00> : vector<4x128xf32>
    %204 = tpu.matmul %201, %203, %cst_223 {dimension_numbers = #tpu.dot_dimension_numbers<[1], [0], [0], [1], [0, 0, 1, 1], [], []>} : vector<4x128xf32>, vector<128x128xf32>, vector<4x128xf32> -> vector<4x128xf32>
    %c8_224 = arith.constant 8 : index
    %c0_225 = arith.constant 0 : index
    %c0_226 = arith.constant 0 : index
    %205 = vector.load %arg4[%c8_224, %c0_225, %c0_226] : memref<25x1x128xf32, #tpu.memory_space<vmem>>, vector<1x1x128xf32>
    %206 = vector.shape_cast %205 : vector<1x1x128xf32> to vector<1x128xf32>
    %207 = vector.broadcast %206 : vector<1x128xf32> to vector<4x128xf32>
    %208 = arith.addf %204, %207 : vector<4x128xf32>
    %209 = arith.addf %173, %208 : vector<4x128xf32>
    %cst_227 = arith.constant 0.000000e+00 : f32
    %210 = vector.broadcast %cst_227 : f32 to vector<4x128xf32>
    %211 = arith.maximumf %209, %210 : vector<4x128xf32>
    %cst_228 = arith.constant 0.000000e+00 : f32
    %212 = vector.broadcast %cst_228 : f32 to vector<1x128xf32>
    %c7_229 = arith.constant 7 : index
    %c0_230 = arith.constant 0 : index
    %213 = vector.load %arg9[%c7_229, %c0_230] : memref<32x128xf32, #tpu.memory_space<vmem>>, vector<1x128xf32>
    tpu.vector_store %arg9[%c7_229, %c0_230], %212 {strides = array<i32>} : memref<32x128xf32, #tpu.memory_space<vmem>>, vector<1x128xf32>,
    %c12_231 = arith.constant 12 : index
    %c0_232 = arith.constant 0 : index
    %214 = vector.load %arg9[%c12_231, %c0_232] : memref<32x128xf32, #tpu.memory_space<vmem>>, vector<1x128xf32>
    tpu.vector_store %arg9[%c12_231, %c0_232], %212 {strides = array<i32>} : memref<32x128xf32, #tpu.memory_space<vmem>>, vector<1x128xf32>,
    %c8_233 = arith.constant 8 : index
    %c0_234 = arith.constant 0 : index
    %215 = vector.load %arg9[%c8_233, %c0_234] : memref<32x128xf32, #tpu.memory_space<vmem>>, vector<4x128xf32>
    tpu.vector_store %arg9[%c8_233, %c0_234], %211 {strides = array<i32>} : memref<32x128xf32, #tpu.memory_space<vmem>>, vector<4x128xf32>,
    %cst_235 = arith.constant 0.000000e+00 : f32
    %216 = vector.broadcast %cst_235 : f32 to vector<4x128xf32>
    %c7_236 = arith.constant 7 : index
    %c0_237 = arith.constant 0 : index
    %217 = vector.load %arg9[%c7_236, %c0_237] : memref<32x128xf32, #tpu.memory_space<vmem>>, vector<4x128xf32>
    %c9_238 = arith.constant 9 : index
    %c0_239 = arith.constant 0 : index
    %c0_240 = arith.constant 0 : index
    %c0_241 = arith.constant 0 : index
    %218 = vector.load %arg3[%c9_238, %c0_239, %c0_240, %c0_241] : memref<25x4x128x128xf32, #tpu.memory_space<vmem>>, vector<1x1x128x128xf32>
    %219 = vector.shape_cast %218 : vector<1x1x128x128xf32> to vector<128x128xf32>
    %cst_242 = arith.constant dense<0.000000e+00> : vector<4x128xf32>
    %220 = tpu.matmul %217, %219, %cst_242 {dimension_numbers = #tpu.dot_dimension_numbers<[1], [0], [0], [1], [0, 0, 1, 1], [], []>} : vector<4x128xf32>, vector<128x128xf32>, vector<4x128xf32> -> vector<4x128xf32>
    %221 = arith.addf %216, %220 : vector<4x128xf32>
    %c8_243 = arith.constant 8 : index
    %c0_244 = arith.constant 0 : index
    %222 = vector.load %arg9[%c8_243, %c0_244] : memref<32x128xf32, #tpu.memory_space<vmem>>, vector<4x128xf32>
    %c9_245 = arith.constant 9 : index
    %c1_246 = arith.constant 1 : index
    %c0_247 = arith.constant 0 : index
    %c0_248 = arith.constant 0 : index
    %223 = vector.load %arg3[%c9_245, %c1_246, %c0_247, %c0_248] : memref<25x4x128x128xf32, #tpu.memory_space<vmem>>, vector<1x1x128x128xf32>
    %224 = vector.shape_cast %223 : vector<1x1x128x128xf32> to vector<128x128xf32>
    %cst_249 = arith.constant dense<0.000000e+00> : vector<4x128xf32>
    %225 = tpu.matmul %222, %224, %cst_249 {dimension_numbers = #tpu.dot_dimension_numbers<[1], [0], [0], [1], [0, 0, 1, 1], [], []>} : vector<4x128xf32>, vector<128x128xf32>, vector<4x128xf32> -> vector<4x128xf32>
    %226 = arith.addf %221, %225 : vector<4x128xf32>
    %c9_250 = arith.constant 9 : index
    %c0_251 = arith.constant 0 : index
    %227 = vector.load %arg9[%c9_250, %c0_251] : memref<32x128xf32, #tpu.memory_space<vmem>>, vector<4x128xf32>
    %c9_252 = arith.constant 9 : index
    %c2_253 = arith.constant 2 : index
    %c0_254 = arith.constant 0 : index
    %c0_255 = arith.constant 0 : index
    %228 = vector.load %arg3[%c9_252, %c2_253, %c0_254, %c0_255] : memref<25x4x128x128xf32, #tpu.memory_space<vmem>>, vector<1x1x128x128xf32>
    %229 = vector.shape_cast %228 : vector<1x1x128x128xf32> to vector<128x128xf32>
    %cst_256 = arith.constant dense<0.000000e+00> : vector<4x128xf32>
    %230 = tpu.matmul %227, %229, %cst_256 {dimension_numbers = #tpu.dot_dimension_numbers<[1], [0], [0], [1], [0, 0, 1, 1], [], []>} : vector<4x128xf32>, vector<128x128xf32>, vector<4x128xf32> -> vector<4x128xf32>
    %231 = arith.addf %226, %230 : vector<4x128xf32>
    %c9_257 = arith.constant 9 : index
    %c0_258 = arith.constant 0 : index
    %c0_259 = arith.constant 0 : index
    %232 = vector.load %arg4[%c9_257, %c0_258, %c0_259] : memref<25x1x128xf32, #tpu.memory_space<vmem>>, vector<1x1x128xf32>
    %233 = vector.shape_cast %232 : vector<1x1x128xf32> to vector<1x128xf32>
    %234 = vector.broadcast %233 : vector<1x128xf32> to vector<4x128xf32>
    %235 = arith.addf %231, %234 : vector<4x128xf32>
    %cst_260 = arith.constant 0.000000e+00 : f32
    %236 = vector.broadcast %cst_260 : f32 to vector<4x128xf32>
    %237 = arith.maximumf %235, %236 : vector<4x128xf32>
    %c10_261 = arith.constant 10 : index
    %c0_262 = arith.constant 0 : index
    %c0_263 = arith.constant 0 : index
    %c0_264 = arith.constant 0 : index
    %238 = vector.load %arg3[%c10_261, %c0_262, %c0_263, %c0_264] : memref<25x4x128x128xf32, #tpu.memory_space<vmem>>, vector<1x1x128x128xf32>
    %239 = vector.shape_cast %238 : vector<1x1x128x128xf32> to vector<128x128xf32>
    %cst_265 = arith.constant dense<0.000000e+00> : vector<4x128xf32>
    %240 = tpu.matmul %237, %239, %cst_265 {dimension_numbers = #tpu.dot_dimension_numbers<[1], [0], [0], [1], [0, 0, 1, 1], [], []>} : vector<4x128xf32>, vector<128x128xf32>, vector<4x128xf32> -> vector<4x128xf32>
    %c10_266 = arith.constant 10 : index
    %c0_267 = arith.constant 0 : index
    %c0_268 = arith.constant 0 : index
    %241 = vector.load %arg4[%c10_266, %c0_267, %c0_268] : memref<25x1x128xf32, #tpu.memory_space<vmem>>, vector<1x1x128xf32>
    %242 = vector.shape_cast %241 : vector<1x1x128xf32> to vector<1x128xf32>
    %243 = vector.broadcast %242 : vector<1x128xf32> to vector<4x128xf32>
    %244 = arith.addf %240, %243 : vector<4x128xf32>
    %245 = arith.addf %209, %244 : vector<4x128xf32>
    %cst_269 = arith.constant 0.000000e+00 : f32
    %246 = vector.broadcast %cst_269 : f32 to vector<1x128xf32>
    %c7_270 = arith.constant 7 : index
    %c0_271 = arith.constant 0 : index
    %247 = vector.load %arg9[%c7_270, %c0_271] : memref<32x128xf32, #tpu.memory_space<vmem>>, vector<1x128xf32>
    tpu.vector_store %arg9[%c7_270, %c0_271], %246 {strides = array<i32>} : memref<32x128xf32, #tpu.memory_space<vmem>>, vector<1x128xf32>,
    %c12_272 = arith.constant 12 : index
    %c0_273 = arith.constant 0 : index
    %248 = vector.load %arg9[%c12_272, %c0_273] : memref<32x128xf32, #tpu.memory_space<vmem>>, vector<1x128xf32>
    tpu.vector_store %arg9[%c12_272, %c0_273], %246 {strides = array<i32>} : memref<32x128xf32, #tpu.memory_space<vmem>>, vector<1x128xf32>,
    %c8_274 = arith.constant 8 : index
    %c0_275 = arith.constant 0 : index
    %249 = vector.load %arg9[%c8_274, %c0_275] : memref<32x128xf32, #tpu.memory_space<vmem>>, vector<4x128xf32>
    tpu.vector_store %arg9[%c8_274, %c0_275], %245 {strides = array<i32>} : memref<32x128xf32, #tpu.memory_space<vmem>>, vector<4x128xf32>,
    %cst_276 = arith.constant 0.000000e+00 : f32
    %250 = vector.broadcast %cst_276 : f32 to vector<4x128xf32>
    %c7_277 = arith.constant 7 : index
    %c0_278 = arith.constant 0 : index
    %251 = vector.load %arg9[%c7_277, %c0_278] : memref<32x128xf32, #tpu.memory_space<vmem>>, vector<4x128xf32>
    %c11_279 = arith.constant 11 : index
    %c0_280 = arith.constant 0 : index
    %c0_281 = arith.constant 0 : index
    %c0_282 = arith.constant 0 : index
    %252 = vector.load %arg3[%c11_279, %c0_280, %c0_281, %c0_282] : memref<25x4x128x128xf32, #tpu.memory_space<vmem>>, vector<1x1x128x128xf32>
    %253 = vector.shape_cast %252 : vector<1x1x128x128xf32> to vector<128x128xf32>
    %cst_283 = arith.constant dense<0.000000e+00> : vector<4x128xf32>
    %254 = tpu.matmul %251, %253, %cst_283 {dimension_numbers = #tpu.dot_dimension_numbers<[1], [0], [0], [1], [0, 0, 1, 1], [], []>} : vector<4x128xf32>, vector<128x128xf32>, vector<4x128xf32> -> vector<4x128xf32>
    %255 = arith.addf %250, %254 : vector<4x128xf32>
    %c8_284 = arith.constant 8 : index
    %c0_285 = arith.constant 0 : index
    %256 = vector.load %arg9[%c8_284, %c0_285] : memref<32x128xf32, #tpu.memory_space<vmem>>, vector<4x128xf32>
    %c11_286 = arith.constant 11 : index
    %c1_287 = arith.constant 1 : index
    %c0_288 = arith.constant 0 : index
    %c0_289 = arith.constant 0 : index
    %257 = vector.load %arg3[%c11_286, %c1_287, %c0_288, %c0_289] : memref<25x4x128x128xf32, #tpu.memory_space<vmem>>, vector<1x1x128x128xf32>
    %258 = vector.shape_cast %257 : vector<1x1x128x128xf32> to vector<128x128xf32>
    %cst_290 = arith.constant dense<0.000000e+00> : vector<4x128xf32>
    %259 = tpu.matmul %256, %258, %cst_290 {dimension_numbers = #tpu.dot_dimension_numbers<[1], [0], [0], [1], [0, 0, 1, 1], [], []>} : vector<4x128xf32>, vector<128x128xf32>, vector<4x128xf32> -> vector<4x128xf32>
    %260 = arith.addf %255, %259 : vector<4x128xf32>
    %c9_291 = arith.constant 9 : index
    %c0_292 = arith.constant 0 : index
    %261 = vector.load %arg9[%c9_291, %c0_292] : memref<32x128xf32, #tpu.memory_space<vmem>>, vector<4x128xf32>
    %c11_293 = arith.constant 11 : index
    %c2_294 = arith.constant 2 : index
    %c0_295 = arith.constant 0 : index
    %c0_296 = arith.constant 0 : index
    %262 = vector.load %arg3[%c11_293, %c2_294, %c0_295, %c0_296] : memref<25x4x128x128xf32, #tpu.memory_space<vmem>>, vector<1x1x128x128xf32>
    %263 = vector.shape_cast %262 : vector<1x1x128x128xf32> to vector<128x128xf32>
    %cst_297 = arith.constant dense<0.000000e+00> : vector<4x128xf32>
    %264 = tpu.matmul %261, %263, %cst_297 {dimension_numbers = #tpu.dot_dimension_numbers<[1], [0], [0], [1], [0, 0, 1, 1], [], []>} : vector<4x128xf32>, vector<128x128xf32>, vector<4x128xf32> -> vector<4x128xf32>
    %265 = arith.addf %260, %264 : vector<4x128xf32>
    %c11_298 = arith.constant 11 : index
    %c0_299 = arith.constant 0 : index
    %c0_300 = arith.constant 0 : index
    %266 = vector.load %arg4[%c11_298, %c0_299, %c0_300] : memref<25x1x128xf32, #tpu.memory_space<vmem>>, vector<1x1x128xf32>
    %267 = vector.shape_cast %266 : vector<1x1x128xf32> to vector<1x128xf32>
    %268 = vector.broadcast %267 : vector<1x128xf32> to vector<4x128xf32>
    %269 = arith.addf %265, %268 : vector<4x128xf32>
    %270 = tpu.iota {dimensions = array<i32: 1>} : vector<4x32xi32>
    %cst_301 = arith.constant 0.000000e+00 : f32
    %271 = vector.broadcast %cst_301 : f32 to vector<4x128xf32>
    %c0_302 = arith.constant 0 : index
    %c0_303 = arith.constant 0 : index
    %c0_304 = arith.constant 0 : index
    %272 = vector.load %arg2[%c0_302, %c0_303, %c0_304] : memref<2x32x128xf32, #tpu.memory_space<vmem>>, vector<1x32x128xf32>
    %273 = vector.shape_cast %272 : vector<1x32x128xf32> to vector<32x128xf32>
    %274 = tpu.transpose %273, [1, 0] : vector<32x128xf32> -> vector<128x32xf32>
    %cst_305 = arith.constant dense<0.000000e+00> : vector<4x32xf32>
    %275 = tpu.matmul %269, %274, %cst_305 {dimension_numbers = #tpu.dot_dimension_numbers<[1], [0], [0], [1], [0, 0, 1, 1], [], []>} : vector<4x128xf32>, vector<128x32xf32>, vector<4x32xf32> -> vector<4x32xf32>
    %276 = arith.mulf %273, %273 : vector<32x128xf32>
    %cst_306 = arith.constant dense<0.000000e+00> : vector<32xf32>
    %277 = vector.multi_reduction <add>, %276, %cst_306 [1] : vector<32x128xf32> to vector<32xf32>
    %278 = vector.shape_cast %277 : vector<32xf32> to vector<32x1xf32>
    %279 = tpu.transpose %278, [1, 0] : vector<32x1xf32> -> vector<1x32xf32>
    %cst_307 = arith.constant 2.000000e+00 : f32
    %280 = vector.broadcast %cst_307 : f32 to vector<4x32xf32>
    %281 = arith.mulf %280, %275 : vector<4x32xf32>
    %282 = vector.broadcast %279 : vector<1x32xf32> to vector<4x32xf32>
    %283 = arith.subf %282, %281 : vector<4x32xf32>
    %cst_308 = arith.constant dense<0x7F800000> : vector<4xf32>
    %284 = vector.multi_reduction <minimumf>, %283, %cst_308 [1] : vector<4x32xf32> to vector<4xf32>
    %285 = vector.shape_cast %284 : vector<4xf32> to vector<4x1xf32>
    %286 = vector.broadcast %285 : vector<4x1xf32> to vector<4x32xf32>
    %287 = arith.cmpf ole, %283, %286 : vector<4x32xf32>
    %c32_i32 = arith.constant 32 : i32
    %288 = vector.broadcast %c32_i32 : i32 to vector<4x32xi32>
    %289 = arith.select %287, %270, %288 : vector<4x32xi1>, vector<4x32xi32>
    %cst_309 = arith.constant dense<2147483647> : vector<4xi32>
    %290 = vector.multi_reduction <minsi>, %289, %cst_309 [1] : vector<4x32xi32> to vector<4xi32>
    %291 = vector.shape_cast %290 : vector<4xi32> to vector<4x1xi32>
    %292 = vector.broadcast %291 : vector<4x1xi32> to vector<4x32xi32>
    %293 = arith.cmpi eq, %270, %292 : vector<4x32xi32>
    %294 = arith.extui %293 : vector<4x32xi1> to vector<4x32xi32>
    %295 = arith.sitofp %294 : vector<4x32xi32> to vector<4x32xf32>
    %cst_310 = arith.constant dense<0.000000e+00> : vector<4x128xf32>
    %296 = tpu.matmul %295, %273, %cst_310 {dimension_numbers = #tpu.dot_dimension_numbers<[1], [0], [0], [1], [0, 0, 1, 1], [], []>} : vector<4x32xf32>, vector<32x128xf32>, vector<4x128xf32> -> vector<4x128xf32>
    %c0_311 = arith.constant 0 : index
    %c0_312 = arith.constant 0 : index
    %c0_313 = arith.constant 0 : index
    %297 = vector.load %arg6[%c0_311, %c0_312, %c0_313] : memref<1x4x2xi32, #tpu.memory_space<vmem>>, vector<1x4x1xi32>
    %298 = vector.shape_cast %297 : vector<1x4x1xi32> to vector<4x1xi32>
    %299 = vector.shape_cast %291 : vector<4x1xi32> to vector<1x4x1xi32>
    tpu.vector_store %arg6[%c0_311, %c0_312, %c0_313], %299 {strides = array<i32>} : memref<1x4x2xi32, #tpu.memory_space<vmem>>, vector<1x4x1xi32>,
    %300 = arith.subf %269, %296 : vector<4x128xf32>
    %301 = arith.mulf %300, %300 : vector<4x128xf32>
    %302 = vector.shape_cast %301 : vector<4x128xf32> to vector<1x4x128xf32>
    %cst_314 = arith.constant dense<0.000000e+00> : vector<1xf32>
    %303 = vector.multi_reduction <add>, %302, %cst_314 [1, 2] : vector<1x4x128xf32> to vector<1xf32>
    %304 = vector.shape_cast %303 : vector<1xf32> to vector<1x1x1xf32>
    %305 = vector.extract %304[0, 0, 0] : f32 from vector<1x1x1xf32>
    %306 = vector.broadcast %305 : f32 to vector<1x1xf32>
    %c0_315 = arith.constant 0 : index
    %c0_316 = arith.constant 0 : index
    %c0_317 = arith.constant 0 : index
    %307 = vector.load %arg7[%c0_315, %c0_316, %c0_317] : memref<1x2x1xf32, #tpu.memory_space<vmem>>, vector<1x1x1xf32>
    %308 = vector.shape_cast %307 : vector<1x1x1xf32> to vector<1x1xf32>
    %309 = vector.shape_cast %306 : vector<1x1xf32> to vector<1x1x1xf32>
    tpu.vector_store %arg7[%c0_315, %c0_316, %c0_317], %309 {strides = array<i32>} : memref<1x2x1xf32, #tpu.memory_space<vmem>>, vector<1x1x1xf32>,
    %cst_318 = arith.constant dense<0.000000e+00> : vector<32xf32>
    %310 = vector.multi_reduction <add>, %295, %cst_318 [0] : vector<4x32xf32> to vector<32xf32>
    %311 = vector.shape_cast %310 : vector<32xf32> to vector<1x32xf32>
    %c0_319 = arith.constant 0 : index
    %c0_320 = arith.constant 0 : index
    %c0_321 = arith.constant 0 : index
    %312 = vector.load %arg8[%c0_319, %c0_320, %c0_321] : memref<1x2x32xf32, #tpu.memory_space<vmem>>, vector<1x1x32xf32>
    %313 = vector.shape_cast %312 : vector<1x1x32xf32> to vector<1x32xf32>
    %314 = vector.shape_cast %311 : vector<1x32xf32> to vector<1x1x32xf32>
    tpu.vector_store %arg8[%c0_319, %c0_320, %c0_321], %314 {strides = array<i32>} : memref<1x2x32xf32, #tpu.memory_space<vmem>>, vector<1x1x32xf32>,
    %315 = arith.subf %269, %296 : vector<4x128xf32>
    %316 = arith.addf %271, %296 : vector<4x128xf32>
    %c1_322 = arith.constant 1 : index
    %c0_323 = arith.constant 0 : index
    %c0_324 = arith.constant 0 : index
    %317 = vector.load %arg2[%c1_322, %c0_323, %c0_324] : memref<2x32x128xf32, #tpu.memory_space<vmem>>, vector<1x32x128xf32>
    %318 = vector.shape_cast %317 : vector<1x32x128xf32> to vector<32x128xf32>
    %319 = tpu.transpose %318, [1, 0] : vector<32x128xf32> -> vector<128x32xf32>
    %cst_325 = arith.constant dense<0.000000e+00> : vector<4x32xf32>
    %320 = tpu.matmul %315, %319, %cst_325 {dimension_numbers = #tpu.dot_dimension_numbers<[1], [0], [0], [1], [0, 0, 1, 1], [], []>} : vector<4x128xf32>, vector<128x32xf32>, vector<4x32xf32> -> vector<4x32xf32>
    %321 = arith.mulf %318, %318 : vector<32x128xf32>
    %cst_326 = arith.constant dense<0.000000e+00> : vector<32xf32>
    %322 = vector.multi_reduction <add>, %321, %cst_326 [1] : vector<32x128xf32> to vector<32xf32>
    %323 = vector.shape_cast %322 : vector<32xf32> to vector<32x1xf32>
    %324 = tpu.transpose %323, [1, 0] : vector<32x1xf32> -> vector<1x32xf32>
    %cst_327 = arith.constant 2.000000e+00 : f32
    %325 = vector.broadcast %cst_327 : f32 to vector<4x32xf32>
    %326 = arith.mulf %325, %320 : vector<4x32xf32>
    %327 = vector.broadcast %324 : vector<1x32xf32> to vector<4x32xf32>
    %328 = arith.subf %327, %326 : vector<4x32xf32>
    %cst_328 = arith.constant dense<0x7F800000> : vector<4xf32>
    %329 = vector.multi_reduction <minimumf>, %328, %cst_328 [1] : vector<4x32xf32> to vector<4xf32>
    %330 = vector.shape_cast %329 : vector<4xf32> to vector<4x1xf32>
    %331 = vector.broadcast %330 : vector<4x1xf32> to vector<4x32xf32>
    %332 = arith.cmpf ole, %328, %331 : vector<4x32xf32>
    %c32_i32_329 = arith.constant 32 : i32
    %333 = vector.broadcast %c32_i32_329 : i32 to vector<4x32xi32>
    %334 = arith.select %332, %270, %333 : vector<4x32xi1>, vector<4x32xi32>
    %cst_330 = arith.constant dense<2147483647> : vector<4xi32>
    %335 = vector.multi_reduction <minsi>, %334, %cst_330 [1] : vector<4x32xi32> to vector<4xi32>
    %336 = vector.shape_cast %335 : vector<4xi32> to vector<4x1xi32>
    %337 = vector.broadcast %336 : vector<4x1xi32> to vector<4x32xi32>
    %338 = arith.cmpi eq, %270, %337 : vector<4x32xi32>
    %339 = arith.extui %338 : vector<4x32xi1> to vector<4x32xi32>
    %340 = arith.sitofp %339 : vector<4x32xi32> to vector<4x32xf32>
    %cst_331 = arith.constant dense<0.000000e+00> : vector<4x128xf32>
    %341 = tpu.matmul %340, %318, %cst_331 {dimension_numbers = #tpu.dot_dimension_numbers<[1], [0], [0], [1], [0, 0, 1, 1], [], []>} : vector<4x32xf32>, vector<32x128xf32>, vector<4x128xf32> -> vector<4x128xf32>
    %c0_332 = arith.constant 0 : index
    %c0_333 = arith.constant 0 : index
    %c1_334 = arith.constant 1 : index
    %342 = vector.load %arg6[%c0_332, %c0_333, %c1_334] : memref<1x4x2xi32, #tpu.memory_space<vmem>>, vector<1x4x1xi32>
    %343 = vector.shape_cast %342 : vector<1x4x1xi32> to vector<4x1xi32>
    %344 = vector.shape_cast %336 : vector<4x1xi32> to vector<1x4x1xi32>
    tpu.vector_store %arg6[%c0_332, %c0_333, %c1_334], %344 {strides = array<i32>} : memref<1x4x2xi32, #tpu.memory_space<vmem>>, vector<1x4x1xi32>,
    %345 = arith.subf %315, %341 : vector<4x128xf32>
    %346 = arith.mulf %345, %345 : vector<4x128xf32>
    %347 = vector.shape_cast %346 : vector<4x128xf32> to vector<1x4x128xf32>
    %cst_335 = arith.constant dense<0.000000e+00> : vector<1xf32>
    %348 = vector.multi_reduction <add>, %347, %cst_335 [1, 2] : vector<1x4x128xf32> to vector<1xf32>
    %349 = vector.shape_cast %348 : vector<1xf32> to vector<1x1x1xf32>
    %350 = vector.extract %349[0, 0, 0] : f32 from vector<1x1x1xf32>
    %351 = vector.broadcast %350 : f32 to vector<1x1xf32>
    %c0_336 = arith.constant 0 : index
    %c1_337 = arith.constant 1 : index
    %c0_338 = arith.constant 0 : index
    %352 = vector.load %arg7[%c0_336, %c1_337, %c0_338] : memref<1x2x1xf32, #tpu.memory_space<vmem>>, vector<1x1x1xf32>
    %353 = vector.shape_cast %352 : vector<1x1x1xf32> to vector<1x1xf32>
    %354 = vector.shape_cast %351 : vector<1x1xf32> to vector<1x1x1xf32>
    tpu.vector_store %arg7[%c0_336, %c1_337, %c0_338], %354 {strides = array<i32>} : memref<1x2x1xf32, #tpu.memory_space<vmem>>, vector<1x1x1xf32>,
    %cst_339 = arith.constant dense<0.000000e+00> : vector<32xf32>
    %355 = vector.multi_reduction <add>, %340, %cst_339 [0] : vector<4x32xf32> to vector<32xf32>
    %356 = vector.shape_cast %355 : vector<32xf32> to vector<1x32xf32>
    %c0_340 = arith.constant 0 : index
    %c1_341 = arith.constant 1 : index
    %c0_342 = arith.constant 0 : index
    %357 = vector.load %arg8[%c0_340, %c1_341, %c0_342] : memref<1x2x32xf32, #tpu.memory_space<vmem>>, vector<1x1x32xf32>
    %358 = vector.shape_cast %357 : vector<1x1x32xf32> to vector<1x32xf32>
    %359 = vector.shape_cast %356 : vector<1x32xf32> to vector<1x1x32xf32>
    tpu.vector_store %arg8[%c0_340, %c1_341, %c0_342], %359 {strides = array<i32>} : memref<1x2x32xf32, #tpu.memory_space<vmem>>, vector<1x1x32xf32>,
    %360 = arith.addf %316, %341 : vector<4x128xf32>
    %cst_343 = arith.constant 0.000000e+00 : f32
    %361 = vector.broadcast %cst_343 : f32 to vector<1x128xf32>
    %c7_344 = arith.constant 7 : index
    %c0_345 = arith.constant 0 : index
    %362 = vector.load %arg9[%c7_344, %c0_345] : memref<32x128xf32, #tpu.memory_space<vmem>>, vector<1x128xf32>
    tpu.vector_store %arg9[%c7_344, %c0_345], %361 {strides = array<i32>} : memref<32x128xf32, #tpu.memory_space<vmem>>, vector<1x128xf32>,
    %c12_346 = arith.constant 12 : index
    %c0_347 = arith.constant 0 : index
    %363 = vector.load %arg9[%c12_346, %c0_347] : memref<32x128xf32, #tpu.memory_space<vmem>>, vector<1x128xf32>
    tpu.vector_store %arg9[%c12_346, %c0_347], %361 {strides = array<i32>} : memref<32x128xf32, #tpu.memory_space<vmem>>, vector<1x128xf32>,
    %c8_348 = arith.constant 8 : index
    %c0_349 = arith.constant 0 : index
    %364 = vector.load %arg9[%c8_348, %c0_349] : memref<32x128xf32, #tpu.memory_space<vmem>>, vector<4x128xf32>
    tpu.vector_store %arg9[%c8_348, %c0_349], %360 {strides = array<i32>} : memref<32x128xf32, #tpu.memory_space<vmem>>, vector<4x128xf32>,
    %cst_350 = arith.constant 0.000000e+00 : f32
    %365 = vector.broadcast %cst_350 : f32 to vector<4x128xf32>
    %c7_351 = arith.constant 7 : index
    %c0_352 = arith.constant 0 : index
    %366 = vector.load %arg9[%c7_351, %c0_352] : memref<32x128xf32, #tpu.memory_space<vmem>>, vector<4x128xf32>
    %c12_353 = arith.constant 12 : index
    %c0_354 = arith.constant 0 : index
    %c0_355 = arith.constant 0 : index
    %c0_356 = arith.constant 0 : index
    %367 = vector.load %arg3[%c12_353, %c0_354, %c0_355, %c0_356] : memref<25x4x128x128xf32, #tpu.memory_space<vmem>>, vector<1x1x128x128xf32>
    %368 = vector.shape_cast %367 : vector<1x1x128x128xf32> to vector<128x128xf32>
    %cst_357 = arith.constant dense<0.000000e+00> : vector<4x128xf32>
    %369 = tpu.matmul %366, %368, %cst_357 {dimension_numbers = #tpu.dot_dimension_numbers<[1], [0], [0], [1], [0, 0, 1, 1], [], []>} : vector<4x128xf32>, vector<128x128xf32>, vector<4x128xf32> -> vector<4x128xf32>
    %370 = arith.addf %365, %369 : vector<4x128xf32>
    %c8_358 = arith.constant 8 : index
    %c0_359 = arith.constant 0 : index
    %371 = vector.load %arg9[%c8_358, %c0_359] : memref<32x128xf32, #tpu.memory_space<vmem>>, vector<4x128xf32>
    %c12_360 = arith.constant 12 : index
    %c1_361 = arith.constant 1 : index
    %c0_362 = arith.constant 0 : index
    %c0_363 = arith.constant 0 : index
    %372 = vector.load %arg3[%c12_360, %c1_361, %c0_362, %c0_363] : memref<25x4x128x128xf32, #tpu.memory_space<vmem>>, vector<1x1x128x128xf32>
    %373 = vector.shape_cast %372 : vector<1x1x128x128xf32> to vector<128x128xf32>
    %cst_364 = arith.constant dense<0.000000e+00> : vector<4x128xf32>
    %374 = tpu.matmul %371, %373, %cst_364 {dimension_numbers = #tpu.dot_dimension_numbers<[1], [0], [0], [1], [0, 0, 1, 1], [], []>} : vector<4x128xf32>, vector<128x128xf32>, vector<4x128xf32> -> vector<4x128xf32>
    %375 = arith.addf %370, %374 : vector<4x128xf32>
    %c9_365 = arith.constant 9 : index
    %c0_366 = arith.constant 0 : index
    %376 = vector.load %arg9[%c9_365, %c0_366] : memref<32x128xf32, #tpu.memory_space<vmem>>, vector<4x128xf32>
    %c12_367 = arith.constant 12 : index
    %c2_368 = arith.constant 2 : index
    %c0_369 = arith.constant 0 : index
    %c0_370 = arith.constant 0 : index
    %377 = vector.load %arg3[%c12_367, %c2_368, %c0_369, %c0_370] : memref<25x4x128x128xf32, #tpu.memory_space<vmem>>, vector<1x1x128x128xf32>
    %378 = vector.shape_cast %377 : vector<1x1x128x128xf32> to vector<128x128xf32>
    %cst_371 = arith.constant dense<0.000000e+00> : vector<4x128xf32>
    %379 = tpu.matmul %376, %378, %cst_371 {dimension_numbers = #tpu.dot_dimension_numbers<[1], [0], [0], [1], [0, 0, 1, 1], [], []>} : vector<4x128xf32>, vector<128x128xf32>, vector<4x128xf32> -> vector<4x128xf32>
    %380 = arith.addf %375, %379 : vector<4x128xf32>
    %c12_372 = arith.constant 12 : index
    %c0_373 = arith.constant 0 : index
    %c0_374 = arith.constant 0 : index
    %381 = vector.load %arg4[%c12_372, %c0_373, %c0_374] : memref<25x1x128xf32, #tpu.memory_space<vmem>>, vector<1x1x128xf32>
    %382 = vector.shape_cast %381 : vector<1x1x128xf32> to vector<1x128xf32>
    %383 = vector.broadcast %382 : vector<1x128xf32> to vector<4x128xf32>
    %384 = arith.addf %380, %383 : vector<4x128xf32>
    %cst_375 = arith.constant 0.000000e+00 : f32
    %385 = vector.broadcast %cst_375 : f32 to vector<4x128xf32>
    %386 = arith.maximumf %384, %385 : vector<4x128xf32>
    %cst_376 = arith.constant 0.000000e+00 : f32
    %387 = vector.broadcast %cst_376 : f32 to vector<4x128xf32>
    %388 = arith.maximumf %386, %387 : vector<4x128xf32>
    %cst_377 = arith.constant 0.000000e+00 : f32
    %389 = vector.broadcast %cst_377 : f32 to vector<3x128xf32>
    %c5_378 = arith.constant 5 : index
    %c0_379 = arith.constant 0 : index
    %390 = vector.load %arg9[%c5_378, %c0_379] : memref<32x128xf32, #tpu.memory_space<vmem>>, vector<3x128xf32>
    tpu.vector_store %arg9[%c5_378, %c0_379], %389 {strides = array<i32>} : memref<32x128xf32, #tpu.memory_space<vmem>>, vector<3x128xf32>,
    %c12_380 = arith.constant 12 : index
    %c0_381 = arith.constant 0 : index
    %391 = vector.load %arg9[%c12_380, %c0_381] : memref<32x128xf32, #tpu.memory_space<vmem>>, vector<3x128xf32>
    tpu.vector_store %arg9[%c12_380, %c0_381], %389 {strides = array<i32>} : memref<32x128xf32, #tpu.memory_space<vmem>>, vector<3x128xf32>,
    %c8_382 = arith.constant 8 : index
    %c0_383 = arith.constant 0 : index
    %392 = vector.load %arg9[%c8_382, %c0_383] : memref<32x128xf32, #tpu.memory_space<vmem>>, vector<4x128xf32>
    tpu.vector_store %arg9[%c8_382, %c0_383], %388 {strides = array<i32>} : memref<32x128xf32, #tpu.memory_space<vmem>>, vector<4x128xf32>,
    %cst_384 = arith.constant 0.000000e+00 : f32
    %393 = vector.broadcast %cst_384 : f32 to vector<4x128xf32>
    %c5_385 = arith.constant 5 : index
    %c0_386 = arith.constant 0 : index
    %394 = vector.load %arg9[%c5_385, %c0_386] : memref<32x128xf32, #tpu.memory_space<vmem>>, vector<4x128xf32>
    %c13 = arith.constant 13 : index
    %c0_387 = arith.constant 0 : index
    %c0_388 = arith.constant 0 : index
    %c0_389 = arith.constant 0 : index
    %395 = vector.load %arg3[%c13, %c0_387, %c0_388, %c0_389] : memref<25x4x128x128xf32, #tpu.memory_space<vmem>>, vector<1x1x128x128xf32>
    %396 = vector.shape_cast %395 : vector<1x1x128x128xf32> to vector<128x128xf32>
    %cst_390 = arith.constant dense<0.000000e+00> : vector<4x128xf32>
    %397 = tpu.matmul %394, %396, %cst_390 {dimension_numbers = #tpu.dot_dimension_numbers<[1], [0], [0], [1], [0, 0, 1, 1], [], []>} : vector<4x128xf32>, vector<128x128xf32>, vector<4x128xf32> -> vector<4x128xf32>
    %398 = arith.addf %393, %397 : vector<4x128xf32>
    %c8_391 = arith.constant 8 : index
    %c0_392 = arith.constant 0 : index
    %399 = vector.load %arg9[%c8_391, %c0_392] : memref<32x128xf32, #tpu.memory_space<vmem>>, vector<4x128xf32>
    %c13_393 = arith.constant 13 : index
    %c1_394 = arith.constant 1 : index
    %c0_395 = arith.constant 0 : index
    %c0_396 = arith.constant 0 : index
    %400 = vector.load %arg3[%c13_393, %c1_394, %c0_395, %c0_396] : memref<25x4x128x128xf32, #tpu.memory_space<vmem>>, vector<1x1x128x128xf32>
    %401 = vector.shape_cast %400 : vector<1x1x128x128xf32> to vector<128x128xf32>
    %cst_397 = arith.constant dense<0.000000e+00> : vector<4x128xf32>
    %402 = tpu.matmul %399, %401, %cst_397 {dimension_numbers = #tpu.dot_dimension_numbers<[1], [0], [0], [1], [0, 0, 1, 1], [], []>} : vector<4x128xf32>, vector<128x128xf32>, vector<4x128xf32> -> vector<4x128xf32>
    %403 = arith.addf %398, %402 : vector<4x128xf32>
    %c11_398 = arith.constant 11 : index
    %c0_399 = arith.constant 0 : index
    %404 = vector.load %arg9[%c11_398, %c0_399] : memref<32x128xf32, #tpu.memory_space<vmem>>, vector<4x128xf32>
    %c13_400 = arith.constant 13 : index
    %c2_401 = arith.constant 2 : index
    %c0_402 = arith.constant 0 : index
    %c0_403 = arith.constant 0 : index
    %405 = vector.load %arg3[%c13_400, %c2_401, %c0_402, %c0_403] : memref<25x4x128x128xf32, #tpu.memory_space<vmem>>, vector<1x1x128x128xf32>
    %406 = vector.shape_cast %405 : vector<1x1x128x128xf32> to vector<128x128xf32>
    %cst_404 = arith.constant dense<0.000000e+00> : vector<4x128xf32>
    %407 = tpu.matmul %404, %406, %cst_404 {dimension_numbers = #tpu.dot_dimension_numbers<[1], [0], [0], [1], [0, 0, 1, 1], [], []>} : vector<4x128xf32>, vector<128x128xf32>, vector<4x128xf32> -> vector<4x128xf32>
    %408 = arith.addf %403, %407 : vector<4x128xf32>
    %c13_405 = arith.constant 13 : index
    %c0_406 = arith.constant 0 : index
    %c0_407 = arith.constant 0 : index
    %409 = vector.load %arg4[%c13_405, %c0_406, %c0_407] : memref<25x1x128xf32, #tpu.memory_space<vmem>>, vector<1x1x128xf32>
    %410 = vector.shape_cast %409 : vector<1x1x128xf32> to vector<1x128xf32>
    %411 = vector.broadcast %410 : vector<1x128xf32> to vector<4x128xf32>
    %412 = arith.addf %408, %411 : vector<4x128xf32>
    %cst_408 = arith.constant 0.000000e+00 : f32
    %413 = vector.broadcast %cst_408 : f32 to vector<4x128xf32>
    %414 = arith.maximumf %412, %413 : vector<4x128xf32>
    %c14 = arith.constant 14 : index
    %c0_409 = arith.constant 0 : index
    %c0_410 = arith.constant 0 : index
    %c0_411 = arith.constant 0 : index
    %415 = vector.load %arg3[%c14, %c0_409, %c0_410, %c0_411] : memref<25x4x128x128xf32, #tpu.memory_space<vmem>>, vector<1x1x128x128xf32>
    %416 = vector.shape_cast %415 : vector<1x1x128x128xf32> to vector<128x128xf32>
    %cst_412 = arith.constant dense<0.000000e+00> : vector<4x128xf32>
    %417 = tpu.matmul %414, %416, %cst_412 {dimension_numbers = #tpu.dot_dimension_numbers<[1], [0], [0], [1], [0, 0, 1, 1], [], []>} : vector<4x128xf32>, vector<128x128xf32>, vector<4x128xf32> -> vector<4x128xf32>
    %c14_413 = arith.constant 14 : index
    %c0_414 = arith.constant 0 : index
    %c0_415 = arith.constant 0 : index
    %418 = vector.load %arg4[%c14_413, %c0_414, %c0_415] : memref<25x1x128xf32, #tpu.memory_space<vmem>>, vector<1x1x128xf32>
    %419 = vector.shape_cast %418 : vector<1x1x128xf32> to vector<1x128xf32>
    %420 = vector.broadcast %419 : vector<1x128xf32> to vector<4x128xf32>
    %421 = arith.addf %417, %420 : vector<4x128xf32>
    %422 = arith.addf %386, %421 : vector<4x128xf32>
    %cst_416 = arith.constant 0.000000e+00 : f32
    %423 = vector.broadcast %cst_416 : f32 to vector<4x128xf32>
    %424 = arith.maximumf %422, %423 : vector<4x128xf32>
    %cst_417 = arith.constant 0.000000e+00 : f32
    %425 = vector.broadcast %cst_417 : f32 to vector<1x128xf32>
    %c7_418 = arith.constant 7 : index
    %c0_419 = arith.constant 0 : index
    %426 = vector.load %arg9[%c7_418, %c0_419] : memref<32x128xf32, #tpu.memory_space<vmem>>, vector<1x128xf32>
    tpu.vector_store %arg9[%c7_418, %c0_419], %425 {strides = array<i32>} : memref<32x128xf32, #tpu.memory_space<vmem>>, vector<1x128xf32>,
    %c12_420 = arith.constant 12 : index
    %c0_421 = arith.constant 0 : index
    %427 = vector.load %arg9[%c12_420, %c0_421] : memref<32x128xf32, #tpu.memory_space<vmem>>, vector<1x128xf32>
    tpu.vector_store %arg9[%c12_420, %c0_421], %425 {strides = array<i32>} : memref<32x128xf32, #tpu.memory_space<vmem>>, vector<1x128xf32>,
    %c8_422 = arith.constant 8 : index
    %c0_423 = arith.constant 0 : index
    %428 = vector.load %arg9[%c8_422, %c0_423] : memref<32x128xf32, #tpu.memory_space<vmem>>, vector<4x128xf32>
    tpu.vector_store %arg9[%c8_422, %c0_423], %424 {strides = array<i32>} : memref<32x128xf32, #tpu.memory_space<vmem>>, vector<4x128xf32>,
    %cst_424 = arith.constant 0.000000e+00 : f32
    %429 = vector.broadcast %cst_424 : f32 to vector<4x128xf32>
    %c7_425 = arith.constant 7 : index
    %c0_426 = arith.constant 0 : index
    %430 = vector.load %arg9[%c7_425, %c0_426] : memref<32x128xf32, #tpu.memory_space<vmem>>, vector<4x128xf32>
    %c15 = arith.constant 15 : index
    %c0_427 = arith.constant 0 : index
    %c0_428 = arith.constant 0 : index
    %c0_429 = arith.constant 0 : index
    %431 = vector.load %arg3[%c15, %c0_427, %c0_428, %c0_429] : memref<25x4x128x128xf32, #tpu.memory_space<vmem>>, vector<1x1x128x128xf32>
    %432 = vector.shape_cast %431 : vector<1x1x128x128xf32> to vector<128x128xf32>
    %cst_430 = arith.constant dense<0.000000e+00> : vector<4x128xf32>
    %433 = tpu.matmul %430, %432, %cst_430 {dimension_numbers = #tpu.dot_dimension_numbers<[1], [0], [0], [1], [0, 0, 1, 1], [], []>} : vector<4x128xf32>, vector<128x128xf32>, vector<4x128xf32> -> vector<4x128xf32>
    %434 = arith.addf %429, %433 : vector<4x128xf32>
    %c8_431 = arith.constant 8 : index
    %c0_432 = arith.constant 0 : index
    %435 = vector.load %arg9[%c8_431, %c0_432] : memref<32x128xf32, #tpu.memory_space<vmem>>, vector<4x128xf32>
    %c15_433 = arith.constant 15 : index
    %c1_434 = arith.constant 1 : index
    %c0_435 = arith.constant 0 : index
    %c0_436 = arith.constant 0 : index
    %436 = vector.load %arg3[%c15_433, %c1_434, %c0_435, %c0_436] : memref<25x4x128x128xf32, #tpu.memory_space<vmem>>, vector<1x1x128x128xf32>
    %437 = vector.shape_cast %436 : vector<1x1x128x128xf32> to vector<128x128xf32>
    %cst_437 = arith.constant dense<0.000000e+00> : vector<4x128xf32>
    %438 = tpu.matmul %435, %437, %cst_437 {dimension_numbers = #tpu.dot_dimension_numbers<[1], [0], [0], [1], [0, 0, 1, 1], [], []>} : vector<4x128xf32>, vector<128x128xf32>, vector<4x128xf32> -> vector<4x128xf32>
    %439 = arith.addf %434, %438 : vector<4x128xf32>
    %c9_438 = arith.constant 9 : index
    %c0_439 = arith.constant 0 : index
    %440 = vector.load %arg9[%c9_438, %c0_439] : memref<32x128xf32, #tpu.memory_space<vmem>>, vector<4x128xf32>
    %c15_440 = arith.constant 15 : index
    %c2_441 = arith.constant 2 : index
    %c0_442 = arith.constant 0 : index
    %c0_443 = arith.constant 0 : index
    %441 = vector.load %arg3[%c15_440, %c2_441, %c0_442, %c0_443] : memref<25x4x128x128xf32, #tpu.memory_space<vmem>>, vector<1x1x128x128xf32>
    %442 = vector.shape_cast %441 : vector<1x1x128x128xf32> to vector<128x128xf32>
    %cst_444 = arith.constant dense<0.000000e+00> : vector<4x128xf32>
    %443 = tpu.matmul %440, %442, %cst_444 {dimension_numbers = #tpu.dot_dimension_numbers<[1], [0], [0], [1], [0, 0, 1, 1], [], []>} : vector<4x128xf32>, vector<128x128xf32>, vector<4x128xf32> -> vector<4x128xf32>
    %444 = arith.addf %439, %443 : vector<4x128xf32>
    %c15_445 = arith.constant 15 : index
    %c0_446 = arith.constant 0 : index
    %c0_447 = arith.constant 0 : index
    %445 = vector.load %arg4[%c15_445, %c0_446, %c0_447] : memref<25x1x128xf32, #tpu.memory_space<vmem>>, vector<1x1x128xf32>
    %446 = vector.shape_cast %445 : vector<1x1x128xf32> to vector<1x128xf32>
    %447 = vector.broadcast %446 : vector<1x128xf32> to vector<4x128xf32>
    %448 = arith.addf %444, %447 : vector<4x128xf32>
    %cst_448 = arith.constant 0.000000e+00 : f32
    %449 = vector.broadcast %cst_448 : f32 to vector<4x128xf32>
    %450 = arith.maximumf %448, %449 : vector<4x128xf32>
    %c16_449 = arith.constant 16 : index
    %c0_450 = arith.constant 0 : index
    %c0_451 = arith.constant 0 : index
    %c0_452 = arith.constant 0 : index
    %451 = vector.load %arg3[%c16_449, %c0_450, %c0_451, %c0_452] : memref<25x4x128x128xf32, #tpu.memory_space<vmem>>, vector<1x1x128x128xf32>
    %452 = vector.shape_cast %451 : vector<1x1x128x128xf32> to vector<128x128xf32>
    %cst_453 = arith.constant dense<0.000000e+00> : vector<4x128xf32>
    %453 = tpu.matmul %450, %452, %cst_453 {dimension_numbers = #tpu.dot_dimension_numbers<[1], [0], [0], [1], [0, 0, 1, 1], [], []>} : vector<4x128xf32>, vector<128x128xf32>, vector<4x128xf32> -> vector<4x128xf32>
    %c16_454 = arith.constant 16 : index
    %c0_455 = arith.constant 0 : index
    %c0_456 = arith.constant 0 : index
    %454 = vector.load %arg4[%c16_454, %c0_455, %c0_456] : memref<25x1x128xf32, #tpu.memory_space<vmem>>, vector<1x1x128xf32>
    %455 = vector.shape_cast %454 : vector<1x1x128xf32> to vector<1x128xf32>
    %456 = vector.broadcast %455 : vector<1x128xf32> to vector<4x128xf32>
    %457 = arith.addf %453, %456 : vector<4x128xf32>
    %458 = arith.addf %422, %457 : vector<4x128xf32>
    %459 = tpu.iota {dimensions = array<i32: 0>} : vector<8x4xi32>
    %460 = tpu.iota {dimensions = array<i32: 1>} : vector<8x4xi32>
    %c2_i32_457 = arith.constant 2 : i32
    %461 = vector.broadcast %c2_i32_457 : i32 to vector<8x4xi32>
    %462 = arith.muli %461, %460 : vector<8x4xi32>
    %463 = arith.cmpi eq, %459, %462 : vector<8x4xi32>
    %c2_i32_458 = arith.constant 2 : i32
    %464 = vector.broadcast %c2_i32_458 : i32 to vector<8x4xi32>
    %465 = arith.muli %464, %460 : vector<8x4xi32>
    %c1_i32 = arith.constant 1 : i32
    %466 = vector.broadcast %c1_i32 : i32 to vector<8x4xi32>
    %467 = arith.addi %465, %466 : vector<8x4xi32>
    %468 = arith.cmpi eq, %459, %467 : vector<8x4xi32>
    %469 = arith.ori %463, %468 : vector<8x4xi1>
    %470 = arith.extui %469 : vector<8x4xi1> to vector<8x4xi32>
    %471 = arith.sitofp %470 : vector<8x4xi32> to vector<8x4xf32>
    %cst_459 = arith.constant dense<0.000000e+00> : vector<8x128xf32>
    %472 = tpu.matmul %471, %458, %cst_459 {dimension_numbers = #tpu.dot_dimension_numbers<[1], [0], [0], [1], [0, 0, 1, 1], [], []>} : vector<8x4xf32>, vector<4x128xf32>, vector<8x128xf32> -> vector<8x128xf32>
    %cst_460 = arith.constant 0.000000e+00 : f32
    %473 = vector.broadcast %cst_460 : f32 to vector<1x128xf32>
    %c7_461 = arith.constant 7 : index
    %c0_462 = arith.constant 0 : index
    %474 = vector.load %arg9[%c7_461, %c0_462] : memref<32x128xf32, #tpu.memory_space<vmem>>, vector<1x128xf32>
    tpu.vector_store %arg9[%c7_461, %c0_462], %473 {strides = array<i32>} : memref<32x128xf32, #tpu.memory_space<vmem>>, vector<1x128xf32>,
    %c16_463 = arith.constant 16 : index
    %c0_464 = arith.constant 0 : index
    %475 = vector.load %arg9[%c16_463, %c0_464] : memref<32x128xf32, #tpu.memory_space<vmem>>, vector<1x128xf32>
    tpu.vector_store %arg9[%c16_463, %c0_464], %473 {strides = array<i32>} : memref<32x128xf32, #tpu.memory_space<vmem>>, vector<1x128xf32>,
    %c8_465 = arith.constant 8 : index
    %c0_466 = arith.constant 0 : index
    %476 = vector.load %arg9[%c8_465, %c0_466] : memref<32x128xf32, #tpu.memory_space<vmem>>, vector<8x128xf32>
    tpu.vector_store %arg9[%c8_465, %c0_466], %472 {strides = array<i32>} : memref<32x128xf32, #tpu.memory_space<vmem>>, vector<8x128xf32>,
    %cst_467 = arith.constant 0.000000e+00 : f32
    %477 = vector.broadcast %cst_467 : f32 to vector<8x128xf32>
    %c7_468 = arith.constant 7 : index
    %c0_469 = arith.constant 0 : index
    %478 = vector.load %arg9[%c7_468, %c0_469] : memref<32x128xf32, #tpu.memory_space<vmem>>, vector<8x128xf32>
    %c17 = arith.constant 17 : index
    %c0_470 = arith.constant 0 : index
    %c0_471 = arith.constant 0 : index
    %c0_472 = arith.constant 0 : index
    %479 = vector.load %arg3[%c17, %c0_470, %c0_471, %c0_472] : memref<25x4x128x128xf32, #tpu.memory_space<vmem>>, vector<1x1x128x128xf32>
    %480 = vector.shape_cast %479 : vector<1x1x128x128xf32> to vector<128x128xf32>
    %cst_473 = arith.constant dense<0.000000e+00> : vector<8x128xf32>
    %481 = tpu.matmul %478, %480, %cst_473 {dimension_numbers = #tpu.dot_dimension_numbers<[1], [0], [0], [1], [0, 0, 1, 1], [], []>} : vector<8x128xf32>, vector<128x128xf32>, vector<8x128xf32> -> vector<8x128xf32>
    %482 = arith.addf %477, %481 : vector<8x128xf32>
    %c8_474 = arith.constant 8 : index
    %c0_475 = arith.constant 0 : index
    %483 = vector.load %arg9[%c8_474, %c0_475] : memref<32x128xf32, #tpu.memory_space<vmem>>, vector<8x128xf32>
    %c17_476 = arith.constant 17 : index
    %c1_477 = arith.constant 1 : index
    %c0_478 = arith.constant 0 : index
    %c0_479 = arith.constant 0 : index
    %484 = vector.load %arg3[%c17_476, %c1_477, %c0_478, %c0_479] : memref<25x4x128x128xf32, #tpu.memory_space<vmem>>, vector<1x1x128x128xf32>
    %485 = vector.shape_cast %484 : vector<1x1x128x128xf32> to vector<128x128xf32>
    %cst_480 = arith.constant dense<0.000000e+00> : vector<8x128xf32>
    %486 = tpu.matmul %483, %485, %cst_480 {dimension_numbers = #tpu.dot_dimension_numbers<[1], [0], [0], [1], [0, 0, 1, 1], [], []>} : vector<8x128xf32>, vector<128x128xf32>, vector<8x128xf32> -> vector<8x128xf32>
    %487 = arith.addf %482, %486 : vector<8x128xf32>
    %c9_481 = arith.constant 9 : index
    %c0_482 = arith.constant 0 : index
    %488 = vector.load %arg9[%c9_481, %c0_482] : memref<32x128xf32, #tpu.memory_space<vmem>>, vector<8x128xf32>
    %c17_483 = arith.constant 17 : index
    %c2_484 = arith.constant 2 : index
    %c0_485 = arith.constant 0 : index
    %c0_486 = arith.constant 0 : index
    %489 = vector.load %arg3[%c17_483, %c2_484, %c0_485, %c0_486] : memref<25x4x128x128xf32, #tpu.memory_space<vmem>>, vector<1x1x128x128xf32>
    %490 = vector.shape_cast %489 : vector<1x1x128x128xf32> to vector<128x128xf32>
    %cst_487 = arith.constant dense<0.000000e+00> : vector<8x128xf32>
    %491 = tpu.matmul %488, %490, %cst_487 {dimension_numbers = #tpu.dot_dimension_numbers<[1], [0], [0], [1], [0, 0, 1, 1], [], []>} : vector<8x128xf32>, vector<128x128xf32>, vector<8x128xf32> -> vector<8x128xf32>
    %492 = arith.addf %487, %491 : vector<8x128xf32>
    %c17_488 = arith.constant 17 : index
    %c0_489 = arith.constant 0 : index
    %c0_490 = arith.constant 0 : index
    %493 = vector.load %arg4[%c17_488, %c0_489, %c0_490] : memref<25x1x128xf32, #tpu.memory_space<vmem>>, vector<1x1x128xf32>
    %494 = vector.shape_cast %493 : vector<1x1x128xf32> to vector<1x128xf32>
    %495 = vector.broadcast %494 : vector<1x128xf32> to vector<8x128xf32>
    %496 = arith.addf %492, %495 : vector<8x128xf32>
    %cst_491 = arith.constant 0.000000e+00 : f32
    %497 = vector.broadcast %cst_491 : f32 to vector<8x128xf32>
    %498 = arith.maximumf %496, %497 : vector<8x128xf32>
    %cst_492 = arith.constant 0.000000e+00 : f32
    %499 = vector.broadcast %cst_492 : f32 to vector<3x128xf32>
    %c5_493 = arith.constant 5 : index
    %c0_494 = arith.constant 0 : index
    %500 = vector.load %arg9[%c5_493, %c0_494] : memref<32x128xf32, #tpu.memory_space<vmem>>, vector<3x128xf32>
    tpu.vector_store %arg9[%c5_493, %c0_494], %499 {strides = array<i32>} : memref<32x128xf32, #tpu.memory_space<vmem>>, vector<3x128xf32>,
    %c16_495 = arith.constant 16 : index
    %c0_496 = arith.constant 0 : index
    %501 = vector.load %arg9[%c16_495, %c0_496] : memref<32x128xf32, #tpu.memory_space<vmem>>, vector<3x128xf32>
    tpu.vector_store %arg9[%c16_495, %c0_496], %499 {strides = array<i32>} : memref<32x128xf32, #tpu.memory_space<vmem>>, vector<3x128xf32>,
    %c8_497 = arith.constant 8 : index
    %c0_498 = arith.constant 0 : index
    %502 = vector.load %arg9[%c8_497, %c0_498] : memref<32x128xf32, #tpu.memory_space<vmem>>, vector<8x128xf32>
    tpu.vector_store %arg9[%c8_497, %c0_498], %498 {strides = array<i32>} : memref<32x128xf32, #tpu.memory_space<vmem>>, vector<8x128xf32>,
    %cst_499 = arith.constant 0.000000e+00 : f32
    %503 = vector.broadcast %cst_499 : f32 to vector<8x128xf32>
    %c5_500 = arith.constant 5 : index
    %c0_501 = arith.constant 0 : index
    %504 = vector.load %arg9[%c5_500, %c0_501] : memref<32x128xf32, #tpu.memory_space<vmem>>, vector<8x128xf32>
    %c18 = arith.constant 18 : index
    %c0_502 = arith.constant 0 : index
    %c0_503 = arith.constant 0 : index
    %c0_504 = arith.constant 0 : index
    %505 = vector.load %arg3[%c18, %c0_502, %c0_503, %c0_504] : memref<25x4x128x128xf32, #tpu.memory_space<vmem>>, vector<1x1x128x128xf32>
    %506 = vector.shape_cast %505 : vector<1x1x128x128xf32> to vector<128x128xf32>
    %cst_505 = arith.constant dense<0.000000e+00> : vector<8x128xf32>
    %507 = tpu.matmul %504, %506, %cst_505 {dimension_numbers = #tpu.dot_dimension_numbers<[1], [0], [0], [1], [0, 0, 1, 1], [], []>} : vector<8x128xf32>, vector<128x128xf32>, vector<8x128xf32> -> vector<8x128xf32>
    %508 = arith.addf %503, %507 : vector<8x128xf32>
    %c8_506 = arith.constant 8 : index
    %c0_507 = arith.constant 0 : index
    %509 = vector.load %arg9[%c8_506, %c0_507] : memref<32x128xf32, #tpu.memory_space<vmem>>, vector<8x128xf32>
    %c18_508 = arith.constant 18 : index
    %c1_509 = arith.constant 1 : index
    %c0_510 = arith.constant 0 : index
    %c0_511 = arith.constant 0 : index
    %510 = vector.load %arg3[%c18_508, %c1_509, %c0_510, %c0_511] : memref<25x4x128x128xf32, #tpu.memory_space<vmem>>, vector<1x1x128x128xf32>
    %511 = vector.shape_cast %510 : vector<1x1x128x128xf32> to vector<128x128xf32>
    %cst_512 = arith.constant dense<0.000000e+00> : vector<8x128xf32>
    %512 = tpu.matmul %509, %511, %cst_512 {dimension_numbers = #tpu.dot_dimension_numbers<[1], [0], [0], [1], [0, 0, 1, 1], [], []>} : vector<8x128xf32>, vector<128x128xf32>, vector<8x128xf32> -> vector<8x128xf32>
    %513 = arith.addf %508, %512 : vector<8x128xf32>
    %c11_513 = arith.constant 11 : index
    %c0_514 = arith.constant 0 : index
    %514 = vector.load %arg9[%c11_513, %c0_514] : memref<32x128xf32, #tpu.memory_space<vmem>>, vector<8x128xf32>
    %c18_515 = arith.constant 18 : index
    %c2_516 = arith.constant 2 : index
    %c0_517 = arith.constant 0 : index
    %c0_518 = arith.constant 0 : index
    %515 = vector.load %arg3[%c18_515, %c2_516, %c0_517, %c0_518] : memref<25x4x128x128xf32, #tpu.memory_space<vmem>>, vector<1x1x128x128xf32>
    %516 = vector.shape_cast %515 : vector<1x1x128x128xf32> to vector<128x128xf32>
    %cst_519 = arith.constant dense<0.000000e+00> : vector<8x128xf32>
    %517 = tpu.matmul %514, %516, %cst_519 {dimension_numbers = #tpu.dot_dimension_numbers<[1], [0], [0], [1], [0, 0, 1, 1], [], []>} : vector<8x128xf32>, vector<128x128xf32>, vector<8x128xf32> -> vector<8x128xf32>
    %518 = arith.addf %513, %517 : vector<8x128xf32>
    %c18_520 = arith.constant 18 : index
    %c0_521 = arith.constant 0 : index
    %c0_522 = arith.constant 0 : index
    %519 = vector.load %arg4[%c18_520, %c0_521, %c0_522] : memref<25x1x128xf32, #tpu.memory_space<vmem>>, vector<1x1x128xf32>
    %520 = vector.shape_cast %519 : vector<1x1x128xf32> to vector<1x128xf32>
    %521 = vector.broadcast %520 : vector<1x128xf32> to vector<8x128xf32>
    %522 = arith.addf %518, %521 : vector<8x128xf32>
    %cst_523 = arith.constant 0.000000e+00 : f32
    %523 = vector.broadcast %cst_523 : f32 to vector<8x128xf32>
    %524 = arith.maximumf %522, %523 : vector<8x128xf32>
    %c19 = arith.constant 19 : index
    %c0_524 = arith.constant 0 : index
    %c0_525 = arith.constant 0 : index
    %c0_526 = arith.constant 0 : index
    %525 = vector.load %arg3[%c19, %c0_524, %c0_525, %c0_526] : memref<25x4x128x128xf32, #tpu.memory_space<vmem>>, vector<1x1x128x128xf32>
    %526 = vector.shape_cast %525 : vector<1x1x128x128xf32> to vector<128x128xf32>
    %cst_527 = arith.constant dense<0.000000e+00> : vector<8x128xf32>
    %527 = tpu.matmul %524, %526, %cst_527 {dimension_numbers = #tpu.dot_dimension_numbers<[1], [0], [0], [1], [0, 0, 1, 1], [], []>} : vector<8x128xf32>, vector<128x128xf32>, vector<8x128xf32> -> vector<8x128xf32>
    %c19_528 = arith.constant 19 : index
    %c0_529 = arith.constant 0 : index
    %c0_530 = arith.constant 0 : index
    %528 = vector.load %arg4[%c19_528, %c0_529, %c0_530] : memref<25x1x128xf32, #tpu.memory_space<vmem>>, vector<1x1x128xf32>
    %529 = vector.shape_cast %528 : vector<1x1x128xf32> to vector<1x128xf32>
    %530 = vector.broadcast %529 : vector<1x128xf32> to vector<8x128xf32>
    %531 = arith.addf %527, %530 : vector<8x128xf32>
    %532 = arith.addf %496, %531 : vector<8x128xf32>
    %cst_531 = arith.constant 0.000000e+00 : f32
    %533 = vector.broadcast %cst_531 : f32 to vector<8x128xf32>
    %534 = arith.maximumf %532, %533 : vector<8x128xf32>
    %cst_532 = arith.constant 0.000000e+00 : f32
    %535 = vector.broadcast %cst_532 : f32 to vector<1x128xf32>
    %c7_533 = arith.constant 7 : index
    %c0_534 = arith.constant 0 : index
    %536 = vector.load %arg9[%c7_533, %c0_534] : memref<32x128xf32, #tpu.memory_space<vmem>>, vector<1x128xf32>
    tpu.vector_store %arg9[%c7_533, %c0_534], %535 {strides = array<i32>} : memref<32x128xf32, #tpu.memory_space<vmem>>, vector<1x128xf32>,
    %c16_535 = arith.constant 16 : index
    %c0_536 = arith.constant 0 : index
    %537 = vector.load %arg9[%c16_535, %c0_536] : memref<32x128xf32, #tpu.memory_space<vmem>>, vector<1x128xf32>
    tpu.vector_store %arg9[%c16_535, %c0_536], %535 {strides = array<i32>} : memref<32x128xf32, #tpu.memory_space<vmem>>, vector<1x128xf32>,
    %c8_537 = arith.constant 8 : index
    %c0_538 = arith.constant 0 : index
    %538 = vector.load %arg9[%c8_537, %c0_538] : memref<32x128xf32, #tpu.memory_space<vmem>>, vector<8x128xf32>
    tpu.vector_store %arg9[%c8_537, %c0_538], %534 {strides = array<i32>} : memref<32x128xf32, #tpu.memory_space<vmem>>, vector<8x128xf32>,
    %cst_539 = arith.constant 0.000000e+00 : f32
    %539 = vector.broadcast %cst_539 : f32 to vector<8x128xf32>
    %c7_540 = arith.constant 7 : index
    %c0_541 = arith.constant 0 : index
    %540 = vector.load %arg9[%c7_540, %c0_541] : memref<32x128xf32, #tpu.memory_space<vmem>>, vector<8x128xf32>
    %c20 = arith.constant 20 : index
    %c0_542 = arith.constant 0 : index
    %c0_543 = arith.constant 0 : index
    %c0_544 = arith.constant 0 : index
    %541 = vector.load %arg3[%c20, %c0_542, %c0_543, %c0_544] : memref<25x4x128x128xf32, #tpu.memory_space<vmem>>, vector<1x1x128x128xf32>
    %542 = vector.shape_cast %541 : vector<1x1x128x128xf32> to vector<128x128xf32>
    %cst_545 = arith.constant dense<0.000000e+00> : vector<8x128xf32>
    %543 = tpu.matmul %540, %542, %cst_545 {dimension_numbers = #tpu.dot_dimension_numbers<[1], [0], [0], [1], [0, 0, 1, 1], [], []>} : vector<8x128xf32>, vector<128x128xf32>, vector<8x128xf32> -> vector<8x128xf32>
    %544 = arith.addf %539, %543 : vector<8x128xf32>
    %c8_546 = arith.constant 8 : index
    %c0_547 = arith.constant 0 : index
    %545 = vector.load %arg9[%c8_546, %c0_547] : memref<32x128xf32, #tpu.memory_space<vmem>>, vector<8x128xf32>
    %c20_548 = arith.constant 20 : index
    %c1_549 = arith.constant 1 : index
    %c0_550 = arith.constant 0 : index
    %c0_551 = arith.constant 0 : index
    %546 = vector.load %arg3[%c20_548, %c1_549, %c0_550, %c0_551] : memref<25x4x128x128xf32, #tpu.memory_space<vmem>>, vector<1x1x128x128xf32>
    %547 = vector.shape_cast %546 : vector<1x1x128x128xf32> to vector<128x128xf32>
    %cst_552 = arith.constant dense<0.000000e+00> : vector<8x128xf32>
    %548 = tpu.matmul %545, %547, %cst_552 {dimension_numbers = #tpu.dot_dimension_numbers<[1], [0], [0], [1], [0, 0, 1, 1], [], []>} : vector<8x128xf32>, vector<128x128xf32>, vector<8x128xf32> -> vector<8x128xf32>
    %549 = arith.addf %544, %548 : vector<8x128xf32>
    %c9_553 = arith.constant 9 : index
    %c0_554 = arith.constant 0 : index
    %550 = vector.load %arg9[%c9_553, %c0_554] : memref<32x128xf32, #tpu.memory_space<vmem>>, vector<8x128xf32>
    %c20_555 = arith.constant 20 : index
    %c2_556 = arith.constant 2 : index
    %c0_557 = arith.constant 0 : index
    %c0_558 = arith.constant 0 : index
    %551 = vector.load %arg3[%c20_555, %c2_556, %c0_557, %c0_558] : memref<25x4x128x128xf32, #tpu.memory_space<vmem>>, vector<1x1x128x128xf32>
    %552 = vector.shape_cast %551 : vector<1x1x128x128xf32> to vector<128x128xf32>
    %cst_559 = arith.constant dense<0.000000e+00> : vector<8x128xf32>
    %553 = tpu.matmul %550, %552, %cst_559 {dimension_numbers = #tpu.dot_dimension_numbers<[1], [0], [0], [1], [0, 0, 1, 1], [], []>} : vector<8x128xf32>, vector<128x128xf32>, vector<8x128xf32> -> vector<8x128xf32>
    %554 = arith.addf %549, %553 : vector<8x128xf32>
    %c20_560 = arith.constant 20 : index
    %c0_561 = arith.constant 0 : index
    %c0_562 = arith.constant 0 : index
    %555 = vector.load %arg4[%c20_560, %c0_561, %c0_562] : memref<25x1x128xf32, #tpu.memory_space<vmem>>, vector<1x1x128xf32>
    %556 = vector.shape_cast %555 : vector<1x1x128xf32> to vector<1x128xf32>
    %557 = vector.broadcast %556 : vector<1x128xf32> to vector<8x128xf32>
    %558 = arith.addf %554, %557 : vector<8x128xf32>
    %cst_563 = arith.constant 0.000000e+00 : f32
    %559 = vector.broadcast %cst_563 : f32 to vector<8x128xf32>
    %560 = arith.maximumf %558, %559 : vector<8x128xf32>
    %c21 = arith.constant 21 : index
    %c0_564 = arith.constant 0 : index
    %c0_565 = arith.constant 0 : index
    %c0_566 = arith.constant 0 : index
    %561 = vector.load %arg3[%c21, %c0_564, %c0_565, %c0_566] : memref<25x4x128x128xf32, #tpu.memory_space<vmem>>, vector<1x1x128x128xf32>
    %562 = vector.shape_cast %561 : vector<1x1x128x128xf32> to vector<128x128xf32>
    %cst_567 = arith.constant dense<0.000000e+00> : vector<8x128xf32>
    %563 = tpu.matmul %560, %562, %cst_567 {dimension_numbers = #tpu.dot_dimension_numbers<[1], [0], [0], [1], [0, 0, 1, 1], [], []>} : vector<8x128xf32>, vector<128x128xf32>, vector<8x128xf32> -> vector<8x128xf32>
    %c21_568 = arith.constant 21 : index
    %c0_569 = arith.constant 0 : index
    %c0_570 = arith.constant 0 : index
    %564 = vector.load %arg4[%c21_568, %c0_569, %c0_570] : memref<25x1x128xf32, #tpu.memory_space<vmem>>, vector<1x1x128xf32>
    %565 = vector.shape_cast %564 : vector<1x1x128xf32> to vector<1x128xf32>
    %566 = vector.broadcast %565 : vector<1x128xf32> to vector<8x128xf32>
    %567 = arith.addf %563, %566 : vector<8x128xf32>
    %568 = arith.addf %532, %567 : vector<8x128xf32>
    %569 = tpu.iota {dimensions = array<i32: 0>} : vector<16x8xi32>
    %570 = tpu.iota {dimensions = array<i32: 1>} : vector<16x8xi32>
    %c2_i32_571 = arith.constant 2 : i32
    %571 = vector.broadcast %c2_i32_571 : i32 to vector<16x8xi32>
    %572 = arith.muli %571, %570 : vector<16x8xi32>
    %573 = arith.cmpi eq, %569, %572 : vector<16x8xi32>
    %c2_i32_572 = arith.constant 2 : i32
    %574 = vector.broadcast %c2_i32_572 : i32 to vector<16x8xi32>
    %575 = arith.muli %574, %570 : vector<16x8xi32>
    %c1_i32_573 = arith.constant 1 : i32
    %576 = vector.broadcast %c1_i32_573 : i32 to vector<16x8xi32>
    %577 = arith.addi %575, %576 : vector<16x8xi32>
    %578 = arith.cmpi eq, %569, %577 : vector<16x8xi32>
    %579 = arith.ori %573, %578 : vector<16x8xi1>
    %580 = arith.extui %579 : vector<16x8xi1> to vector<16x8xi32>
    %581 = arith.sitofp %580 : vector<16x8xi32> to vector<16x8xf32>
    %cst_574 = arith.constant dense<0.000000e+00> : vector<16x128xf32>
    %582 = tpu.matmul %581, %568, %cst_574 {dimension_numbers = #tpu.dot_dimension_numbers<[1], [0], [0], [1], [0, 0, 1, 1], [], []>} : vector<16x8xf32>, vector<8x128xf32>, vector<16x128xf32> -> vector<16x128xf32>
    %cst_575 = arith.constant 0.000000e+00 : f32
    %583 = vector.broadcast %cst_575 : f32 to vector<1x128xf32>
    %c7_576 = arith.constant 7 : index
    %c0_577 = arith.constant 0 : index
    %584 = vector.load %arg9[%c7_576, %c0_577] : memref<32x128xf32, #tpu.memory_space<vmem>>, vector<1x128xf32>
    tpu.vector_store %arg9[%c7_576, %c0_577], %583 {strides = array<i32>} : memref<32x128xf32, #tpu.memory_space<vmem>>, vector<1x128xf32>,
    %c24_578 = arith.constant 24 : index
    %c0_579 = arith.constant 0 : index
    %585 = vector.load %arg9[%c24_578, %c0_579] : memref<32x128xf32, #tpu.memory_space<vmem>>, vector<1x128xf32>
    tpu.vector_store %arg9[%c24_578, %c0_579], %583 {strides = array<i32>} : memref<32x128xf32, #tpu.memory_space<vmem>>, vector<1x128xf32>,
    %c8_580 = arith.constant 8 : index
    %c0_581 = arith.constant 0 : index
    %586 = vector.load %arg9[%c8_580, %c0_581] : memref<32x128xf32, #tpu.memory_space<vmem>>, vector<16x128xf32>
    tpu.vector_store %arg9[%c8_580, %c0_581], %582 {strides = array<i32>} : memref<32x128xf32, #tpu.memory_space<vmem>>, vector<16x128xf32>,
    %cst_582 = arith.constant 0.000000e+00 : f32
    %587 = vector.broadcast %cst_582 : f32 to vector<16x128xf32>
    %c7_583 = arith.constant 7 : index
    %c0_584 = arith.constant 0 : index
    %588 = vector.load %arg9[%c7_583, %c0_584] : memref<32x128xf32, #tpu.memory_space<vmem>>, vector<16x128xf32>
    %c22 = arith.constant 22 : index
    %c0_585 = arith.constant 0 : index
    %c0_586 = arith.constant 0 : index
    %c0_587 = arith.constant 0 : index
    %589 = vector.load %arg3[%c22, %c0_585, %c0_586, %c0_587] : memref<25x4x128x128xf32, #tpu.memory_space<vmem>>, vector<1x1x128x128xf32>
    %590 = vector.shape_cast %589 : vector<1x1x128x128xf32> to vector<128x128xf32>
    %cst_588 = arith.constant dense<0.000000e+00> : vector<16x128xf32>
    %591 = tpu.matmul %588, %590, %cst_588 {dimension_numbers = #tpu.dot_dimension_numbers<[1], [0], [0], [1], [0, 0, 1, 1], [], []>} : vector<16x128xf32>, vector<128x128xf32>, vector<16x128xf32> -> vector<16x128xf32>
    %592 = arith.addf %587, %591 : vector<16x128xf32>
    %c8_589 = arith.constant 8 : index
    %c0_590 = arith.constant 0 : index
    %593 = vector.load %arg9[%c8_589, %c0_590] : memref<32x128xf32, #tpu.memory_space<vmem>>, vector<16x128xf32>
    %c22_591 = arith.constant 22 : index
    %c1_592 = arith.constant 1 : index
    %c0_593 = arith.constant 0 : index
    %c0_594 = arith.constant 0 : index
    %594 = vector.load %arg3[%c22_591, %c1_592, %c0_593, %c0_594] : memref<25x4x128x128xf32, #tpu.memory_space<vmem>>, vector<1x1x128x128xf32>
    %595 = vector.shape_cast %594 : vector<1x1x128x128xf32> to vector<128x128xf32>
    %cst_595 = arith.constant dense<0.000000e+00> : vector<16x128xf32>
    %596 = tpu.matmul %593, %595, %cst_595 {dimension_numbers = #tpu.dot_dimension_numbers<[1], [0], [0], [1], [0, 0, 1, 1], [], []>} : vector<16x128xf32>, vector<128x128xf32>, vector<16x128xf32> -> vector<16x128xf32>
    %597 = arith.addf %592, %596 : vector<16x128xf32>
    %c9_596 = arith.constant 9 : index
    %c0_597 = arith.constant 0 : index
    %598 = vector.load %arg9[%c9_596, %c0_597] : memref<32x128xf32, #tpu.memory_space<vmem>>, vector<16x128xf32>
    %c22_598 = arith.constant 22 : index
    %c2_599 = arith.constant 2 : index
    %c0_600 = arith.constant 0 : index
    %c0_601 = arith.constant 0 : index
    %599 = vector.load %arg3[%c22_598, %c2_599, %c0_600, %c0_601] : memref<25x4x128x128xf32, #tpu.memory_space<vmem>>, vector<1x1x128x128xf32>
    %600 = vector.shape_cast %599 : vector<1x1x128x128xf32> to vector<128x128xf32>
    %cst_602 = arith.constant dense<0.000000e+00> : vector<16x128xf32>
    %601 = tpu.matmul %598, %600, %cst_602 {dimension_numbers = #tpu.dot_dimension_numbers<[1], [0], [0], [1], [0, 0, 1, 1], [], []>} : vector<16x128xf32>, vector<128x128xf32>, vector<16x128xf32> -> vector<16x128xf32>
    %602 = arith.addf %597, %601 : vector<16x128xf32>
    %c22_603 = arith.constant 22 : index
    %c0_604 = arith.constant 0 : index
    %c0_605 = arith.constant 0 : index
    %603 = vector.load %arg4[%c22_603, %c0_604, %c0_605] : memref<25x1x128xf32, #tpu.memory_space<vmem>>, vector<1x1x128xf32>
    %604 = vector.shape_cast %603 : vector<1x1x128xf32> to vector<1x128xf32>
    %605 = vector.broadcast %604 : vector<1x128xf32> to vector<16x128xf32>
    %606 = arith.addf %602, %605 : vector<16x128xf32>
    %cst_606 = arith.constant 0.000000e+00 : f32
    %607 = vector.broadcast %cst_606 : f32 to vector<1x128xf32>
    %c7_607 = arith.constant 7 : index
    %c0_608 = arith.constant 0 : index
    %608 = vector.load %arg9[%c7_607, %c0_608] : memref<32x128xf32, #tpu.memory_space<vmem>>, vector<1x128xf32>
    tpu.vector_store %arg9[%c7_607, %c0_608], %607 {strides = array<i32>} : memref<32x128xf32, #tpu.memory_space<vmem>>, vector<1x128xf32>,
    %c24_609 = arith.constant 24 : index
    %c0_610 = arith.constant 0 : index
    %609 = vector.load %arg9[%c24_609, %c0_610] : memref<32x128xf32, #tpu.memory_space<vmem>>, vector<1x128xf32>
    tpu.vector_store %arg9[%c24_609, %c0_610], %607 {strides = array<i32>} : memref<32x128xf32, #tpu.memory_space<vmem>>, vector<1x128xf32>,
    %c8_611 = arith.constant 8 : index
    %c0_612 = arith.constant 0 : index
    %610 = vector.load %arg9[%c8_611, %c0_612] : memref<32x128xf32, #tpu.memory_space<vmem>>, vector<16x128xf32>
    tpu.vector_store %arg9[%c8_611, %c0_612], %606 {strides = array<i32>} : memref<32x128xf32, #tpu.memory_space<vmem>>, vector<16x128xf32>,
    %cst_613 = arith.constant 0.000000e+00 : f32
    %611 = vector.broadcast %cst_613 : f32 to vector<16x128xf32>
    %c7_614 = arith.constant 7 : index
    %c0_615 = arith.constant 0 : index
    %612 = vector.load %arg9[%c7_614, %c0_615] : memref<32x128xf32, #tpu.memory_space<vmem>>, vector<16x128xf32>
    %c23 = arith.constant 23 : index
    %c0_616 = arith.constant 0 : index
    %c0_617 = arith.constant 0 : index
    %c0_618 = arith.constant 0 : index
    %613 = vector.load %arg3[%c23, %c0_616, %c0_617, %c0_618] : memref<25x4x128x128xf32, #tpu.memory_space<vmem>>, vector<1x1x128x128xf32>
    %614 = vector.shape_cast %613 : vector<1x1x128x128xf32> to vector<128x128xf32>
    %cst_619 = arith.constant dense<0.000000e+00> : vector<16x128xf32>
    %615 = tpu.matmul %612, %614, %cst_619 {dimension_numbers = #tpu.dot_dimension_numbers<[1], [0], [0], [1], [0, 0, 1, 1], [], []>} : vector<16x128xf32>, vector<128x128xf32>, vector<16x128xf32> -> vector<16x128xf32>
    %616 = arith.addf %611, %615 : vector<16x128xf32>
    %c8_620 = arith.constant 8 : index
    %c0_621 = arith.constant 0 : index
    %617 = vector.load %arg9[%c8_620, %c0_621] : memref<32x128xf32, #tpu.memory_space<vmem>>, vector<16x128xf32>
    %c23_622 = arith.constant 23 : index
    %c1_623 = arith.constant 1 : index
    %c0_624 = arith.constant 0 : index
    %c0_625 = arith.constant 0 : index
    %618 = vector.load %arg3[%c23_622, %c1_623, %c0_624, %c0_625] : memref<25x4x128x128xf32, #tpu.memory_space<vmem>>, vector<1x1x128x128xf32>
    %619 = vector.shape_cast %618 : vector<1x1x128x128xf32> to vector<128x128xf32>
    %cst_626 = arith.constant dense<0.000000e+00> : vector<16x128xf32>
    %620 = tpu.matmul %617, %619, %cst_626 {dimension_numbers = #tpu.dot_dimension_numbers<[1], [0], [0], [1], [0, 0, 1, 1], [], []>} : vector<16x128xf32>, vector<128x128xf32>, vector<16x128xf32> -> vector<16x128xf32>
    %621 = arith.addf %616, %620 : vector<16x128xf32>
    %c9_627 = arith.constant 9 : index
    %c0_628 = arith.constant 0 : index
    %622 = vector.load %arg9[%c9_627, %c0_628] : memref<32x128xf32, #tpu.memory_space<vmem>>, vector<16x128xf32>
    %c23_629 = arith.constant 23 : index
    %c2_630 = arith.constant 2 : index
    %c0_631 = arith.constant 0 : index
    %c0_632 = arith.constant 0 : index
    %623 = vector.load %arg3[%c23_629, %c2_630, %c0_631, %c0_632] : memref<25x4x128x128xf32, #tpu.memory_space<vmem>>, vector<1x1x128x128xf32>
    %624 = vector.shape_cast %623 : vector<1x1x128x128xf32> to vector<128x128xf32>
    %cst_633 = arith.constant dense<0.000000e+00> : vector<16x128xf32>
    %625 = tpu.matmul %622, %624, %cst_633 {dimension_numbers = #tpu.dot_dimension_numbers<[1], [0], [0], [1], [0, 0, 1, 1], [], []>} : vector<16x128xf32>, vector<128x128xf32>, vector<16x128xf32> -> vector<16x128xf32>
    %626 = arith.addf %621, %625 : vector<16x128xf32>
    %c23_634 = arith.constant 23 : index
    %c0_635 = arith.constant 0 : index
    %c0_636 = arith.constant 0 : index
    %627 = vector.load %arg4[%c23_634, %c0_635, %c0_636] : memref<25x1x128xf32, #tpu.memory_space<vmem>>, vector<1x1x128xf32>
    %628 = vector.shape_cast %627 : vector<1x1x128xf32> to vector<1x128xf32>
    %629 = vector.broadcast %628 : vector<1x128xf32> to vector<16x128xf32>
    %630 = arith.addf %626, %629 : vector<16x128xf32>
    %cst_637 = arith.constant 0.000000e+00 : f32
    %631 = vector.broadcast %cst_637 : f32 to vector<16x128xf32>
    %632 = arith.maximumf %630, %631 : vector<16x128xf32>
    %cst_638 = arith.constant 0.000000e+00 : f32
    %633 = vector.broadcast %cst_638 : f32 to vector<1x128xf32>
    %c7_639 = arith.constant 7 : index
    %c0_640 = arith.constant 0 : index
    %634 = vector.load %arg9[%c7_639, %c0_640] : memref<32x128xf32, #tpu.memory_space<vmem>>, vector<1x128xf32>
    tpu.vector_store %arg9[%c7_639, %c0_640], %633 {strides = array<i32>} : memref<32x128xf32, #tpu.memory_space<vmem>>, vector<1x128xf32>,
    %c24_641 = arith.constant 24 : index
    %c0_642 = arith.constant 0 : index
    %635 = vector.load %arg9[%c24_641, %c0_642] : memref<32x128xf32, #tpu.memory_space<vmem>>, vector<1x128xf32>
    tpu.vector_store %arg9[%c24_641, %c0_642], %633 {strides = array<i32>} : memref<32x128xf32, #tpu.memory_space<vmem>>, vector<1x128xf32>,
    %c8_643 = arith.constant 8 : index
    %c0_644 = arith.constant 0 : index
    %636 = vector.load %arg9[%c8_643, %c0_644] : memref<32x128xf32, #tpu.memory_space<vmem>>, vector<16x128xf32>
    tpu.vector_store %arg9[%c8_643, %c0_644], %632 {strides = array<i32>} : memref<32x128xf32, #tpu.memory_space<vmem>>, vector<16x128xf32>,
    %cst_645 = arith.constant 0.000000e+00 : f32
    %637 = vector.broadcast %cst_645 : f32 to vector<16x128xf32>
    %c7_646 = arith.constant 7 : index
    %c0_647 = arith.constant 0 : index
    %638 = vector.load %arg9[%c7_646, %c0_647] : memref<32x128xf32, #tpu.memory_space<vmem>>, vector<16x128xf32>
    %c24_648 = arith.constant 24 : index
    %c0_649 = arith.constant 0 : index
    %c0_650 = arith.constant 0 : index
    %c0_651 = arith.constant 0 : index
    %639 = vector.load %arg3[%c24_648, %c0_649, %c0_650, %c0_651] : memref<25x4x128x128xf32, #tpu.memory_space<vmem>>, vector<1x1x128x128xf32>
    %640 = vector.shape_cast %639 : vector<1x1x128x128xf32> to vector<128x128xf32>
    %cst_652 = arith.constant dense<0.000000e+00> : vector<16x128xf32>
    %641 = tpu.matmul %638, %640, %cst_652 {dimension_numbers = #tpu.dot_dimension_numbers<[1], [0], [0], [1], [0, 0, 1, 1], [], []>} : vector<16x128xf32>, vector<128x128xf32>, vector<16x128xf32> -> vector<16x128xf32>
    %642 = arith.addf %637, %641 : vector<16x128xf32>
    %c8_653 = arith.constant 8 : index
    %c0_654 = arith.constant 0 : index
    %643 = vector.load %arg9[%c8_653, %c0_654] : memref<32x128xf32, #tpu.memory_space<vmem>>, vector<16x128xf32>
    %c24_655 = arith.constant 24 : index
    %c1_656 = arith.constant 1 : index
    %c0_657 = arith.constant 0 : index
    %c0_658 = arith.constant 0 : index
    %644 = vector.load %arg3[%c24_655, %c1_656, %c0_657, %c0_658] : memref<25x4x128x128xf32, #tpu.memory_space<vmem>>, vector<1x1x128x128xf32>
    %645 = vector.shape_cast %644 : vector<1x1x128x128xf32> to vector<128x128xf32>
    %cst_659 = arith.constant dense<0.000000e+00> : vector<16x128xf32>
    %646 = tpu.matmul %643, %645, %cst_659 {dimension_numbers = #tpu.dot_dimension_numbers<[1], [0], [0], [1], [0, 0, 1, 1], [], []>} : vector<16x128xf32>, vector<128x128xf32>, vector<16x128xf32> -> vector<16x128xf32>
    %647 = arith.addf %642, %646 : vector<16x128xf32>
    %c9_660 = arith.constant 9 : index
    %c0_661 = arith.constant 0 : index
    %648 = vector.load %arg9[%c9_660, %c0_661] : memref<32x128xf32, #tpu.memory_space<vmem>>, vector<16x128xf32>
    %c24_662 = arith.constant 24 : index
    %c2_663 = arith.constant 2 : index
    %c0_664 = arith.constant 0 : index
    %c0_665 = arith.constant 0 : index
    %649 = vector.load %arg3[%c24_662, %c2_663, %c0_664, %c0_665] : memref<25x4x128x128xf32, #tpu.memory_space<vmem>>, vector<1x1x128x128xf32>
    %650 = vector.shape_cast %649 : vector<1x1x128x128xf32> to vector<128x128xf32>
    %cst_666 = arith.constant dense<0.000000e+00> : vector<16x128xf32>
    %651 = tpu.matmul %648, %650, %cst_666 {dimension_numbers = #tpu.dot_dimension_numbers<[1], [0], [0], [1], [0, 0, 1, 1], [], []>} : vector<16x128xf32>, vector<128x128xf32>, vector<16x128xf32> -> vector<16x128xf32>
    %652 = arith.addf %647, %651 : vector<16x128xf32>
    %c24_667 = arith.constant 24 : index
    %c0_668 = arith.constant 0 : index
    %c0_669 = arith.constant 0 : index
    %653 = vector.load %arg4[%c24_667, %c0_668, %c0_669] : memref<25x1x128xf32, #tpu.memory_space<vmem>>, vector<1x1x128xf32>
    %654 = vector.shape_cast %653 : vector<1x1x128xf32> to vector<1x128xf32>
    %655 = vector.broadcast %654 : vector<1x128xf32> to vector<16x128xf32>
    %656 = arith.addf %652, %655 : vector<16x128xf32>
    %c0_670 = arith.constant 0 : index
    %c0_671 = arith.constant 0 : index
    %c0_672 = arith.constant 0 : index
    %657 = vector.load %arg5[%c0_670, %c0_671, %c0_672] : memref<1x16x128xf32, #tpu.memory_space<vmem>>, vector<1x16x128xf32>
    %658 = vector.shape_cast %657 : vector<1x16x128xf32> to vector<16x128xf32>
    %659 = vector.shape_cast %656 : vector<16x128xf32> to vector<1x16x128xf32>
    tpu.vector_store %arg5[%c0_670, %c0_671, %c0_672], %659 {strides = array<i32>} : memref<1x16x128xf32, #tpu.memory_space<vmem>>, vector<1x16x128xf32>,
    return
  }
  func.func @transform_0(%arg0: i32) -> (i32, i32, i32) {
    %c0_i32 = arith.constant 0 : i32
    %c0_i32_0 = arith.constant 0 : i32
    %c0_i32_1 = arith.constant 0 : i32
    return %arg0, %c0_i32, %c0_i32_0 : i32, i32, i32
  }
  func.func @transform_1(%arg0: i32) -> (i32, i32, i32) {
    %c0_i32 = arith.constant 0 : i32
    %c0_i32_0 = arith.constant 0 : i32
    %c0_i32_1 = arith.constant 0 : i32
    %c0_i32_2 = arith.constant 0 : i32
    return %c0_i32, %c0_i32_0, %c0_i32_1 : i32, i32, i32
  }
  func.func @transform_2(%arg0: i32) -> (i32, i32, i32, i32) {
    %c0_i32 = arith.constant 0 : i32
    %c0_i32_0 = arith.constant 0 : i32
    %c0_i32_1 = arith.constant 0 : i32
    %c0_i32_2 = arith.constant 0 : i32
    %c0_i32_3 = arith.constant 0 : i32
    return %c0_i32, %c0_i32_0, %c0_i32_1, %c0_i32_2 : i32, i32, i32, i32
  }
  func.func @transform_3(%arg0: i32) -> (i32, i32, i32) {
    %c0_i32 = arith.constant 0 : i32
    %c0_i32_0 = arith.constant 0 : i32
    %c0_i32_1 = arith.constant 0 : i32
    %c0_i32_2 = arith.constant 0 : i32
    return %c0_i32, %c0_i32_0, %c0_i32_1 : i32, i32, i32
  }
  func.func @transform_4(%arg0: i32) -> (i32, i32, i32) {
    %c0_i32 = arith.constant 0 : i32
    %c0_i32_0 = arith.constant 0 : i32
    %c0_i32_1 = arith.constant 0 : i32
    return %arg0, %c0_i32, %c0_i32_0 : i32, i32, i32
  }
  func.func @transform_5(%arg0: i32) -> (i32, i32, i32) {
    %c0_i32 = arith.constant 0 : i32
    %c0_i32_0 = arith.constant 0 : i32
    %c0_i32_1 = arith.constant 0 : i32
    return %arg0, %c0_i32, %c0_i32_0 : i32, i32, i32
  }
  func.func @transform_6(%arg0: i32) -> (i32, i32, i32) {
    %c0_i32 = arith.constant 0 : i32
    %c0_i32_0 = arith.constant 0 : i32
    %c0_i32_1 = arith.constant 0 : i32
    return %arg0, %c0_i32, %c0_i32_0 : i32, i32, i32
  }
  func.func @transform_7(%arg0: i32) -> (i32, i32, i32) {
    %c0_i32 = arith.constant 0 : i32
    %c0_i32_0 = arith.constant 0 : i32
    %c0_i32_1 = arith.constant 0 : i32
    return %arg0, %c0_i32, %c0_i32_0 : i32, i32, i32
  }
}

</mosaic_0001>

<bundles_post_ra>
// kernel: rvqvae_forward.1
= control target key start
LH: loop header
LB: loop body
LE: loop exit
PB: predicated region body
PF: predicated region fallthrough
CT: control target
= control target key end

     0   :  { %13 = vsyncpa [#allocation4], 0  ;;  %s13347_s0 = inlined_call_operand.vmem [shape: f32[2,16,128], index: 0, kind: input, shape index: {}]   ;;  %s13348_s1 = inlined_call_operand.hbm [shape: f32[2,32,128], index: 1, kind: input, shape index: {}]   ;;  %s13349_s2 = inlined_call_operand.hbm [shape: f32[25,4,128,128], index: 2, kind: input, shape index: {}]   ;;  %s13350_s3 = inlined_call_operand.hbm [shape: f32[25,1,128], index: 3, kind: input, shape index: {}]   ;;  %s13351_s4 = inlined_call_operand.hbm [shape: f32[2,16,128], index: 4, kind: output, shape index: {0}]   ;;  %s13352_s5 = inlined_call_operand.vmem [shape: s32[2,4,2], index: 5, kind: output, shape index: {1}]   ;;  %s13353_s6 = inlined_call_operand.vmem [shape: f32[2,2,1], index: 6, kind: output, shape index: {2}]   ;;  %s13354_s7 = inlined_call_operand.vmem [shape: f32[2,2,32], index: 7, kind: output, shape index: {3}]  }
   0x1   :  { %14 = vsyncpa [#allocation7], 0 }
   0x2   :  { %15 = vsyncpa [#allocation5], 0 }
   0x3   :  { %17 = vsyncpa [#allocation5 + $0x1], 0  ;;  %s12457_s24 = smov 0   ;;  %s12459_s25 = smov 0  }
   0x4   :  { %s12461_s26 = smov 0   ;;  %s12463_s27 = smov 0  }
   0x5 LB: > { %13361 = sst [smem:[#allocation13_spill]] %s12397_s26  ;;  %s12478_s28 = sadd.s32 4294967295, %s12401_s27   ;;  %s12401_s27 = sphi %s12463_s27, %s13376_s27   ;;  %s12397_s26 = sphi %s12461_s26, %s13378_s26   ;;  %s12393_s25 = sphi %s12459_s25, %s13380_s25   ;;  %s12389_s24 = sphi %s12457_s24, %s13379_s24  }
   0x6   : > { %s7168_s29 = sadd.s32 4294967294, %s12401_s27   ;;  %s12482_s30 = sadd.s32 1, %s12401_s27  }
   0x7   : > { %13362 = sst [smem:[#allocation14_spill]] %s12482_s30  ;;  %s119_s8 = sadd.s32 1, %s12397_s26 }
   0x8   : > { %s116_s9 = ssub.s32 %s12401_s27, %s12482_s30  ;;  %p129_p0 = scmp.ne.s32.totalorder %s12397_s26, %s12393_s25 }
   0x9   : > { %p117_p1 = scmp.eq.s32.totalorder %s116_s9, 0  ;;  %p130_p2 = scmp.eq.s32.totalorder %s12478_s28, 1 }
   0xa   : > { %p135_p3 = scmp.ne.s32.totalorder %s12393_s25, %s12389_s24  ;;  %p136_p4 = scmp.eq.s32.totalorder %s7168_s29, 1 }
   0xb   : > { %s12493_s10 = scalar_select %p117_p1, %s12397_s26, %s119_s8  }
   0xc   : > { %p12495_p5 = por %p130_p2, %p129_p0  ;;  %p12499_p6 = por %p136_p4, %p135_p3 }
   0xd   : > { %13363 = sst [smem:[#allocation15_spill]] %s12493_s10  ;;  %p7169_p7 = scmp.ge.s32.totalorder %s12401_s27, 1 }
   0xe   : > { %s13364_s11 = scalar_select %p12495_p5, 1, 0 }
   0xf   : > { %s13365_s12 = scalar_select %p12499_p6, 1, 0 }
  0x10   : > { %p221_p8 = scmp.lt.s32.totalorder %s12401_s27, 3  ;;  %p13355_p9 = scmp.eq.s32.totalorder %s12478_s28, 0 }
  0x11   : > { %s12403_s14 = smov [#allocation6]   ;;  %s12404_s17 = smov [#allocation3]  }
  0x12   : > { %p12506_p10 = pnand %p7169_p7, %p221_p8  ;;  %s246_s15 = sshll.u32 %s12403_s14, 4  ;;  %s12512_s15 = int_to_ptr.vmem [resolvable:$true] %s246_s15 }
  0x13   : > { %s233_s18 = sshll.u32 %s12404_s17, 4  ;;  %s12405_s19 = smov [#allocation8]   ;;  %s12520_s18 = int_to_ptr.vmem [resolvable:$true] %s233_s18 }
  0x14   : > { %s13366_s13 = scalar_select %p12506_p10, 1, 0 }
  0x15   : > { %p12181_p11 = pneg %p12506_p10  ;;  %s12522_s20 = sshll.u32 %s12405_s19, 4  ;;  %s260_s20 = int_to_ptr.vmem [resolvable:$true] %s12522_s20 }
  0x16   : > { %s12247_s23 = scalar_lea.hbm %s13349_s2, 204800 }
  0x17   : > { %p12516_p12 = pnand %p13355_p9, %p12181_p11  ;;  %p12248_p13 = scmp.ne.s32.totalorder %s13349_s2, %s12247_s23 }
  0x18   : > { %p12254_p3 = scmp.lt.u32.totalorder %s12247_s23, %s13349_s2 }
  0x19   : > { %p12532_p0 = pneg %p12516_p12 }
  0x1b   : > { %p12250_p1 = pnand %p12532_p0, %p12248_p13 }
  0x1d   : > { %p12251_p2 = pneg %p12250_p1 }
  0x1f   : > { %p12256_p4 = pnand %p12254_p3, %p12251_p2 }
  0x21   : > { %12259 = shalt.err (!%p12256_p4)
}
  0x22   : > { %s12260_s19 = scalar_lea.vmem %s12512_s15, 204800  ;;  %p12268_p9 = scmp.lt.s32.totalorder %s12512_s15, %s12512_s15 }
  0x23   : > { %p12261_p7 = scmp.ne.s32.totalorder %s12512_s15, %s12260_s19  ;;  %p12269_p6 = scmp.lt.s32.totalorder %s12260_s19, %s12260_s19 }
  0x25   : > { %p12263_p8 = pnand %p12261_p7, %p12532_p0  ;;  %p12270_p13 = por %p12269_p6, %p12268_p9 }
  0x27   : > { %p12264_p11 = pneg %p12263_p8 }
  0x29   : > { %p12271_p1 = pnand %p12270_p13, %p12264_p11 }
  0x2b   : > { %12274 = shalt.err (!%p12271_p1)
}
  0x2c   : > { %s12406_s21 = smov 128   ;;  %s12407_s22 = smov 8  }
  0x2d   : > { %12187 = dma.hbm_to_vmem [thread:$0]  (!%p12516_p12), %s13349_s2, 204800, %s12512_s15, [#allocation7], %s12406_s21, %s12406_s21, %s12407_s22  }
  0x2e   : > { %s12275_s17 = scalar_lea.hbm %s13348_s1, 1024 }
  0x2f   : > { %p12276_p6 = scmp.ne.s32.totalorder %s13348_s1, %s12275_s17  ;;  %p12282_p3 = scmp.lt.u32.totalorder %s12275_s17, %s13348_s1 }
  0x31   : > { %p12278_p9 = pnand %p12276_p6, %p12532_p0 }
  0x33   : > { %p12279_p2 = pneg %p12278_p9 }
  0x35   : > { %p12284_p4 = pnand %p12282_p3, %p12279_p2 }
  0x37   : > { %12287 = shalt.err (!%p12284_p4)
}
  0x38   : > { %s12288_s15 = scalar_lea.vmem %s12520_s18, 1024  ;;  %p12296_p13 = scmp.lt.s32.totalorder %s12520_s18, %s12520_s18 }
  0x39   : > { %p12289_p7 = scmp.ne.s32.totalorder %s12520_s18, %s12288_s15  ;;  %p12297_p1 = scmp.lt.s32.totalorder %s12288_s15, %s12288_s15 }
  0x3b   : > { %p12291_p8 = pnand %p12289_p7, %p12532_p0  ;;  %p12298_p6 = por %p12297_p1, %p12296_p13 }
  0x3d   : > { %p12292_p11 = pneg %p12291_p8 }
  0x3f   : > { %p12299_p9 = pnand %p12298_p6, %p12292_p11 }
  0x41   : > { %12302 = shalt.err (!%p12299_p9)
}
  0x42   : > { %12184 = dma.hbm_to_vmem [thread:$0]  (!%p12516_p12), %s13348_s1, 1024, %s12520_s18, [#allocation4], %s12406_s21, %s12406_s21, %s12407_s22  }
  0x43   : > { %s12303_s29 = scalar_lea.hbm %s13350_s3, 400 }
  0x44   : > { %p12304_p2 = scmp.ne.s32.totalorder %s13350_s3, %s12303_s29  ;;  %p12310_p7 = scmp.lt.u32.totalorder %s12303_s29, %s13350_s3 }
  0x46   : > { %p12306_p3 = pnand %p12304_p2, %p12532_p0 }
  0x48   : > { %p12307_p4 = pneg %p12306_p3 }
  0x4a   : > { %p12312_p8 = pnand %p12310_p7, %p12307_p4 }
  0x4c   : > { %12315 = shalt.err (!%p12312_p8)
}
  0x4d   : > { %s12316_s15 = scalar_lea.vmem %s260_s20, 400  ;;  %s12323_s18 = scalar_lea.vmem %s260_s20, 416 }
  0x4e   : > { %p12317_p11 = scmp.ne.s32.totalorder %s260_s20, %s12316_s15  ;;  %p12324_p6 = scmp.lt.s32.totalorder %s260_s20, %s260_s20 }
  0x4f   : > { %p12325_p9 = scmp.lt.s32.totalorder %s12323_s18, %s12316_s15 }
  0x50   : > { %p12319_p13 = pnand %p12317_p11, %p12532_p0 }
  0x51   : > { %p12326_p5 = por %p12325_p9, %p12324_p6 }
  0x52   : > { %p12320_p1 = pneg %p12319_p13 }
  0x54   : > { %p12327_p10 = pnand %p12326_p5, %p12320_p1 }
  0x56   : > { %12330 = shalt.err (!%p12327_p10)
}
  0x57   : > { %s12408_s21 = smov 16   ;;  %s12409_s22 = smov 1  }
  0x58   : > { %12190 = dma.hbm_to_vmem [thread:$0]  (!%p12516_p12), %s13350_s3, 400, %s260_s20, [#allocation7], %s12408_s21, %s12408_s21, %s12409_s22  }
  0x59   : > { %p13369_p2 = scmp.ne.s32.totalorder %s13366_s13, 0 }
  0x5a   : > { %p13370_p0 = scmp.eq.s32.totalorder (!%p13369_p2), %s12478_s28, 0 }
  0x5b   : > { %283 = sbr.rel (%p13369_p2) target bundleno = 9058 (0x2362), region = 36 }
  0x62   : > { %12376 = dma.done.wait (%p13370_p0), [#allocation4], 1024   ;;  %p13371_p3 = pmov %p13370_p0 }
  0x63   : > { %p13372_p5 = pmov %p13370_p0 }
  0x64   : > { %12378 = vsyncadd (%p13371_p3), [#allocation4], 4294966272 }
  0x65   : > { %12380 = dma.done.wait (%p13372_p5), [#allocation7], 205200   ;;  %p13373_p10 = pmov %p13370_p0 }
  0x66   : > { %p335_p4 = scmp.lt.s32.totalorder %s12478_s28, 1  ;;  %v12410_v0 = vmov 0.0   ;;  %v360_v1 = vld [vmem:[#allocation6] sm:$0xff]  ;;  %v361_v2 = vld [vmem:[#allocation6 + $0x8] sm:$0xff]  ;;  %v362_v3 = vld [vmem:[#allocation6 + $0x10] sm:$0xff]  ;;  %vm12412_vm0 = vmmov 0  }
  0x67   : > { %12382 = vsyncadd (%p13373_p10), [#allocation7], 4294762096  ;;  %354 = vst [vmem:[#allocation2 + $0x7] sm:$0x1] %v12410_v0  ;;  %v10547_v4 = vpack.c.bf16 %v361_v2, %v360_v1  ;;  %v363_v5 = vld [vmem:[#allocation6 + $0x18] sm:$0xff]  ;;  %v364_v7 = vld [vmem:[#allocation6 + $0x20] sm:$0xff] }
  0x68   : > { %355 = vst [vmem:[#allocation2 + $0x18] sm:$0x1] %v12410_v0  ;;  %s12609_s13 = scalar_select %p335_p4, %s12478_s28, 1  ;;  %v10551_v6 = vpack.c.bf16 %v363_v5, %v362_v3  ;;  %v365_v8 = vld [vmem:[#allocation6 + $0x28] sm:$0xff]  ;;  %v379_v10 = vld [vmem:[#allocation6 + $0x80] sm:$0xff]  ;;  %v366_v12 = vld [vmem:[#allocation6 + $0x30] sm:$0xff] }
  0x69   : > { %10548 = vmatprep.subr.bf16.mxu0 %v10547_v4  ;;  %v10555_v9 = vpack.c.bf16 %v365_v8, %v364_v7  ;;  %v380_v11 = vld [vmem:[#allocation6 + $0x88] sm:$0xff]  ;;  %v367_v13 = vld [vmem:[#allocation6 + $0x38] sm:$0xff]  ;;  %v381_v17 = vld [vmem:[#allocation6 + $0x90] sm:$0xff]  ;;  %vm1056_vm1 = vcmask 1046528   ;;  %vm12413_vm2 = vmmov 1   ;;  %vm1052_vm5 = vcmask 121856  }
  0x6a   : > { %s7229_s16 = sshll.u32 %s12609_s13, 4  ;;  %10550 = vmatpush3.bf16.msra.mxu0 %v10547_v4  ;;  %v10515_v14 = vpack.c.bf16 %v380_v11, %v379_v10  ;;  %v382_v18 = vld [vmem:[#allocation6 + $0x98] sm:$0xff]  ;;  %v383_v20 = vld [vmem:[#allocation6 + $0xa0] sm:$0xff]  ;;  %v10559_v21 = vpack.c.bf16 %v367_v13, %v366_v12  ;;  %v384_v22 = vld [vmem:[#allocation6 + $0xa8] sm:$0xff]  ;;  %vm2245_vm6 = vcmask 56320   ;;  %vm3472_vm7 = vcmask 257024  }
  0x6b   : > { %s339_s10 = scalar_lea.vmem %s13347_s0, %s7229_s16  ;;  %10552 = vmatprep.subr.bf16.mxu0 %v10551_v6  ;;  %v10519_v19 = vpack.c.bf16 %v382_v18, %v381_v17  ;;  %v368_v23 = vld [vmem:[#allocation6 + $0x40] sm:$0xff]  ;;  %v369_v24 = vld [vmem:[#allocation6 + $0x48] sm:$0xff]  ;;  %v10523_v25 = vpack.c.bf16 %v384_v22, %v383_v20  ;;  %v385_v26 = vld [vmem:[#allocation6 + $0xb0] sm:$0xff]  ;;  %s7181_s23 = sshll.u32 %s12609_s13, 2  ;;  %vm3570_vm10 = vcmask 3072   ;;  %vm3496_vm11 = vcmask 261120  }
  0x6c   : > { %v352_v15 = vld [vmem:[%s339_s10] sm:$0xff]  ;;  %v12615_v16 = vld [vmem:[%s339_s10 + $0x8] sm:$0xff]  ;;  %10516 = vmatprep.subr.bf16.mxu1 %v10515_v14  ;;  %v386_v27 = vld [vmem:[#allocation6 + $0xb8] sm:$0xff]  ;;  %v10563_v28 = vpack.c.bf16 %v369_v24, %v368_v23  ;;  %s12958_s14 = scalar_lea.vmem %s13352_s5, %s7181_s23  ;;  %s7182_s17 = sshll.u32 %s12609_s13, 1  ;;  %vm3595_vm13 = vcmask 253952  }
  0x6d   : > { %356 = vst [vmem:[#allocation2 + $0x8] sm:$0xff] %v352_v15  ;;  %8346 = vmatprep.mubr.f32.mxu1 %v352_v15  ;;  %357 = vst [vmem:[#allocation2 + $0x10] sm:$0xff] %v12615_v16  ;;  %10518 = vmatpush3.bf16.msra.mxu1 %v10515_v14  ;;  %v370_v29 = vld [vmem:[#allocation6 + $0x50] sm:$0xff]  ;;  %v371_v30 = vld [vmem:[#allocation6 + $0x58] sm:$0xff]  ;;  %v10527_v32 = vpack.c.bf16 %v386_v27, %v385_v26  ;;  %s12974_s18 = scalar_lea.vmem %s13354_s7, %s7182_s17  ;;  %s13021_s26 = scalar_lea.vmem %s13353_s6, %s7182_s17 }
  0x6e   : > { %10554 = vmatpush3.bf16.msra.mxu0 %v10551_v6  ;;  %10520 = vmatprep.subr.bf16.mxu1 %v10519_v19  ;;  %v387_v33 = vld [vmem:[#allocation6 + $0xc0] sm:$0xff]  ;;  %v388_v34 = vld [vmem:[#allocation6 + $0xc8] sm:$0xff]  ;;  %v10567_v35 = vpack.c.bf16 %v371_v30, %v370_v29  ;;  %v389_v40 = vld [vmem:[#allocation6 + $0xd0] sm:$0xff]  ;;  %s314_s16 = sand.u32 1, %s12393_s25   ;;  %s7230_s23 = sshll.u32 %s12478_s28, 8 }
  0x6f   : > { %10556 = vmatprep.subr.bf16.mxu0 %v10555_v9  ;;  %v372_v37 = vld [vmem:[#allocation6 + $0x60] sm:$0xff]  ;;  %v373_v38 = vld [vmem:[#allocation6 + $0x68] sm:$0xff]  ;;  %v10531_v39 = vpack.c.bf16 %v388_v34, %v387_v33  ;;  %v390_v41 = vld [vmem:[#allocation6 + $0xd8] sm:$0xff]  ;;  %s7178_s20 = sshll.u32 %s314_s16, 4  ;;  %s13306_s17 = scalar_lea.sflag [#allocation5], %s314_s16 }
  0x70   : > { %v10571_v42 = vpack.c.bf16 %v373_v38, %v372_v37  ;;  %v374_v43 = vld [vmem:[#allocation6 + $0x70] sm:$0xff]  ;;  %v375_v44 = vld [vmem:[#allocation6 + $0x78] sm:$0xff]  ;;  %v10535_v45 = vpack.c.bf16 %v390_v41, %v389_v40  ;;  %v391_v46 = vld [vmem:[#allocation6 + $0xe0] sm:$0xff]  ;;  %s316_s9 = scalar_lea.vmem [#allocation9], %s7178_s20  ;;  %p13374_p7 = scmp.ne.s32.totalorder %s13364_s11, 0 }
  0x71   : > { %10522 = vmatpush3.bf16.msra.mxu1 %v10519_v19  ;;  %v392_v47 = vld [vmem:[#allocation6 + $0xe8] sm:$0xff]  ;;  %v10575_v48 = vpack.c.bf16 %v375_v44, %v374_v43  ;;  %v548_v49 = vld [vmem:[#allocation6 + $0x100] sm:$0xff]  ;;  %v393_v52 = vld [vmem:[#allocation6 + $0xf0] sm:$0xff]  ;;  %s6994_s10 = sshll.u32 %s316_s9, 4  ;;  %s12414_s28 = smov [#allocation9]   ;;  %s13299_s10 = int_to_ptr.vmem [resolvable:$true] %s6994_s10 }
  0x72   : > { %10558 = vmatpush3.bf16.msra.mxu0 %v10555_v9  ;;  %10524 = vmatprep.subr.bf16.mxu1 %v10523_v25  ;;  %v549_v50 = vld [vmem:[#allocation6 + $0x108] sm:$0xff]  ;;  %v10539_v51 = vpack.c.bf16 %v392_v47, %v391_v46  ;;  %v394_v53 = vld [vmem:[#allocation6 + $0xf8] sm:$0xff]  ;;  %v550_v55 = vld [vmem:[#allocation6 + $0x110] sm:$0xff]  ;;  %s12331_s19 = scalar_lea.vmem %s13299_s10, 256  ;;  %s12335_s15 = sshll.u32 %s12414_s28, 4  ;;  %s12336_s15 = int_to_ptr.vmem [resolvable:$false] %s12335_s15 }
  0x73   : > { %10560 = vmatprep.subr.bf16.mxu0 %v10559_v21  ;;  %v10579_v54 = vpack.c.bf16 %v549_v50, %v548_v49  ;;  %v551_v56 = vld [vmem:[#allocation6 + $0x118] sm:$0xff]  ;;  %v10543_v57 = vpack.c.bf16 %v394_v53, %v393_v52  ;;  %v678_v58 = vld [vmem:[#allocation6 + $0x280] sm:$0xff]  ;;  %v679_v59 = vld [vmem:[#allocation6 + $0x288] sm:$0xff]  ;;  %p12332_p12 = scmp.ne.s32.totalorder %s13299_s10, %s12331_s19  ;;  %p12338_p13 = scmp.lt.s32.totalorder %s13299_s10, %s12336_s15 }
  0x74   : > { %v358_v31 = vld [vmem:[#allocation2 + $0x7] sm:$0xff]  ;;  %v12619_v36 = vld [vmem:[#allocation2 + $0x11] sm:$0xff]  ;;  %v10583_v62 = vpack.c.bf16 %v551_v56, %v550_v55  ;;  %v10611_v2 = vpack.c.bf16 %v679_v59, %v678_v58  ;;  %v7184_v46 = vld [vmem:[#allocation8] ss:$0 sm:$0xff] }
  0x75   : > { %8381 = vmatprep.mubr.f32.mxu0 %v358_v31  ;;  %652 = vst [vmem:[#allocation2 + $0x7] sm:$0x1] %v12410_v0  ;;  %10526 = vmatpush3.bf16.msra.mxu1 %v10523_v25  ;;  %653 = vst [vmem:[#allocation2 + $0x18] sm:$0x1] %v12410_v0  ;;  %v359_v60 = vld [vmem:[#allocation2 + $0xf] sm:$0xff]  ;;  %v552_v63 = vld [vmem:[#allocation6 + $0x120] sm:$0xff]  ;;  %p12333_p8 = pnand %p12332_p12, %p13374_p7 }
  0x76   : > { %10562 = vmatpush3.bf16.msra.mxu0 %v10559_v21  ;;  %10528 = vmatprep.subr.bf16.mxu1 %v10527_v32  ;;  %v545_v61 = vld [vmem:[#allocation2 + $0x9] sm:$0xff]  ;;  %v681_v4 = vld [vmem:[#allocation6 + $0x298] sm:$0xff]  ;;  %v682_v9 = vld [vmem:[#allocation6 + $0x2a0] sm:$0xff] }
  0x77   : > { %10564 = vmatprep.subr.bf16.mxu0 %v10563_v28  ;;  %v553_v1 = vld [vmem:[#allocation6 + $0x128] sm:$0xff]  ;;  %v680_v3 = vld [vmem:[#allocation6 + $0x290] sm:$0xff]  ;;  %v555_v7 = vld [vmem:[#allocation6 + $0x138] sm:$0xff]  ;;  %p12334_p11 = pneg %p12333_p8 }
  0x78   : > { %v10587_v5 = vpack.c.bf16 %v553_v1, %v552_v63  ;;  %v554_v6 = vld [vmem:[#allocation6 + $0x130] sm:$0xff]  ;;  %v10615_v8 = vpack.c.bf16 %v681_v4, %v680_v3  ;;  %v683_v10 = vld [vmem:[#allocation6 + $0x2a8] sm:$0xff]  ;;  %v556_v12 = vld [vmem:[#allocation6 + $0x140] sm:$0xff] }
  0x79   : > { %10530 = vmatpush3.bf16.msra.mxu1 %v10527_v32  ;;  %v10591_v11 = vpack.c.bf16 %v555_v7, %v554_v6  ;;  %v557_v13 = vld [vmem:[#allocation6 + $0x148] sm:$0xff]  ;;  %v10619_v14 = vpack.c.bf16 %v683_v10, %v682_v9  ;;  %v684_v15 = vld [vmem:[#allocation6 + $0x2b0] sm:$0xff]  ;;  %v685_v17 = vld [vmem:[#allocation6 + $0x2b8] sm:$0xff] }
  0x7a   : > { %10566 = vmatpush3.bf16.msra.mxu0 %v10563_v28  ;;  %10532 = vmatprep.subr.bf16.mxu1 %v10531_v39  ;;  %v10595_v18 = vpack.c.bf16 %v557_v13, %v556_v12  ;;  %v558_v19 = vld [vmem:[#allocation6 + $0x150] sm:$0xff]  ;;  %v559_v20 = vld [vmem:[#allocation6 + $0x158] sm:$0xff]  ;;  %v10623_v21 = vpack.c.bf16 %v685_v17, %v684_v15  ;;  %v560_v22 = vld [vmem:[#allocation6 + $0x160] sm:$0xff] }
  0x7b   : > { %10568 = vmatprep.subr.bf16.mxu0 %v10567_v35  ;;  %v561_v23 = vld [vmem:[#allocation6 + $0x168] sm:$0xff]  ;;  %v562_v25 = vld [vmem:[#allocation6 + $0x170] sm:$0xff]  ;;  %v563_v26 = vld [vmem:[#allocation6 + $0x178] sm:$0xff] }
  0x7c   : > { %v10603_v24 = vpack.c.bf16 %v561_v23, %v560_v22  ;;  %v10607_v27 = vpack.c.bf16 %v563_v26, %v562_v25  ;;  %v686_v28 = vld [vmem:[#allocation6 + $0x2c0] sm:$0xff]  ;;  %v687_v29 = vld [vmem:[#allocation6 + $0x2c8] sm:$0xff]  ;;  %v688_v31 = vld [vmem:[#allocation6 + $0x2d0] sm:$0xff] }
  0x7d   : > { %10534 = vmatpush3.bf16.msra.mxu1 %v10531_v39  ;;  %v10627_v30 = vpack.c.bf16 %v687_v29, %v686_v28  ;;  %v689_v32 = vld [vmem:[#allocation6 + $0x2d8] sm:$0xff]  ;;  %v690_v34 = vld [vmem:[#allocation6 + $0x2e0] sm:$0xff]  ;;  %v692_v38 = vld [vmem:[#allocation6 + $0x2f0] sm:$0xff] }
  0x7e   : > { %10570 = vmatpush3.bf16.msra.mxu0 %v10567_v35  ;;  %10536 = vmatprep.subr.bf16.mxu1 %v10535_v45  ;;  %v10631_v33 = vpack.c.bf16 %v689_v32, %v688_v31  ;;  %v691_v35 = vld [vmem:[#allocation6 + $0x2e8] sm:$0xff]  ;;  %v693_v39 = vld [vmem:[#allocation6 + $0x2f8] sm:$0xff]  ;;  %v665_v4 = vld [vmem:[#allocation6 + $0x230] sm:$0xff] }
  0x7f   : > { %10572 = vmatprep.subr.bf16.mxu0 %v10571_v42  ;;  %v10635_v37 = vpack.c.bf16 %v691_v35, %v690_v34  ;;  %v10639_v40 = vpack.c.bf16 %v693_v39, %v692_v38  ;;  %v660_v41 = vld [vmem:[#allocation6 + $0x208] sm:$0xff]  ;;  %v662_v55 = vld [vmem:[#allocation6 + $0x218] sm:$0xff]  ;;  %v667_v7 = vld [vmem:[#allocation6 + $0x240] sm:$0xff] }
  0x80   : > { %v664_v59 = vld [vmem:[#allocation6 + $0x228] sm:$0xff]  ;;  %v669_v10 = vld [vmem:[#allocation6 + $0x250] sm:$0xff]  ;;  %v671_v13 = vld [vmem:[#allocation6 + $0x260] sm:$0xff] }
  0x81   : > { %10538 = vmatpush3.bf16.msra.mxu1 %v10535_v45  ;;  %v673_v17 = vld [vmem:[#allocation6 + $0x270] sm:$0xff]  ;;  %v850_v23 = vld [vmem:[#allocation6 + $0x318] sm:$0xff]  ;;  %v851_v25 = vld [vmem:[#allocation6 + $0x320] sm:$0xff] }
  0x82   : > { %10574 = vmatpush3.bf16.msra.mxu0 %v10571_v42  ;;  %10540 = vmatprep.subr.bf16.mxu1 %v10539_v51  ;;  %v849_v22 = vld [vmem:[#allocation6 + $0x310] sm:$0xff]  ;;  %v852_v26 = vld [vmem:[#allocation6 + $0x328] sm:$0xff]  ;;  %v854_v29 = vld [vmem:[#allocation6 + $0x338] sm:$0xff] }
  0x83   : > { %10576 = vmatprep.subr.bf16.mxu0 %v10575_v48  ;;  %v853_v28 = vld [vmem:[#allocation6 + $0x330] sm:$0xff]  ;;  %v855_v31 = vld [vmem:[#allocation6 + $0x340] sm:$0xff]  ;;  %v856_v32 = vld [vmem:[#allocation6 + $0x348] sm:$0xff] }
  0x84   : > { %v857_v34 = vld [vmem:[#allocation6 + $0x350] sm:$0xff]  ;;  %v858_v35 = vld [vmem:[#allocation6 + $0x358] sm:$0xff]  ;;  %v859_v38 = vld [vmem:[#allocation6 + $0x360] sm:$0xff] }
  0x85   : > { %10542 = vmatpush3.bf16.msra.mxu1 %v10539_v51  ;;  %v860_v39 = vld [vmem:[#allocation6 + $0x368] sm:$0xff]  ;;  %vm10741_vm3 = vmpackc.low %vm1056_vm1, %vm12413_vm2  ;;  %vm3819_vm2 = vcmask 11272  }
  0x86   : > { %10578 = vmatpush3.bf16.msra.mxu0 %v10575_v48  ;;  %10544 = vmatprep.subr.bf16.mxu1 %v10543_v57 }
  0x87   : > { %10580 = vmatprep.subr.bf16.mxu0 %v10579_v54 }
  0x89   : > { %8382 = vmatmul.mubr.f32.vlgmr.msra.gmra.mrb[0].mxu0 %v359_v60  ;;  %10546 = vmatpush3.bf16.msra.mxu1 %v10543_v57  ;;  %v663_v57 = vld [vmem:[#allocation6 + $0x220] sm:$0xff] }
  0x8a   : > { %10582 = vmatpush3.bf16.msra.mxu0 %v10579_v54  ;;  %8416 = vmatprep.mubr.f32.mxu0 %v545_v61  ;;  %v661_v54 = vld [vmem:[#allocation6 + $0x210] sm:$0xff]  ;;  %v10651_v3 = vpack.c.bf16 %v664_v59, %v663_v57  ;;  %v954_v59 = vld [vmem:[#allocation6 + $0x3d8] sm:$0xff] }
  0x8b   : > { %10584 = vmatprep.subr.bf16.mxu0 %v10583_v62  ;;  %10612 = vmatprep.subr.bf16.mxu1 %v10611_v2  ;;  %v10647_v56 = vpack.c.bf16 %v662_v55, %v661_v54  ;;  %v951_v55 = vld [vmem:[#allocation6 + $0x3c0] sm:$0xff] }
  0x8c   : > { %8347 = vmatmul.mubr.f32.vlgmr.msra.gmra.mrb[0].mxu1 %v12615_v16  ;;  %v10599_v16 = vpack.c.bf16 %v559_v20, %v558_v19  ;;  %v847_v20 = vld [vmem:[#allocation6 + $0x300] sm:$0xff] }
  0x8d   : > { %10614 = vmatpush3.bf16.msra.mxu1 %v10611_v2 }
  0x8e   : > { %10586 = vmatpush3.bf16.msra.mxu0 %v10583_v62  ;;  %10616 = vmatprep.subr.bf16.mxu1 %v10615_v8 }
  0x8f   : > { %10588 = vmatprep.subr.bf16.mxu0 %v10587_v5 }
  0x91   : > { %10618 = vmatpush3.bf16.msra.mxu1 %v10615_v8  ;;  %v668_v8 = vld [vmem:[#allocation6 + $0x248] sm:$0xff] }
  0x92   : > { %10590 = vmatpush3.bf16.msra.mxu0 %v10587_v5  ;;  %10620 = vmatprep.subr.bf16.mxu1 %v10619_v14  ;;  %v666_v5 = vld [vmem:[#allocation6 + $0x238] sm:$0xff]  ;;  %v10659_v9 = vpack.c.bf16 %v668_v8, %v667_v7  ;;  %v1137_v7 = vld [vmem:[#allocation6 + $0x408] sm:$0xff] }
  0x93   : > { %10592 = vmatprep.subr.bf16.mxu0 %v10591_v11  ;;  %v10655_v6 = vpack.c.bf16 %v666_v5, %v665_v4  ;;  %v12411_v5 = vmov 0.0|0.0  }
  0x95   : > { %10622 = vmatpush3.bf16.msra.mxu1 %v10619_v14  ;;  %v672_v14 = vld [vmem:[#allocation6 + $0x268] sm:$0xff] }
  0x96   : > { %10594 = vmatpush3.bf16.msra.mxu0 %v10591_v11  ;;  %10624 = vmatprep.subr.bf16.mxu1 %v10623_v21  ;;  %v670_v11 = vld [vmem:[#allocation6 + $0x258] sm:$0xff]  ;;  %v10667_v15 = vpack.c.bf16 %v672_v14, %v671_v13  ;;  %v1142_v14 = vld [vmem:[#allocation6 + $0x430] sm:$0xff] }
  0x97   : > { %10596 = vmatprep.subr.bf16.mxu0 %v10595_v18  ;;  %v10663_v12 = vpack.c.bf16 %v670_v11, %v669_v10  ;;  %v1140_v11 = vld [vmem:[#allocation6 + $0x420] sm:$0xff] }
  0x99   : > { %10626 = vmatpush3.bf16.msra.mxu1 %v10623_v21  ;;  %v848_v21 = vld [vmem:[#allocation6 + $0x308] sm:$0xff] }
  0x9a   : > { %10598 = vmatpush3.bf16.msra.mxu0 %v10595_v18  ;;  %10628 = vmatprep.subr.bf16.mxu1 %v10627_v30  ;;  %v674_v18 = vld [vmem:[#allocation6 + $0x278] sm:$0xff] }
  0x9b   : > { %10600 = vmatprep.subr.bf16.mxu0 %v10599_v16  ;;  %v10671_v19 = vpack.c.bf16 %v674_v18, %v673_v17  ;;  %v1144_v18 = vld [vmem:[#allocation6 + $0x440] sm:$0xff] }
  0x9d   : > { %10630 = vmatpush3.bf16.msra.mxu1 %v10627_v30  ;;  %v10687_v30 = vpack.c.bf16 %v854_v29, %v853_v28 }
  0x9e   : > { %10602 = vmatpush3.bf16.msra.mxu0 %v10599_v16  ;;  %10632 = vmatprep.subr.bf16.mxu1 %v10631_v33  ;;  %v10675_v16 = vpack.c.bf16 %v848_v21, %v847_v20  ;;  %v1036_v21 = vlaneseq }
  0x9f   : > { %10604 = vmatprep.subr.bf16.mxu0 %v10603_v24 }
  0xa1   : > { %10634 = vmatpush3.bf16.msra.mxu1 %v10631_v33  ;;  %v10691_v33 = vpack.c.bf16 %v856_v32, %v855_v31  ;;  %v1156_v31 = vld [vmem:[#allocation6 + $0x490] sm:$0xff]  ;;  %v1157_v32 = vld [vmem:[#allocation6 + $0x498] sm:$0xff] }
  0xa2   : > { %10606 = vmatpush3.bf16.msra.mxu0 %v10603_v24  ;;  %10636 = vmatprep.subr.bf16.mxu1 %v10635_v37  ;;  %v10679_v24 = vpack.c.bf16 %v850_v23, %v849_v22  ;;  %v12649_v22 = vand.u32 127, %v1036_v21 }
  0xa3   : > { %10608 = vmatprep.subr.bf16.mxu0 %v10607_v27 }
  0xa5   : > { %10638 = vmatpush3.bf16.msra.mxu1 %v10635_v37  ;;  %v10695_v37 = vpack.c.bf16 %v858_v35, %v857_v34  ;;  %v1158_v34 = vld [vmem:[#allocation6 + $0x4a0] sm:$0xff]  ;;  %v1159_v35 = vld [vmem:[#allocation6 + $0x4a8] sm:$0xff] }
  0xa6   : > { %10610 = vmatpush3.bf16.msra.mxu0 %v10607_v27  ;;  %10640 = vmatprep.subr.bf16.mxu1 %v10639_v40  ;;  %v10683_v27 = vpack.c.bf16 %v852_v26, %v851_v25  ;;  %v1154_v26 = vld [vmem:[#allocation6 + $0x480] sm:$0xff] }
  0xa7   : > { %10739 = vmatprep.subr.bf16.mxu0 %v12411_v5 }
  0xa9   : > { %8417 = vmatmul.mubr.f32.vlgmr.msra.gmra.mrb[0].mxu0 %v12619_v36  ;;  %10642 = vmatpush3.bf16.msra.mxu1 %v10639_v40  ;;  %v659_v36 = vld [vmem:[#allocation6 + $0x200] sm:$0xff]  ;;  %v10699_v40 = vpack.c.bf16 %v860_v39, %v859_v38  ;;  %v1160_v38 = vld [vmem:[#allocation6 + $0x4b0] sm:$0xff]  ;;  %v1161_v39 = vld [vmem:[#allocation6 + $0x4b8] sm:$0xff] }
  0xaa   : > { %v10643_v42 = vpack.c.bf16 %v660_v41, %v659_v36  ;;  %v861_v36 = vld [vmem:[#allocation6 + $0x370] sm:$0xff]  ;;  %v862_v41 = vld [vmem:[#allocation6 + $0x378] sm:$0xff]  ;;  %8563 = vmatprep.mubr.msk.f32.mxu0 %vm12412_vm0, %v12410_v0 }
  0xac   : > { %10644 = vmatprep.subr.bf16.mxu1 %v10643_v42 }
 0x15f   : > { %v8348_v43 = vpop.f32.mrb[0].mxu1 }
 0x160   : > { %v461_v44 = vpop.f32.mrb[1].mxu1 }
 0x17c   : > { %v8418_v45 = vpop.f32.mrb[0].mxu0 }
 0x17d   : > { %v12135_v47 = vadd.f32 %v8418_v45, %v8348_v43  ;;  %v630_v48 = vpop.f32.mrb[1].mxu0  ;;  %v943_v43 = vld [vmem:[#allocation6 + $0x380] sm:$0xff] }
 0x17e   : > { %v12136_v49 = vadd.f32 %v630_v48, %v461_v44  ;;  %v944_v44 = vld [vmem:[#allocation6 + $0x388] sm:$0xff] }
 0x17f   : > { %v649_v50 = vadd.f32 %v12135_v47, %v7184_v46  ;;  %v10707_v45 = vpack.c.bf16 %v944_v44, %v943_v43  ;;  %v946_v47 = vld [vmem:[#allocation6 + $0x398] sm:$0xff]  ;;  %v1164_v43 = vld [vmem:[#allocation6 + $0x4d0] sm:$0xff] }
 0x180   : > { %v648_v51 = vadd.f32 %v12136_v49, %v7184_v46  ;;  %v945_v46 = vld [vmem:[#allocation6 + $0x390] sm:$0xff]  ;;  %v947_v49 = vld [vmem:[#allocation6 + $0x3a0] sm:$0xff]  ;;  %v1165_v44 = vld [vmem:[#allocation6 + $0x4d8] sm:$0xff] }
 0x181   : > { %v651_v52 = vmax.f32 %v649_v50, 0.0  ;;  %v10711_v48 = vpack.c.bf16 %v946_v47, %v945_v46  ;;  %v948_v50 = vld [vmem:[#allocation6 + $0x3a8] sm:$0xff]  ;;  %v1166_v46 = vld [vmem:[#allocation6 + $0x4e0] sm:$0xff] }
 0x182   : > { %v650_v53 = vmax.f32 %v648_v51, 0.0  ;;  %v10715_v51 = vpack.c.bf16 %v948_v50, %v947_v49  ;;  %v1167_v47 = vld [vmem:[#allocation6 + $0x4e8] sm:$0xff]  ;;  %v1168_v49 = vld [vmem:[#allocation6 + $0x4f0] sm:$0xff]  ;;  %v1169_v50 = vld [vmem:[#allocation6 + $0x4f8] sm:$0xff] }
 0x183   : > { %655 = vst [vmem:[#allocation2 + $0x10] sm:$0xff] %v651_v52  ;;  %v949_v52 = vld [vmem:[#allocation6 + $0x3b0] sm:$0xff] }
 0x184   : > { %654 = vst [vmem:[#allocation2 + $0x8] sm:$0xff] %v650_v53  ;;  %8451 = vmatprep.mubr.f32.mxu1 %v650_v53  ;;  %v950_v53 = vld [vmem:[#allocation6 + $0x3b8] sm:$0xff] }
 0x185   : > { %v10719_v54 = vpack.c.bf16 %v950_v53, %v949_v52  ;;  %v1147_v52 = vld [vmem:[#allocation6 + $0x458] sm:$0xff]  ;;  %v10765_v53 = vpack.c.bf16 %v1169_v50, %v1168_v49 }
 0x186   : > { %v1421_v49 = vld [vmem:[#allocation6 + $0x658] sm:$0xff] }
 0x18a   : > { %v676_v58 = vld [vmem:[#allocation2 + $0x10] sm:$0x7f] }
 0x18b   : > { %v12624_v60 = vld [vmem:[#allocation2 + $0x12] sm:$0x7f]  ;;  %v656_v61 = vld [vmem:[#allocation2 + $0x7] sm:$0xff]  ;;  %8452 = vmatmul.mubr.f32.vlgmr.msra.gmra.mrb[2].mxu1 %v676_v58 }
 0x18c   : > { %v12626_v62 = vld [vmem:[#allocation2 + $0x11] sm:$0x7f]  ;;  %6071 = vst [vmem:[#allocation2 + $0x18] sm:$0x1] %v12410_v0  ;;  %v844_v1 = vld [vmem:[#allocation2 + $0x9] sm:$0xff]  ;;  %10646 = vmatpush3.bf16.msra.mxu1 %v10643_v42  ;;  %8486 = vmatprep.mubr.f32.mxu1 %v656_v61  ;;  %v10703_v42 = vpack.c.bf16 %v862_v41, %v861_v36  ;;  %v1162_v36 = vld [vmem:[#allocation6 + $0x4c0] sm:$0xff] }
 0x18d   : > { %v657_v63 = vld [vmem:[#allocation2 + $0xf] sm:$0x7f]  ;;  %1131 = vst [vmem:[#allocation2 + $0x5] sm:$0x7] %v12410_v0  ;;  %10648 = vmatprep.subr.bf16.mxu1 %v10647_v56 }
 0x18e   : > { %v12629_v2 = vld [vmem:[#allocation2 + $0xa] sm:$0xff] }
 0x18f   : > { %1132 = vst [vmem:[#allocation2 + $0x10] sm:$0x7] %v12410_v0  ;;  %v953_v58 = vld [vmem:[#allocation6 + $0x3d0] sm:$0xff]  ;;  %v1163_v41 = vld [vmem:[#allocation6 + $0x4c8] sm:$0xff] }
 0x190   : > { %10650 = vmatpush3.bf16.msra.mxu1 %v10647_v56  ;;  %v952_v56 = vld [vmem:[#allocation6 + $0x3c8] sm:$0xff]  ;;  %v10727_v61 = vpack.c.bf16 %v954_v59, %v953_v58  ;;  %v1150_v58 = vld [vmem:[#allocation6 + $0x470] sm:$0xff]  ;;  %v1151_v59 = vld [vmem:[#allocation6 + $0x478] sm:$0xff] }
 0x191   : > { %10652 = vmatprep.subr.bf16.mxu1 %v10651_v3  ;;  %v10723_v57 = vpack.c.bf16 %v952_v56, %v951_v55  ;;  %v1148_v55 = vld [vmem:[#allocation6 + $0x460] sm:$0xff]  ;;  %v1149_v56 = vld [vmem:[#allocation6 + $0x468] sm:$0xff] }
 0x194   : > { %10654 = vmatpush3.bf16.msra.mxu1 %v10651_v3  ;;  %v958_v3 = vld [vmem:[#allocation6 + $0x3f8] sm:$0xff] }
 0x195   : > { %10656 = vmatprep.subr.bf16.mxu1 %v10655_v6 }
 0x198   : > { %10658 = vmatpush3.bf16.msra.mxu1 %v10655_v6  ;;  %v1136_v6 = vld [vmem:[#allocation6 + $0x400] sm:$0xff] }
 0x199   : > { %10660 = vmatprep.subr.bf16.mxu1 %v10659_v9  ;;  %v10768_v8 = vpack.c.bf16 %v1137_v7, %v1136_v6 }
 0x19c   : > { %10662 = vmatpush3.bf16.msra.mxu1 %v10659_v9  ;;  %v1138_v9 = vld [vmem:[#allocation6 + $0x410] sm:$0xff] }
 0x19d   : > { %10664 = vmatprep.subr.bf16.mxu1 %v10663_v12 }
 0x1a0   : > { %10666 = vmatpush3.bf16.msra.mxu1 %v10663_v12  ;;  %v1141_v12 = vld [vmem:[#allocation6 + $0x428] sm:$0xff] }
 0x1a1   : > { %10668 = vmatprep.subr.bf16.mxu1 %v10667_v15  ;;  %v10774_v13 = vpack.c.bf16 %v1141_v12, %v1140_v11  ;;  %v1317_v11 = vld [vmem:[#allocation6 + $0x528] sm:$0xff] }
 0x1a4   : > { %10670 = vmatpush3.bf16.msra.mxu1 %v10667_v15  ;;  %v1143_v15 = vld [vmem:[#allocation6 + $0x438] sm:$0xff] }
 0x1a5   : > { %10672 = vmatprep.subr.bf16.mxu1 %v10671_v19  ;;  %v10777_v17 = vpack.c.bf16 %v1143_v15, %v1142_v14  ;;  %v1319_v14 = vld [vmem:[#allocation6 + $0x538] sm:$0xff] }
 0x1a8   : > { %10674 = vmatpush3.bf16.msra.mxu1 %v10671_v19  ;;  %v1145_v19 = vld [vmem:[#allocation6 + $0x448] sm:$0xff] }
 0x1a9   : > { %10676 = vmatprep.subr.bf16.mxu1 %v10675_v16  ;;  %v10780_v20 = vpack.c.bf16 %v1145_v19, %v1144_v18  ;;  %v1320_v19 = vld [vmem:[#allocation6 + $0x540] sm:$0xff] }
 0x1ab   : > { %8487 = vmatmul.mubr.f32.vlgmr.msra.gmra.mrb[2].mxu1 %v657_v63  ;;  %v956_v63 = vld [vmem:[#allocation6 + $0x3e8] sm:$0xff] }
 0x1ac   : > { %10678 = vmatpush3.bf16.msra.mxu1 %v10675_v16  ;;  %8521 = vmatprep.mubr.f32.mxu1 %v844_v1  ;;  %v12647_v16 = vshrl.u32 %v1036_v21, 7 }
 0x1ad   : > { %10680 = vmatprep.subr.bf16.mxu1 %v10679_v24 }
 0x1ae   : > { %v1040_v23 = vmul.u32 2, %v12647_v16 }
 0x1b0   : > { %10682 = vmatpush3.bf16.msra.mxu1 %v10679_v24  ;;  %vm1041_vm4 = vcmp.eq.s32.totalorder %v12649_v22, %v1040_v23  ;;  %v1322_v23 = vld [vmem:[#allocation6 + $0x550] sm:$0xff] }
 0x1b1   : > { %10684 = vmatprep.subr.bf16.mxu1 %v10683_v27  ;;  %v12655_v29 = vsel %vm1041_vm4, 1.0, %v12410_v0  ;;  %vm3586_vm4 = vcmask 0  }
 0x1b4   : > { %10686 = vmatpush3.bf16.msra.mxu1 %v10683_v27  ;;  %v1155_v27 = vld [vmem:[#allocation6 + $0x488] sm:$0xff] }
 0x1b5   : > { %10688 = vmatprep.subr.bf16.mxu1 %v10687_v30 }
 0x1b8   : > { %10690 = vmatpush3.bf16.msra.mxu1 %v10687_v30  ;;  %v10744_v30 = vpack.c.bf16 %v1155_v27, %v1154_v26  ;;  %v1324_v26 = vld [vmem:[#allocation6 + $0x560] sm:$0xff]  ;;  %v1325_v27 = vld [vmem:[#allocation6 + $0x568] sm:$0xff] }
 0x1b9   : > { %10692 = vmatprep.subr.bf16.mxu1 %v10691_v33 }
 0x1bc   : > { %10694 = vmatpush3.bf16.msra.mxu1 %v10691_v33  ;;  %v10747_v33 = vpack.c.bf16 %v1157_v32, %v1156_v31  ;;  %v1327_v31 = vld [vmem:[#allocation6 + $0x578] sm:$0xff] }
 0x1bd   : > { %10696 = vmatprep.subr.bf16.mxu1 %v10695_v37 }
 0x1c0   : > { %10698 = vmatpush3.bf16.msra.mxu1 %v10695_v37  ;;  %v10750_v37 = vpack.c.bf16 %v1159_v35, %v1158_v34  ;;  %v1411_v34 = vld [vmem:[#allocation6 + $0x608] sm:$0xff] }
 0x1c1   : > { %10700 = vmatprep.subr.bf16.mxu1 %v10699_v40 }
 0x1c4   : > { %10702 = vmatpush3.bf16.msra.mxu1 %v10699_v40  ;;  %v10753_v40 = vpack.c.bf16 %v1161_v39, %v1160_v38  ;;  %v1413_v38 = vld [vmem:[#allocation6 + $0x618] sm:$0xff]  ;;  %v1414_v39 = vld [vmem:[#allocation6 + $0x620] sm:$0xff] }
 0x1c5   : > { %10704 = vmatprep.subr.bf16.mxu1 %v10703_v42 }
 0x1c8   : > { %10706 = vmatpush3.bf16.msra.mxu1 %v10703_v42  ;;  %v10756_v42 = vpack.c.bf16 %v1163_v41, %v1162_v36  ;;  %v1415_v36 = vld [vmem:[#allocation6 + $0x628] sm:$0xff] }
 0x1c9   : > { %10708 = vmatprep.subr.bf16.mxu1 %v10707_v45  ;;  %v10822_v41 = vpack.c.bf16 %v1415_v36, %v1414_v39  ;;  %v1540_v39 = vld [vmem:[#allocation6 + $0x8d8] sm:$0xff]  ;;  %v1541_v36 = vld [vmem:[#allocation6 + $0x8e0] sm:$0xff] }
 0x1cb   : > { %8522 = vmatmul.mubr.f32.vlgmr.msra.gmra.mrb[2].mxu1 %v12626_v62  ;;  %v955_v62 = vld [vmem:[#allocation6 + $0x3e0] sm:$0xff] }
 0x1cc   : > { %10710 = vmatpush3.bf16.msra.mxu1 %v10707_v45  ;;  %8556 = vmatprep.mubr.f32.mxu1 %v12629_v2  ;;  %v10731_v1 = vpack.c.bf16 %v956_v63, %v955_v62  ;;  %v957_v2 = vld [vmem:[#allocation6 + $0x3f0] sm:$0xff]  ;;  %v10759_v45 = vpack.c.bf16 %v1165_v44, %v1164_v43  ;;  %v7186_v62 = vld [vmem:[#allocation8 + $0x1] ss:$0 sm:$0xff]  ;;  %v1417_v43 = vld [vmem:[#allocation6 + $0x638] sm:$0xff] }
 0x1cd   : > { %10712 = vmatprep.subr.bf16.mxu1 %v10711_v48  ;;  %v10735_v4 = vpack.c.bf16 %v958_v3, %v957_v2  ;;  %v1312_v63 = vld [vmem:[#allocation6 + $0x500] sm:$0xff] }
 0x1d0   : > { %10714 = vmatpush3.bf16.msra.mxu1 %v10711_v48  ;;  %v10762_v48 = vpack.c.bf16 %v1167_v47, %v1166_v46  ;;  %v1419_v46 = vld [vmem:[#allocation6 + $0x648] sm:$0xff] }
 0x1d1   : > { %10716 = vmatprep.subr.bf16.mxu1 %v10715_v51 }
 0x1d4   : > { %10718 = vmatpush3.bf16.msra.mxu1 %v10715_v51  ;;  %v1146_v51 = vld [vmem:[#allocation6 + $0x450] sm:$0xff] }
 0x1d5   : > { %10720 = vmatprep.subr.bf16.mxu1 %v10719_v54 }
 0x1d8   : > { %10722 = vmatpush3.bf16.msra.mxu1 %v10719_v54  ;;  %v10783_v54 = vpack.c.bf16 %v1147_v52, %v1146_v51  ;;  %v1422_v51 = vld [vmem:[#allocation6 + $0x660] sm:$0xff]  ;;  %v1423_v52 = vld [vmem:[#allocation6 + $0x668] sm:$0xff] }
 0x1d9   : > { %10724 = vmatprep.subr.bf16.mxu1 %v10723_v57 }
 0x1dc   : > { %10726 = vmatpush3.bf16.msra.mxu1 %v10723_v57  ;;  %v10786_v57 = vpack.c.bf16 %v1149_v56, %v1148_v55  ;;  %v1425_v55 = vld [vmem:[#allocation6 + $0x678] sm:$0xff] }
 0x1dd   : > { %10728 = vmatprep.subr.bf16.mxu1 %v10727_v61 }
 0x1e0   : > { %10730 = vmatpush3.bf16.msra.mxu1 %v10727_v61  ;;  %v10789_v61 = vpack.c.bf16 %v1151_v59, %v1150_v58  ;;  %v1530_v58 = vld [vmem:[#allocation6 + $0x888] sm:$0xff] }
 0x1e1   : > { %10732 = vmatprep.subr.bf16.mxu1 %v10731_v1 }
 0x1e4   : > { %10734 = vmatpush3.bf16.msra.mxu1 %v10731_v1  ;;  %v1313_v1 = vld [vmem:[#allocation6 + $0x508] sm:$0xff] }
 0x1e5   : > { %10736 = vmatprep.subr.bf16.mxu1 %v10735_v4  ;;  %v10792_v6 = vpack.c.bf16 %v1313_v1, %v1312_v63  ;;  %v1533_v1 = vld [vmem:[#allocation6 + $0x8a0] sm:$0xff] }
 0x1e8   : > { %10738 = vmatpush3.bf16.msra.mxu1 %v10735_v4 }
 0x1e9   : > { %10767 = vmatprep.subr.bf16.mxu1 %v12411_v5 }
 0x1eb   : > { %8557 = vmatmul.mubr.f32.vlgmr.msra.gmra.mrb[2].mxu1 %v12624_v60  ;;  %v1139_v60 = vld [vmem:[#allocation6 + $0x418] sm:$0xff] }
 0x1ec   : > { %8633 = vmatprep.mubr.msk.f32.mxu1 %vm12412_vm0, %v12410_v0  ;;  %10769 = vmatpush3.bf16.msra.mxu1 %v10768_v8  ;;  %v10771_v10 = vpack.c.bf16 %v1139_v60, %v1138_v9  ;;  %v1314_v8 = vld [vmem:[#allocation6 + $0x510] sm:$0xff]  ;;  %v1315_v9 = vld [vmem:[#allocation6 + $0x518] sm:$0xff] }
 0x1ed   : > { %10770 = vmatprep.subr.bf16.mxu1 %v12411_v5  ;;  %v10795_v60 = vpack.c.bf16 %v1315_v9, %v1314_v8  ;;  %v1537_v9 = vld [vmem:[#allocation6 + $0x8c0] sm:$0xff] }
 0x1f0   : > { %10772 = vmatpush3.bf16.msra.mxu1 %v10771_v10  ;;  %v1316_v10 = vld [vmem:[#allocation6 + $0x520] sm:$0xff] }
 0x1f1   : > { %10773 = vmatprep.subr.bf16.mxu1 %v12411_v5  ;;  %v10798_v12 = vpack.c.bf16 %v1317_v11, %v1316_v10 }
 0x1f4   : > { %10775 = vmatpush3.bf16.msra.mxu1 %v10774_v13  ;;  %v1318_v13 = vld [vmem:[#allocation6 + $0x530] sm:$0xff] }
 0x1f5   : > { %10776 = vmatprep.subr.bf16.mxu1 %v12411_v5  ;;  %v10801_v18 = vpack.c.bf16 %v1319_v14, %v1318_v13 }
 0x1f8   : > { %10778 = vmatpush3.bf16.msra.mxu1 %v10777_v17 }
 0x1f9   : > { %10779 = vmatprep.subr.bf16.mxu1 %v12411_v5 }
 0x1fc   : > { %10781 = vmatpush3.bf16.msra.mxu1 %v10780_v20  ;;  %v1321_v20 = vld [vmem:[#allocation6 + $0x548] sm:$0xff] }
 0x1fd   : > { %10782 = vmatprep.subr.bf16.mxu1 %v12411_v5  ;;  %v10804_v21 = vpack.c.bf16 %v1321_v20, %v1320_v19 }
 0x200   : > { %10784 = vmatpush3.bf16.msra.mxu1 %v10783_v54  ;;  %v1424_v54 = vld [vmem:[#allocation6 + $0x670] sm:$0xff] }
 0x201   : > { %10785 = vmatprep.subr.bf16.mxu1 %v12411_v5  ;;  %v10837_v56 = vpack.c.bf16 %v1425_v55, %v1424_v54  ;;  %v1525_v55 = vld [vmem:[#allocation6 + $0x870] sm:$0xff] }
 0x204   : > { %10787 = vmatpush3.bf16.msra.mxu1 %v10786_v57  ;;  %v1529_v57 = vld [vmem:[#allocation6 + $0x880] sm:$0xff] }
 0x205   : > { %10788 = vmatprep.subr.bf16.mxu1 %v12411_v5  ;;  %v10840_v59 = vpack.c.bf16 %v1530_v58, %v1529_v57  ;;  %v7190_v58 = vld [vmem:[#allocation8 + $0x3] ss:$0 sm:$0xff] }
 0x208   : > { %10790 = vmatpush3.bf16.msra.mxu1 %v10789_v61  ;;  %v1531_v61 = vld [vmem:[#allocation6 + $0x890] sm:$0xff] }
 0x209   : > { %10815 = vmatprep.subr.bf16.mxu1 %v12411_v5 }
 0x2be   : > { %v8558_v24 = vpop.f32.mrb[2].mxu1 }
 0x2bf   : > { %v1025_v25 = vpop.f32.mrb[3].mxu1 }
 0x2c0   : > { %v10740_v28 = vpack.c.bf16 %v8558_v24, %v1025_v25  ;;  %v1323_v24 = vld [vmem:[#allocation6 + $0x558] sm:$0xff] }
 0x2c1   : > { %v10807_v25 = vpack.c.bf16 %v1323_v24, %v1322_v23  ;;  %v1512_v23 = vld [vmem:[#allocation6 + $0x808] sm:$0xff] }
 0x2c2   : > { %10742 = vmatpush3.bf16.msk.msra.mxu0 %vm10741_vm3, %v10740_v28  ;;  %v10810_v28 = vpack.c.bf16 %v1325_v27, %v1324_v26  ;;  %v1513_v27 = vld [vmem:[#allocation6 + $0x810] sm:$0xff] }
 0x2c3   : > { %10743 = vmatprep.subr.bf16.mxu0 %v12411_v5 }
 0x2c5   : > { %8564 = vmatmul.mubr.msk.f32.vlgmr.msra.gmra.mrb[2].mxu0 %vm1052_vm5, %v12655_v29 }
 0x2c6   : > { %10745 = vmatpush3.bf16.msra.mxu0 %v10744_v30  ;;  %8598 = vmatprep.mubr.msk.f32.mxu0 %vm12412_vm0, %v12410_v0  ;;  %v1326_v30 = vld [vmem:[#allocation6 + $0x570] sm:$0xff] }
 0x2c7   : > { %10746 = vmatprep.subr.bf16.mxu0 %v12411_v5  ;;  %v10813_v32 = vpack.c.bf16 %v1327_v31, %v1326_v30  ;;  %v1515_v31 = vld [vmem:[#allocation6 + $0x820] sm:$0xff] }
 0x2ca   : > { %10748 = vmatpush3.bf16.msra.mxu0 %v10747_v33  ;;  %v1410_v33 = vld [vmem:[#allocation6 + $0x600] sm:$0xff] }
 0x2cb   : > { %10749 = vmatprep.subr.bf16.mxu0 %v12411_v5  ;;  %v10816_v35 = vpack.c.bf16 %v1411_v34, %v1410_v33  ;;  %v1517_v34 = vld [vmem:[#allocation6 + $0x830] sm:$0xff] }
 0x2ce   : > { %10751 = vmatpush3.bf16.msra.mxu0 %v10750_v37  ;;  %v1412_v37 = vld [vmem:[#allocation6 + $0x610] sm:$0xff] }
 0x2cf   : > { %10752 = vmatprep.subr.bf16.mxu0 %v12411_v5 }
 0x2d2   : > { %10754 = vmatpush3.bf16.msra.mxu0 %v10753_v40  ;;  %v10819_v40 = vpack.c.bf16 %v1413_v38, %v1412_v37  ;;  %v1539_v38 = vld [vmem:[#allocation6 + $0x8d0] sm:$0xff] }
 0x2d3   : > { %10755 = vmatprep.subr.bf16.mxu0 %v12411_v5 }
 0x2d6   : > { %10757 = vmatpush3.bf16.msra.mxu0 %v10756_v42  ;;  %v1416_v42 = vld [vmem:[#allocation6 + $0x630] sm:$0xff] }
 0x2d7   : > { %10758 = vmatprep.subr.bf16.mxu0 %v12411_v5  ;;  %v10825_v44 = vpack.c.bf16 %v1417_v43, %v1416_v42  ;;  %v1519_v42 = vld [vmem:[#allocation6 + $0x840] sm:$0xff]  ;;  %v1520_v43 = vld [vmem:[#allocation6 + $0x848] sm:$0xff] }
 0x2da   : > { %10760 = vmatpush3.bf16.msra.mxu0 %v10759_v45  ;;  %v1418_v45 = vld [vmem:[#allocation6 + $0x640] sm:$0xff] }
 0x2db   : > { %10761 = vmatprep.subr.bf16.mxu0 %v12411_v5  ;;  %v10828_v47 = vpack.c.bf16 %v1419_v46, %v1418_v45  ;;  %v10876_v45 = vpack.c.bf16 %v1520_v43, %v1519_v42  ;;  %v1543_v46 = vld [vmem:[#allocation6 + $0x8f0] sm:$0xff]  ;;  %v1793_v43 = vld [vmem:[#allocation6 + $0xa40] sm:$0xff] }
 0x2de   : > { %10763 = vmatpush3.bf16.msra.mxu0 %v10762_v48  ;;  %v1420_v48 = vld [vmem:[#allocation6 + $0x650] sm:$0xff] }
 0x2df   : > { %10764 = vmatprep.subr.bf16.mxu0 %v12411_v5  ;;  %v10831_v50 = vpack.c.bf16 %v1421_v49, %v1420_v48  ;;  %v1521_v48 = vld [vmem:[#allocation6 + $0x850] sm:$0xff]  ;;  %v1522_v49 = vld [vmem:[#allocation6 + $0x858] sm:$0xff] }
 0x2e2   : > { %10766 = vmatpush3.bf16.msra.mxu0 %v10765_v53  ;;  %v10834_v53 = vpack.c.bf16 %v1423_v52, %v1422_v51  ;;  %v10879_v51 = vpack.c.bf16 %v1522_v49, %v1521_v48  ;;  %v1523_v52 = vld [vmem:[#allocation6 + $0x860] sm:$0xff] }
 0x2e3   : > { %10791 = vmatprep.subr.bf16.mxu0 %v12411_v5  ;;  %v1797_v49 = vld [vmem:[#allocation6 + $0xa60] sm:$0xff] }
 0x398   : > { %v1126_v2 = vpop.f32.mrb[2].mxu0 }
 0x399   : > { %v12672_v3 = vadd.f32 %v7186_v62, %v1126_v2  ;;  %v8565_v4 = vpop.f32.mrb[3].mxu0  ;;  %v1532_v62 = vld [vmem:[#allocation6 + $0x898] sm:$0xff]  ;;  %v1534_v2 = vld [vmem:[#allocation6 + $0x8a8] sm:$0xff] }
 0x39a   : > { %v10843_v63 = vpack.c.bf16 %v1532_v62, %v1531_v61  ;;  %v10846_v4 = vpack.c.bf16 %v1534_v2, %v1533_v1  ;;  %v1688_v1 = vld [vmem:[#allocation6 + $0x908] sm:$0xff] }
 0x39b   : > { %v1130_v7 = vmax.f32 %v12672_v3, 0.0 }
 0x39d   : > { %1133 = vst [vmem:[#allocation2 + $0x8] sm:$0xff] %v1130_v7  ;;  %8599 = vmatmul.mubr.f32.vlgmr.msra.gmra.mrb[4].mxu0 %v1130_v7  ;;  %v1536_v7 = vld [vmem:[#allocation6 + $0x8b8] sm:$0xff] }
 0x39e   : > { %10793 = vmatpush3.bf16.msra.mxu0 %v10792_v6  ;;  %8668 = vmatprep.mubr.msk.f32.mxu0 %vm12412_vm0, %v12410_v0  ;;  %v1535_v6 = vld [vmem:[#allocation6 + $0x8b0] sm:$0xff] }
 0x39f   : > { %10794 = vmatprep.subr.bf16.mxu0 %v12411_v5  ;;  %v10849_v8 = vpack.c.bf16 %v1536_v7, %v1535_v6  ;;  %v1689_v7 = vld [vmem:[#allocation6 + $0x910] sm:$0xff] }
 0x3a2   : > { %10796 = vmatpush3.bf16.msra.mxu0 %v10795_v60  ;;  %v1538_v60 = vld [vmem:[#allocation6 + $0x8c8] sm:$0xff] }
 0x3a3   : > { %10797 = vmatprep.subr.bf16.mxu0 %v12411_v5  ;;  %v10852_v10 = vpack.c.bf16 %v1538_v60, %v1537_v9  ;;  %v1691_v60 = vld [vmem:[#allocation6 + $0x920] sm:$0xff] }
 0x3a4   : > { %v1134_v15 = vld [vmem:[#allocation2 + $0x5] sm:$0xff] }
 0x3a5   : > { %v1310_v17 = vld [vmem:[#allocation2 + $0xb] sm:$0xff]  ;;  %1506 = vst [vmem:[#allocation2 + $0x7] sm:$0x1] %v12410_v0  ;;  %8634 = vmatmul.mubr.f32.vlgmr.msra.gmra.mrb[4].mxu1 %v1134_v15 }
 0x3a6   : > { %1507 = vst [vmem:[#allocation2 + $0x10] sm:$0x1] %v12410_v0  ;;  %10799 = vmatpush3.bf16.msra.mxu0 %v10798_v12  ;;  %8703 = vmatprep.mubr.msk.f32.mxu1 %vm12412_vm0, %v12410_v0 }
 0x3a7   : > { %10800 = vmatprep.subr.bf16.mxu0 %v12411_v5  ;;  %10817 = vmatpush3.bf16.msra.mxu1 %v10816_v35  ;;  %v1518_v35 = vld [vmem:[#allocation6 + $0x838] sm:$0xff] }
 0x3a8   : > { %10818 = vmatprep.subr.bf16.mxu1 %v12411_v5  ;;  %v10873_v37 = vpack.c.bf16 %v1518_v35, %v1517_v34  ;;  %v1787_v34 = vld [vmem:[#allocation6 + $0xa10] sm:$0xff]  ;;  %v1788_v35 = vld [vmem:[#allocation6 + $0xa18] sm:$0xff] }
 0x3aa   : > { %10802 = vmatpush3.bf16.msra.mxu0 %v10801_v18  ;;  %v7189_v18 = vld [vmem:[#allocation8 + $0x2] ss:$0 sm:$0xff] }
 0x3ab   : > { %10803 = vmatprep.subr.bf16.mxu0 %v12411_v5  ;;  %10820 = vmatpush3.bf16.msra.mxu1 %v10819_v40  ;;  %v10855_v40 = vpack.c.bf16 %v1540_v39, %v1539_v38  ;;  %v10915_v38 = vpack.c.bf16 %v1788_v35, %v1787_v34  ;;  %v1790_v39 = vld [vmem:[#allocation6 + $0xa28] sm:$0xff] }
 0x3ac   : > { %10821 = vmatprep.subr.bf16.mxu1 %v12411_v5 }
 0x3ae   : > { %10805 = vmatpush3.bf16.msra.mxu0 %v10804_v21  ;;  %v1511_v21 = vld [vmem:[#allocation6 + $0x800] sm:$0xff] }
 0x3af   : > { %10806 = vmatprep.subr.bf16.mxu0 %v12411_v5  ;;  %10823 = vmatpush3.bf16.msra.mxu1 %v10822_v41  ;;  %v1542_v41 = vld [vmem:[#allocation6 + $0x8e8] sm:$0xff] }
 0x3b0   : > { %10824 = vmatprep.subr.bf16.mxu1 %v12411_v5 }
 0x3b2   : > { %10808 = vmatpush3.bf16.msra.mxu0 %v10807_v25  ;;  %v10864_v25 = vpack.c.bf16 %v1512_v23, %v1511_v21  ;;  %v1698_v21 = vld [vmem:[#allocation6 + $0x958] sm:$0xff] }
 0x3b3   : > { %10809 = vmatprep.subr.bf16.mxu0 %v12411_v5  ;;  %10826 = vmatpush3.bf16.msra.mxu1 %v10825_v44  ;;  %v10858_v44 = vpack.c.bf16 %v1542_v41, %v1541_v36  ;;  %v1791_v36 = vld [vmem:[#allocation6 + $0xa30] sm:$0xff]  ;;  %v1792_v41 = vld [vmem:[#allocation6 + $0xa38] sm:$0xff] }
 0x3b4   : > { %10827 = vmatprep.subr.bf16.mxu1 %v12411_v5  ;;  %v10921_v42 = vpack.c.bf16 %v1792_v41, %v1791_v36  ;;  %v1887_v36 = vld [vmem:[#allocation6 + $0xc10] sm:$0xff]  ;;  %v1888_v41 = vld [vmem:[#allocation6 + $0xc18] sm:$0xff] }
 0x3b6   : > { %10811 = vmatpush3.bf16.msra.mxu0 %v10810_v28  ;;  %v1514_v28 = vld [vmem:[#allocation6 + $0x818] sm:$0xff] }
 0x3b7   : > { %10812 = vmatprep.subr.bf16.mxu0 %v12411_v5  ;;  %10829 = vmatpush3.bf16.msra.mxu1 %v10828_v47  ;;  %v10867_v30 = vpack.c.bf16 %v1514_v28, %v1513_v27  ;;  %v1544_v47 = vld [vmem:[#allocation6 + $0x8f8] sm:$0xff]  ;;  %v1701_v27 = vld [vmem:[#allocation6 + $0x970] sm:$0xff] }
 0x3b8   : > { %10830 = vmatprep.subr.bf16.mxu1 %v12411_v5  ;;  %v1702_v28 = vld [vmem:[#allocation6 + $0x978] sm:$0xff] }
 0x3ba   : > { %10814 = vmatpush3.bf16.msra.mxu0 %v10813_v32  ;;  %v1516_v32 = vld [vmem:[#allocation6 + $0x828] sm:$0xff] }
 0x3bb   : > { %10839 = vmatprep.subr.bf16.mxu0 %v12411_v5  ;;  %10832 = vmatpush3.bf16.msra.mxu1 %v10831_v50  ;;  %v10870_v33 = vpack.c.bf16 %v1516_v32, %v1515_v31  ;;  %v10861_v50 = vpack.c.bf16 %v1544_v47, %v1543_v46  ;;  %v1785_v31 = vld [vmem:[#allocation6 + $0xa00] sm:$0xff]  ;;  %v1786_v32 = vld [vmem:[#allocation6 + $0xa08] sm:$0xff]  ;;  %v1795_v46 = vld [vmem:[#allocation6 + $0xa50] sm:$0xff] }
 0x3bc   : > { %10833 = vmatprep.subr.bf16.mxu1 %v12411_v5  ;;  %v1796_v47 = vld [vmem:[#allocation6 + $0xa58] sm:$0xff] }
 0x3bd   : > { %8669 = vmatmul.mubr.f32.vlgmr.msra.gmra.mrb[6].mxu0 %v1310_v17  ;;  %v10927_v48 = vpack.c.bf16 %v1796_v47, %v1795_v46  ;;  %v10963_v46 = vpack.c.bf16 %v1888_v41, %v1887_v36  ;;  %v1890_v47 = vld [vmem:[#allocation6 + $0xc28] sm:$0xff]  ;;  %v2157_v36 = vld [vmem:[#allocation6 + $0xdb8] sm:$0xff] }
 0x3be   : > { %8738 = vmatprep.mubr.msk.f32.mxu0 %vm12412_vm0, %v12410_v0  ;;  %10841 = vmatpush3.bf16.msra.mxu0 %v10840_v59 }
 0x3bf   : > { %10835 = vmatpush3.bf16.msra.mxu1 %v10834_v53  ;;  %10842 = vmatprep.subr.bf16.mxu0 %v12411_v5  ;;  %v1524_v53 = vld [vmem:[#allocation6 + $0x868] sm:$0xff] }
 0x3c0   : > { %10836 = vmatprep.subr.bf16.mxu1 %v12411_v5  ;;  %v10882_v54 = vpack.c.bf16 %v1524_v53, %v1523_v52  ;;  %v1799_v52 = vld [vmem:[#allocation6 + $0xa70] sm:$0xff]  ;;  %v1800_v53 = vld [vmem:[#allocation6 + $0xa78] sm:$0xff] }
 0x3c2   : > { %10844 = vmatpush3.bf16.msra.mxu0 %v10843_v63  ;;  %v1687_v63 = vld [vmem:[#allocation6 + $0x900] sm:$0xff] }
 0x3c3   : > { %10838 = vmatpush3.bf16.msra.mxu1 %v10837_v56  ;;  %10845 = vmatprep.subr.bf16.mxu0 %v12411_v5  ;;  %v1526_v56 = vld [vmem:[#allocation6 + $0x878] sm:$0xff] }
 0x3c4   : > { %10863 = vmatprep.subr.bf16.mxu1 %v12411_v5  ;;  %v10885_v57 = vpack.c.bf16 %v1526_v56, %v1525_v55  ;;  %v1903_v55 = vld [vmem:[#allocation6 + $0xc80] sm:$0xff]  ;;  %v1904_v56 = vld [vmem:[#allocation6 + $0xc88] sm:$0xff] }
 0x3c6   : > { %10847 = vmatpush3.bf16.msra.mxu0 %v10846_v4  ;;  %v10888_v4 = vpack.c.bf16 %v1688_v1, %v1687_v63  ;;  %v1908_v63 = vld [vmem:[#allocation6 + $0xca8] sm:$0xff] }
 0x3c7   : > { %10848 = vmatprep.subr.bf16.mxu0 %v12411_v5 }
 0x3ca   : > { %10850 = vmatpush3.bf16.msra.mxu0 %v10849_v8  ;;  %v1690_v8 = vld [vmem:[#allocation6 + $0x918] sm:$0xff] }
 0x3cb   : > { %10851 = vmatprep.subr.bf16.mxu0 %v12411_v5  ;;  %v10891_v9 = vpack.c.bf16 %v1690_v8, %v1689_v7  ;;  %v1911_v8 = vld [vmem:[#allocation6 + $0xcc0] sm:$0xff] }
 0x3ce   : > { %10853 = vmatpush3.bf16.msra.mxu0 %v10852_v10  ;;  %v1692_v10 = vld [vmem:[#allocation6 + $0x928] sm:$0xff] }
 0x3cf   : > { %10854 = vmatprep.subr.bf16.mxu0 %v12411_v5 }
 0x3d2   : > { %10856 = vmatpush3.bf16.msra.mxu0 %v10855_v40 }
 0x3d3   : > { %10857 = vmatprep.subr.bf16.mxu0 %v12411_v5 }
 0x3d6   : > { %10859 = vmatpush3.bf16.msra.mxu0 %v10858_v44  ;;  %v1794_v44 = vld [vmem:[#allocation6 + $0xa48] sm:$0xff] }
 0x3d7   : > { %10860 = vmatprep.subr.bf16.mxu0 %v12411_v5 }
 0x3da   : > { %10862 = vmatpush3.bf16.msra.mxu0 %v10861_v50  ;;  %v1798_v50 = vld [vmem:[#allocation6 + $0xa68] sm:$0xff] }
 0x3db   : > { %10887 = vmatprep.subr.bf16.mxu0 %v12411_v5 }
 0x470   : > { %v1236_v11 = vpop.f32.mrb[4].mxu0 }
 0x471   : > { %v8600_v12 = vpop.f32.mrb[5].mxu0 }
 0x472   : > { %v1694_v12 = vld [vmem:[#allocation6 + $0x938] sm:$0xff] }
 0x478   : > { %v1306_v13 = vpop.f32.mrb[4].mxu1 }
 0x479   : > { %v1307_v14 = vadd.f32 %v1306_v13, %v1236_v11  ;;  %v8635_v15 = vpop.f32.mrb[5].mxu1  ;;  %v10894_v11 = vpack.c.bf16 %v1692_v10, %v1691_v60 }
 0x490   : > { %v1394_v17 = vpop.f32.mrb[6].mxu0 }
 0x491   : > { %v1398_v19 = vadd.f32 %v1394_v17, %v1307_v14  ;;  %v8670_v20 = vpop.f32.mrb[7].mxu0  ;;  %v1695_v17 = vld [vmem:[#allocation6 + $0x940] sm:$0xff] }
 0x492   : > { %v1697_v20 = vld [vmem:[#allocation6 + $0x950] sm:$0xff] }
 0x493   : > { %v1407_v24 = vadd.f32 %v7189_v18, %v1398_v19  ;;  %v1696_v18 = vld [vmem:[#allocation6 + $0x948] sm:$0xff]  ;;  %v10903_v23 = vpack.c.bf16 %v1698_v21, %v1697_v20  ;;  %v1913_v21 = vld [vmem:[#allocation6 + $0xcd0] sm:$0xff] }
 0x494   : > { %v10900_v19 = vpack.c.bf16 %v1696_v18, %v1695_v17 }
 0x495   : > { %v1408_v26 = vmax.f32 %v1407_v24, 0.0  ;;  %v1699_v24 = vld [vmem:[#allocation6 + $0x960] sm:$0xff] }
 0x497   : > { %8704 = vmatmul.mubr.f32.vlgmr.msra.gmra.mrb[6].mxu1 %v1408_v26 }
 0x498   : > { %10865 = vmatpush3.bf16.msra.mxu1 %v10864_v25  ;;  %8773 = vmatprep.mubr.msk.f32.mxu1 %vm12412_vm0, %v12410_v0  ;;  %v1700_v25 = vld [vmem:[#allocation6 + $0x968] sm:$0xff] }
 0x499   : > { %10866 = vmatprep.subr.bf16.mxu1 %v12411_v5  ;;  %v10906_v26 = vpack.c.bf16 %v1700_v25, %v1699_v24  ;;  %v1915_v25 = vld [vmem:[#allocation6 + $0xce0] sm:$0xff] }
 0x49c   : > { %10868 = vmatpush3.bf16.msra.mxu1 %v10867_v30  ;;  %v10909_v30 = vpack.c.bf16 %v1702_v28, %v1701_v27  ;;  %v1917_v28 = vld [vmem:[#allocation6 + $0xcf0] sm:$0xff] }
 0x49d   : > { %10869 = vmatprep.subr.bf16.mxu1 %v12411_v5 }
 0x4a0   : > { %10871 = vmatpush3.bf16.msra.mxu1 %v10870_v33  ;;  %v10912_v33 = vpack.c.bf16 %v1786_v32, %v1785_v31  ;;  %v7192_v32 = vld [vmem:[#allocation8 + $0x5] ss:$0 sm:$0xff] }
 0x4a1   : > { %10872 = vmatprep.subr.bf16.mxu1 %v12411_v5 }
 0x4a4   : > { %10874 = vmatpush3.bf16.msra.mxu1 %v10873_v37  ;;  %v1789_v37 = vld [vmem:[#allocation6 + $0xa20] sm:$0xff] }
 0x4a5   : > { %10875 = vmatprep.subr.bf16.mxu1 %v12411_v5  ;;  %v10918_v40 = vpack.c.bf16 %v1790_v39, %v1789_v37  ;;  %v1886_v39 = vld [vmem:[#allocation6 + $0xc08] sm:$0xff] }
 0x4a8   : > { %10877 = vmatpush3.bf16.msra.mxu1 %v10876_v45  ;;  %v10924_v45 = vpack.c.bf16 %v1794_v44, %v1793_v43 }
 0x4a9   : > { %10878 = vmatprep.subr.bf16.mxu1 %v12411_v5 }
 0x4ac   : > { %10880 = vmatpush3.bf16.msra.mxu1 %v10879_v51  ;;  %v10930_v51 = vpack.c.bf16 %v1798_v50, %v1797_v49  ;;  %v1891_v49 = vld [vmem:[#allocation6 + $0xc30] sm:$0xff]  ;;  %v1892_v50 = vld [vmem:[#allocation6 + $0xc38] sm:$0xff] }
 0x4ad   : > { %10881 = vmatprep.subr.bf16.mxu1 %v12411_v5 }
 0x4b0   : > { %10883 = vmatpush3.bf16.msra.mxu1 %v10882_v54  ;;  %v10933_v54 = vpack.c.bf16 %v1800_v53, %v1799_v52  ;;  %v1893_v52 = vld [vmem:[#allocation6 + $0xc40] sm:$0xff]  ;;  %v1894_v53 = vld [vmem:[#allocation6 + $0xc48] sm:$0xff] }
 0x4b1   : > { %10884 = vmatprep.subr.bf16.mxu1 %v12411_v5 }
 0x4b4   : > { %10886 = vmatpush3.bf16.msra.mxu1 %v10885_v57  ;;  %v1905_v57 = vld [vmem:[#allocation6 + $0xc90] sm:$0xff] }
 0x4b5   : > { %10911 = vmatprep.subr.bf16.mxu1 %v12411_v5 }
 0x56a   : > { %v1500_v59 = vpop.f32.mrb[6].mxu1 }
 0x56b   : > { %v1501_v61 = vadd.f32 %v7190_v58, %v1500_v59  ;;  %v8705_v62 = vpop.f32.mrb[7].mxu1  ;;  %v10936_v58 = vpack.c.bf16 %v1904_v56, %v1903_v55  ;;  %v1906_v59 = vld [vmem:[#allocation6 + $0xc98] sm:$0xff]  ;;  %v1895_v55 = vld [vmem:[#allocation6 + $0xc50] sm:$0xff] }
 0x56c   : > { %v1907_v62 = vld [vmem:[#allocation6 + $0xca0] sm:$0xff]  ;;  %v1896_v56 = vld [vmem:[#allocation6 + $0xc58] sm:$0xff] }
 0x56d   : > { %v12718_v2 = vadd.f32 %v1501_v61, %v12672_v3  ;;  %v1693_v3 = vld [vmem:[#allocation6 + $0x930] sm:$0xff]  ;;  %v10939_v61 = vpack.c.bf16 %v1906_v59, %v1905_v57  ;;  %v10942_v1 = vpack.c.bf16 %v1908_v63, %v1907_v62  ;;  %v10975_v57 = vpack.c.bf16 %v1896_v56, %v1895_v55  ;;  %v1898_v59 = vld [vmem:[#allocation6 + $0xc68] sm:$0xff]  ;;  %v1900_v63 = vld [vmem:[#allocation6 + $0xc78] sm:$0xff] }
 0x56e   : > { %v10897_v15 = vpack.c.bf16 %v1694_v12, %v1693_v3  ;;  %v1899_v62 = vld [vmem:[#allocation6 + $0xc70] sm:$0xff]  ;;  %v2346_v55 = vld [vmem:[#allocation6 + $0xe88] sm:$0xff] }
 0x56f   : > { %v1505_v6 = vmax.f32 %v12718_v2, 0.0 }
 0x571   : > { %1508 = vst [vmem:[#allocation2 + $0x8] sm:$0xff] %v1505_v6  ;;  %8739 = vmatmul.mubr.f32.vlgmr.msra.gmra.mrb[8].mxu0 %v1505_v6  ;;  %v1910_v6 = vld [vmem:[#allocation6 + $0xcb8] sm:$0xff] }
 0x572   : > { %10889 = vmatpush3.bf16.msra.mxu0 %v10888_v4  ;;  %8808 = vmatprep.mubr.msk.f32.mxu0 %vm12412_vm0, %v12410_v0  ;;  %v1909_v4 = vld [vmem:[#allocation6 + $0xcb0] sm:$0xff] }
 0x573   : > { %10890 = vmatprep.subr.bf16.mxu0 %v12411_v5  ;;  %v10945_v7 = vpack.c.bf16 %v1910_v6, %v1909_v4  ;;  %v2061_v4 = vld [vmem:[#allocation6 + $0xd00] sm:$0xff]  ;;  %v2062_v6 = vld [vmem:[#allocation6 + $0xd08] sm:$0xff] }
 0x576   : > { %10892 = vmatpush3.bf16.msra.mxu0 %v10891_v9  ;;  %v1912_v9 = vld [vmem:[#allocation6 + $0xcc8] sm:$0xff] }
 0x577   : > { %10893 = vmatprep.subr.bf16.mxu0 %v12411_v5  ;;  %v10948_v60 = vpack.c.bf16 %v1912_v9, %v1911_v8  ;;  %v2063_v8 = vld [vmem:[#allocation6 + $0xd10] sm:$0xff]  ;;  %v2064_v9 = vld [vmem:[#allocation6 + $0xd18] sm:$0xff] }
 0x578   : > { %v1509_v13 = vld [vmem:[#allocation2 + $0x7] sm:$0xff] }
 0x579   : > { %v1685_v14 = vld [vmem:[#allocation2 + $0x9] sm:$0xff]  ;;  %1880 = vst [vmem:[#allocation2 + $0x7] sm:$0x1] %v12410_v0  ;;  %8774 = vmatmul.mubr.f32.vlgmr.msra.gmra.mrb[8].mxu1 %v1509_v13 }
 0x57a   : > { %1881 = vst [vmem:[#allocation2 + $0x10] sm:$0x1] %v12410_v0  ;;  %10895 = vmatpush3.bf16.msra.mxu0 %v10894_v11  ;;  %8843 = vmatprep.mubr.msk.f32.mxu1 %vm12412_vm0, %v12410_v0 }
 0x57b   : > { %10896 = vmatprep.subr.bf16.mxu0 %v12411_v5  ;;  %10913 = vmatpush3.bf16.msra.mxu1 %v10912_v33 }
 0x57c   : > { %10914 = vmatprep.subr.bf16.mxu1 %v12411_v5 }
 0x57e   : > { %10898 = vmatpush3.bf16.msra.mxu0 %v10897_v15  ;;  %v7191_v15 = vld [vmem:[#allocation8 + $0x4] ss:$0 sm:$0xff] }
 0x57f   : > { %10899 = vmatprep.subr.bf16.mxu0 %v12411_v5  ;;  %10916 = vmatpush3.bf16.msra.mxu1 %v10915_v38  ;;  %v1885_v38 = vld [vmem:[#allocation6 + $0xc00] sm:$0xff] }
 0x580   : > { %10917 = vmatprep.subr.bf16.mxu1 %v12411_v5 }
 0x582   : > { %10901 = vmatpush3.bf16.msra.mxu0 %v10900_v19 }
 0x583   : > { %10902 = vmatprep.subr.bf16.mxu0 %v12411_v5  ;;  %10919 = vmatpush3.bf16.msra.mxu1 %v10918_v40  ;;  %v10960_v40 = vpack.c.bf16 %v1886_v39, %v1885_v38  ;;  %v2155_v38 = vld [vmem:[#allocation6 + $0xda8] sm:$0xff] }
 0x584   : > { %10920 = vmatprep.subr.bf16.mxu1 %v12411_v5 }
 0x586   : > { %10904 = vmatpush3.bf16.msra.mxu0 %v10903_v23  ;;  %v1914_v23 = vld [vmem:[#allocation6 + $0xcd8] sm:$0xff] }
 0x587   : > { %10905 = vmatprep.subr.bf16.mxu0 %v12411_v5  ;;  %10922 = vmatpush3.bf16.msra.mxu1 %v10921_v42  ;;  %v10951_v24 = vpack.c.bf16 %v1914_v23, %v1913_v21  ;;  %v2073_v23 = vld [vmem:[#allocation6 + $0xd60] sm:$0xff] }
 0x588   : > { %10923 = vmatprep.subr.bf16.mxu1 %v12411_v5 }
 0x58a   : > { %10907 = vmatpush3.bf16.msra.mxu0 %v10906_v26  ;;  %v1916_v26 = vld [vmem:[#allocation6 + $0xce8] sm:$0xff] }
 0x58b   : > { %10908 = vmatprep.subr.bf16.mxu0 %v12411_v5  ;;  %10925 = vmatpush3.bf16.msra.mxu1 %v10924_v45  ;;  %v10954_v27 = vpack.c.bf16 %v1916_v26, %v1915_v25  ;;  %v2075_v26 = vld [vmem:[#allocation6 + $0xd70] sm:$0xff] }
 0x58c   : > { %10926 = vmatprep.subr.bf16.mxu1 %v12411_v5 }
 0x58e   : > { %10910 = vmatpush3.bf16.msra.mxu0 %v10909_v30  ;;  %v1918_v30 = vld [vmem:[#allocation6 + $0xcf8] sm:$0xff] }
 0x58f   : > { %10935 = vmatprep.subr.bf16.mxu0 %v12411_v5  ;;  %10928 = vmatpush3.bf16.msra.mxu1 %v10927_v48  ;;  %v10957_v31 = vpack.c.bf16 %v1918_v30, %v1917_v28  ;;  %v2150_v30 = vld [vmem:[#allocation6 + $0xd80] sm:$0xff] }
 0x590   : > { %10929 = vmatprep.subr.bf16.mxu1 %v12411_v5 }
 0x591   : > { %8809 = vmatmul.mubr.f32.vlgmr.msra.gmra.mrb[10].mxu0 %v1685_v14 }
 0x592   : > { %8878 = vmatprep.mubr.msk.f32.mxu0 %vm12412_vm0, %v12410_v0  ;;  %10937 = vmatpush3.bf16.msra.mxu0 %v10936_v58  ;;  %v1897_v58 = vld [vmem:[#allocation6 + $0xc60] sm:$0xff] }
 0x593   : > { %10931 = vmatpush3.bf16.msra.mxu1 %v10930_v51  ;;  %10938 = vmatprep.subr.bf16.mxu0 %v12411_v5  ;;  %v10969_v51 = vpack.c.bf16 %v1892_v50, %v1891_v49  ;;  %v2163_v49 = vld [vmem:[#allocation6 + $0xde8] sm:$0xff] }
 0x594   : > { %10932 = vmatprep.subr.bf16.mxu1 %v12411_v5 }
 0x596   : > { %10940 = vmatpush3.bf16.msra.mxu0 %v10939_v61  ;;  %v10978_v61 = vpack.c.bf16 %v1898_v59, %v1897_v58  ;;  %v2347_v58 = vld [vmem:[#allocation6 + $0xe90] sm:$0xff]  ;;  %v2348_v59 = vld [vmem:[#allocation6 + $0xe98] sm:$0xff] }
 0x597   : > { %10934 = vmatpush3.bf16.msra.mxu1 %v10933_v54  ;;  %10941 = vmatprep.subr.bf16.mxu0 %v12411_v5  ;;  %v10972_v54 = vpack.c.bf16 %v1894_v53, %v1893_v52  ;;  %v2165_v52 = vld [vmem:[#allocation6 + $0xdf8] sm:$0xff] }
 0x598   : > { %8986 = vmatprep.subr.mxu1 %v12410_v0 }
 0x59a   : > { %10943 = vmatpush3.bf16.msra.mxu0 %v10942_v1  ;;  %v10981_v1 = vpack.c.bf16 %v1900_v63, %v1899_v62  ;;  %v11035_v62 = vpack.c.bf16 %v2348_v59, %v2347_v58  ;;  %v2350_v63 = vld [vmem:[#allocation6 + $0xea8] sm:$0xff]  ;;  %v2507_v58 = vld [vmem:[#allocation6 + $0xf20] sm:$0xff] }
 0x59b   : > { %10944 = vmatprep.subr.bf16.mxu0 %v12411_v5  ;;  %v2508_v59 = vld [vmem:[#allocation6 + $0xf28] sm:$0xff] }
 0x59e   : > { %10946 = vmatpush3.bf16.msra.mxu0 %v10945_v7  ;;  %v10984_v7 = vpack.c.bf16 %v2062_v6, %v2061_v4  ;;  %v2351_v4 = vld [vmem:[#allocation6 + $0xeb0] sm:$0xff]  ;;  %v2352_v6 = vld [vmem:[#allocation6 + $0xeb8] sm:$0xff] }
 0x59f   : > { %10947 = vmatprep.subr.bf16.mxu0 %v12411_v5 }
 0x5a2   : > { %10949 = vmatpush3.bf16.msra.mxu0 %v10948_v60  ;;  %v10987_v60 = vpack.c.bf16 %v2064_v9, %v2063_v8  ;;  %v2354_v8 = vld [vmem:[#allocation6 + $0xec8] sm:$0xff] }
 0x5a3   : > { %10950 = vmatprep.subr.bf16.mxu0 %v12411_v5 }
 0x5a6   : > { %10952 = vmatpush3.bf16.msra.mxu0 %v10951_v24  ;;  %v2074_v24 = vld [vmem:[#allocation6 + $0xd68] sm:$0xff] }
 0x5a7   : > { %10953 = vmatprep.subr.bf16.mxu0 %v12411_v5  ;;  %v11002_v25 = vpack.c.bf16 %v2074_v24, %v2073_v23  ;;  %v2327_v24 = vld [vmem:[#allocation6 + $0xe00] sm:$0xff] }
 0x5aa   : > { %10955 = vmatpush3.bf16.msra.mxu0 %v10954_v27  ;;  %v2076_v27 = vld [vmem:[#allocation6 + $0xd78] sm:$0xff] }
 0x5ab   : > { %10956 = vmatprep.subr.bf16.mxu0 %v12411_v5  ;;  %v11005_v28 = vpack.c.bf16 %v2076_v27, %v2075_v26  ;;  %v2329_v27 = vld [vmem:[#allocation6 + $0xe10] sm:$0xff] }
 0x5ae   : > { %10958 = vmatpush3.bf16.msra.mxu0 %v10957_v31  ;;  %v2151_v31 = vld [vmem:[#allocation6 + $0xd88] sm:$0xff] }
 0x5af   : > { %10959 = vmatprep.subr.bf16.mxu0 %v12411_v5 }
 0x644   : > { %v1611_v10 = vpop.f32.mrb[8].mxu0 }
 0x645   : > { %v8740_v11 = vpop.f32.mrb[9].mxu0 }
 0x646   : > { %v2066_v11 = vld [vmem:[#allocation6 + $0xd28] sm:$0xff] }
 0x64c   : > { %v1681_v3 = vpop.f32.mrb[8].mxu1 }
 0x64d   : > { %v1682_v12 = vadd.f32 %v1681_v3, %v1611_v10  ;;  %v8775_v13 = vpop.f32.mrb[9].mxu1  ;;  %v2065_v10 = vld [vmem:[#allocation6 + $0xd20] sm:$0xff] }
 0x64e   : > { %v10990_v3 = vpack.c.bf16 %v2066_v11, %v2065_v10  ;;  %v2068_v13 = vld [vmem:[#allocation6 + $0xd38] sm:$0xff] }
 0x64f   : > { %v2356_v10 = vld [vmem:[#allocation6 + $0xed8] sm:$0xff] }
 0x664   : > { %v1769_v14 = vpop.f32.mrb[10].mxu0 }
 0x665   : > { %v1773_v17 = vadd.f32 %v1769_v14, %v1682_v12  ;;  %v8810_v18 = vpop.f32.mrb[11].mxu0  ;;  %v2067_v12 = vld [vmem:[#allocation6 + $0xd30] sm:$0xff] }
 0x666   : > { %v10993_v14 = vpack.c.bf16 %v2068_v13, %v2067_v12  ;;  %v2358_v12 = vld [vmem:[#allocation6 + $0xee8] sm:$0xff] }
 0x667   : > { %v1782_v19 = vadd.f32 %v7191_v15, %v1773_v17  ;;  %v2069_v15 = vld [vmem:[#allocation6 + $0xd40] sm:$0xff]  ;;  %v2070_v17 = vld [vmem:[#allocation6 + $0xd48] sm:$0xff] }
 0x668   : > { %v10996_v18 = vpack.c.bf16 %v2070_v17, %v2069_v15  ;;  %v2360_v15 = vld [vmem:[#allocation6 + $0xef8] sm:$0xff] }
 0x669   : > { %v1783_v20 = vmax.f32 %v1782_v19, 0.0  ;;  %v2071_v19 = vld [vmem:[#allocation6 + $0xd50] sm:$0xff] }
 0x66b   : > { %8844 = vmatmul.mubr.f32.vlgmr.msra.gmra.mrb[10].mxu1 %v1783_v20  ;;  %v2072_v20 = vld [vmem:[#allocation6 + $0xd58] sm:$0xff] }
 0x66c   : > { %8988 = vmatprep.mubr.msk.f32.mxu1 %vm12412_vm0, %v12410_v0  ;;  %v10999_v21 = vpack.c.bf16 %v2072_v20, %v2071_v19 }
 0x73e   : > { %v1875_v33 = vpop.f32.mrb[10].mxu1 }
 0x73f   : > { %v1876_v34 = vadd.f32 %v7192_v32, %v1875_v33  ;;  %v8845_v35 = vpop.f32.mrb[11].mxu1  ;;  %v11008_v32 = vpack.c.bf16 %v2151_v31, %v2150_v30  ;;  %v2152_v33 = vld [vmem:[#allocation6 + $0xd90] sm:$0xff] }
 0x741   : > { %v1879_v37 = vadd.f32 %v1876_v34, %v12718_v2  ;;  %v1889_v2 = vld [vmem:[#allocation6 + $0xc20] sm:$0xff]  ;;  %v2153_v34 = vld [vmem:[#allocation6 + $0xd98] sm:$0xff] }
 0x742   : > { %v10966_v48 = vpack.c.bf16 %v1890_v47, %v1889_v2  ;;  %v11011_v35 = vpack.c.bf16 %v2153_v34, %v2152_v33  ;;  %v2161_v2 = vld [vmem:[#allocation6 + $0xdd8] sm:$0xff]  ;;  %v2331_v34 = vld [vmem:[#allocation6 + $0xe20] sm:$0xff] }
 0x743   : > { %1882 = vst [vmem:[#allocation2 + $0x8] sm:$0xff] %v1879_v37  ;;  %v2154_v37 = vld [vmem:[#allocation6 + $0xda0] sm:$0xff] }
 0x744   : > { %v11014_v39 = vpack.c.bf16 %v2155_v38, %v2154_v37  ;;  %v2333_v38 = vld [vmem:[#allocation6 + $0xe30] sm:$0xff] }
 0x74a   : > { %v1883_v42 = vld [vmem:[#allocation2 + $0x7] sm:$0x7f] }
 0x74b   : > { %v1901_v43 = vld [vmem:[#allocation2 + $0x8] sm:$0x7f]  ;;  %2322 = vst [vmem:[#allocation2 + $0x5] sm:$0x7] %v12410_v0 }
 0x74c   : > { %v12756_v44 = vld [vmem:[#allocation2 + $0xa] sm:$0x7f]  ;;  %8879 = vmatmul.mubr.f32.vlgmr.msra.gmra.mrb[12].mxu0 %v1901_v43 }
 0x74d   : > { %4957 = vst [vmem:[#allocation2 + $0x10] sm:$0x1] %v12410_v0  ;;  %v12760_v45 = vld [vmem:[#allocation2 + $0x9] sm:$0x7f]  ;;  %10961 = vmatpush3.bf16.msra.mxu0 %v10960_v40  ;;  %8913 = vmatprep.mubr.msk.f32.mxu0 %vm12412_vm0, %v12410_v0  ;;  %v2156_v40 = vld [vmem:[#allocation6 + $0xdb0] sm:$0xff] }
 0x74e   : > { %2323 = vst [vmem:[#allocation2 + $0xc] sm:$0x7] %v12410_v0  ;;  %10962 = vmatprep.subr.bf16.mxu0 %v12411_v5  ;;  %v11017_v41 = vpack.c.bf16 %v2157_v36, %v2156_v40  ;;  %v2159_v43 = vld [vmem:[#allocation6 + $0xdc8] sm:$0xff]  ;;  %v2335_v36 = vld [vmem:[#allocation6 + $0xe40] sm:$0xff] }
 0x751   : > { %10964 = vmatpush3.bf16.msra.mxu0 %v10963_v46  ;;  %v2160_v46 = vld [vmem:[#allocation6 + $0xdd0] sm:$0xff] }
 0x752   : > { %10965 = vmatprep.subr.bf16.mxu0 %v12411_v5  ;;  %v11023_v47 = vpack.c.bf16 %v2161_v2, %v2160_v46  ;;  %v2339_v2 = vld [vmem:[#allocation6 + $0xe60] sm:$0xff] }
 0x755   : > { %10967 = vmatpush3.bf16.msra.mxu0 %v10966_v48  ;;  %v2162_v48 = vld [vmem:[#allocation6 + $0xde0] sm:$0xff] }
 0x756   : > { %10968 = vmatprep.subr.bf16.mxu0 %v12411_v5  ;;  %v11026_v50 = vpack.c.bf16 %v2163_v49, %v2162_v48  ;;  %v2341_v49 = vld [vmem:[#allocation6 + $0xe70] sm:$0xff] }
 0x759   : > { %10970 = vmatpush3.bf16.msra.mxu0 %v10969_v51  ;;  %v2164_v51 = vld [vmem:[#allocation6 + $0xdf0] sm:$0xff] }
 0x75a   : > { %10971 = vmatprep.subr.bf16.mxu0 %v12411_v5  ;;  %v11029_v53 = vpack.c.bf16 %v2165_v52, %v2164_v51  ;;  %v2503_v52 = vld [vmem:[#allocation6 + $0xf00] sm:$0xff] }
 0x75d   : > { %10973 = vmatpush3.bf16.msra.mxu0 %v10972_v54  ;;  %v2345_v54 = vld [vmem:[#allocation6 + $0xe80] sm:$0xff] }
 0x75e   : > { %10974 = vmatprep.subr.bf16.mxu0 %v12411_v5  ;;  %v11032_v56 = vpack.c.bf16 %v2346_v55, %v2345_v54  ;;  %v2505_v55 = vld [vmem:[#allocation6 + $0xf10] sm:$0xff] }
 0x761   : > { %10976 = vmatpush3.bf16.msra.mxu0 %v10975_v57 }
 0x762   : > { %10977 = vmatprep.subr.bf16.mxu0 %v12411_v5 }
 0x765   : > { %10979 = vmatpush3.bf16.msra.mxu0 %v10978_v61 }
 0x766   : > { %10980 = vmatprep.subr.bf16.mxu0 %v12411_v5 }
 0x769   : > { %10982 = vmatpush3.bf16.msra.mxu0 %v10981_v1 }
 0x76a   : > { %10983 = vmatprep.subr.bf16.mxu0 %v12411_v5 }
 0x76c   : > { %8914 = vmatmul.mubr.f32.vlgmr.msra.gmra.mrb[12].mxu0 %v1883_v42  ;;  %v2158_v42 = vld [vmem:[#allocation6 + $0xdc0] sm:$0xff] }
 0x76d   : > { %10985 = vmatpush3.bf16.msra.mxu0 %v10984_v7  ;;  %8948 = vmatprep.mubr.msk.f32.mxu0 %vm12412_vm0, %v12410_v0  ;;  %v11041_v7 = vpack.c.bf16 %v2352_v6, %v2351_v4  ;;  %v2512_v4 = vld [vmem:[#allocation6 + $0xf48] sm:$0xff] }
 0x76e   : > { %10986 = vmatprep.subr.bf16.mxu0 %v12411_v5 }
 0x771   : > { %10988 = vmatpush3.bf16.msra.mxu0 %v10987_v60  ;;  %v2355_v60 = vld [vmem:[#allocation6 + $0xed0] sm:$0xff] }
 0x772   : > { %10989 = vmatprep.subr.bf16.mxu0 %v12411_v5  ;;  %v11047_v11 = vpack.c.bf16 %v2356_v10, %v2355_v60  ;;  %v2516_v60 = vld [vmem:[#allocation6 + $0xf68] sm:$0xff] }
 0x775   : > { %10991 = vmatpush3.bf16.msra.mxu0 %v10990_v3  ;;  %v2357_v3 = vld [vmem:[#allocation6 + $0xee0] sm:$0xff] }
 0x776   : > { %10992 = vmatprep.subr.bf16.mxu0 %v12411_v5  ;;  %v11050_v13 = vpack.c.bf16 %v2358_v12, %v2357_v3  ;;  %v2518_v3 = vld [vmem:[#allocation6 + $0xf78] sm:$0xff] }
 0x779   : > { %10994 = vmatpush3.bf16.msra.mxu0 %v10993_v14  ;;  %v2359_v14 = vld [vmem:[#allocation6 + $0xef0] sm:$0xff] }
 0x77a   : > { %10995 = vmatprep.subr.bf16.mxu0 %v12411_v5  ;;  %v11053_v17 = vpack.c.bf16 %v2360_v15, %v2359_v14  ;;  %v2602_v14 = vld [vmem:[#allocation6 + $0x1008] sm:$0xff]  ;;  %v2603_v15 = vld [vmem:[#allocation6 + $0x1010] sm:$0xff] }
 0x77d   : > { %10997 = vmatpush3.bf16.msra.mxu0 %v10996_v18  ;;  %v7193_v18 = vld [vmem:[#allocation8 + $0x6] ss:$0 sm:$0xff] }
 0x77e   : > { %10998 = vmatprep.subr.bf16.mxu0 %v12411_v5 }
 0x781   : > { %11000 = vmatpush3.bf16.msra.mxu0 %v10999_v21 }
 0x782   : > { %11001 = vmatprep.subr.bf16.mxu0 %v12411_v5 }
 0x785   : > { %11003 = vmatpush3.bf16.msra.mxu0 %v11002_v25  ;;  %v2328_v25 = vld [vmem:[#allocation6 + $0xe08] sm:$0xff] }
 0x786   : > { %11004 = vmatprep.subr.bf16.mxu0 %v12411_v5  ;;  %v11056_v26 = vpack.c.bf16 %v2328_v25, %v2327_v24  ;;  %v2607_v25 = vld [vmem:[#allocation6 + $0x1030] sm:$0xff] }
 0x789   : > { %11006 = vmatpush3.bf16.msra.mxu0 %v11005_v28  ;;  %v2330_v28 = vld [vmem:[#allocation6 + $0xe18] sm:$0xff] }
 0x78a   : > { %11007 = vmatprep.subr.bf16.mxu0 %v12411_v5  ;;  %v11059_v33 = vpack.c.bf16 %v2330_v28, %v2329_v27  ;;  %v2609_v28 = vld [vmem:[#allocation6 + $0x1040] sm:$0xff] }
 0x78c   : > { %8949 = vmatmul.mubr.f32.vlgmr.msra.gmra.mrb[12].mxu0 %v12760_v45  ;;  %v11020_v45 = vpack.c.bf16 %v2159_v43, %v2158_v42  ;;  %v2337_v43 = vld [vmem:[#allocation6 + $0xe50] sm:$0xff] }
 0x78d   : > { %11009 = vmatpush3.bf16.msra.mxu0 %v11008_v32  ;;  %8983 = vmatprep.mubr.msk.f32.mxu0 %vm12412_vm0, %v12410_v0 }
 0x78e   : > { %11010 = vmatprep.subr.bf16.mxu0 %v12411_v5 }
 0x791   : > { %11012 = vmatpush3.bf16.msra.mxu0 %v11011_v35  ;;  %v2332_v35 = vld [vmem:[#allocation6 + $0xe28] sm:$0xff] }
 0x792   : > { %11013 = vmatprep.subr.bf16.mxu0 %v12411_v5  ;;  %v11062_v37 = vpack.c.bf16 %v2332_v35, %v2331_v34  ;;  %v2613_v35 = vld [vmem:[#allocation6 + $0x1060] sm:$0xff] }
 0x795   : > { %11015 = vmatpush3.bf16.msra.mxu0 %v11014_v39  ;;  %v2334_v39 = vld [vmem:[#allocation6 + $0xe38] sm:$0xff] }
 0x796   : > { %11016 = vmatprep.subr.bf16.mxu0 %v12411_v5  ;;  %v11065_v40 = vpack.c.bf16 %v2334_v39, %v2333_v38  ;;  %v2615_v39 = vld [vmem:[#allocation6 + $0x1070] sm:$0xff] }
 0x799   : > { %11018 = vmatpush3.bf16.msra.mxu0 %v11017_v41  ;;  %v2336_v41 = vld [vmem:[#allocation6 + $0xe48] sm:$0xff] }
 0x79a   : > { %11019 = vmatprep.subr.bf16.mxu0 %v12411_v5  ;;  %v11068_v42 = vpack.c.bf16 %v2336_v41, %v2335_v36  ;;  %v2720_v41 = vld [vmem:[#allocation6 + $0x1280] sm:$0xff] }
 0x79d   : > { %11021 = vmatpush3.bf16.msra.mxu0 %v11020_v45  ;;  %v2338_v45 = vld [vmem:[#allocation6 + $0xe58] sm:$0xff] }
 0x79e   : > { %11022 = vmatprep.subr.bf16.mxu0 %v12411_v5  ;;  %v11071_v46 = vpack.c.bf16 %v2338_v45, %v2337_v43  ;;  %v2722_v45 = vld [vmem:[#allocation6 + $0x1290] sm:$0xff] }
 0x7a1   : > { %11024 = vmatpush3.bf16.msra.mxu0 %v11023_v47  ;;  %v2340_v47 = vld [vmem:[#allocation6 + $0xe68] sm:$0xff] }
 0x7a2   : > { %11025 = vmatprep.subr.bf16.mxu0 %v12411_v5  ;;  %v11074_v48 = vpack.c.bf16 %v2340_v47, %v2339_v2  ;;  %v2724_v47 = vld [vmem:[#allocation6 + $0x12a0] sm:$0xff] }
 0x7a5   : > { %11027 = vmatpush3.bf16.msra.mxu0 %v11026_v50  ;;  %v2342_v50 = vld [vmem:[#allocation6 + $0xe78] sm:$0xff] }
 0x7a6   : > { %11028 = vmatprep.subr.bf16.mxu0 %v12411_v5  ;;  %v11077_v51 = vpack.c.bf16 %v2342_v50, %v2341_v49  ;;  %v2726_v50 = vld [vmem:[#allocation6 + $0x12b0] sm:$0xff] }
 0x7a9   : > { %11030 = vmatpush3.bf16.msra.mxu0 %v11029_v53  ;;  %v2504_v53 = vld [vmem:[#allocation6 + $0xf08] sm:$0xff] }
 0x7aa   : > { %11103 = vmatprep.subr.bf16.mxu0 %v12411_v5  ;;  %v11080_v54 = vpack.c.bf16 %v2504_v53, %v2503_v52  ;;  %v2728_v53 = vld [vmem:[#allocation6 + $0x12c0] sm:$0xff] }
 0x7ac   : > { %8984 = vmatmul.mubr.f32.vlgmr.msra.gmra.mrb[12].mxu0 %v12756_v44  ;;  %v2349_v44 = vld [vmem:[#allocation6 + $0xea0] sm:$0xff] }
 0x7ad   : > { %9128 = vmatprep.mubr.msk.f32.mxu0 %vm12412_vm0, %v12410_v0  ;;  %v11038_v1 = vpack.c.bf16 %v2350_v63, %v2349_v44  ;;  %v2510_v44 = vld [vmem:[#allocation6 + $0xf38] sm:$0xff] }
 0x87f   : > { %v2232_v57 = vpop.f32.mrb[12].mxu0 }
 0x880   : > { %v8985_v61 = vpop.f32.mrb[13].mxu0  ;;  %8987 = vmatpush3.msk.msra.mxu1 %vm1056_vm1, %v2232_v57  ;;  %vm3574_vm1 = vcmask 1043456  }
 0x881   : > { %8989 = vmatmul.mubr.msk.f32.vlgmr.msra.gmra.mrb[12].mxu1 %vm2245_vm6, %v12655_v29  ;;  %11031 = vmatprep.subr.bf16.mxu1 %v12411_v5  ;;  %v2353_v29 = vld [vmem:[#allocation6 + $0xec0] sm:$0xff]  ;;  %v11086_v61 = vpack.c.bf16 %v2508_v59, %v2507_v58 }
 0x882   : > { %11033 = vmatpush3.bf16.msra.mxu1 %v11032_v56  ;;  %9023 = vmatprep.mubr.msk.f32.mxu1 %vm12412_vm0, %v12410_v0  ;;  %v11044_v9 = vpack.c.bf16 %v2354_v8, %v2353_v29  ;;  %v2506_v56 = vld [vmem:[#allocation6 + $0xf18] sm:$0xff] }
 0x883   : > { %11034 = vmatprep.subr.bf16.mxu1 %v12411_v5  ;;  %v11083_v57 = vpack.c.bf16 %v2506_v56, %v2505_v55  ;;  %v2514_v29 = vld [vmem:[#allocation6 + $0xf58] sm:$0xff] }
 0x886   : > { %11036 = vmatpush3.bf16.msra.mxu1 %v11035_v62  ;;  %v2509_v62 = vld [vmem:[#allocation6 + $0xf30] sm:$0xff] }
 0x887   : > { %11037 = vmatprep.subr.bf16.mxu1 %v12411_v5  ;;  %v11089_v63 = vpack.c.bf16 %v2510_v44, %v2509_v62  ;;  %v7196_v44 = vld [vmem:[#allocation8 + $0x7] ss:$0 sm:$0xff] }
 0x88a   : > { %11039 = vmatpush3.bf16.msra.mxu1 %v11038_v1  ;;  %v2511_v1 = vld [vmem:[#allocation6 + $0xf40] sm:$0xff] }
 0x88b   : > { %11040 = vmatprep.subr.bf16.mxu1 %v12411_v5  ;;  %v11092_v6 = vpack.c.bf16 %v2512_v4, %v2511_v1  ;;  %v2702_v4 = vld [vmem:[#allocation6 + $0x1200] sm:$0xff] }
 0x88e   : > { %11042 = vmatpush3.bf16.msra.mxu1 %v11041_v7  ;;  %v2513_v7 = vld [vmem:[#allocation6 + $0xf50] sm:$0xff] }
 0x88f   : > { %11043 = vmatprep.subr.bf16.mxu1 %v12411_v5  ;;  %v11095_v8 = vpack.c.bf16 %v2514_v29, %v2513_v7 }
 0x892   : > { %11045 = vmatpush3.bf16.msra.mxu1 %v11044_v9  ;;  %v2515_v9 = vld [vmem:[#allocation6 + $0xf60] sm:$0xff] }
 0x893   : > { %11046 = vmatprep.subr.bf16.mxu1 %v12411_v5  ;;  %v11098_v10 = vpack.c.bf16 %v2516_v60, %v2515_v9  ;;  %v2704_v9 = vld [vmem:[#allocation6 + $0x1210] sm:$0xff]  ;;  %v2705_v60 = vld [vmem:[#allocation6 + $0x1218] sm:$0xff] }
 0x896   : > { %11048 = vmatpush3.bf16.msra.mxu1 %v11047_v11  ;;  %v2517_v11 = vld [vmem:[#allocation6 + $0xf70] sm:$0xff] }
 0x897   : > { %11049 = vmatprep.subr.bf16.mxu1 %v12411_v5  ;;  %v11101_v12 = vpack.c.bf16 %v2518_v3, %v2517_v11  ;;  %v2706_v11 = vld [vmem:[#allocation6 + $0x1220] sm:$0xff]  ;;  %v2707_v3 = vld [vmem:[#allocation6 + $0x1228] sm:$0xff] }
 0x89a   : > { %11051 = vmatpush3.bf16.msra.mxu1 %v11050_v13  ;;  %v2601_v13 = vld [vmem:[#allocation6 + $0x1000] sm:$0xff] }
 0x89b   : > { %11052 = vmatprep.subr.bf16.mxu1 %v12411_v5 }
 0x89e   : > { %11054 = vmatpush3.bf16.msra.mxu1 %v11053_v17  ;;  %v11104_v17 = vpack.c.bf16 %v2602_v14, %v2601_v13  ;;  %v2708_v13 = vld [vmem:[#allocation6 + $0x1230] sm:$0xff]  ;;  %v2709_v14 = vld [vmem:[#allocation6 + $0x1238] sm:$0xff] }
 0x89f   : > { %11055 = vmatprep.subr.bf16.mxu1 %v12411_v5 }
 0x8a0   : > { %11105 = vmatpush3.bf16.msra.mxu0 %v11104_v17  ;;  %v2710_v17 = vld [vmem:[#allocation6 + $0x1240] sm:$0xff] }
 0x8a1   : > { %11106 = vmatprep.subr.bf16.mxu0 %v12411_v5 }
 0x954   : > { %v2317_v19 = vpop.f32.mrb[12].mxu1 }
 0x955   : > { %v12810_v20 = vadd.f32 %v7193_v18, %v2317_v19  ;;  %v8990_v21 = vpop.f32.mrb[13].mxu1  ;;  %v2604_v18 = vld [vmem:[#allocation6 + $0x1018] sm:$0xff] }
 0x956   : > { %v11107_v19 = vpack.c.bf16 %v2604_v18, %v2603_v15  ;;  %v2605_v21 = vld [vmem:[#allocation6 + $0x1020] sm:$0xff]  ;;  %v11161_v15 = vpack.c.bf16 %v2709_v14, %v2708_v13  ;;  %v2711_v18 = vld [vmem:[#allocation6 + $0x1248] sm:$0xff]  ;;  %v2979_v14 = vld [vmem:[#allocation6 + $0x1418] sm:$0xff] }
 0x957   : > { %v2321_v23 = vmax.f32 %v12810_v20, 0.0 }
 0x958   : > { %11108 = vmatpush3.bf16.msra.mxu0 %v11107_v19  ;;  %v11164_v19 = vpack.c.bf16 %v2711_v18, %v2710_v17  ;;  %v2980_v17 = vld [vmem:[#allocation6 + $0x1420] sm:$0xff]  ;;  %v2981_v18 = vld [vmem:[#allocation6 + $0x1428] sm:$0xff] }
 0x959   : > { %2324 = vst [vmem:[#allocation2 + $0x8] sm:$0xf] %v2321_v23  ;;  %v2606_v23 = vld [vmem:[#allocation6 + $0x1028] sm:$0xff]  ;;  %11109 = vmatprep.subr.bf16.mxu0 %v12411_v5 }
 0x95a   : > { %v11110_v24 = vpack.c.bf16 %v2606_v23, %v2605_v21  ;;  %v2730_v21 = vld [vmem:[#allocation6 + $0x12d0] sm:$0xff]  ;;  %v2731_v23 = vld [vmem:[#allocation6 + $0x12d8] sm:$0xff] }
 0x95c   : > { %11111 = vmatpush3.bf16.msra.mxu0 %v11110_v24  ;;  %v11143_v24 = vpack.c.bf16 %v2731_v23, %v2730_v21  ;;  %v2982_v21 = vld [vmem:[#allocation6 + $0x1430] sm:$0xff]  ;;  %v2983_v23 = vld [vmem:[#allocation6 + $0x1438] sm:$0xff] }
 0x95d   : > { %11112 = vmatprep.subr.bf16.mxu0 %v12411_v5 }
 0x960   : > { %v2325_v30 = vld [vmem:[#allocation2 + $0x5] sm:$0xf]  ;;  %v12813_v32 = vld [vmem:[#allocation2 + $0xb] sm:$0xf] }
 0x961   : > { %v2343_v31 = vld [vmem:[#allocation2 + $0x8] sm:$0xf]  ;;  %2697 = vst [vmem:[#allocation2 + $0x7] sm:$0x1] %v12410_v0  ;;  %2698 = vst [vmem:[#allocation2 + $0xc] sm:$0x1] %v12410_v0 }
 0x962   : > { %9024 = vmatmul.mubr.f32.vlgmr.msra.gmra.mrb[14].mxu1 %v2343_v31 }
 0x963   : > { %11057 = vmatpush3.bf16.msra.mxu1 %v11056_v26  ;;  %9058 = vmatprep.mubr.msk.f32.mxu1 %vm12412_vm0, %v12410_v0  ;;  %v2608_v26 = vld [vmem:[#allocation6 + $0x1038] sm:$0xff] }
 0x964   : > { %11058 = vmatprep.subr.bf16.mxu1 %v12411_v5  ;;  %v11113_v27 = vpack.c.bf16 %v2608_v26, %v2607_v25  ;;  %v2712_v25 = vld [vmem:[#allocation6 + $0x1250] sm:$0xff]  ;;  %v2713_v26 = vld [vmem:[#allocation6 + $0x1258] sm:$0xff] }
 0x966   : > { %11114 = vmatpush3.bf16.msra.mxu0 %v11113_v27  ;;  %v11167_v27 = vpack.c.bf16 %v2713_v26, %v2712_v25  ;;  %v2984_v25 = vld [vmem:[#allocation6 + $0x1440] sm:$0xff]  ;;  %v2985_v26 = vld [vmem:[#allocation6 + $0x1448] sm:$0xff] }
 0x967   : > { %11060 = vmatpush3.bf16.msra.mxu1 %v11059_v33  ;;  %11115 = vmatprep.subr.bf16.mxu0 %v12411_v5  ;;  %v2612_v33 = vld [vmem:[#allocation6 + $0x1058] sm:$0xff] }
 0x968   : > { %11061 = vmatprep.subr.bf16.mxu1 %v12411_v5 }
 0x96b   : > { %11063 = vmatpush3.bf16.msra.mxu1 %v11062_v37  ;;  %v2614_v37 = vld [vmem:[#allocation6 + $0x1068] sm:$0xff] }
 0x96c   : > { %11064 = vmatprep.subr.bf16.mxu1 %v12411_v5  ;;  %v11122_v38 = vpack.c.bf16 %v2614_v37, %v2613_v35  ;;  %v2734_v35 = vld [vmem:[#allocation6 + $0x12f0] sm:$0xff]  ;;  %v2735_v37 = vld [vmem:[#allocation6 + $0x12f8] sm:$0xff] }
 0x96f   : > { %11066 = vmatpush3.bf16.msra.mxu1 %v11065_v40  ;;  %v2616_v40 = vld [vmem:[#allocation6 + $0x1078] sm:$0xff] }
 0x970   : > { %11067 = vmatprep.subr.bf16.mxu1 %v12411_v5  ;;  %v11125_v36 = vpack.c.bf16 %v2616_v40, %v2615_v39  ;;  %v11149_v39 = vpack.c.bf16 %v2735_v37, %v2734_v35  ;;  %v2717_v40 = vld [vmem:[#allocation6 + $0x1278] sm:$0xff]  ;;  %v2990_v35 = vld [vmem:[#allocation6 + $0x1470] sm:$0xff] }
 0x971   : > { %v2991_v37 = vld [vmem:[#allocation6 + $0x1478] sm:$0xff] }
 0x973   : > { %11069 = vmatpush3.bf16.msra.mxu1 %v11068_v42  ;;  %v2721_v42 = vld [vmem:[#allocation6 + $0x1288] sm:$0xff] }
 0x974   : > { %11070 = vmatprep.subr.bf16.mxu1 %v12411_v5  ;;  %v11128_v43 = vpack.c.bf16 %v2721_v42, %v2720_v41  ;;  %v7197_v41 = vld [vmem:[#allocation8 + $0x8] ss:$0 sm:$0xff] }
 0x977   : > { %11072 = vmatpush3.bf16.msra.mxu1 %v11071_v46  ;;  %v2723_v46 = vld [vmem:[#allocation6 + $0x1298] sm:$0xff] }
 0x978   : > { %11073 = vmatprep.subr.bf16.mxu1 %v12411_v5  ;;  %v11131_v2 = vpack.c.bf16 %v2723_v46, %v2722_v45 }
 0x97b   : > { %11075 = vmatpush3.bf16.msra.mxu1 %v11074_v48  ;;  %v2725_v48 = vld [vmem:[#allocation6 + $0x12a8] sm:$0xff] }
 0x97c   : > { %11076 = vmatprep.subr.bf16.mxu1 %v12411_v5  ;;  %v11134_v49 = vpack.c.bf16 %v2725_v48, %v2724_v47  ;;  %v2878_v47 = vld [vmem:[#allocation6 + $0x1300] sm:$0xff]  ;;  %v2879_v48 = vld [vmem:[#allocation6 + $0x1308] sm:$0xff] }
 0x97f   : > { %11078 = vmatpush3.bf16.msra.mxu1 %v11077_v51  ;;  %v2727_v51 = vld [vmem:[#allocation6 + $0x12b8] sm:$0xff] }
 0x980   : > { %11079 = vmatprep.subr.bf16.mxu1 %v12411_v5  ;;  %v11137_v52 = vpack.c.bf16 %v2727_v51, %v2726_v50  ;;  %v2880_v50 = vld [vmem:[#allocation6 + $0x1310] sm:$0xff]  ;;  %v2881_v51 = vld [vmem:[#allocation6 + $0x1318] sm:$0xff] }
 0x982   : > { %9059 = vmatmul.mubr.f32.vlgmr.msra.gmra.mrb[16].mxu1 %v2325_v30  ;;  %v2610_v30 = vld [vmem:[#allocation6 + $0x1048] sm:$0xff] }
 0x983   : > { %11081 = vmatpush3.bf16.msra.mxu1 %v11080_v54  ;;  %9093 = vmatprep.mubr.msk.f32.mxu1 %vm12412_vm0, %v12410_v0  ;;  %v11116_v31 = vpack.c.bf16 %v2610_v30, %v2609_v28  ;;  %v2729_v54 = vld [vmem:[#allocation6 + $0x12c8] sm:$0xff]  ;;  %v2732_v28 = vld [vmem:[#allocation6 + $0x12e0] sm:$0xff] }
 0x984   : > { %11082 = vmatprep.subr.bf16.mxu1 %v12411_v5  ;;  %v11140_v55 = vpack.c.bf16 %v2729_v54, %v2728_v53  ;;  %v2733_v30 = vld [vmem:[#allocation6 + $0x12e8] sm:$0xff] }
 0x985   : > { %11117 = vmatpush3.bf16.msra.mxu0 %v11116_v31  ;;  %v11146_v31 = vpack.c.bf16 %v2733_v30, %v2732_v28  ;;  %v2986_v28 = vld [vmem:[#allocation6 + $0x1450] sm:$0xff]  ;;  %v2987_v30 = vld [vmem:[#allocation6 + $0x1458] sm:$0xff] }
 0x986   : > { %11118 = vmatprep.subr.bf16.mxu0 %v12411_v5 }
 0x987   : > { %11084 = vmatpush3.bf16.msra.mxu1 %v11083_v57 }
 0x988   : > { %11085 = vmatprep.subr.bf16.mxu1 %v12411_v5 }
 0x98b   : > { %11087 = vmatpush3.bf16.msra.mxu1 %v11086_v61 }
 0x98c   : > { %11088 = vmatprep.subr.bf16.mxu1 %v12411_v5 }
 0x98f   : > { %11090 = vmatpush3.bf16.msra.mxu1 %v11089_v63 }
 0x990   : > { %11091 = vmatprep.subr.bf16.mxu1 %v12411_v5 }
 0x993   : > { %11093 = vmatpush3.bf16.msra.mxu1 %v11092_v6  ;;  %v2703_v6 = vld [vmem:[#allocation6 + $0x1208] sm:$0xff] }
 0x994   : > { %11094 = vmatprep.subr.bf16.mxu1 %v12411_v5  ;;  %v11152_v29 = vpack.c.bf16 %v2703_v6, %v2702_v4  ;;  %v2889_v4 = vld [vmem:[#allocation6 + $0x1358] sm:$0xff] }
 0x997   : > { %11096 = vmatpush3.bf16.msra.mxu1 %v11095_v8 }
 0x998   : > { %11097 = vmatprep.subr.bf16.mxu1 %v12411_v5 }
 0x99b   : > { %11099 = vmatpush3.bf16.msra.mxu1 %v11098_v10  ;;  %v11155_v10 = vpack.c.bf16 %v2705_v60, %v2704_v9  ;;  %v2892_v9 = vld [vmem:[#allocation6 + $0x1370] sm:$0xff]  ;;  %v2893_v60 = vld [vmem:[#allocation6 + $0x1378] sm:$0xff] }
 0x99c   : > { %11100 = vmatprep.subr.bf16.mxu1 %v12411_v5 }
 0x99f   : > { %11102 = vmatpush3.bf16.msra.mxu1 %v11101_v12  ;;  %v11158_v12 = vpack.c.bf16 %v2707_v3, %v2706_v11  ;;  %v2976_v11 = vld [vmem:[#allocation6 + $0x1400] sm:$0xff]  ;;  %v2977_v3 = vld [vmem:[#allocation6 + $0x1408] sm:$0xff] }
 0x9a0   : > { %11127 = vmatprep.subr.bf16.mxu1 %v12411_v5  ;;  %v11200_v13 = vpack.c.bf16 %v2977_v3, %v2976_v11  ;;  %v3082_v11 = vld [vmem:[#allocation6 + $0x1630] sm:$0xff]  ;;  %v3083_v3 = vld [vmem:[#allocation6 + $0x1638] sm:$0xff] }
 0x9a2   : > { %9094 = vmatmul.mubr.f32.vlgmr.msra.gmra.mrb[18].mxu1 %v12813_v32  ;;  %v2611_v32 = vld [vmem:[#allocation6 + $0x1050] sm:$0xff] }
 0x9a3   : > { %9163 = vmatprep.mubr.msk.f32.mxu1 %vm12412_vm0, %v12410_v0  ;;  %v11119_v34 = vpack.c.bf16 %v2612_v33, %v2611_v32  ;;  %11129 = vmatpush3.bf16.msra.mxu1 %v11128_v43  ;;  %v2714_v32 = vld [vmem:[#allocation6 + $0x1260] sm:$0xff]  ;;  %v2715_v33 = vld [vmem:[#allocation6 + $0x1268] sm:$0xff] }
 0x9a4   : > { %11130 = vmatprep.subr.bf16.mxu1 %v12411_v5 }
 0x9a5   : > { %11120 = vmatpush3.bf16.msra.mxu0 %v11119_v34  ;;  %v11170_v34 = vpack.c.bf16 %v2715_v33, %v2714_v32  ;;  %v2988_v32 = vld [vmem:[#allocation6 + $0x1460] sm:$0xff]  ;;  %v2989_v33 = vld [vmem:[#allocation6 + $0x1468] sm:$0xff] }
 0x9a6   : > { %11121 = vmatprep.subr.bf16.mxu0 %v12411_v5 }
 0x9a7   : > { %11132 = vmatpush3.bf16.msra.mxu1 %v11131_v2 }
 0x9a8   : > { %11133 = vmatprep.subr.bf16.mxu1 %v12411_v5 }
 0x9a9   : > { %11123 = vmatpush3.bf16.msra.mxu0 %v11122_v38  ;;  %v2716_v38 = vld [vmem:[#allocation6 + $0x1270] sm:$0xff] }
 0x9aa   : > { %11124 = vmatprep.subr.bf16.mxu0 %v12411_v5 }
 0x9ab   : > { %11135 = vmatpush3.bf16.msra.mxu1 %v11134_v49  ;;  %v11176_v49 = vpack.c.bf16 %v2879_v48, %v2878_v47  ;;  %v3100_v48 = vld [vmem:[#allocation6 + $0x16b0] sm:$0xff] }
 0x9ac   : > { %11136 = vmatprep.subr.bf16.mxu1 %v12411_v5 }
 0x9ad   : > { %11126 = vmatpush3.bf16.msra.mxu0 %v11125_v36  ;;  %v11173_v36 = vpack.c.bf16 %v2717_v40, %v2716_v38  ;;  %v11221_v38 = vpack.c.bf16 %v2991_v37, %v2990_v35  ;;  %v3095_v40 = vld [vmem:[#allocation6 + $0x1688] sm:$0xff]  ;;  %v3091_v37 = vld [vmem:[#allocation6 + $0x1678] sm:$0xff] }
 0x9ae   : > { %11151 = vmatprep.subr.bf16.mxu0 %v12411_v5 }
 0x9af   : > { %11138 = vmatpush3.bf16.msra.mxu1 %v11137_v52 }
 0x9b0   : > { %11139 = vmatprep.subr.bf16.mxu1 %v12411_v5 }
 0x9b3   : > { %11141 = vmatpush3.bf16.msra.mxu1 %v11140_v55  ;;  %v2882_v55 = vld [vmem:[#allocation6 + $0x1320] sm:$0xff] }
 0x9b4   : > { %11142 = vmatprep.subr.bf16.mxu1 %v12411_v5 }
 0x9b7   : > { %11144 = vmatpush3.bf16.msra.mxu1 %v11143_v24  ;;  %v11209_v24 = vpack.c.bf16 %v2983_v23, %v2982_v21  ;;  %v3086_v21 = vld [vmem:[#allocation6 + $0x1650] sm:$0xff]  ;;  %v3087_v23 = vld [vmem:[#allocation6 + $0x1658] sm:$0xff] }
 0x9b8   : > { %11145 = vmatprep.subr.bf16.mxu1 %v12411_v5 }
 0x9bb   : > { %11147 = vmatpush3.bf16.msra.mxu1 %v11146_v31  ;;  %v11215_v31 = vpack.c.bf16 %v2987_v30, %v2986_v28  ;;  %v3088_v28 = vld [vmem:[#allocation6 + $0x1660] sm:$0xff]  ;;  %v3089_v30 = vld [vmem:[#allocation6 + $0x1668] sm:$0xff] }
 0x9bc   : > { %11148 = vmatprep.subr.bf16.mxu1 %v12411_v5 }
 0x9bf   : > { %11150 = vmatpush3.bf16.msra.mxu1 %v11149_v39  ;;  %v3094_v39 = vld [vmem:[#allocation6 + $0x1680] sm:$0xff] }
 0x9c0   : > { %11175 = vmatprep.subr.bf16.mxu1 %v12411_v5 }
 0xa35   : > { %v2427_v56 = vpop.f32.mrb[14].mxu1 }
 0xa36   : > { %v9025_v57 = vpop.f32.mrb[15].mxu1 }
 0xa55   : > { %v2497_v58 = vpop.f32.mrb[16].mxu1 }
 0xa56   : > { %v2498_v59 = vadd.f32 %v2497_v58, %v2427_v56  ;;  %v9060_v61 = vpop.f32.mrb[17].mxu1  ;;  %v2883_v56 = vld [vmem:[#allocation6 + $0x1328] sm:$0xff]  ;;  %v2884_v58 = vld [vmem:[#allocation6 + $0x1330] sm:$0xff] }
 0xa57   : > { %v11182_v57 = vpack.c.bf16 %v2883_v56, %v2882_v55 }
 0xa75   : > { %v2585_v62 = vpop.f32.mrb[18].mxu1 }
 0xa76   : > { %v2589_v63 = vadd.f32 %v2585_v62, %v2498_v59  ;;  %v9095_v1 = vpop.f32.mrb[19].mxu1  ;;  %v2885_v59 = vld [vmem:[#allocation6 + $0x1338] sm:$0xff]  ;;  %v2886_v62 = vld [vmem:[#allocation6 + $0x1340] sm:$0xff] }
 0xa77   : > { %v11185_v61 = vpack.c.bf16 %v2885_v59, %v2884_v58  ;;  %v2888_v1 = vld [vmem:[#allocation6 + $0x1350] sm:$0xff]  ;;  %v7198_v59 = vld [vmem:[#allocation8 + $0x9] ss:$0 sm:$0xff] }
 0xa78   : > { %v2598_v7 = vadd.f32 %v7196_v44, %v2589_v63  ;;  %v2887_v44 = vld [vmem:[#allocation6 + $0x1348] sm:$0xff]  ;;  %v11191_v6 = vpack.c.bf16 %v2889_v4, %v2888_v1 }
 0xa79   : > { %v11188_v63 = vpack.c.bf16 %v2887_v44, %v2886_v62  ;;  %v3076_v44 = vld [vmem:[#allocation6 + $0x1600] sm:$0xff] }
 0xa7a   : > { %v2599_v8 = vmax.f32 %v2598_v7, 0.0  ;;  %v2890_v7 = vld [vmem:[#allocation6 + $0x1360] sm:$0xff] }
 0xa7c   : > { %9129 = vmatmul.mubr.f32.vlgmr.msra.gmra.mrb[14].mxu0 %v2599_v8 }
 0xa7d   : > { %11153 = vmatpush3.bf16.msra.mxu0 %v11152_v29  ;;  %9198 = vmatprep.mubr.msk.f32.mxu0 %vm12412_vm0, %v12410_v0  ;;  %v2891_v29 = vld [vmem:[#allocation6 + $0x1368] sm:$0xff] }
 0xa7e   : > { %11154 = vmatprep.subr.bf16.mxu0 %v12411_v5  ;;  %v11194_v8 = vpack.c.bf16 %v2891_v29, %v2890_v7  ;;  %v3078_v7 = vld [vmem:[#allocation6 + $0x1610] sm:$0xff]  ;;  %v3079_v29 = vld [vmem:[#allocation6 + $0x1618] sm:$0xff] }
 0xa81   : > { %11156 = vmatpush3.bf16.msra.mxu0 %v11155_v10  ;;  %v11197_v10 = vpack.c.bf16 %v2893_v60, %v2892_v9  ;;  %v3080_v9 = vld [vmem:[#allocation6 + $0x1620] sm:$0xff]  ;;  %v3081_v60 = vld [vmem:[#allocation6 + $0x1628] sm:$0xff] }
 0xa82   : > { %11157 = vmatprep.subr.bf16.mxu0 %v12411_v5 }
 0xa85   : > { %11159 = vmatpush3.bf16.msra.mxu0 %v11158_v12  ;;  %v2978_v12 = vld [vmem:[#allocation6 + $0x1410] sm:$0xff] }
 0xa86   : > { %11160 = vmatprep.subr.bf16.mxu0 %v12411_v5 }
 0xa89   : > { %11162 = vmatpush3.bf16.msra.mxu0 %v11161_v15  ;;  %v11203_v15 = vpack.c.bf16 %v2979_v14, %v2978_v12  ;;  %v11257_v12 = vpack.c.bf16 %v3083_v3, %v3082_v11  ;;  %v3085_v14 = vld [vmem:[#allocation6 + $0x1648] sm:$0xff]  ;;  %v3264_v11 = vld [vmem:[#allocation6 + $0x1760] sm:$0xff] }
 0xa8a   : > { %11163 = vmatprep.subr.bf16.mxu0 %v12411_v5  ;;  %v3265_v3 = vld [vmem:[#allocation6 + $0x1768] sm:$0xff] }
 0xa8d   : > { %11165 = vmatpush3.bf16.msra.mxu0 %v11164_v19  ;;  %v11206_v19 = vpack.c.bf16 %v2981_v18, %v2980_v17  ;;  %v3104_v17 = vld [vmem:[#allocation6 + $0x16d0] sm:$0xff]  ;;  %v3105_v18 = vld [vmem:[#allocation6 + $0x16d8] sm:$0xff] }
 0xa8e   : > { %11166 = vmatprep.subr.bf16.mxu0 %v12411_v5 }
 0xa91   : > { %11168 = vmatpush3.bf16.msra.mxu0 %v11167_v27  ;;  %v11212_v27 = vpack.c.bf16 %v2985_v26, %v2984_v25  ;;  %v3106_v25 = vld [vmem:[#allocation6 + $0x16e0] sm:$0xff]  ;;  %v3107_v26 = vld [vmem:[#allocation6 + $0x16e8] sm:$0xff] }
 0xa92   : > { %11169 = vmatprep.subr.bf16.mxu0 %v12411_v5 }
 0xa95   : > { %11171 = vmatpush3.bf16.msra.mxu0 %v11170_v34  ;;  %v11218_v34 = vpack.c.bf16 %v2989_v33, %v2988_v32  ;;  %v3108_v32 = vld [vmem:[#allocation6 + $0x16f0] sm:$0xff]  ;;  %v3109_v33 = vld [vmem:[#allocation6 + $0x16f8] sm:$0xff] }
 0xa96   : > { %11172 = vmatprep.subr.bf16.mxu0 %v12411_v5  ;;  %v11245_v35 = vpack.c.bf16 %v3109_v33, %v3108_v32 }
 0xa99   : > { %11174 = vmatpush3.bf16.msra.mxu0 %v11173_v36  ;;  %v11224_v36 = vpack.c.bf16 %v3095_v40, %v3094_v39  ;;  %v3348_v39 = vld [vmem:[#allocation3] sm:$0xff]  ;;  %v3349_v40 = vld [vmem:[#allocation3 + $0x8] sm:$0xff] }
 0xa9a   : > { %11199 = vmatprep.subr.bf16.mxu0 %v12411_v5 }
 0xb4f   : > { %v2691_v42 = vpop.f32.mrb[14].mxu0 }
 0xb50   : > { %v2692_v43 = vadd.f32 %v7197_v41, %v2691_v42  ;;  %v9130_v45 = vpop.f32.mrb[15].mxu0  ;;  %v3096_v41 = vld [vmem:[#allocation6 + $0x1690] sm:$0xff]  ;;  %v3097_v42 = vld [vmem:[#allocation6 + $0x1698] sm:$0xff] }
 0xb51   : > { %v3098_v45 = vld [vmem:[#allocation6 + $0x16a0] sm:$0xff] }
 0xb52   : > { %v12867_v46 = vadd.f32 %v2692_v43, %v12810_v20  ;;  %v11179_v20 = vpack.c.bf16 %v2881_v51, %v2880_v50  ;;  %v11227_v43 = vpack.c.bf16 %v3097_v42, %v3096_v41  ;;  %v3102_v51 = vld [vmem:[#allocation6 + $0x16c0] sm:$0xff]  ;;  %v3422_v41 = vmul.f32 %v3348_v39, %v3348_v39 }
 0xb53   : > { %v12912_v42 = vpack.c.bf16 %v3349_v40, %v3348_v39 }
 0xb54   : > { %v2696_v2 = vmax.f32 %v12867_v46, 0.0  ;;  %3426 = vadd.xlane.f32.xlu0 %v3422_v41 }
 0xb56   : > { %2699 = vst [vmem:[#allocation2 + $0x8] sm:$0xf] %v2696_v2  ;;  %v3099_v2 = vld [vmem:[#allocation6 + $0x16a8] sm:$0xff] }
 0xb57   : > { %v11230_v47 = vpack.c.bf16 %v3099_v2, %v3098_v45 }
 0xb5d   : > { %v2700_v52 = vld [vmem:[#allocation2 + $0x7] sm:$0xf] }
 0xb5e   : > { %v2718_v53 = vld [vmem:[#allocation2 + $0x8] sm:$0xf]  ;;  %3071 = vst [vmem:[#allocation2 + $0x7] sm:$0x1] %v12410_v0  ;;  %9199 = vmatmul.mubr.f32.vlgmr.msra.gmra.mrb[16].mxu0 %v2700_v52 }
 0xb5f   : > { %v2876_v54 = vld [vmem:[#allocation2 + $0x9] sm:$0xf]  ;;  %9164 = vmatmul.mubr.f32.vlgmr.msra.gmra.mrb[20].mxu1 %v2718_v53  ;;  %9268 = vmatprep.mubr.msk.f32.mxu0 %vm12412_vm0, %v12410_v0 }
 0xb60   : > { %3072 = vst [vmem:[#allocation2 + $0xc] sm:$0x1] %v12410_v0  ;;  %11177 = vmatpush3.bf16.msra.mxu1 %v11176_v49  ;;  %9233 = vmatprep.mubr.msk.f32.mxu1 %vm12412_vm0, %v12410_v0  ;;  %v3101_v49 = vld [vmem:[#allocation6 + $0x16b8] sm:$0xff]  ;;  %v3103_v52 = vld [vmem:[#allocation6 + $0x16c8] sm:$0xff] }
 0xb61   : > { %11178 = vmatprep.subr.bf16.mxu1 %v12411_v5  ;;  %11201 = vmatpush3.bf16.msra.mxu0 %v11200_v13  ;;  %v11233_v50 = vpack.c.bf16 %v3101_v49, %v3100_v48  ;;  %v11236_v53 = vpack.c.bf16 %v3103_v52, %v3102_v51  ;;  %v3084_v13 = vld [vmem:[#allocation6 + $0x1640] sm:$0xff]  ;;  %v7199_v49 = vld [vmem:[#allocation8 + $0xa] ss:$0 sm:$0xff] }
 0xb62   : > { %11202 = vmatprep.subr.bf16.mxu0 %v12411_v5 }
 0xb64   : > { %11180 = vmatpush3.bf16.msra.mxu1 %v11179_v20 }
 0xb65   : > { %11181 = vmatprep.subr.bf16.mxu1 %v12411_v5  ;;  %11204 = vmatpush3.bf16.msra.mxu0 %v11203_v15  ;;  %v11260_v15 = vpack.c.bf16 %v3085_v14, %v3084_v13  ;;  %v3266_v13 = vld [vmem:[#allocation6 + $0x1770] sm:$0xff]  ;;  %v3267_v14 = vld [vmem:[#allocation6 + $0x1778] sm:$0xff] }
 0xb66   : > { %11205 = vmatprep.subr.bf16.mxu0 %v12411_v5 }
 0xb68   : > { %11183 = vmatpush3.bf16.msra.mxu1 %v11182_v57 }
 0xb69   : > { %11184 = vmatprep.subr.bf16.mxu1 %v12411_v5  ;;  %11207 = vmatpush3.bf16.msra.mxu0 %v11206_v19  ;;  %v11239_v19 = vpack.c.bf16 %v3105_v18, %v3104_v17 }
 0xb6a   : > { %11208 = vmatprep.subr.bf16.mxu0 %v12411_v5 }
 0xb6c   : > { %11186 = vmatpush3.bf16.msra.mxu1 %v11185_v61 }
 0xb6d   : > { %11187 = vmatprep.subr.bf16.mxu1 %v12411_v5  ;;  %11210 = vmatpush3.bf16.msra.mxu0 %v11209_v24  ;;  %v11263_v24 = vpack.c.bf16 %v3087_v23, %v3086_v21 }
 0xb6e   : > { %11211 = vmatprep.subr.bf16.mxu0 %v12411_v5 }
 0xb70   : > { %11189 = vmatpush3.bf16.msra.mxu1 %v11188_v63  ;;  %v3077_v63 = vld [vmem:[#allocation6 + $0x1608] sm:$0xff] }
 0xb71   : > { %11190 = vmatprep.subr.bf16.mxu1 %v12411_v5  ;;  %11213 = vmatpush3.bf16.msra.mxu0 %v11212_v27  ;;  %v11248_v4 = vpack.c.bf16 %v3077_v63, %v3076_v44  ;;  %v11242_v27 = vpack.c.bf16 %v3107_v26, %v3106_v25  ;;  %v3257_v44 = vld [vmem:[#allocation6 + $0x1728] sm:$0xff] }
 0xb72   : > { %11214 = vmatprep.subr.bf16.mxu0 %v12411_v5 }
 0xb74   : > { %11192 = vmatpush3.bf16.msra.mxu1 %v11191_v6 }
 0xb75   : > { %11193 = vmatprep.subr.bf16.mxu1 %v12411_v5  ;;  %11216 = vmatpush3.bf16.msra.mxu0 %v11215_v31  ;;  %v11266_v31 = vpack.c.bf16 %v3089_v30, %v3088_v28  ;;  %v7200_v30 = vld [vmem:[#allocation8 + $0xb] ss:$0 sm:$0xff] }
 0xb76   : > { %11217 = vmatprep.subr.bf16.mxu0 %v12411_v5 }
 0xb78   : > { %11195 = vmatpush3.bf16.msra.mxu1 %v11194_v8  ;;  %v11251_v8 = vpack.c.bf16 %v3079_v29, %v3078_v7  ;;  %v3260_v7 = vld [vmem:[#allocation6 + $0x1740] sm:$0xff]  ;;  %v3261_v29 = vld [vmem:[#allocation6 + $0x1748] sm:$0xff] }
 0xb79   : > { %11196 = vmatprep.subr.bf16.mxu1 %v12411_v5  ;;  %11219 = vmatpush3.bf16.msra.mxu0 %v11218_v34  ;;  %v3090_v34 = vld [vmem:[#allocation6 + $0x1670] sm:$0xff] }
 0xb7a   : > { %11220 = vmatprep.subr.bf16.mxu0 %v12411_v5 }
 0xb7c   : > { %11198 = vmatpush3.bf16.msra.mxu1 %v11197_v10  ;;  %v11254_v10 = vpack.c.bf16 %v3081_v60, %v3080_v9  ;;  %v3262_v9 = vld [vmem:[#allocation6 + $0x1750] sm:$0xff]  ;;  %v3263_v60 = vld [vmem:[#allocation6 + $0x1758] sm:$0xff] }
 0xb7d   : > { %11223 = vmatprep.subr.bf16.mxu1 %v12411_v5  ;;  %11222 = vmatpush3.bf16.msra.mxu0 %v11221_v38  ;;  %v11269_v38 = vpack.c.bf16 %v3091_v37, %v3090_v34  ;;  %v3469_v34 = vsub.s32 0, %v12647_v16 }
 0xb7e   : > { %11247 = vmatprep.subr.bf16.mxu0 %v12411_v5 }
 0xb7f   : > { %9234 = vmatmul.mubr.f32.vlgmr.msra.gmra.mrb[22].mxu1 %v2876_v54 }
 0xb80   : > { %9303 = vmatprep.mubr.msk.f32.mxu1 %vm12412_vm0, %v12410_v0  ;;  %11225 = vmatpush3.bf16.msra.mxu1 %v11224_v36  ;;  %v3350_v36 = vld [vmem:[#allocation3 + $0x10] sm:$0xff] }
 0xb81   : > { %11226 = vmatprep.subr.bf16.mxu1 %v12411_v5  ;;  %v3424_v45 = vmul.f32 %v3350_v36, %v3350_v36 }
 0xb83   : > { %3430 = vadd.xlane.f32.xlu1 %v3424_v45 }
 0xb84   : > { %11228 = vmatpush3.bf16.msra.mxu1 %v11227_v43  ;;  %v3351_v43 = vld [vmem:[#allocation3 + $0x18] sm:$0xff] }
 0xb85   : > { %11229 = vmatprep.subr.bf16.mxu1 %v12411_v5  ;;  %v12914_v2 = vpack.c.bf16 %v3351_v43, %v3350_v36  ;;  %v3425_v48 = vmul.f32 %v3351_v43, %v3351_v43 }
 0xb87   : > { %3432 = vadd.xlane.f32.xlu1 %v3425_v48 }
 0xb88   : > { %11231 = vmatpush3.bf16.msra.mxu1 %v11230_v47  ;;  %v3423_v47 = vmul.f32 %v3349_v40, %v3349_v40 }
 0xb89   : > { %11232 = vmatprep.subr.bf16.mxu1 %v12411_v5 }
 0xb8a   : > { %3428 = vadd.xlane.f32.xlu0 %v3423_v47 }
 0xb8c   : > { %11234 = vmatpush3.bf16.msra.mxu1 %v11233_v50 }
 0xb8d   : > { %11235 = vmatprep.subr.bf16.mxu1 %v12411_v5 }
 0xb90   : > { %11237 = vmatpush3.bf16.msra.mxu1 %v11236_v53 }
 0xb91   : > { %11238 = vmatprep.subr.bf16.mxu1 %v12411_v5 }
 0xb94   : > { %11240 = vmatpush3.bf16.msra.mxu1 %v11239_v19 }
 0xb95   : > { %11241 = vmatprep.subr.bf16.mxu1 %v12411_v5 }
 0xb98   : > { %11243 = vmatpush3.bf16.msra.mxu1 %v11242_v27 }
 0xb99   : > { %11244 = vmatprep.subr.bf16.mxu1 %v12411_v5 }
 0xb9c   : > { %11246 = vmatpush3.bf16.msra.mxu1 %v11245_v35 }
 0xb9d   : > { %11271 = vmatprep.subr.bf16.mxu1 %v12411_v5 }
 0xbe1   : > { %v3427_v17 = vpop.xlane.xlu0 %3426 }
 0xbe2   : > { %3434 = vxpose.xlu0.b32.start [1/4] (short) (narrow) %v3427_v17, 8 }
 0xc10   : > { %v3431_v19 = vpop.xlane.xlu1 %3430 }
 0xc14   : > { %v3433_v21 = vpop.xlane.xlu1 %3432 }
 0xc17   : > { %v3429_v18 = vpop.xlane.xlu0 %3428 }
 0xc18   : > { %3435 = vxpose.xlu0.b32.cont [2/4] (short) (narrow) %v3429_v18, 8 }
 0xc1c   : > { %3436 = vxpose.xlu0.b32.cont [3/4] (short) (narrow) %v3431_v19, 8 }
 0xc20   : > { %3437 = vxpose.xlu0.b32.end [4/4] (short) (narrow) %v3433_v21, 8 }
 0xc31   : > { %v2872_v20 = vpop.f32.mrb[16].mxu0 }
 0xc32   : > { %v2802_v54 = vpop.f32.mrb[20].mxu1  ;;  %v9200_v57 = vpop.f32.mrb[17].mxu0 }
 0xc33   : > { %v2873_v55 = vadd.f32 %v2872_v20, %v2802_v54  ;;  %v9165_v56 = vpop.f32.mrb[21].mxu1  ;;  %v3252_v54 = vld [vmem:[#allocation6 + $0x1700] sm:$0xff]  ;;  %v3253_v20 = vld [vmem:[#allocation6 + $0x1708] sm:$0xff]  ;;  %v3255_v57 = vld [vmem:[#allocation6 + $0x1718] sm:$0xff] }
 0xc34   : > { %v3254_v56 = vld [vmem:[#allocation6 + $0x1710] sm:$0xff] }
 0xc52   : > { %v2960_v58 = vpop.f32.mrb[22].mxu1 }
 0xc53   : > { %v2964_v61 = vadd.f32 %v2960_v58, %v2873_v55  ;;  %v9235_v62 = vpop.f32.mrb[23].mxu1  ;;  %v11272_v55 = vpack.c.bf16 %v3253_v20, %v3252_v54 }
 0xc54   : > { %v11275_v62 = vpack.c.bf16 %v3255_v57, %v3254_v56  ;;  %v3601_v56 = vld [vmem:[#allocation3 + $0x30] sm:$0xff]  ;;  %v3602_v57 = vld [vmem:[#allocation3 + $0x38] sm:$0xff] }
 0xc55   : > { %v2973_v1 = vadd.f32 %v7198_v59, %v2964_v61 }
 0xc57   : > { %v2974_v6 = vmax.f32 %v2973_v1, 0.0  ;;  %v3258_v1 = vld [vmem:[#allocation6 + $0x1730] sm:$0xff] }
 0xc59   : > { %9269 = vmatmul.mubr.f32.vlgmr.msra.gmra.mrb[18].mxu0 %v2974_v6 }
 0xc5a   : > { %11249 = vmatpush3.bf16.msra.mxu0 %v11248_v4  ;;  %9338 = vmatprep.mubr.msk.f32.mxu0 %vm12412_vm0, %v12410_v0  ;;  %v3259_v4 = vld [vmem:[#allocation6 + $0x1738] sm:$0xff] }
 0xc5b   : > { %11250 = vmatprep.subr.bf16.mxu0 %v12411_v5  ;;  %v11281_v6 = vpack.c.bf16 %v3259_v4, %v3258_v1 }
 0xc5e   : > { %11252 = vmatpush3.bf16.msra.mxu0 %v11251_v8  ;;  %v11284_v8 = vpack.c.bf16 %v3261_v29, %v3260_v7 }
 0xc5f   : > { %11253 = vmatprep.subr.bf16.mxu0 %v12411_v5 }
 0xc62   : > { %11255 = vmatpush3.bf16.msra.mxu0 %v11254_v10  ;;  %v11287_v10 = vpack.c.bf16 %v3263_v60, %v3262_v9 }
 0xc63   : > { %11256 = vmatprep.subr.bf16.mxu0 %v12411_v5 }
 0xc66   : > { %11258 = vmatpush3.bf16.msra.mxu0 %v11257_v12  ;;  %v11290_v12 = vpack.c.bf16 %v3265_v3, %v3264_v11 }
 0xc67   : > { %11259 = vmatprep.subr.bf16.mxu0 %v12411_v5 }
 0xc6a   : > { %11261 = vmatpush3.bf16.msra.mxu0 %v11260_v15  ;;  %v11293_v15 = vpack.c.bf16 %v3267_v14, %v3266_v13 }
 0xc6b   : > { %11262 = vmatprep.subr.bf16.mxu0 %v12411_v5 }
 0xc6e   : > { %11264 = vmatpush3.bf16.msra.mxu0 %v11263_v24 }
 0xc6f   : > { %11265 = vmatprep.subr.bf16.mxu0 %v12411_v5 }
 0xc72   : > { %11267 = vmatpush3.bf16.msra.mxu0 %v11266_v31 }
 0xc73   : > { %11268 = vmatprep.subr.bf16.mxu0 %v12411_v5 }
 0xc76   : > { %11270 = vmatpush3.bf16.msra.mxu0 %v11269_v38 }
 0xc77   : > { %11313 = vmatprep.subr.bf16.mxu0 %v12411_v5 }
 0xc94   : > { %v3450_v35 = vpop.trf.xlu0 }
 0xc95   : > { %v3470_v37 = vrot.slane %v3450_v35, %v3469_v34 }
 0xd2c   : > { %v3066_v50 = vpop.f32.mrb[18].mxu0 }
 0xd2d   : > { %v3067_v51 = vadd.f32 %v7199_v49, %v3066_v50  ;;  %v9270_v52 = vpop.f32.mrb[19].mxu0 }
 0xd2e   : > { %v3599_v52 = vld [vmem:[#allocation3 + $0x20] sm:$0xff] }
 0xd2f   : > { %v3070_v53 = vadd.f32 %v3067_v51, %v12867_v46  ;;  %v3256_v46 = vld [vmem:[#allocation6 + $0x1720] sm:$0xff]  ;;  %v3673_v54 = vmul.f32 %v3599_v52, %v3599_v52 }
 0xd30   : > { %v11278_v63 = vpack.c.bf16 %v3257_v44, %v3256_v46 }
 0xd31   : > { %3073 = vst [vmem:[#allocation2 + $0x8] sm:$0xf] %v3070_v53  ;;  %v3600_v53 = vld [vmem:[#allocation3 + $0x28] sm:$0xff] }
 0xd32   : > { %v11308_v20 = vpack.c.bf16 %v3600_v53, %v3599_v52  ;;  %v3857_v52 = vld [vmem:[#allocation6 + $0x1840] sm:$0xff] }
 0xd38   : > { %v3074_v58 = vld [vmem:[#allocation2 + $0x7] sm:$0xf] }
 0xd39   : > { %v3092_v59 = vld [vmem:[#allocation2 + $0x8] sm:$0xf]  ;;  %3844 = vst [vmem:[#allocation2 + $0x7] sm:$0x1] %v12410_v0  ;;  %9339 = vmatmul.mubr.f32.vlgmr.msra.gmra.mrb[20].mxu0 %v3074_v58  ;;  %v11311_v58 = vpack.c.bf16 %v3602_v57, %v3601_v56 }
 0xd3a   : > { %v3250_v61 = vld [vmem:[#allocation2 + $0x9] sm:$0xf]  ;;  %9304 = vmatmul.mubr.f32.vlgmr.msra.gmra.mrb[24].mxu1 %v3092_v59  ;;  %9417 = vmatprep.mubr.msk.f32.mxu0 %vm12412_vm0, %v12410_v0  ;;  %v3675_v59 = vmul.f32 %v3601_v56, %v3601_v56 }
 0xd3b   : > { %3845 = vst [vmem:[#allocation2 + $0xc] sm:$0x1] %v12410_v0  ;;  %11273 = vmatpush3.bf16.msra.mxu1 %v11272_v55  ;;  %9373 = vmatprep.mubr.msk.f32.mxu1 %vm12412_vm0, %v12410_v0  ;;  %v3674_v55 = vmul.f32 %v3600_v53, %v3600_v53  ;;  %v3858_v53 = vld [vmem:[#allocation6 + $0x1848] sm:$0xff] }
 0xd3c   : > { %11274 = vmatprep.subr.bf16.mxu1 %v12411_v5  ;;  %11315 = vmatpush3.bf16.msra.mxu0 %v11308_v20 }
 0xd3d   : > { %11316 = vmatprep.subr.bf16.mxu0 %v12411_v5 }
 0xd3f   : > { %11276 = vmatpush3.bf16.msra.mxu1 %v11275_v62 }
 0xd40   : > { %11277 = vmatprep.subr.bf16.mxu1 %v12411_v5  ;;  %11318 = vmatpush3.bf16.msra.mxu0 %v11311_v58 }
 0xd41   : > { %11319 = vmatprep.subr.bf16.mxu0 %v12411_v5 }
 0xd43   : > { %11279 = vmatpush3.bf16.msra.mxu1 %v11278_v63 }
 0xd44   : > { %11280 = vmatprep.subr.bf16.mxu1 %v12411_v5 }
 0xd47   : > { %11282 = vmatpush3.bf16.msra.mxu1 %v11281_v6 }
 0xd48   : > { %11283 = vmatprep.subr.bf16.mxu1 %v12411_v5 }
 0xd4b   : > { %11285 = vmatpush3.bf16.msra.mxu1 %v11284_v8 }
 0xd4c   : > { %11286 = vmatprep.subr.bf16.mxu1 %v12411_v5 }
 0xd4f   : > { %11288 = vmatpush3.bf16.msra.mxu1 %v11287_v10 }
 0xd50   : > { %11289 = vmatprep.subr.bf16.mxu1 %v12411_v5 }
 0xd53   : > { %11291 = vmatpush3.bf16.msra.mxu1 %v11290_v12 }
 0xd54   : > { %11292 = vmatprep.subr.bf16.mxu1 %v12411_v5 }
 0xd57   : > { %11294 = vmatpush3.bf16.msra.mxu1 %v11293_v15 }
 0xd58   : > { %11295 = vmatprep.subr.bf16.mxu1 %v12411_v5 }
 0xd5a   : > { %9374 = vmatmul.mubr.f32.vlgmr.msra.gmra.mrb[26].mxu1 %v3250_v61  ;;  %v3676_v61 = vmul.f32 %v3602_v57, %v3602_v57 }
 0xd5b   : > { %9384 = vmatprep.mubr.msk.f32.mxu1 %vm12412_vm0, %v12410_v0 }
 0xd60   : > { %11297 = vmatpush3.bf16.xpose.msra.mxu1 %v12912_v42 }
 0xd61   : > { %11298 = vmatprep.subr.bf16.mxu1 %v12411_v5 }
 0xd68   : > { %11300 = vmatpush3.bf16.xpose.msra.mxu1 %v12914_v2 }
 0xd69   : > { %11301 = vmatprep.subr.bf16.mxu1 %v12411_v5 }
 0xe0c   : > { %v3246_v24 = vpop.f32.mrb[20].mxu0 }
 0xe0d   : > { %v3176_v23 = vpop.f32.mrb[24].mxu1  ;;  %v9340_v27 = vpop.f32.mrb[21].mxu0 }
 0xe0e   : > { %v3247_v25 = vadd.f32 %v3246_v24, %v3176_v23  ;;  %v9305_v26 = vpop.f32.mrb[25].mxu1 }
 0xe2d   : > { %v3334_v28 = vpop.f32.mrb[26].mxu1 }
 0xe2e   : > { %v3338_v31 = vadd.f32 %v3334_v28, %v3247_v25  ;;  %v9375_v32 = vpop.f32.mrb[27].mxu1 }
 0xe30   : > { %v12937_v33 = vadd.f32 %v7200_v30, %v3338_v31 }
 0xe32   : > { %9385 = vmatmul.mubr.f32.vlgmr.msra.gmra.mrb[28].mxu1 %v12937_v33 }
 0xe33   : > { %11303 = vmatpush3.bf16.msra.mxu1 %v12912_v42  ;;  %9395 = vmatprep.mubr.msk.f32.mxu1 %vm12412_vm0, %v12410_v0 }
 0xe34   : > { %11304 = vmatprep.subr.bf16.mxu1 %v12411_v5 }
 0xe37   : > { %11306 = vmatpush3.bf16.msra.mxu1 %v12914_v2 }
 0xe38   : > { %11307 = vmatprep.subr.bf16.mxu1 %v12411_v5 }
 0xf05   : > { %v3418_v38 = vpop.f32.mrb[28].mxu1 }
 0xf06   : > { %v3466_v39 = vmul.f32 2.0, %v3418_v38  ;;  %v9386_v40 = vpop.f32.mrb[29].mxu1 }
 0xf07   : > { %v3849_v40 = vld [vmem:[#allocation6 + $0x1800] sm:$0xff] }
 0xf08   : > { %v3471_v36 = vsub.f32 %v3470_v37, %v3466_v39 }
 0xf0a   : > { %v3473_v41 = vsel %vm3472_vm7, %v3471_v36, inf }
 0xf0b   : > { %3474 = vmin.xlane.f32.xlu1 %v3473_v41 }
 0xf98   : > { %v3475_v42 = vpop.xlane.xlu1 %3474 }
 0xf99   : > { %vm3476_vm8 = vcmp.le.f32.partialorder %v3471_v36, %v3475_v42  ;;  %v3850_v36 = vld [vmem:[#allocation6 + $0x1808] sm:$0xff]  ;;  %v3851_v42 = vld [vmem:[#allocation6 + $0x1810] sm:$0xff] }
 0xf9a   : > { %v3477_v43 = vsel %vm3476_vm8, %v12649_v22, 32  ;;  %v11344_v41 = vpack.c.bf16 %v3850_v36, %v3849_v40  ;;  %v3880_v40 = vld [vmem:[#allocation6 + $0x18e8] sm:$0xff]  ;;  %vm4879_vm8 = vcmask 31744  }
 0xf9b   : > { %v3478_v45 = vsel %vm3472_vm7, %v3477_v43, 2147483647  ;;  %v3852_v43 = vld [vmem:[#allocation6 + $0x1818] sm:$0xff] }
 0xf9c   : > { %v3480_v2 = vshra.s32 %v3478_v45, 16  ;;  %v3479_v48 = vand.u32 65535, %v3478_v45  ;;  %v11347_v45 = vpack.c.bf16 %v3852_v43, %v3851_v42  ;;  %v3862_v42 = vld [vmem:[#allocation6 + $0x1868] sm:$0xff] }
 0xf9e   : > { %v3482_v47 = vcvt.s32.f32 %v3480_v2  ;;  %v3481_v50 = vcvt.s32.f32 %v3479_v48  ;;  %v3853_v2 = vld [vmem:[#allocation6 + $0x1820] sm:$0xff] }
 0xfa0   : > { %3483 = vmin.xlane.f32.xlu1 %v3482_v47 }
0x102d   : > { %v3484_v49 = vpop.xlane.xlu1 %3483 }
0x102e   : > { %vm3485_vm9 = vcmp.eq.f32.partialorder %v3482_v47, %v3484_v49  ;;  %v3490_v62 = vcvt.f32.s32 %v3484_v49  ;;  %v3854_v47 = vld [vmem:[#allocation6 + $0x1828] sm:$0xff]  ;;  %v3855_v49 = vld [vmem:[#allocation6 + $0x1830] sm:$0xff] }
0x102f   : > { %v3486_v51 = vsel %vm3485_vm9, %v3481_v50, inf  ;;  %v11350_v48 = vpack.c.bf16 %v3854_v47, %v3853_v2  ;;  %v3856_v50 = vld [vmem:[#allocation6 + $0x1838] sm:$0xff] }
0x1030   : > { %3487 = vmin.xlane.f32.xlu1 %v3486_v51  ;;  %v3491_v44 = vshll.u32 %v3490_v62, 16  ;;  %v11353_v51 = vpack.c.bf16 %v3856_v50, %v3855_v49  ;;  %v3882_v2 = vld [vmem:[#allocation6 + $0x18f8] sm:$0xff] }
0x1031   : > { %v3864_v49 = vld [vmem:[#allocation6 + $0x1878] sm:$0xff] }
0x1034   : > { %3677 = vadd.xlane.f32.xlu1 %v3673_v54  ;;  %v11356_v54 = vpack.c.bf16 %v3858_v53, %v3857_v52 }
0x1038   : > { %3679 = vadd.xlane.f32.xlu1 %v3674_v55 }
0x103c   : > { %3681 = vadd.xlane.f32.xlu1 %v3675_v59  ;;  %v3868_v59 = vld [vmem:[#allocation6 + $0x1888] sm:$0xff] }
0x1040   : > { %3683 = vadd.xlane.f32.xlu1 %v3676_v61 }
0x10bd   : > { %v3488_v46 = vpop.xlane.xlu1 %3487 }
0x10be   : > { %v3489_v63 = vcvt.f32.s32 %v3488_v46 }
0x10c0   : > { %v3492_v1 = vadd.s32 %v3491_v44, %v3489_v63  ;;  %v3869_v63 = vld [vmem:[#allocation6 + $0x1890] sm:$0xff] }
0x10c1   : > { %v3678_v11 = vpop.xlane.xlu1 %3677 }
0x10c2   : > { %vm3493_vm12 = vcmp.eq.s32.totalorder %v12649_v22, %v3492_v1  ;;  %3571 = vst.msk [vmem:[%s12958_s14] sm:$0xf] %vm3570_vm10, %v3492_v1  ;;  %3685 = vxpose.xlu1.b32.start [1/4] (short) (narrow) %v3678_v11, 8  ;;  %v3870_v1 = vld [vmem:[#allocation6 + $0x1898] sm:$0xff] }
0x10c3   : > { %v7201_v4 = vsel %vm3493_vm12, 1.0, %v12410_v0 }
0x10c4   : > { %v3588_v6 = vsel %vm3472_vm7, %v7201_v4, 0.0  ;;  %9396 = vmatmul.mubr.msk.f32.vlgmr.msra.gmra.mrb[30].mxu1 %vm3496_vm11, %v7201_v4 }
0x10c5   : > { %v3589_v7 = vrot.slane %v3588_v6, 4  ;;  %11309 = vmatpush3.bf16.xpose.msra.mxu1 %v11308_v20  ;;  %9406 = vmatprep.mubr.msk.f32.mxu1 %vm12412_vm0, %v12410_v0  ;;  %v3680_v3 = vpop.xlane.xlu1 %3679 }
0x10c6   : > { %11310 = vmatprep.subr.bf16.mxu1 %v12411_v5  ;;  %3686 = vxpose.xlu1.b32.cont [2/4] (short) (narrow) %v3680_v3, 8 }
0x10c7   : > { %v3590_v29 = vadd.f32 %v3589_v7, %v3588_v6 }
0x10c9   : > { %v3591_v8 = vrot.slane %v3590_v29, 2  ;;  %v3682_v12 = vpop.xlane.xlu1 %3681 }
0x10ca   : > { %3687 = vxpose.xlu1.b32.cont [3/4] (short) (narrow) %v3682_v12, 8 }
0x10cb   : > { %v3592_v9 = vadd.f32 %v3591_v8, %v3590_v29  ;;  %v11323_v8 = vpack.c.bf16 %v3870_v1, %v3869_v63  ;;  %v4030_v63 = vld [vmem:[#allocation6 + $0x1928] sm:$0xff] }
0x10cd   : > { %v3593_v60 = vrot.slane %v3592_v9, 1  ;;  %11312 = vmatpush3.bf16.xpose.msra.mxu1 %v11311_v58  ;;  %v3684_v13 = vpop.xlane.xlu1 %3683  ;;  %v3867_v58 = vld [vmem:[#allocation6 + $0x1880] sm:$0xff] }
0x10ce   : > { %11343 = vmatprep.subr.bf16.mxu1 %v12411_v5  ;;  %3688 = vxpose.xlu1.b32.end [4/4] (short) (narrow) %v3684_v13, 8  ;;  %v11320_v46 = vpack.c.bf16 %v3868_v59, %v3867_v58  ;;  %v4027_v59 = vld [vmem:[#allocation6 + $0x1910] sm:$0xff] }
0x10cf   : > { %v3594_v10 = vadd.f32 %v3593_v60, %v3592_v9  ;;  %v3871_v60 = vld [vmem:[#allocation6 + $0x18a0] sm:$0xff] }
0x10d1   : > { %3596 = vst.msk [vmem:[%s12974_s18] sm:$0x1] %vm3595_vm13, %v3594_v10  ;;  %v3872_v10 = vld [vmem:[#allocation6 + $0x18a8] sm:$0xff] }
0x10d2   : > { %v11326_v13 = vpack.c.bf16 %v3872_v10, %v3871_v60  ;;  %v4035_v60 = vld [vmem:[#allocation6 + $0x1950] sm:$0xff]  ;;  %v4036_v10 = vld [vmem:[#allocation6 + $0x1958] sm:$0xff] }
0x1142   : > { %v3701_v18 = vpop.trf.xlu1 }
0x1143   : > { %v3721_v19 = vrot.slane %v3701_v18, %v3469_v34  ;;  %v3873_v18 = vld [vmem:[#allocation6 + $0x18b0] sm:$0xff] }
0x1197   : > { %v12979_v14 = vpop.f32.mrb[30].mxu1 }
0x1198   : > { %v12983_v15 = vsub.f32 %v12937_v33, %v12979_v14  ;;  %v9397_v17 = vpop.f32.mrb[31].mxu1 }
0x119a   : > { %9407 = vmatmul.mubr.f32.vlgmr.msra.gmra.mrb[32].mxu1 %v12983_v15  ;;  %v3573_v38 = vmul.f32 %v12983_v15, %v12983_v15 }
0x119b   : > { %9487 = vmatprep.mubr.msk.f32.mxu1 %vm12412_vm0, %v12410_v0  ;;  %11345 = vmatpush3.bf16.msra.mxu1 %v11344_v41  ;;  %v3861_v41 = vld [vmem:[#allocation6 + $0x1860] sm:$0xff] }
0x119c   : > { %v3575_v39 = vsel %vm3574_vm1, %v3573_v38, 0.0  ;;  %11346 = vmatprep.subr.bf16.mxu1 %v12411_v5  ;;  %v11362_v43 = vpack.c.bf16 %v3862_v42, %v3861_v41  ;;  %v4152_v41 = vld [vmem:[#allocation6 + $0x1ab0] sm:$0xff]  ;;  %v4153_v42 = vld [vmem:[#allocation6 + $0x1ab8] sm:$0xff] }
0x119f   : > { %11348 = vmatpush3.bf16.msra.mxu1 %v11347_v45  ;;  %v3881_v45 = vld [vmem:[#allocation6 + $0x18f0] sm:$0xff] }
0x11a0   : > { %11349 = vmatprep.subr.bf16.mxu1 %v12411_v5  ;;  %v11341_v47 = vpack.c.bf16 %v3882_v2, %v3881_v45  ;;  %v4135_v45 = vld [vmem:[#allocation6 + $0x1a38] sm:$0xff]  ;;  %v11401_v2 = vpack.c.bf16 %v4153_v42, %v4152_v41  ;;  %v4309_v41 = vld [vmem:[#allocation6 + $0x1b28] sm:$0xff] }
0x11a3   : > { %11351 = vmatpush3.bf16.msra.mxu1 %v11350_v48  ;;  %v3863_v48 = vld [vmem:[#allocation6 + $0x1870] sm:$0xff] }
0x11a4   : > { %11352 = vmatprep.subr.bf16.mxu1 %v12411_v5  ;;  %v11365_v50 = vpack.c.bf16 %v3864_v49, %v3863_v48  ;;  %v4154_v48 = vld [vmem:[#allocation6 + $0x1ac0] sm:$0xff]  ;;  %v4155_v49 = vld [vmem:[#allocation6 + $0x1ac8] sm:$0xff] }
0x11a7   : > { %11354 = vmatpush3.bf16.msra.mxu1 %v11353_v51 }
0x11a8   : > { %11355 = vmatprep.subr.bf16.mxu1 %v12411_v5 }
0x11ab   : > { %11357 = vmatpush3.bf16.msra.mxu1 %v11356_v54 }
0x11ac   : > { %11358 = vmatprep.subr.bf16.mxu1 %v12411_v5 }
0x126d   : > { %v3669_v21 = vpop.f32.mrb[32].mxu1 }
0x126e   : > { %v3717_v23 = vmul.f32 2.0, %v3669_v21  ;;  %v9408_v24 = vpop.f32.mrb[33].mxu1 }
0x1270   : > { %v3722_v25 = vsub.f32 %v3721_v19, %v3717_v23  ;;  %v3874_v19 = vld [vmem:[#allocation6 + $0x18b8] sm:$0xff] }
0x1272   : > { %v3723_v26 = vsel %vm3472_vm7, %v3722_v25, inf }
0x1273   : > { %3724 = vmin.xlane.f32.xlu0 %v3723_v26  ;;  %v3875_v26 = vld [vmem:[#allocation6 + $0x18c0] sm:$0xff] }
0x1300   : > { %v3725_v27 = vpop.xlane.xlu0 %3724 }
0x1301   : > { %vm3726_vm14 = vcmp.le.f32.partialorder %v3722_v25, %v3725_v27  ;;  %v11329_v25 = vpack.c.bf16 %v3874_v19, %v3873_v18  ;;  %v3876_v27 = vld [vmem:[#allocation6 + $0x18c8] sm:$0xff]  ;;  %v4040_v18 = vld [vmem:[#allocation6 + $0x1978] sm:$0xff] }
0x1302   : > { %v3727_v28 = vsel %vm3726_vm14, %v12649_v22, 32 }
0x1303   : > { %v3728_v30 = vsel %vm3472_vm7, %v3727_v28, 2147483647 }
0x1304   : > { %v3730_v31 = vshra.s32 %v3728_v30, 16  ;;  %v3729_v33 = vand.u32 65535, %v3728_v30  ;;  %v11332_v30 = vpack.c.bf16 %v3876_v27, %v3875_v26  ;;  %v4129_v26 = vld [vmem:[#allocation6 + $0x1a08] sm:$0xff]  ;;  %v4148_v27 = vld [vmem:[#allocation6 + $0x1a90] sm:$0xff] }
0x1306   : > { %v3732_v32 = vcvt.s32.f32 %v3730_v31  ;;  %v3731_v37 = vcvt.s32.f32 %v3729_v33  ;;  %v3877_v31 = vld [vmem:[#allocation6 + $0x18d0] sm:$0xff] }
0x1308   : > { %3733 = vmin.xlane.f32.xlu1 %v3732_v32 }
0x1395   : > { %v3734_v35 = vpop.xlane.xlu1 %3733 }
0x1396   : > { %vm3735_vm15 = vcmp.eq.f32.partialorder %v3732_v32, %v3734_v35  ;;  %v3740_v20 = vcvt.f32.s32 %v3734_v35  ;;  %v3878_v32 = vld [vmem:[#allocation6 + $0x18d8] sm:$0xff] }
0x1397   : > { %v3736_v34 = vsel %vm3735_vm15, %v3731_v37, inf  ;;  %v11335_v33 = vpack.c.bf16 %v3878_v32, %v3877_v31  ;;  %v3859_v37 = vld [vmem:[#allocation6 + $0x1850] sm:$0xff]  ;;  %v4131_v32 = vld [vmem:[#allocation6 + $0x1a18] sm:$0xff] }
0x1398   : > { %3737 = vmin.xlane.f32.xlu0 %v3736_v34  ;;  %v3741_v56 = vshll.u32 %v3740_v20, 16  ;;  %v3860_v34 = vld [vmem:[#allocation6 + $0x1858] sm:$0xff]  ;;  %v4130_v31 = vld [vmem:[#allocation6 + $0x1a10] sm:$0xff] }
0x1399   : > { %v11359_v38 = vpack.c.bf16 %v3860_v34, %v3859_v37  ;;  %v4150_v37 = vld [vmem:[#allocation6 + $0x1aa0] sm:$0xff]  ;;  %v4151_v34 = vld [vmem:[#allocation6 + $0x1aa8] sm:$0xff] }
0x139b   : > { %11360 = vmatpush3.bf16.msra.mxu1 %v11359_v38  ;;  %v4132_v38 = vld [vmem:[#allocation6 + $0x1a20] sm:$0xff] }
0x139c   : > { %3576 = vadd.xlane.f32.xlu0 %v3575_v39  ;;  %v3879_v39 = vld [vmem:[#allocation6 + $0x18e0] sm:$0xff]  ;;  %11361 = vmatprep.subr.bf16.mxu1 %v12411_v5 }
0x139d   : > { %v11338_v36 = vpack.c.bf16 %v3880_v40, %v3879_v39  ;;  %v4133_v39 = vld [vmem:[#allocation6 + $0x1a28] sm:$0xff]  ;;  %v11398_v40 = vpack.c.bf16 %v4151_v34, %v4150_v37  ;;  %v4307_v37 = vld [vmem:[#allocation6 + $0x1b18] sm:$0xff] }
0x139f   : > { %11363 = vmatpush3.bf16.msra.mxu1 %v11362_v43  ;;  %v4134_v43 = vld [vmem:[#allocation6 + $0x1a30] sm:$0xff] }
0x13a0   : > { %11364 = vmatprep.subr.bf16.mxu1 %v12411_v5 }
0x13a3   : > { %11366 = vmatpush3.bf16.msra.mxu1 %v11365_v50  ;;  %v11404_v50 = vpack.c.bf16 %v4155_v49, %v4154_v48  ;;  %v4313_v48 = vld [vmem:[#allocation6 + $0x1b48] sm:$0xff] }
0x13a4   : > { %11391 = vmatprep.subr.bf16.mxu1 %v12411_v5 }
0x1425   : > { %v3738_v55 = vpop.xlane.xlu0 %3737 }
0x1426   : > { %v3739_v57 = vcvt.f32.s32 %v3738_v55 }
0x1428   : > { %v3742_v61 = vadd.s32 %v3741_v56, %v3739_v57  ;;  %v4025_v56 = vld [vmem:[#allocation6 + $0x1900] sm:$0xff]  ;;  %v4026_v57 = vld [vmem:[#allocation6 + $0x1908] sm:$0xff] }
0x1429   : > { %v3577_v62 = vpop.xlane.xlu0 %3576  ;;  %v11368_v58 = vpack.c.bf16 %v4026_v57, %v4025_v56  ;;  %v4138_v56 = vld [vmem:[#allocation6 + $0x1a50] sm:$0xff]  ;;  %v4139_v57 = vld [vmem:[#allocation6 + $0x1a58] sm:$0xff] }
0x142a   : > { %vm3743_vm3 = vcmp.eq.s32.totalorder %v12649_v22, %v3742_v61  ;;  %3820 = vst.msk [vmem:[%s12958_s14] sm:$0xf] %vm3819_vm2, %v3742_v61  ;;  %v3578_v44 = vrot.slane %v3577_v62, 4  ;;  %v4028_v61 = vld [vmem:[#allocation6 + $0x1918] sm:$0xff]  ;;  %s13304_s14 = scalar_lea.hbm %s13351_s4, %s7230_s23 }
0x142b   : > { %v7203_v4 = vsel %vm3743_vm3, 1.0, %v12410_v0 }
0x142c   : > { %v3835_v6 = vsel %vm3472_vm7, %v7203_v4, 0.0  ;;  %v3579_v7 = vadd.f32 %v3578_v44, %v3577_v62  ;;  %9418 = vmatmul.mubr.msk.f32.vlgmr.msra.gmra.mrb[22].mxu0 %vm3496_vm11, %v7203_v4  ;;  %v4031_v4 = vld [vmem:[#allocation6 + $0x1930] sm:$0xff] }
0x142d   : > { %v3836_v29 = vrot.slane %v3835_v6, 4  ;;  %11321 = vmatpush3.bf16.msra.mxu0 %v11320_v46  ;;  %9452 = vmatprep.mubr.msk.f32.mxu0 %vm12412_vm0, %v12410_v0 }
0x142e   : > { %v3580_v9 = vrot.slane %v3579_v7, 2  ;;  %11322 = vmatprep.subr.bf16.mxu0 %v12411_v5 }
0x142f   : > { %v3837_v11 = vadd.f32 %v3836_v29, %v3835_v6  ;;  %v4032_v6 = vld [vmem:[#allocation6 + $0x1938] sm:$0xff]  ;;  %v4033_v29 = vld [vmem:[#allocation6 + $0x1940] sm:$0xff] }
0x1430   : > { %v3581_v3 = vadd.f32 %v3580_v9, %v3579_v7  ;;  %v11377_v7 = vpack.c.bf16 %v4032_v6, %v4031_v4  ;;  %v4143_v6 = vld [vmem:[#allocation6 + $0x1a78] sm:$0xff] }
0x1431   : > { %v3838_v12 = vrot.slane %v3837_v11, 2  ;;  %11324 = vmatpush3.bf16.msra.mxu0 %v11323_v8  ;;  %v4034_v8 = vld [vmem:[#allocation6 + $0x1948] sm:$0xff] }
0x1432   : > { %v3582_v17 = vrot.slane %v3581_v3, 1  ;;  %11325 = vmatprep.subr.bf16.mxu0 %v12411_v5  ;;  %v11380_v9 = vpack.c.bf16 %v4034_v8, %v4033_v29 }
0x1433   : > { %v3839_v21 = vadd.f32 %v3838_v12, %v3837_v11  ;;  %v11383_v11 = vpack.c.bf16 %v4036_v10, %v4035_v60  ;;  %v4038_v12 = vld [vmem:[#allocation6 + $0x1968] sm:$0xff] }
0x1434   : > { %v3583_v23 = vadd.f32 %v3582_v17, %v3581_v3  ;;  %v4037_v3 = vld [vmem:[#allocation6 + $0x1960] sm:$0xff]  ;;  %v4039_v17 = vld [vmem:[#allocation6 + $0x1970] sm:$0xff] }
0x1435   : > { %v3840_v24 = vrot.slane %v3839_v21, 1  ;;  %11327 = vmatpush3.bf16.msra.mxu0 %v11326_v13  ;;  %v11386_v13 = vpack.c.bf16 %v4038_v12, %v4037_v3  ;;  %v11389_v19 = vpack.c.bf16 %v4040_v18, %v4039_v17 }
0x1436   : > { %12163 = vpush %v3583_v23  ;;  %11328 = vmatprep.subr.bf16.mxu0 %v12411_v5  ;;  %v4147_v23 = vld [vmem:[#allocation6 + $0x1a88] sm:$0xff] }
0x1437   : > { %v3841_v28 = vadd.f32 %v3840_v24, %v3839_v21  ;;  %v4146_v21 = vld [vmem:[#allocation6 + $0x1a80] sm:$0xff] }
0x1438   : > { %v4128_v24 = vld [vmem:[#allocation6 + $0x1a00] sm:$0xff] }
0x1439   : > { %3842 = vst.msk [vmem:[%s12974_s18 + $0x1] sm:$0x1] %vm3595_vm13, %v3841_v28  ;;  %11330 = vmatpush3.bf16.msra.mxu0 %v11329_v25  ;;  %v11392_v25 = vpack.c.bf16 %v4147_v23, %v4146_v21  ;;  %v4149_v28 = vld [vmem:[#allocation6 + $0x1a98] sm:$0xff]  ;;  %s12337_s18 = scalar_lea.vmem %s12336_s15, 512 }
0x143a   : > { %11331 = vmatprep.subr.bf16.mxu0 %v12411_v5  ;;  %p12339_p1 = scmp.lt.s32.totalorder %s12337_s18, %s12331_s19 }
0x143c   : > { %p12340_p6 = por %p12339_p1, %p12338_p13 }
0x143d   : > { %11333 = vmatpush3.bf16.msra.mxu0 %v11332_v30  ;;  %v11416_v30 = vpack.c.bf16 %v4129_v26, %v4128_v24  ;;  %v7205_v24 = vld [vmem:[#allocation8 + $0xc] ss:$0 sm:$0xff] }
0x143e   : > { %11334 = vmatprep.subr.bf16.mxu0 %v12411_v5  ;;  %p12341_p9 = pnand %p12340_p6, %p12334_p11 }
0x1441   : > { %11336 = vmatpush3.bf16.msra.mxu0 %v11335_v33  ;;  %v11395_v33 = vpack.c.bf16 %v4149_v28, %v4148_v27 }
0x1442   : > { %11337 = vmatprep.subr.bf16.mxu0 %v12411_v5 }
0x1445   : > { %11339 = vmatpush3.bf16.msra.mxu0 %v11338_v36  ;;  %v11422_v36 = vpack.c.bf16 %v4133_v39, %v4132_v38 }
0x1446   : > { %11340 = vmatprep.subr.bf16.mxu0 %v12411_v5 }
0x1449   : > { %11342 = vmatpush3.bf16.msra.mxu0 %v11341_v47  ;;  %v11425_v47 = vpack.c.bf16 %v4135_v45, %v4134_v43  ;;  %v4310_v43 = vld [vmem:[#allocation6 + $0x1b30] sm:$0xff]  ;;  %v4311_v45 = vld [vmem:[#allocation6 + $0x1b38] sm:$0xff] }
0x144a   : > { %11367 = vmatprep.subr.bf16.mxu0 %v12411_v5 }
0x1467   : > { %s12164_s30 = spop %12163 }
0x1468   : > { %v3585_v35 = vstv %s12164_s30 }
0x1469   : > { %3587 = vst.msk [vmem:[%s13021_s26] sm:$0x1] %vm3586_vm4, %v3585_v35  ;;  %v11419_v35 = vpack.c.bf16 %v4131_v32, %v4130_v31  ;;  %v4304_v31 = vld [vmem:[#allocation6 + $0x1b00] sm:$0xff]  ;;  %v4305_v32 = vld [vmem:[#allocation6 + $0x1b08] sm:$0xff] }
0x14ff   : > { %v3815_v51 = vpop.f32.mrb[22].mxu0 }
0x1500   : > { %v3821_v52 = vsub.f32 %v12983_v15, %v3815_v51  ;;  %v3843_v53 = vadd.f32 %v3815_v51, %v12979_v14  ;;  %v9419_v54 = vpop.f32.mrb[23].mxu0  ;;  %v11371_v14 = vpack.c.bf16 %v4028_v61, %v4027_v59  ;;  %v4029_v15 = vld [vmem:[#allocation6 + $0x1920] sm:$0xff]  ;;  %v4159_v61 = vld [vmem:[#allocation6 + $0x1ae8] sm:$0xff] }
0x1501   : > { %v11374_v1 = vpack.c.bf16 %v4030_v63, %v4029_v15  ;;  %v4136_v51 = vld [vmem:[#allocation6 + $0x1a40] sm:$0xff]  ;;  %v4156_v54 = vld [vmem:[#allocation6 + $0x1ad0] sm:$0xff]  ;;  %v4161_v63 = vld [vmem:[#allocation6 + $0x1af8] sm:$0xff] }
0x1502   : > { %v3822_v20 = vmul.f32 %v3821_v52, %v3821_v52  ;;  %3846 = vst [vmem:[#allocation2 + $0x8] sm:$0xf] %v3843_v53  ;;  %v4137_v52 = vld [vmem:[#allocation6 + $0x1a48] sm:$0xff]  ;;  %v4158_v59 = vld [vmem:[#allocation6 + $0x1ae0] sm:$0xff]  ;;  %v4160_v15 = vld [vmem:[#allocation6 + $0x1af0] sm:$0xff] }
0x1503   : > { %v11428_v53 = vpack.c.bf16 %v4137_v52, %v4136_v51  ;;  %v11413_v4 = vpack.c.bf16 %v4161_v63, %v4160_v15  ;;  %v4315_v51 = vld [vmem:[#allocation6 + $0x1b58] sm:$0xff]  ;;  %v4407_v15 = vld [vmem:[#allocation6 + $0x1c28] sm:$0xff] }
0x1504   : > { %v3823_v55 = vsel %vm3574_vm1, %v3822_v20, 0.0  ;;  %v4157_v20 = vld [vmem:[#allocation6 + $0x1ad8] sm:$0xff] }
0x1505   : > { %3824 = vadd.xlane.f32.xlu0 %v3823_v55  ;;  %v11407_v55 = vpack.c.bf16 %v4157_v20, %v4156_v54  ;;  %v4317_v54 = vld [vmem:[#allocation6 + $0x1b68] sm:$0xff] }
0x1509   : > { %v3847_v62 = vld [vmem:[#allocation2 + $0x7] sm:$0xf] }
0x150a   : > { %v3865_v46 = vld [vmem:[#allocation2 + $0x8] sm:$0xf]  ;;  %4123 = vst [vmem:[#allocation2 + $0x5] sm:$0x7] %v12410_v0  ;;  %9488 = vmatmul.mubr.f32.vlgmr.msra.gmra.mrb[34].mxu1 %v3847_v62  ;;  %v11410_v62 = vpack.c.bf16 %v4159_v61, %v4158_v59  ;;  %v4404_v61 = vld [vmem:[#allocation6 + $0x1c10] sm:$0xff] }
0x150b   : > { %v4023_v44 = vld [vmem:[#allocation2 + $0x9] sm:$0xf]  ;;  %9453 = vmatmul.mubr.f32.vlgmr.msra.gmra.mrb[24].mxu0 %v3865_v46  ;;  %9557 = vmatprep.mubr.msk.f32.mxu1 %vm12412_vm0, %v12410_v0  ;;  %v4140_v46 = vld [vmem:[#allocation6 + $0x1a60] sm:$0xff] }
0x150c   : > { %4124 = vst [vmem:[#allocation2 + $0xc] sm:$0x7] %v12410_v0  ;;  %11369 = vmatpush3.bf16.msra.mxu0 %v11368_v58  ;;  %9522 = vmatprep.mubr.msk.f32.mxu0 %vm12412_vm0, %v12410_v0  ;;  %v11431_v58 = vpack.c.bf16 %v4139_v57, %v4138_v56  ;;  %v4319_v56 = vld [vmem:[#allocation6 + $0x1b78] sm:$0xff]  ;;  %v4403_v59 = vld [vmem:[#allocation6 + $0x1c08] sm:$0xff] }
0x150d   : > { %11370 = vmatprep.subr.bf16.mxu0 %v12411_v5  ;;  %11393 = vmatpush3.bf16.msra.mxu1 %v11392_v25 }
0x150e   : > { %11394 = vmatprep.subr.bf16.mxu1 %v12411_v5 }
0x1510   : > { %11372 = vmatpush3.bf16.msra.mxu0 %v11371_v14 }
0x1511   : > { %11373 = vmatprep.subr.bf16.mxu0 %v12411_v5  ;;  %11396 = vmatpush3.bf16.msra.mxu1 %v11395_v33  ;;  %v11440_v33 = vpack.c.bf16 %v4305_v32, %v4304_v31  ;;  %v4526_v31 = vld [vmem:[#allocation6 + $0x1ea8] sm:$0xff] }
0x1512   : > { %11397 = vmatprep.subr.bf16.mxu1 %v12411_v5 }
0x1514   : > { %11375 = vmatpush3.bf16.msra.mxu0 %v11374_v1  ;;  %v4142_v1 = vld [vmem:[#allocation6 + $0x1a70] sm:$0xff] }
0x1515   : > { %11376 = vmatprep.subr.bf16.mxu0 %v12411_v5  ;;  %11399 = vmatpush3.bf16.msra.mxu1 %v11398_v40 }
0x1516   : > { %11400 = vmatprep.subr.bf16.mxu1 %v12411_v5 }
0x1518   : > { %11378 = vmatpush3.bf16.msra.mxu0 %v11377_v7  ;;  %v11437_v7 = vpack.c.bf16 %v4143_v6, %v4142_v1  ;;  %v4408_v1 = vld [vmem:[#allocation6 + $0x1c30] sm:$0xff] }
0x1519   : > { %11379 = vmatprep.subr.bf16.mxu0 %v12411_v5  ;;  %11402 = vmatpush3.bf16.msra.mxu1 %v11401_v2  ;;  %v11449_v2 = vpack.c.bf16 %v4311_v45, %v4310_v43 }
0x151a   : > { %11403 = vmatprep.subr.bf16.mxu1 %v12411_v5 }
0x151c   : > { %11381 = vmatpush3.bf16.msra.mxu0 %v11380_v9 }
0x151d   : > { %11382 = vmatprep.subr.bf16.mxu0 %v12411_v5  ;;  %11405 = vmatpush3.bf16.msra.mxu1 %v11404_v50  ;;  %v4314_v50 = vld [vmem:[#allocation6 + $0x1b50] sm:$0xff] }
0x151e   : > { %11406 = vmatprep.subr.bf16.mxu1 %v12411_v5  ;;  %v11455_v52 = vpack.c.bf16 %v4315_v51, %v4314_v50  ;;  %v4504_v50 = vld [vmem:[#allocation6 + $0x1e08] sm:$0xff] }
0x1520   : > { %11384 = vmatpush3.bf16.msra.mxu0 %v11383_v11 }
0x1521   : > { %11385 = vmatprep.subr.bf16.mxu0 %v12411_v5  ;;  %11408 = vmatpush3.bf16.msra.mxu1 %v11407_v55  ;;  %v4318_v55 = vld [vmem:[#allocation6 + $0x1b70] sm:$0xff] }
0x1522   : > { %11409 = vmatprep.subr.bf16.mxu1 %v12411_v5  ;;  %v11461_v57 = vpack.c.bf16 %v4319_v56, %v4318_v55  ;;  %v4507_v56 = vld [vmem:[#allocation6 + $0x1e20] sm:$0xff] }
0x1524   : > { %11387 = vmatpush3.bf16.msra.mxu0 %v11386_v13 }
0x1525   : > { %11388 = vmatprep.subr.bf16.mxu0 %v12411_v5  ;;  %11411 = vmatpush3.bf16.msra.mxu1 %v11410_v62 }
0x1526   : > { %11412 = vmatprep.subr.bf16.mxu1 %v12411_v5 }
0x1528   : > { %11390 = vmatpush3.bf16.msra.mxu0 %v11389_v19 }
0x1529   : > { %11415 = vmatprep.subr.bf16.mxu0 %v12411_v5  ;;  %11414 = vmatpush3.bf16.msra.mxu1 %v11413_v4  ;;  %v4409_v4 = vld [vmem:[#allocation6 + $0x1c38] sm:$0xff] }
0x152a   : > { %11439 = vmatprep.subr.bf16.mxu1 %v12411_v5  ;;  %v11473_v6 = vpack.c.bf16 %v4409_v4, %v4408_v1  ;;  %v4513_v4 = vld [vmem:[#allocation6 + $0x1e50] sm:$0xff] }
0x152b   : > { %9523 = vmatmul.mubr.f32.vlgmr.msra.gmra.mrb[26].mxu0 %v4023_v44  ;;  %v4141_v44 = vld [vmem:[#allocation6 + $0x1a68] sm:$0xff] }
0x152c   : > { %9592 = vmatprep.mubr.msk.f32.mxu0 %vm12412_vm0, %v12410_v0  ;;  %11417 = vmatpush3.bf16.msra.mxu0 %v11416_v30  ;;  %v11434_v14 = vpack.c.bf16 %v4141_v44, %v4140_v46  ;;  %v4405_v46 = vld [vmem:[#allocation6 + $0x1c18] sm:$0xff] }
0x152d   : > { %11418 = vmatprep.subr.bf16.mxu0 %v12411_v5  ;;  %v11467_v44 = vpack.c.bf16 %v4405_v46, %v4404_v61  ;;  %v4510_v61 = vld [vmem:[#allocation6 + $0x1e38] sm:$0xff]  ;;  %v4511_v46 = vld [vmem:[#allocation6 + $0x1e40] sm:$0xff] }
0x1530   : > { %11420 = vmatpush3.bf16.msra.mxu0 %v11419_v35  ;;  %v4306_v35 = vld [vmem:[#allocation6 + $0x1b10] sm:$0xff] }
0x1531   : > { %11421 = vmatprep.subr.bf16.mxu0 %v12411_v5  ;;  %v11443_v40 = vpack.c.bf16 %v4307_v37, %v4306_v35  ;;  %v4528_v35 = vld [vmem:[#allocation6 + $0x1eb8] sm:$0xff] }
0x1534   : > { %11423 = vmatpush3.bf16.msra.mxu0 %v11422_v36  ;;  %v4308_v36 = vld [vmem:[#allocation6 + $0x1b20] sm:$0xff] }
0x1535   : > { %11424 = vmatprep.subr.bf16.mxu0 %v12411_v5  ;;  %v11446_v42 = vpack.c.bf16 %v4309_v41, %v4308_v36 }
0x1538   : > { %11426 = vmatpush3.bf16.msra.mxu0 %v11425_v47  ;;  %v4312_v47 = vld [vmem:[#allocation6 + $0x1b40] sm:$0xff] }
0x1539   : > { %11427 = vmatprep.subr.bf16.mxu0 %v12411_v5  ;;  %v11452_v49 = vpack.c.bf16 %v4313_v48, %v4312_v47 }
0x153c   : > { %11429 = vmatpush3.bf16.msra.mxu0 %v11428_v53  ;;  %v4316_v53 = vld [vmem:[#allocation6 + $0x1b60] sm:$0xff] }
0x153d   : > { %11430 = vmatprep.subr.bf16.mxu0 %v12411_v5  ;;  %v11458_v20 = vpack.c.bf16 %v4317_v54, %v4316_v53  ;;  %v4505_v54 = vld [vmem:[#allocation6 + $0x1e10] sm:$0xff] }
0x1540   : > { %11432 = vmatpush3.bf16.msra.mxu0 %v11431_v58  ;;  %v4402_v58 = vld [vmem:[#allocation6 + $0x1c00] sm:$0xff] }
0x1541   : > { %11433 = vmatprep.subr.bf16.mxu0 %v12411_v5  ;;  %v11464_v62 = vpack.c.bf16 %v4403_v59, %v4402_v58  ;;  %v4509_v59 = vld [vmem:[#allocation6 + $0x1e30] sm:$0xff] }
0x1544   : > { %11435 = vmatpush3.bf16.msra.mxu0 %v11434_v14  ;;  %v4406_v14 = vld [vmem:[#allocation6 + $0x1c20] sm:$0xff] }
0x1545   : > { %11436 = vmatprep.subr.bf16.mxu0 %v12411_v5  ;;  %v11470_v63 = vpack.c.bf16 %v4407_v15, %v4406_v14  ;;  %v4531_v15 = vld [vmem:[#allocation6 + $0x1ed0] sm:$0xff] }
0x1548   : > { %11438 = vmatpush3.bf16.msra.mxu0 %v11437_v7  ;;  %v4410_v7 = vld [vmem:[#allocation6 + $0x1c40] sm:$0xff] }
0x1549   : > { %11463 = vmatprep.subr.bf16.mxu0 %v12411_v5 }
0x1592   : > { %v3825_v29 = vpop.xlane.xlu0 %3824 }
0x1593   : > { %v3826_v8 = vrot.slane %v3825_v29, 4 }
0x1595   : > { %v3827_v9 = vadd.f32 %v3826_v8, %v3825_v29  ;;  %v4411_v29 = vld [vmem:[#allocation6 + $0x1c48] sm:$0xff] }
0x1596   : > { %v11476_v8 = vpack.c.bf16 %v4411_v29, %v4410_v7  ;;  %v4533_v29 = vld [vmem:[#allocation6 + $0x1ee0] sm:$0xff] }
0x1597   : > { %v3828_v60 = vrot.slane %v3827_v9, 2 }
0x1599   : > { %v3829_v10 = vadd.f32 %v3828_v60, %v3827_v9  ;;  %v4412_v9 = vld [vmem:[#allocation6 + $0x1c50] sm:$0xff]  ;;  %v4413_v60 = vld [vmem:[#allocation6 + $0x1c58] sm:$0xff] }
0x159b   : > { %v3830_v11 = vrot.slane %v3829_v10, 1 }
0x159d   : > { %v3831_v3 = vadd.f32 %v3830_v11, %v3829_v10  ;;  %v11479_v10 = vpack.c.bf16 %v4413_v60, %v4412_v9  ;;  %v4414_v11 = vld [vmem:[#allocation6 + $0x1c60] sm:$0xff] }
0x159e   : > { %v4515_v60 = vld [vmem:[#allocation6 + $0x1e60] sm:$0xff] }
0x159f   : > { %12165 = vpush %v3831_v3  ;;  %v4415_v3 = vld [vmem:[#allocation6 + $0x1c68] sm:$0xff] }
0x15d0   : > { %s12166_s13 = spop %12165 }
0x15d1   : > { %v3833_v12 = vstv %s12166_s13 }
0x15d2   : > { %3834 = vst.msk [vmem:[%s13021_s26 + $0x1] sm:$0x1] %vm3586_vm4, %v3833_v12  ;;  %v11482_v12 = vpack.c.bf16 %v4415_v3, %v4414_v11  ;;  %v4535_v3 = vld [vmem:[#allocation6 + $0x1ef0] sm:$0xff] }
0x15dd   : > { %v4019_v17 = vpop.f32.mrb[34].mxu1 }
0x15de   : > { %v3949_v13 = vpop.f32.mrb[24].mxu0  ;;  %v9489_v21 = vpop.f32.mrb[35].mxu1 }
0x15df   : > { %v4020_v18 = vadd.f32 %v4019_v17, %v3949_v13  ;;  %v9454_v19 = vpop.f32.mrb[25].mxu0  ;;  %v4416_v13 = vld [vmem:[#allocation6 + $0x1c70] sm:$0xff]  ;;  %v4417_v17 = vld [vmem:[#allocation6 + $0x1c78] sm:$0xff]  ;;  %v4522_v21 = vld [vmem:[#allocation6 + $0x1e88] sm:$0xff] }
0x15e0   : > { %v4521_v19 = vld [vmem:[#allocation6 + $0x1e80] sm:$0xff] }
0x15fe   : > { %v4107_v23 = vpop.f32.mrb[26].mxu0 }
0x15ff   : > { %v4111_v25 = vadd.f32 %v4107_v23, %v4020_v18  ;;  %v9524_v26 = vpop.f32.mrb[27].mxu0  ;;  %v11485_v18 = vpack.c.bf16 %v4417_v17, %v4416_v13  ;;  %v11488_v23 = vpack.c.bf16 %v4522_v21, %v4521_v19  ;;  %v4517_v13 = vld [vmem:[#allocation6 + $0x1e70] sm:$0xff]  ;;  %v7207_v21 = vld [vmem:[#allocation8 + $0xe] ss:$0 sm:$0xff] }
0x1601   : > { %v13067_v27 = vadd.f32 %v7205_v24, %v4111_v25  ;;  %v4523_v24 = vld [vmem:[#allocation6 + $0x1e90] sm:$0xff]  ;;  %v4524_v25 = vld [vmem:[#allocation6 + $0x1e98] sm:$0xff] }
0x1602   : > { %v11491_v26 = vpack.c.bf16 %v4524_v25, %v4523_v24 }
0x1603   : > { %v4121_v28 = vmax.f32 %v13067_v27, 0.0  ;;  %v4683_v27 = vld [vmem:[#allocation6 + $0x1f20] sm:$0xff] }
0x1605   : > { %v4122_v30 = vmax.f32 %v4121_v28, 0.0 }
0x1607   : > { %4125 = vst [vmem:[#allocation2 + $0x8] sm:$0xf] %v4122_v30  ;;  %v4525_v30 = vld [vmem:[#allocation6 + $0x1ea0] sm:$0xff] }
0x1608   : > { %v11494_v32 = vpack.c.bf16 %v4526_v31, %v4525_v30  ;;  %v4679_v31 = vld [vmem:[#allocation6 + $0x1f00] sm:$0xff] }
0x160e   : > { %v4144_v34 = vld [vmem:[#allocation2 + $0x8] sm:$0xf] }
0x160f   : > { %v4126_v38 = vld [vmem:[#allocation2 + $0x5] sm:$0xf]  ;;  %v4302_v39 = vld [vmem:[#allocation2 + $0xb] sm:$0xf]  ;;  %9558 = vmatmul.mubr.f32.vlgmr.msra.gmra.mrb[36].mxu1 %v4144_v34 }
0x1610   : > { %9593 = vmatmul.mubr.f32.vlgmr.msra.gmra.mrb[28].mxu0 %v4126_v38  ;;  %4498 = vst [vmem:[#allocation2 + $0x7] sm:$0x1] %v12410_v0  ;;  %4499 = vst [vmem:[#allocation2 + $0xc] sm:$0x1] %v12410_v0  ;;  %11441 = vmatpush3.bf16.msra.mxu1 %v11440_v33  ;;  %v4527_v33 = vld [vmem:[#allocation6 + $0x1eb0] sm:$0xff]  ;;  %v4529_v34 = vld [vmem:[#allocation6 + $0x1ec0] sm:$0xff] }
0x1611   : > { %9627 = vmatprep.mubr.msk.f32.mxu1 %vm12412_vm0, %v12410_v0  ;;  %11442 = vmatprep.subr.bf16.mxu1 %v12411_v5  ;;  %v11497_v37 = vpack.c.bf16 %v4528_v35, %v4527_v33  ;;  %v4530_v38 = vld [vmem:[#allocation6 + $0x1ec8] sm:$0xff]  ;;  %v4681_v35 = vld [vmem:[#allocation6 + $0x1f10] sm:$0xff] }
0x1612   : > { %9662 = vmatprep.mubr.msk.f32.mxu0 %vm12412_vm0, %v12410_v0  ;;  %11465 = vmatpush3.bf16.msra.mxu0 %v11464_v62  ;;  %v11521_v62 = vpack.c.bf16 %v4510_v61, %v4509_v59  ;;  %v4780_v61 = vld [vmem:[#allocation6 + $0x2018] sm:$0xff] }
0x1613   : > { %11466 = vmatprep.subr.bf16.mxu0 %v12411_v5 }
0x1614   : > { %11444 = vmatpush3.bf16.msra.mxu1 %v11443_v40 }
0x1615   : > { %11445 = vmatprep.subr.bf16.mxu1 %v12411_v5 }
0x1616   : > { %11468 = vmatpush3.bf16.msra.mxu0 %v11467_v44  ;;  %v4512_v44 = vld [vmem:[#allocation6 + $0x1e48] sm:$0xff] }
0x1617   : > { %11469 = vmatprep.subr.bf16.mxu0 %v12411_v5  ;;  %v11524_v14 = vpack.c.bf16 %v4512_v44, %v4511_v46  ;;  %v4781_v46 = vld [vmem:[#allocation6 + $0x2020] sm:$0xff]  ;;  %v4782_v44 = vld [vmem:[#allocation6 + $0x2028] sm:$0xff] }
0x1618   : > { %11447 = vmatpush3.bf16.msra.mxu1 %v11446_v42 }
0x1619   : > { %11448 = vmatprep.subr.bf16.mxu1 %v12411_v5 }
0x161a   : > { %11471 = vmatpush3.bf16.msra.mxu0 %v11470_v63  ;;  %v4532_v63 = vld [vmem:[#allocation6 + $0x1ed8] sm:$0xff] }
0x161b   : > { %11472 = vmatprep.subr.bf16.mxu0 %v12411_v5  ;;  %v11503_v1 = vpack.c.bf16 %v4532_v63, %v4531_v15  ;;  %v4783_v15 = vld [vmem:[#allocation6 + $0x2030] sm:$0xff]  ;;  %v4784_v63 = vld [vmem:[#allocation6 + $0x2038] sm:$0xff] }
0x161c   : > { %11450 = vmatpush3.bf16.msra.mxu1 %v11449_v2  ;;  %v7206_v2 = vld [vmem:[#allocation8 + $0xd] ss:$0 sm:$0xff] }
0x161d   : > { %11451 = vmatprep.subr.bf16.mxu1 %v12411_v5 }
0x161e   : > { %11474 = vmatpush3.bf16.msra.mxu0 %v11473_v6  ;;  %v4514_v6 = vld [vmem:[#allocation6 + $0x1e58] sm:$0xff] }
0x161f   : > { %11475 = vmatprep.subr.bf16.mxu0 %v12411_v5  ;;  %v11527_v7 = vpack.c.bf16 %v4514_v6, %v4513_v4  ;;  %v4785_v4 = vld [vmem:[#allocation6 + $0x2040] sm:$0xff]  ;;  %v4786_v6 = vld [vmem:[#allocation6 + $0x2048] sm:$0xff] }
0x1620   : > { %11453 = vmatpush3.bf16.msra.mxu1 %v11452_v49  ;;  %v4503_v49 = vld [vmem:[#allocation6 + $0x1e00] sm:$0xff] }
0x1621   : > { %11454 = vmatprep.subr.bf16.mxu1 %v12411_v5 }
0x1622   : > { %11477 = vmatpush3.bf16.msra.mxu0 %v11476_v8  ;;  %v4534_v8 = vld [vmem:[#allocation6 + $0x1ee8] sm:$0xff] }
0x1623   : > { %11478 = vmatprep.subr.bf16.mxu0 %v12411_v5  ;;  %v11506_v9 = vpack.c.bf16 %v4534_v8, %v4533_v29  ;;  %v4787_v29 = vld [vmem:[#allocation6 + $0x2050] sm:$0xff]  ;;  %v4788_v8 = vld [vmem:[#allocation6 + $0x2058] sm:$0xff] }
0x1624   : > { %11456 = vmatpush3.bf16.msra.mxu1 %v11455_v52  ;;  %v11512_v52 = vpack.c.bf16 %v4504_v50, %v4503_v49  ;;  %v4691_v50 = vld [vmem:[#allocation6 + $0x1f60] sm:$0xff] }
0x1625   : > { %11457 = vmatprep.subr.bf16.mxu1 %v12411_v5 }
0x1626   : > { %11480 = vmatpush3.bf16.msra.mxu0 %v11479_v10  ;;  %v4516_v10 = vld [vmem:[#allocation6 + $0x1e68] sm:$0xff] }
0x1627   : > { %11481 = vmatprep.subr.bf16.mxu0 %v12411_v5  ;;  %v11530_v11 = vpack.c.bf16 %v4516_v10, %v4515_v60  ;;  %v4789_v60 = vld [vmem:[#allocation6 + $0x2060] sm:$0xff]  ;;  %v4790_v10 = vld [vmem:[#allocation6 + $0x2068] sm:$0xff] }
0x1628   : > { %11459 = vmatpush3.bf16.msra.mxu1 %v11458_v20  ;;  %v4506_v20 = vld [vmem:[#allocation6 + $0x1e18] sm:$0xff] }
0x1629   : > { %11460 = vmatprep.subr.bf16.mxu1 %v12411_v5  ;;  %v11515_v55 = vpack.c.bf16 %v4506_v20, %v4505_v54  ;;  %v4694_v54 = vld [vmem:[#allocation6 + $0x1f78] sm:$0xff] }
0x162a   : > { %11483 = vmatpush3.bf16.msra.mxu0 %v11482_v12  ;;  %v4536_v12 = vld [vmem:[#allocation6 + $0x1ef8] sm:$0xff] }
0x162b   : > { %11484 = vmatprep.subr.bf16.mxu0 %v12411_v5  ;;  %v11509_v17 = vpack.c.bf16 %v4536_v12, %v4535_v3  ;;  %v4791_v3 = vld [vmem:[#allocation6 + $0x2070] sm:$0xff]  ;;  %v4792_v12 = vld [vmem:[#allocation6 + $0x2078] sm:$0xff] }
0x162c   : > { %11462 = vmatpush3.bf16.msra.mxu1 %v11461_v57  ;;  %v4508_v57 = vld [vmem:[#allocation6 + $0x1e28] sm:$0xff] }
0x162d   : > { %11487 = vmatprep.subr.bf16.mxu1 %v12411_v5  ;;  %v11518_v58 = vpack.c.bf16 %v4508_v57, %v4507_v56  ;;  %v4777_v56 = vld [vmem:[#allocation6 + $0x2000] sm:$0xff]  ;;  %v4778_v57 = vld [vmem:[#allocation6 + $0x2008] sm:$0xff] }
0x162e   : > { %11486 = vmatpush3.bf16.msra.mxu0 %v11485_v18  ;;  %v4518_v18 = vld [vmem:[#allocation6 + $0x1e78] sm:$0xff]  ;;  %v11560_v59 = vpack.c.bf16 %v4778_v57, %v4777_v56 }
0x162f   : > { %9628 = vmatmul.mubr.f32.vlgmr.msra.gmra.mrb[38].mxu1 %v4302_v39  ;;  %11511 = vmatprep.subr.bf16.mxu0 %v12411_v5  ;;  %v11500_v39 = vpack.c.bf16 %v4530_v38, %v4529_v34  ;;  %v11533_v19 = vpack.c.bf16 %v4518_v18, %v4517_v13  ;;  %v11581_v13 = vpack.c.bf16 %v4792_v12, %v4791_v3  ;;  %v4993_v3 = vld [vmem:[#allocation6 + $0x22f0] sm:$0xff]  ;;  %v4994_v12 = vld [vmem:[#allocation6 + $0x22f8] sm:$0xff] }
0x1630   : > { %9697 = vmatprep.mubr.msk.f32.mxu1 %vm12412_vm0, %v12410_v0  ;;  %11489 = vmatpush3.bf16.msra.mxu1 %v11488_v23 }
0x1631   : > { %11490 = vmatprep.subr.bf16.mxu1 %v12411_v5 }
0x1634   : > { %11492 = vmatpush3.bf16.msra.mxu1 %v11491_v26 }
0x1635   : > { %11493 = vmatprep.subr.bf16.mxu1 %v12411_v5 }
0x1638   : > { %11495 = vmatpush3.bf16.msra.mxu1 %v11494_v32  ;;  %v4680_v32 = vld [vmem:[#allocation6 + $0x1f08] sm:$0xff] }
0x1639   : > { %11496 = vmatprep.subr.bf16.mxu1 %v12411_v5  ;;  %v11536_v33 = vpack.c.bf16 %v4680_v32, %v4679_v31 }
0x163c   : > { %11498 = vmatpush3.bf16.msra.mxu1 %v11497_v37  ;;  %v4682_v37 = vld [vmem:[#allocation6 + $0x1f18] sm:$0xff] }
0x163d   : > { %11499 = vmatprep.subr.bf16.mxu1 %v12411_v5 }
0x1640   : > { %11501 = vmatpush3.bf16.msra.mxu1 %v11500_v39  ;;  %v11539_v39 = vpack.c.bf16 %v4682_v37, %v4681_v35  ;;  %v4961_v35 = vld [vmem:[#allocation6 + $0x2200] sm:$0xff]  ;;  %v4962_v37 = vld [vmem:[#allocation6 + $0x2208] sm:$0xff] }
0x1641   : > { %11502 = vmatprep.subr.bf16.mxu1 %v12411_v5 }
0x1644   : > { %11504 = vmatpush3.bf16.msra.mxu1 %v11503_v1  ;;  %v11569_v1 = vpack.c.bf16 %v4784_v63, %v4783_v15  ;;  %v4985_v15 = vld [vmem:[#allocation6 + $0x22b0] sm:$0xff]  ;;  %v4986_v63 = vld [vmem:[#allocation6 + $0x22b8] sm:$0xff] }
0x1645   : > { %11505 = vmatprep.subr.bf16.mxu1 %v12411_v5 }
0x1648   : > { %11507 = vmatpush3.bf16.msra.mxu1 %v11506_v9  ;;  %v11575_v9 = vpack.c.bf16 %v4788_v8, %v4787_v29  ;;  %v4989_v29 = vld [vmem:[#allocation6 + $0x22d0] sm:$0xff]  ;;  %v4990_v8 = vld [vmem:[#allocation6 + $0x22d8] sm:$0xff] }
0x1649   : > { %11508 = vmatprep.subr.bf16.mxu1 %v12411_v5 }
0x164c   : > { %11510 = vmatpush3.bf16.msra.mxu1 %v11509_v17 }
0x164d   : > { %11535 = vmatprep.subr.bf16.mxu1 %v12411_v5 }
0x16e2   : > { %v4228_v40 = vpop.f32.mrb[36].mxu1 }
0x16e3   : > { %v4298_v36 = vpop.f32.mrb[28].mxu0  ;;  %v9559_v42 = vpop.f32.mrb[37].mxu1 }
0x16e4   : > { %v4299_v41 = vadd.f32 %v4298_v36, %v4228_v40  ;;  %v9594_v43 = vpop.f32.mrb[29].mxu0  ;;  %v4685_v36 = vld [vmem:[#allocation6 + $0x1f30] sm:$0xff] }
0x16e5   : > { %v4687_v43 = vld [vmem:[#allocation6 + $0x1f40] sm:$0xff] }
0x1702   : > { %v4386_v45 = vpop.f32.mrb[38].mxu1 }
0x1703   : > { %v4390_v47 = vadd.f32 %v4386_v45, %v4299_v41  ;;  %v9629_v48 = vpop.f32.mrb[39].mxu1  ;;  %v4686_v41 = vld [vmem:[#allocation6 + $0x1f38] sm:$0xff]  ;;  %v4688_v45 = vld [vmem:[#allocation6 + $0x1f48] sm:$0xff] }
0x1704   : > { %v11545_v42 = vpack.c.bf16 %v4686_v41, %v4685_v36  ;;  %v4690_v48 = vld [vmem:[#allocation6 + $0x1f58] sm:$0xff]  ;;  %v4967_v41 = vld [vmem:[#allocation6 + $0x2230] sm:$0xff] }
0x1705   : > { %v4399_v51 = vadd.f32 %v7206_v2, %v4390_v47  ;;  %v11548_v2 = vpack.c.bf16 %v4688_v45, %v4687_v43  ;;  %v4689_v47 = vld [vmem:[#allocation6 + $0x1f50] sm:$0xff]  ;;  %v4969_v45 = vld [vmem:[#allocation6 + $0x2240] sm:$0xff] }
0x1706   : > { %v11551_v49 = vpack.c.bf16 %v4690_v48, %v4689_v47  ;;  %v4971_v48 = vld [vmem:[#allocation6 + $0x2250] sm:$0xff] }
0x1707   : > { %v4400_v53 = vmax.f32 %v4399_v51, 0.0  ;;  %v4692_v51 = vld [vmem:[#allocation6 + $0x1f68] sm:$0xff] }
0x1709   : > { %9663 = vmatmul.mubr.f32.vlgmr.msra.gmra.mrb[30].mxu0 %v4400_v53  ;;  %v4693_v53 = vld [vmem:[#allocation6 + $0x1f70] sm:$0xff] }
0x170a   : > { %11513 = vmatpush3.bf16.msra.mxu0 %v11512_v52  ;;  %9732 = vmatprep.mubr.msk.f32.mxu0 %vm12412_vm0, %v12410_v0  ;;  %v11554_v52 = vpack.c.bf16 %v4692_v51, %v4691_v50  ;;  %v11557_v20 = vpack.c.bf16 %v4694_v54, %v4693_v53  ;;  %v13151_v51 = vmul.u32 2, %v12649_v22  ;;  %v7209_v53 = vld [vmem:[#allocation8 + $0x10] ss:$0 sm:$0xff] }
0x170b   : > { %11514 = vmatprep.subr.bf16.mxu0 %v12411_v5 }
0x170c   : > { %vm4873_vm5 = vcmp.eq.s32.totalorder %v12647_v16, %v13151_v51 }
0x170e   : > { %11516 = vmatpush3.bf16.msra.mxu0 %v11515_v55 }
0x170f   : > { %11517 = vmatprep.subr.bf16.mxu0 %v12411_v5 }
0x1712   : > { %11519 = vmatpush3.bf16.msra.mxu0 %v11518_v58  ;;  %v4779_v58 = vld [vmem:[#allocation6 + $0x2010] sm:$0xff] }
0x1713   : > { %11520 = vmatprep.subr.bf16.mxu0 %v12411_v5 }
0x1716   : > { %11522 = vmatpush3.bf16.msra.mxu0 %v11521_v62  ;;  %v11563_v62 = vpack.c.bf16 %v4780_v61, %v4779_v58  ;;  %v4981_v61 = vld [vmem:[#allocation6 + $0x2290] sm:$0xff] }
0x1717   : > { %11523 = vmatprep.subr.bf16.mxu0 %v12411_v5 }
0x171a   : > { %11525 = vmatpush3.bf16.msra.mxu0 %v11524_v14  ;;  %v11566_v14 = vpack.c.bf16 %v4782_v44, %v4781_v46  ;;  %v4984_v44 = vld [vmem:[#allocation6 + $0x22a8] sm:$0xff] }
0x171b   : > { %11526 = vmatprep.subr.bf16.mxu0 %v12411_v5 }
0x171e   : > { %11528 = vmatpush3.bf16.msra.mxu0 %v11527_v7  ;;  %v11572_v7 = vpack.c.bf16 %v4786_v6, %v4785_v4  ;;  %v4987_v4 = vld [vmem:[#allocation6 + $0x22c0] sm:$0xff]  ;;  %v4988_v6 = vld [vmem:[#allocation6 + $0x22c8] sm:$0xff] }
0x171f   : > { %11529 = vmatprep.subr.bf16.mxu0 %v12411_v5 }
0x1722   : > { %11531 = vmatpush3.bf16.msra.mxu0 %v11530_v11  ;;  %v11578_v11 = vpack.c.bf16 %v4790_v10, %v4789_v60  ;;  %v4991_v60 = vld [vmem:[#allocation6 + $0x22e0] sm:$0xff]  ;;  %v4992_v10 = vld [vmem:[#allocation6 + $0x22e8] sm:$0xff] }
0x1723   : > { %11532 = vmatprep.subr.bf16.mxu0 %v12411_v5 }
0x1726   : > { %11534 = vmatpush3.bf16.msra.mxu0 %v11533_v19 }
0x1727   : > { %11559 = vmatprep.subr.bf16.mxu0 %v12411_v5 }
0x17dc   : > { %v4492_v23 = vpop.f32.mrb[30].mxu0 }
0x17dd   : > { %v4493_v24 = vadd.f32 %v7207_v21, %v4492_v23  ;;  %v9664_v25 = vpop.f32.mrb[31].mxu0 }
0x17de   : > { %v7208_v25 = vld [vmem:[#allocation8 + $0xf] ss:$0 sm:$0xff] }
0x17df   : > { %v13116_v26 = vadd.f32 %v4493_v24, %v4121_v28  ;;  %v4684_v28 = vld [vmem:[#allocation6 + $0x1f28] sm:$0xff] }
0x17e0   : > { %v11542_v40 = vpack.c.bf16 %v4684_v28, %v4683_v27  ;;  %v4965_v28 = vld [vmem:[#allocation6 + $0x2220] sm:$0xff] }
0x17e1   : > { %v4497_v30 = vmax.f32 %v13116_v26, 0.0 }
0x17e3   : > { %4500 = vst [vmem:[#allocation2 + $0x8] sm:$0xf] %v4497_v30 }
0x17ea   : > { %v4519_v34 = vld [vmem:[#allocation2 + $0x8] sm:$0xf] }
0x17eb   : > { %v4501_v38 = vld [vmem:[#allocation2 + $0x7] sm:$0xf]  ;;  %9698 = vmatmul.mubr.f32.vlgmr.msra.gmra.mrb[40].mxu1 %v4519_v34  ;;  %v11608_v34 = vpack.c.bf16 %v4962_v37, %v4961_v35 }
0x17ec   : > { %9733 = vmatmul.mubr.f32.vlgmr.msra.gmra.mrb[32].mxu0 %v4501_v38  ;;  %4956 = vst [vmem:[#allocation2 + $0x7] sm:$0x1] %v12410_v0  ;;  %11537 = vmatpush3.bf16.msra.mxu1 %v11536_v33  ;;  %v4677_v55 = vld [vmem:[#allocation2 + $0x9] sm:$0xf]  ;;  %v4963_v38 = vld [vmem:[#allocation6 + $0x2210] sm:$0xff] }
0x17ed   : > { %9767 = vmatprep.mubr.msk.f32.mxu1 %vm12412_vm0, %v12410_v0  ;;  %11538 = vmatprep.subr.bf16.mxu1 %v12411_v5 }
0x17ee   : > { %9802 = vmatprep.mubr.msk.f32.mxu0 %vm12412_vm0, %v12410_v0  ;;  %11561 = vmatpush3.bf16.msra.mxu0 %v11560_v59 }
0x17ef   : > { %11562 = vmatprep.subr.bf16.mxu0 %v12411_v5 }
0x17f0   : > { %11540 = vmatpush3.bf16.msra.mxu1 %v11539_v39  ;;  %v4964_v39 = vld [vmem:[#allocation6 + $0x2218] sm:$0xff] }
0x17f1   : > { %11541 = vmatprep.subr.bf16.mxu1 %v12411_v5  ;;  %v11611_v27 = vpack.c.bf16 %v4964_v39, %v4963_v38  ;;  %v5141_v38 = vld [vmem:[#allocation6 + $0x2320] sm:$0xff]  ;;  %v5142_v39 = vld [vmem:[#allocation6 + $0x2328] sm:$0xff] }
0x17f2   : > { %11564 = vmatpush3.bf16.msra.mxu0 %v11563_v62  ;;  %v4982_v62 = vld [vmem:[#allocation6 + $0x2298] sm:$0xff] }
0x17f3   : > { %11565 = vmatprep.subr.bf16.mxu0 %v12411_v5  ;;  %v11587_v46 = vpack.c.bf16 %v4982_v62, %v4981_v61  ;;  %v5259_v61 = vld [vmem:[#allocation6 + $0x2490] sm:$0xff]  ;;  %v5260_v62 = vld [vmem:[#allocation6 + $0x2498] sm:$0xff] }
0x17f4   : > { %11543 = vmatpush3.bf16.msra.mxu1 %v11542_v40  ;;  %v4966_v40 = vld [vmem:[#allocation6 + $0x2228] sm:$0xff] }
0x17f5   : > { %11544 = vmatprep.subr.bf16.mxu1 %v12411_v5  ;;  %v11614_v36 = vpack.c.bf16 %v4966_v40, %v4965_v28  ;;  %v5143_v28 = vld [vmem:[#allocation6 + $0x2330] sm:$0xff]  ;;  %v5144_v40 = vld [vmem:[#allocation6 + $0x2338] sm:$0xff] }
0x17f6   : > { %11567 = vmatpush3.bf16.msra.mxu0 %v11566_v14 }
0x17f7   : > { %11568 = vmatprep.subr.bf16.mxu0 %v12411_v5 }
0x17f8   : > { %11546 = vmatpush3.bf16.msra.mxu1 %v11545_v42  ;;  %v4968_v42 = vld [vmem:[#allocation6 + $0x2238] sm:$0xff] }
0x17f9   : > { %11547 = vmatprep.subr.bf16.mxu1 %v12411_v5  ;;  %v11617_v43 = vpack.c.bf16 %v4968_v42, %v4967_v41  ;;  %v11641_v42 = vpack.c.bf16 %v5144_v40, %v5143_v28  ;;  %v5251_v40 = vld [vmem:[#allocation6 + $0x2460] sm:$0xff] }
0x17fa   : > { %11570 = vmatpush3.bf16.msra.mxu0 %v11569_v1  ;;  %v11593_v1 = vpack.c.bf16 %v4986_v63, %v4985_v15  ;;  %v5242_v63 = vld [vmem:[#allocation6 + $0x2418] sm:$0xff] }
0x17fb   : > { %11571 = vmatprep.subr.bf16.mxu0 %v12411_v5 }
0x17fc   : > { %11549 = vmatpush3.bf16.msra.mxu1 %v11548_v2  ;;  %v4970_v2 = vld [vmem:[#allocation6 + $0x2248] sm:$0xff] }
0x17fd   : > { %11550 = vmatprep.subr.bf16.mxu1 %v12411_v5  ;;  %v11620_v47 = vpack.c.bf16 %v4970_v2, %v4969_v45  ;;  %v5146_v45 = vld [vmem:[#allocation6 + $0x2348] sm:$0xff] }
0x17fe   : > { %11573 = vmatpush3.bf16.msra.mxu0 %v11572_v7  ;;  %v11596_v7 = vpack.c.bf16 %v4988_v6, %v4987_v4  ;;  %v5262_v4 = vld [vmem:[#allocation6 + $0x24a8] sm:$0xff] }
0x17ff   : > { %11574 = vmatprep.subr.bf16.mxu0 %v12411_v5 }
0x1800   : > { %11552 = vmatpush3.bf16.msra.mxu1 %v11551_v49  ;;  %v4972_v49 = vld [vmem:[#allocation6 + $0x2258] sm:$0xff] }
0x1801   : > { %11553 = vmatprep.subr.bf16.mxu1 %v12411_v5  ;;  %v11623_v50 = vpack.c.bf16 %v4972_v49, %v4971_v48  ;;  %v5148_v48 = vld [vmem:[#allocation6 + $0x2358] sm:$0xff] }
0x1802   : > { %11576 = vmatpush3.bf16.msra.mxu0 %v11575_v9  ;;  %v11599_v9 = vpack.c.bf16 %v4990_v8, %v4989_v29  ;;  %v5263_v29 = vld [vmem:[#allocation6 + $0x24b0] sm:$0xff]  ;;  %v5264_v8 = vld [vmem:[#allocation6 + $0x24b8] sm:$0xff] }
0x1803   : > { %11577 = vmatprep.subr.bf16.mxu0 %v12411_v5 }
0x1804   : > { %11555 = vmatpush3.bf16.msra.mxu1 %v11554_v52  ;;  %v13154_v52 = vadd.s32 1, %v13151_v51 }
0x1805   : > { %11556 = vmatprep.subr.bf16.mxu1 %v12411_v5 }
0x1806   : > { %11579 = vmatpush3.bf16.msra.mxu0 %v11578_v11  ;;  %vm4875_vm6 = vcmp.eq.s32.totalorder %v12647_v16, %v13154_v52  ;;  %v11602_v11 = vpack.c.bf16 %v4992_v10, %v4991_v60  ;;  %v5244_v60 = vld [vmem:[#allocation6 + $0x2428] sm:$0xff]  ;;  %v11665_v10 = vpack.c.bf16 %v5264_v8, %v5263_v29  ;;  %v5423_v29 = vld [vmem:[#allocation6 + $0x2540] sm:$0xff] }
0x1807   : > { %11580 = vmatprep.subr.bf16.mxu0 %v12411_v5  ;;  %vm4876_vm7 = vmor %vm4873_vm5, %vm4875_vm6  ;;  %v5424_v8 = vld [vmem:[#allocation6 + $0x2548] sm:$0xff] }
0x1808   : > { %11558 = vmatpush3.bf16.msra.mxu1 %v11557_v20  ;;  %v4979_v20 = vld [vmem:[#allocation6 + $0x2280] sm:$0xff]  ;;  %v13162_v22 = vsel %vm4876_vm7, 1.0, %v12410_v0 }
0x1809   : > { %9805 = vmatprep.subr.mxu1 %v12410_v0 }
0x180a   : > { %11582 = vmatpush3.bf16.msra.mxu0 %v11581_v13  ;;  %v11605_v13 = vpack.c.bf16 %v4994_v12, %v4993_v3  ;;  %v5265_v3 = vld [vmem:[#allocation6 + $0x24c0] sm:$0xff]  ;;  %v5266_v12 = vld [vmem:[#allocation6 + $0x24c8] sm:$0xff] }
0x180b   : > { %9768 = vmatmul.mubr.f32.vlgmr.msra.gmra.mrb[42].mxu1 %v4677_v55  ;;  %11607 = vmatprep.subr.bf16.mxu0 %v12411_v5  ;;  %v4980_v55 = vld [vmem:[#allocation6 + $0x2288] sm:$0xff] }
0x180c   : > { %9807 = vmatprep.mubr.msk.f32.mxu1 %vm12412_vm0, %v12410_v0  ;;  %v11584_v59 = vpack.c.bf16 %v4980_v55, %v4979_v20  ;;  %v5151_v20 = vld [vmem:[#allocation6 + $0x2370] sm:$0xff]  ;;  %v5152_v55 = vld [vmem:[#allocation6 + $0x2378] sm:$0xff] }
0x18be   : > { %v4603_v17 = vpop.f32.mrb[40].mxu1 }
0x18bf   : > { %v4673_v18 = vpop.f32.mrb[32].mxu0  ;;  %v9699_v21 = vpop.f32.mrb[41].mxu1 }
0x18c0   : > { %v4674_v19 = vadd.f32 %v4673_v18, %v4603_v17  ;;  %v9734_v23 = vpop.f32.mrb[33].mxu0  ;;  %v4973_v17 = vld [vmem:[#allocation6 + $0x2260] sm:$0xff]  ;;  %v4974_v18 = vld [vmem:[#allocation6 + $0x2268] sm:$0xff]  ;;  %v4975_v21 = vld [vmem:[#allocation6 + $0x2270] sm:$0xff] }
0x18c1   : > { %v4976_v23 = vld [vmem:[#allocation6 + $0x2278] sm:$0xff] }
0x18de   : > { %v4761_v24 = vpop.f32.mrb[42].mxu1 }
0x18df   : > { %v4765_v30 = vadd.f32 %v4761_v24, %v4674_v19  ;;  %v9769_v31 = vpop.f32.mrb[43].mxu1  ;;  %v11626_v19 = vpack.c.bf16 %v4974_v18, %v4973_v17  ;;  %v11629_v24 = vpack.c.bf16 %v4976_v23, %v4975_v21  ;;  %v5246_v17 = vld [vmem:[#allocation6 + $0x2438] sm:$0xff]  ;;  %v11668_v18 = vpack.c.bf16 %v5266_v12, %v5265_v3  ;;  %v5267_v21 = vld [vmem:[#allocation6 + $0x24d0] sm:$0xff]  ;;  %v5427_v3 = vld [vmem:[#allocation6 + $0x2560] sm:$0xff] }
0x18e0   : > { %v5268_v23 = vld [vmem:[#allocation6 + $0x24d8] sm:$0xff]  ;;  %v5428_v12 = vld [vmem:[#allocation6 + $0x2568] sm:$0xff] }
0x18e1   : > { %v4774_v32 = vadd.f32 %v7208_v25, %v4765_v30  ;;  %v5137_v25 = vld [vmem:[#allocation6 + $0x2300] sm:$0xff]  ;;  %v5138_v30 = vld [vmem:[#allocation6 + $0x2308] sm:$0xff] }
0x18e2   : > { %v11632_v31 = vpack.c.bf16 %v5138_v30, %v5137_v25  ;;  %v5269_v25 = vld [vmem:[#allocation6 + $0x24e0] sm:$0xff]  ;;  %v5270_v30 = vld [vmem:[#allocation6 + $0x24e8] sm:$0xff] }
0x18e3   : > { %v4775_v33 = vmax.f32 %v4774_v32, 0.0  ;;  %v5139_v32 = vld [vmem:[#allocation6 + $0x2310] sm:$0xff] }
0x18e5   : > { %9803 = vmatmul.mubr.f32.vlgmr.msra.gmra.mrb[34].mxu0 %v4775_v33  ;;  %v5140_v33 = vld [vmem:[#allocation6 + $0x2318] sm:$0xff] }
0x18e6   : > { %9877 = vmatprep.mubr.msk.f32.mxu0 %vm12412_vm0, %v12410_v0  ;;  %11609 = vmatpush3.bf16.msra.mxu0 %v11608_v34  ;;  %v11635_v34 = vpack.c.bf16 %v5140_v33, %v5139_v32  ;;  %v5248_v32 = vld [vmem:[#allocation6 + $0x2448] sm:$0xff]  ;;  %v11674_v33 = vpack.c.bf16 %v5270_v30, %v5269_v25  ;;  %v5515_v25 = vld [vmem:[#allocation6 + $0x2610] sm:$0xff]  ;;  %v5516_v30 = vld [vmem:[#allocation6 + $0x2618] sm:$0xff] }
0x18e7   : > { %11610 = vmatprep.subr.bf16.mxu0 %v12411_v5 }
0x18ea   : > { %11612 = vmatpush3.bf16.msra.mxu0 %v11611_v27  ;;  %v11638_v27 = vpack.c.bf16 %v5142_v39, %v5141_v38  ;;  %v5249_v38 = vld [vmem:[#allocation6 + $0x2450] sm:$0xff]  ;;  %v5250_v39 = vld [vmem:[#allocation6 + $0x2458] sm:$0xff] }
0x18eb   : > { %11613 = vmatprep.subr.bf16.mxu0 %v12411_v5  ;;  %v11695_v28 = vpack.c.bf16 %v5250_v39, %v5249_v38  ;;  %v5521_v39 = vld [vmem:[#allocation6 + $0x2640] sm:$0xff] }
0x18ee   : > { %11615 = vmatpush3.bf16.msra.mxu0 %v11614_v36 }
0x18ef   : > { %11616 = vmatprep.subr.bf16.mxu0 %v12411_v5 }
0x18f2   : > { %11618 = vmatpush3.bf16.msra.mxu0 %v11617_v43  ;;  %v5145_v43 = vld [vmem:[#allocation6 + $0x2340] sm:$0xff] }
0x18f3   : > { %11619 = vmatprep.subr.bf16.mxu0 %v12411_v5  ;;  %v11644_v2 = vpack.c.bf16 %v5146_v45, %v5145_v43  ;;  %v5254_v43 = vld [vmem:[#allocation6 + $0x2478] sm:$0xff] }
0x18f6   : > { %11621 = vmatpush3.bf16.msra.mxu0 %v11620_v47  ;;  %v5147_v47 = vld [vmem:[#allocation6 + $0x2350] sm:$0xff] }
0x18f7   : > { %11622 = vmatprep.subr.bf16.mxu0 %v12411_v5  ;;  %v11647_v49 = vpack.c.bf16 %v5148_v48, %v5147_v47 }
0x18fa   : > { %11624 = vmatpush3.bf16.msra.mxu0 %v11623_v50  ;;  %v5149_v50 = vld [vmem:[#allocation6 + $0x2360] sm:$0xff] }
0x18fb   : > { %11625 = vmatprep.subr.bf16.mxu0 %v12411_v5 }
0x18fe   : > { %11627 = vmatpush3.bf16.msra.mxu0 %v11626_v19 }
0x18ff   : > { %11628 = vmatprep.subr.bf16.mxu0 %v12411_v5 }
0x1902   : > { %11630 = vmatpush3.bf16.msra.mxu0 %v11629_v24  ;;  %v11671_v24 = vpack.c.bf16 %v5268_v23, %v5267_v21  ;;  %v5513_v21 = vld [vmem:[#allocation6 + $0x2600] sm:$0xff]  ;;  %v5514_v23 = vld [vmem:[#allocation6 + $0x2608] sm:$0xff] }
0x1903   : > { %11655 = vmatprep.subr.bf16.mxu0 %v12411_v5 }
0x19b8   : > { %v4867_v54 = vpop.f32.mrb[34].mxu0 }
0x19b9   : > { %v4868_v56 = vadd.f32 %v7209_v53, %v4867_v54  ;;  %v9804_v57 = vpop.f32.mrb[35].mxu0  ;;  %v5150_v53 = vld [vmem:[#allocation6 + $0x2368] sm:$0xff] }
0x19ba   : > { %v11650_v54 = vpack.c.bf16 %v5150_v53, %v5149_v50  ;;  %v5257_v57 = vld [vmem:[#allocation6 + $0x2480] sm:$0xff] }
0x19bb   : > { %v4871_v58 = vadd.f32 %v4868_v56, %v13116_v26  ;;  %v4983_v26 = vld [vmem:[#allocation6 + $0x22a0] sm:$0xff]  ;;  %v11653_v56 = vpack.c.bf16 %v5152_v55, %v5151_v20 }
0x19bc   : > { %v11590_v14 = vpack.c.bf16 %v4984_v44, %v4983_v26  ;;  %v5240_v26 = vld [vmem:[#allocation6 + $0x2408] sm:$0xff]  ;;  %v11659_v44 = vpack.c.bf16 %v5260_v62, %v5259_v61  ;;  %v5417_v62 = vld [vmem:[#allocation6 + $0x2510] sm:$0xff] }
0x19bd   : > { %9806 = vmatpush3.msk.msra.mxu1 %vm3574_vm1, %v4871_v58  ;;  %v5258_v58 = vld [vmem:[#allocation6 + $0x2488] sm:$0xff] }
0x19be   : > { %9808 = vmatmul.mubr.msk.f32.vlgmr.msra.gmra.mrb[44].mxu1 %vm4879_vm8, %v13162_v22  ;;  %11583 = vmatprep.subr.bf16.mxu1 %v12411_v5 }
0x19bf   : > { %11585 = vmatpush3.bf16.msra.mxu1 %v11584_v59  ;;  %9842 = vmatprep.mubr.msk.f32.mxu1 %vm12412_vm0, %v12410_v0  ;;  %v11656_v59 = vpack.c.bf16 %v5258_v58, %v5257_v57  ;;  %v5416_v57 = vld [vmem:[#allocation6 + $0x2508] sm:$0xff] }
0x19c0   : > { %11586 = vmatprep.subr.bf16.mxu1 %v12411_v5 }
0x19c3   : > { %11588 = vmatpush3.bf16.msra.mxu1 %v11587_v46  ;;  %v5239_v46 = vld [vmem:[#allocation6 + $0x2400] sm:$0xff] }
0x19c4   : > { %11589 = vmatprep.subr.bf16.mxu1 %v12411_v5  ;;  %v11680_v15 = vpack.c.bf16 %v5240_v26, %v5239_v46  ;;  %v5418_v46 = vld [vmem:[#allocation6 + $0x2518] sm:$0xff] }
0x19c5   : > { %v11707_v26 = vpack.c.bf16 %v5418_v46, %v5417_v62  ;;  %v5639_v62 = vld [vmem:[#allocation6 + $0x28b8] sm:$0xff] }
0x19c7   : > { %11591 = vmatpush3.bf16.msra.mxu1 %v11590_v14  ;;  %v5241_v14 = vld [vmem:[#allocation6 + $0x2410] sm:$0xff] }
0x19c8   : > { %11592 = vmatprep.subr.bf16.mxu1 %v12411_v5 }
0x19cb   : > { %11594 = vmatpush3.bf16.msra.mxu1 %v11593_v1  ;;  %v5261_v1 = vld [vmem:[#allocation6 + $0x24a0] sm:$0xff] }
0x19cc   : > { %11595 = vmatprep.subr.bf16.mxu1 %v12411_v5  ;;  %v11662_v6 = vpack.c.bf16 %v5262_v4, %v5261_v1  ;;  %v5422_v1 = vld [vmem:[#allocation6 + $0x2538] sm:$0xff] }
0x19cf   : > { %11597 = vmatpush3.bf16.msra.mxu1 %v11596_v7  ;;  %v11683_v7 = vpack.c.bf16 %v5242_v63, %v5241_v14  ;;  %v5420_v14 = vld [vmem:[#allocation6 + $0x2528] sm:$0xff]  ;;  %v5421_v63 = vld [vmem:[#allocation6 + $0x2530] sm:$0xff] }
0x19d0   : > { %11598 = vmatprep.subr.bf16.mxu1 %v12411_v5 }
0x19d3   : > { %11600 = vmatpush3.bf16.msra.mxu1 %v11599_v9  ;;  %v5243_v9 = vld [vmem:[#allocation6 + $0x2420] sm:$0xff] }
0x19d4   : > { %11601 = vmatprep.subr.bf16.mxu1 %v12411_v5 }
0x19d7   : > { %11603 = vmatpush3.bf16.msra.mxu1 %v11602_v11  ;;  %v11686_v11 = vpack.c.bf16 %v5244_v60, %v5243_v9  ;;  %v11716_v9 = vpack.c.bf16 %v5424_v8, %v5423_v29  ;;  %v5425_v60 = vld [vmem:[#allocation6 + $0x2550] sm:$0xff] }
0x19d8   : > { %11604 = vmatprep.subr.bf16.mxu1 %v12411_v5  ;;  %v7214_v29 = vld [vmem:[#allocation8 + $0x12] ss:$0 sm:$0xff] }
0x19db   : > { %11606 = vmatpush3.bf16.msra.mxu1 %v11605_v13  ;;  %v5245_v13 = vld [vmem:[#allocation6 + $0x2430] sm:$0xff] }
0x19dc   : > { %11631 = vmatprep.subr.bf16.mxu1 %v12411_v5  ;;  %v11689_v19 = vpack.c.bf16 %v5246_v17, %v5245_v13  ;;  %v11722_v13 = vpack.c.bf16 %v5428_v12, %v5427_v3  ;;  %v5429_v17 = vld [vmem:[#allocation6 + $0x2570] sm:$0xff] }
0x1a91   : > { %v4952_v35 = vpop.f32.mrb[44].mxu1 }
0x1a92   : > { %4958 = vst [vmem:[#allocation2 + $0x8] sm:$0xff] %v4952_v35  ;;  %v9809_v37 = vpop.f32.mrb[45].mxu1  ;;  %9843 = vmatmul.mubr.f32.vlgmr.msra.gmra.mrb[46].mxu1 %v4952_v35 }
0x1a93   : > { %11633 = vmatpush3.bf16.msra.mxu1 %v11632_v31  ;;  %9912 = vmatprep.mubr.msk.f32.mxu1 %vm12412_vm0, %v12410_v0  ;;  %v5247_v31 = vld [vmem:[#allocation6 + $0x2440] sm:$0xff]  ;;  %v5271_v37 = vld [vmem:[#allocation6 + $0x24f0] sm:$0xff] }
0x1a94   : > { %11634 = vmatprep.subr.bf16.mxu1 %v12411_v5  ;;  %v11692_v35 = vpack.c.bf16 %v5248_v32, %v5247_v31  ;;  %v5517_v31 = vld [vmem:[#allocation6 + $0x2620] sm:$0xff]  ;;  %v11731_v32 = vpack.c.bf16 %v5516_v30, %v5515_v25  ;;  %v5621_v25 = vld [vmem:[#allocation6 + $0x2838] sm:$0xff] }
0x1a97   : > { %11636 = vmatpush3.bf16.msra.mxu1 %v11635_v34  ;;  %v5272_v34 = vld [vmem:[#allocation6 + $0x24f8] sm:$0xff] }
0x1a98   : > { %11637 = vmatprep.subr.bf16.mxu1 %v12411_v5 }
0x1a99   : > { %v4959_v36 = vld [vmem:[#allocation2 + $0x7] sm:$0xff] }
0x1a9a   : > { %v5135_v41 = vld [vmem:[#allocation2 + $0x9] sm:$0xff]  ;;  %9878 = vmatmul.mubr.f32.vlgmr.msra.gmra.mrb[36].mxu0 %v4959_v36  ;;  %5234 = vst [vmem:[#allocation2 + $0x5] sm:$0x7] %v12410_v0 }
0x1a9b   : > { %5235 = vst [vmem:[#allocation2 + $0x10] sm:$0x7] %v12410_v0  ;;  %11639 = vmatpush3.bf16.msra.mxu1 %v11638_v27  ;;  %9947 = vmatprep.mubr.msk.f32.mxu0 %vm12412_vm0, %v12410_v0  ;;  %v11677_v27 = vpack.c.bf16 %v5272_v34, %v5271_v37  ;;  %v5252_v36 = vld [vmem:[#allocation6 + $0x2468] sm:$0xff]  ;;  %v5519_v37 = vld [vmem:[#allocation6 + $0x2630] sm:$0xff]  ;;  %v5520_v34 = vld [vmem:[#allocation6 + $0x2638] sm:$0xff] }
0x1a9c   : > { %11640 = vmatprep.subr.bf16.mxu1 %v12411_v5  ;;  %11657 = vmatpush3.bf16.msra.mxu0 %v11656_v59  ;;  %v11737_v38 = vpack.c.bf16 %v5520_v34, %v5519_v37  ;;  %v5645_v37 = vld [vmem:[#allocation6 + $0x28e8] sm:$0xff]  ;;  %v5622_v34 = vld [vmem:[#allocation6 + $0x2840] sm:$0xff] }
0x1a9d   : > { %11658 = vmatprep.subr.bf16.mxu0 %v12411_v5 }
0x1a9f   : > { %11642 = vmatpush3.bf16.msra.mxu1 %v11641_v42  ;;  %v5253_v42 = vld [vmem:[#allocation6 + $0x2470] sm:$0xff] }
0x1aa0   : > { %11643 = vmatprep.subr.bf16.mxu1 %v12411_v5  ;;  %11660 = vmatpush3.bf16.msra.mxu0 %v11659_v44  ;;  %v11701_v45 = vpack.c.bf16 %v5254_v43, %v5253_v42  ;;  %v5419_v44 = vld [vmem:[#allocation6 + $0x2520] sm:$0xff]  ;;  %v5526_v43 = vld [vmem:[#allocation6 + $0x2668] sm:$0xff] }
0x1aa1   : > { %11661 = vmatprep.subr.bf16.mxu0 %v12411_v5  ;;  %v5525_v42 = vld [vmem:[#allocation6 + $0x2660] sm:$0xff] }
0x1aa3   : > { %11645 = vmatpush3.bf16.msra.mxu1 %v11644_v2 }
0x1aa4   : > { %11646 = vmatprep.subr.bf16.mxu1 %v12411_v5  ;;  %11663 = vmatpush3.bf16.msra.mxu0 %v11662_v6 }
0x1aa5   : > { %11664 = vmatprep.subr.bf16.mxu0 %v12411_v5 }
0x1aa7   : > { %11648 = vmatpush3.bf16.msra.mxu1 %v11647_v49 }
0x1aa8   : > { %11649 = vmatprep.subr.bf16.mxu1 %v12411_v5  ;;  %11666 = vmatpush3.bf16.msra.mxu0 %v11665_v10  ;;  %v5426_v10 = vld [vmem:[#allocation6 + $0x2558] sm:$0xff] }
0x1aa9   : > { %11667 = vmatprep.subr.bf16.mxu0 %v12411_v5 }
0x1aab   : > { %11651 = vmatpush3.bf16.msra.mxu1 %v11650_v54  ;;  %v7213_v54 = vld [vmem:[#allocation8 + $0x11] ss:$0 sm:$0xff] }
0x1aac   : > { %11652 = vmatprep.subr.bf16.mxu1 %v12411_v5  ;;  %11669 = vmatpush3.bf16.msra.mxu0 %v11668_v18  ;;  %v5430_v18 = vld [vmem:[#allocation6 + $0x2578] sm:$0xff] }
0x1aad   : > { %11670 = vmatprep.subr.bf16.mxu0 %v12411_v5 }
0x1aaf   : > { %11654 = vmatpush3.bf16.msra.mxu1 %v11653_v56  ;;  %v5415_v56 = vld [vmem:[#allocation6 + $0x2500] sm:$0xff] }
0x1ab0   : > { %11679 = vmatprep.subr.bf16.mxu1 %v12411_v5  ;;  %11672 = vmatpush3.bf16.msra.mxu0 %v11671_v24  ;;  %v11704_v59 = vpack.c.bf16 %v5416_v57, %v5415_v56  ;;  %v11728_v24 = vpack.c.bf16 %v5514_v23, %v5513_v21  ;;  %v5636_v56 = vld [vmem:[#allocation6 + $0x28a0] sm:$0xff]  ;;  %v5637_v57 = vld [vmem:[#allocation6 + $0x28a8] sm:$0xff] }
0x1ab1   : > { %11673 = vmatprep.subr.bf16.mxu0 %v12411_v5  ;;  %v5619_v21 = vld [vmem:[#allocation6 + $0x2828] sm:$0xff] }
0x1ab2   : > { %9913 = vmatmul.mubr.f32.vlgmr.msra.gmra.mrb[48].mxu1 %v5135_v41  ;;  %v11698_v41 = vpack.c.bf16 %v5252_v36, %v5251_v40  ;;  %v5523_v40 = vld [vmem:[#allocation6 + $0x2650] sm:$0xff]  ;;  %v5524_v36 = vld [vmem:[#allocation6 + $0x2658] sm:$0xff] }
0x1ab3   : > { %9982 = vmatprep.mubr.msk.f32.mxu1 %vm12412_vm0, %v12410_v0  ;;  %11681 = vmatpush3.bf16.msra.mxu1 %v11680_v15  ;;  %v11710_v15 = vpack.c.bf16 %v5420_v14, %v5419_v44  ;;  %v5641_v44 = vld [vmem:[#allocation6 + $0x28c8] sm:$0xff] }
0x1ab4   : > { %11682 = vmatprep.subr.bf16.mxu1 %v12411_v5  ;;  %11675 = vmatpush3.bf16.msra.mxu0 %v11674_v33  ;;  %v5518_v33 = vld [vmem:[#allocation6 + $0x2628] sm:$0xff] }
0x1ab5   : > { %11676 = vmatprep.subr.bf16.mxu0 %v12411_v5 }
0x1ab7   : > { %11684 = vmatpush3.bf16.msra.mxu1 %v11683_v7  ;;  %v11713_v7 = vpack.c.bf16 %v5422_v1, %v5421_v63 }
0x1ab8   : > { %11685 = vmatprep.subr.bf16.mxu1 %v12411_v5  ;;  %11678 = vmatpush3.bf16.msra.mxu0 %v11677_v27  ;;  %v5522_v27 = vld [vmem:[#allocation6 + $0x2648] sm:$0xff] }
0x1ab9   : > { %11703 = vmatprep.subr.bf16.mxu0 %v12411_v5 }
0x1abb   : > { %11687 = vmatpush3.bf16.msra.mxu1 %v11686_v11  ;;  %v11719_v11 = vpack.c.bf16 %v5426_v10, %v5425_v60  ;;  %v5614_v60 = vld [vmem:[#allocation6 + $0x2800] sm:$0xff]  ;;  %v5615_v10 = vld [vmem:[#allocation6 + $0x2808] sm:$0xff] }
0x1abc   : > { %11688 = vmatprep.subr.bf16.mxu1 %v12411_v5  ;;  %v11776_v3 = vpack.c.bf16 %v5615_v10, %v5614_v60  ;;  %v5801_v60 = vld [vmem:[#allocation6 + $0x2958] sm:$0xff] }
0x1abf   : > { %11690 = vmatpush3.bf16.msra.mxu1 %v11689_v19  ;;  %v11725_v19 = vpack.c.bf16 %v5430_v18, %v5429_v17  ;;  %v5617_v17 = vld [vmem:[#allocation6 + $0x2818] sm:$0xff] }
0x1ac0   : > { %11691 = vmatprep.subr.bf16.mxu1 %v12411_v5 }
0x1ac3   : > { %11693 = vmatpush3.bf16.msra.mxu1 %v11692_v35  ;;  %v11734_v35 = vpack.c.bf16 %v5518_v33, %v5517_v31  ;;  %v5642_v31 = vld [vmem:[#allocation6 + $0x28d0] sm:$0xff] }
0x1ac4   : > { %11694 = vmatprep.subr.bf16.mxu1 %v12411_v5 }
0x1ac7   : > { %11696 = vmatpush3.bf16.msra.mxu1 %v11695_v28  ;;  %v11740_v28 = vpack.c.bf16 %v5522_v27, %v5521_v39 }
0x1ac8   : > { %11697 = vmatprep.subr.bf16.mxu1 %v12411_v5 }
0x1acb   : > { %11699 = vmatpush3.bf16.msra.mxu1 %v11698_v41  ;;  %v11743_v41 = vpack.c.bf16 %v5524_v36, %v5523_v40  ;;  %v5647_v40 = vld [vmem:[#allocation6 + $0x28f8] sm:$0xff]  ;;  %v5624_v36 = vld [vmem:[#allocation6 + $0x2850] sm:$0xff] }
0x1acc   : > { %11700 = vmatprep.subr.bf16.mxu1 %v12411_v5 }
0x1acf   : > { %11702 = vmatpush3.bf16.msra.mxu1 %v11701_v45  ;;  %v11746_v45 = vpack.c.bf16 %v5526_v43, %v5525_v42 }
0x1ad0   : > { %11727 = vmatprep.subr.bf16.mxu1 %v12411_v5 }
0x1b65   : > { %v5061_v2 = vpop.f32.mrb[46].mxu1 }
0x1b66   : > { %v9844_v47 = vpop.f32.mrb[47].mxu1 }
0x1b67   : > { %v5528_v47 = vld [vmem:[#allocation6 + $0x2678] sm:$0xff] }
0x1b6d   : > { %v5131_v48 = vpop.f32.mrb[36].mxu0 }
0x1b6e   : > { %v5132_v49 = vadd.f32 %v5131_v48, %v5061_v2  ;;  %v9879_v50 = vpop.f32.mrb[37].mxu0  ;;  %v5527_v2 = vld [vmem:[#allocation6 + $0x2670] sm:$0xff] }
0x1b6f   : > { %v11749_v48 = vpack.c.bf16 %v5528_v47, %v5527_v2  ;;  %v5633_v50 = vld [vmem:[#allocation6 + $0x2888] sm:$0xff] }
0x1b70   : > { %v5627_v2 = vld [vmem:[#allocation6 + $0x2868] sm:$0xff] }
0x1b85   : > { %v5219_v53 = vpop.f32.mrb[48].mxu1 }
0x1b86   : > { %v5223_v20 = vadd.f32 %v5219_v53, %v5132_v49  ;;  %v9914_v55 = vpop.f32.mrb[49].mxu1  ;;  %v5632_v49 = vld [vmem:[#allocation6 + $0x2880] sm:$0xff] }
0x1b87   : > { %v11752_v53 = vpack.c.bf16 %v5633_v50, %v5632_v49  ;;  %v5629_v49 = vld [vmem:[#allocation6 + $0x2878] sm:$0xff] }
0x1b88   : > { %v13211_v58 = vadd.f32 %v7213_v54, %v5223_v20  ;;  %v5634_v54 = vld [vmem:[#allocation6 + $0x2890] sm:$0xff]  ;;  %v5635_v20 = vld [vmem:[#allocation6 + $0x2898] sm:$0xff] }
0x1b89   : > { %v11755_v55 = vpack.c.bf16 %v5635_v20, %v5634_v54 }
0x1b8a   : > { %v5233_v61 = vmax.f32 %v13211_v58, 0.0 }
0x1b8c   : > { %5236 = vst [vmem:[#allocation2 + $0x8] sm:$0xff] %v5233_v61  ;;  %9948 = vmatmul.mubr.f32.vlgmr.msra.gmra.mrb[38].mxu0 %v5233_v61  ;;  %v5638_v61 = vld [vmem:[#allocation6 + $0x28b0] sm:$0xff] }
0x1b8d   : > { %11705 = vmatpush3.bf16.msra.mxu0 %v11704_v59  ;;  %10017 = vmatprep.mubr.msk.f32.mxu0 %vm12412_vm0, %v12410_v0  ;;  %v11758_v59 = vpack.c.bf16 %v5637_v57, %v5636_v56  ;;  %v11761_v46 = vpack.c.bf16 %v5639_v62, %v5638_v61  ;;  %v5790_v56 = vld [vmem:[#allocation6 + $0x2900] sm:$0xff]  ;;  %v5791_v57 = vld [vmem:[#allocation6 + $0x2908] sm:$0xff] }
0x1b8e   : > { %11706 = vmatprep.subr.bf16.mxu0 %v12411_v5  ;;  %v11800_v61 = vpack.c.bf16 %v5791_v57, %v5790_v56  ;;  %v7216_v56 = vld [vmem:[#allocation8 + $0x14] ss:$0 sm:$0xff] }
0x1b91   : > { %11708 = vmatpush3.bf16.msra.mxu0 %v11707_v26  ;;  %v5640_v26 = vld [vmem:[#allocation6 + $0x28c0] sm:$0xff] }
0x1b92   : > { %11709 = vmatprep.subr.bf16.mxu0 %v12411_v5  ;;  %v11764_v14 = vpack.c.bf16 %v5641_v44, %v5640_v26  ;;  %v5793_v26 = vld [vmem:[#allocation6 + $0x2918] sm:$0xff] }
0x1b93   : > { %v5237_v4 = vld [vmem:[#allocation2 + $0x5] sm:$0xff] }
0x1b94   : > { %v5413_v6 = vld [vmem:[#allocation2 + $0xb] sm:$0xff]  ;;  %9983 = vmatmul.mubr.f32.vlgmr.msra.gmra.mrb[50].mxu1 %v5237_v4  ;;  %5609 = vst [vmem:[#allocation2 + $0x7] sm:$0x1] %v12410_v0 }
0x1b95   : > { %5610 = vst [vmem:[#allocation2 + $0x10] sm:$0x1] %v12410_v0  ;;  %11711 = vmatpush3.bf16.msra.mxu0 %v11710_v15  ;;  %10052 = vmatprep.mubr.msk.f32.mxu1 %vm12412_vm0, %v12410_v0 }
0x1b96   : > { %11712 = vmatprep.subr.bf16.mxu0 %v12411_v5  ;;  %11729 = vmatpush3.bf16.msra.mxu1 %v11728_v24  ;;  %v5620_v24 = vld [vmem:[#allocation6 + $0x2830] sm:$0xff] }
0x1b97   : > { %11730 = vmatprep.subr.bf16.mxu1 %v12411_v5  ;;  %v11785_v30 = vpack.c.bf16 %v5621_v25, %v5620_v24  ;;  %v5890_v25 = vld [vmem:[#allocation6 + $0x2a10] sm:$0xff] }
0x1b99   : > { %11714 = vmatpush3.bf16.msra.mxu0 %v11713_v7 }
0x1b9a   : > { %11715 = vmatprep.subr.bf16.mxu0 %v12411_v5  ;;  %11732 = vmatpush3.bf16.msra.mxu1 %v11731_v32  ;;  %v5643_v32 = vld [vmem:[#allocation6 + $0x28d8] sm:$0xff] }
0x1b9b   : > { %11733 = vmatprep.subr.bf16.mxu1 %v12411_v5  ;;  %v11767_v33 = vpack.c.bf16 %v5643_v32, %v5642_v31  ;;  %v5892_v31 = vld [vmem:[#allocation6 + $0x2a20] sm:$0xff] }
0x1b9d   : > { %11717 = vmatpush3.bf16.msra.mxu0 %v11716_v9 }
0x1b9e   : > { %11718 = vmatprep.subr.bf16.mxu0 %v12411_v5  ;;  %11735 = vmatpush3.bf16.msra.mxu1 %v11734_v35  ;;  %v5644_v35 = vld [vmem:[#allocation6 + $0x28e0] sm:$0xff] }
0x1b9f   : > { %11736 = vmatprep.subr.bf16.mxu1 %v12411_v5  ;;  %v11770_v39 = vpack.c.bf16 %v5645_v37, %v5644_v35  ;;  %v5894_v37 = vld [vmem:[#allocation6 + $0x2a30] sm:$0xff] }
0x1ba1   : > { %11720 = vmatpush3.bf16.msra.mxu0 %v11719_v11 }
0x1ba2   : > { %11721 = vmatprep.subr.bf16.mxu0 %v12411_v5  ;;  %11738 = vmatpush3.bf16.msra.mxu1 %v11737_v38  ;;  %v5623_v38 = vld [vmem:[#allocation6 + $0x2848] sm:$0xff] }
0x1ba3   : > { %11739 = vmatprep.subr.bf16.mxu1 %v12411_v5  ;;  %v11788_v27 = vpack.c.bf16 %v5623_v38, %v5622_v34  ;;  %v5895_v34 = vld [vmem:[#allocation6 + $0x2a38] sm:$0xff] }
0x1ba4   : > { %v11833_v38 = vpack.c.bf16 %v5895_v34, %v5894_v37  ;;  %v6397_v34 = vld [vmem:[#allocation6 + $0x2e98] sm:$0xff] }
0x1ba5   : > { %11723 = vmatpush3.bf16.msra.mxu0 %v11722_v13  ;;  %v5616_v13 = vld [vmem:[#allocation6 + $0x2810] sm:$0xff] }
0x1ba6   : > { %11724 = vmatprep.subr.bf16.mxu0 %v12411_v5  ;;  %11741 = vmatpush3.bf16.msra.mxu1 %v11740_v28  ;;  %v11779_v18 = vpack.c.bf16 %v5617_v17, %v5616_v13  ;;  %v5646_v28 = vld [vmem:[#allocation6 + $0x28f0] sm:$0xff]  ;;  %v5805_v17 = vld [vmem:[#allocation6 + $0x2978] sm:$0xff] }
0x1ba7   : > { %11742 = vmatprep.subr.bf16.mxu1 %v12411_v5  ;;  %v11773_v42 = vpack.c.bf16 %v5647_v40, %v5646_v28  ;;  %v5804_v13 = vld [vmem:[#allocation6 + $0x2970] sm:$0xff] }
0x1ba8   : > { %v5898_v40 = vld [vmem:[#allocation6 + $0x2a50] sm:$0xff] }
0x1ba9   : > { %11726 = vmatpush3.bf16.msra.mxu0 %v11725_v19  ;;  %v5618_v19 = vld [vmem:[#allocation6 + $0x2820] sm:$0xff] }
0x1baa   : > { %11751 = vmatprep.subr.bf16.mxu0 %v12411_v5  ;;  %11744 = vmatpush3.bf16.msra.mxu1 %v11743_v41  ;;  %v11782_v23 = vpack.c.bf16 %v5619_v21, %v5618_v19  ;;  %v5625_v41 = vld [vmem:[#allocation6 + $0x2858] sm:$0xff]  ;;  %v5888_v21 = vld [vmem:[#allocation6 + $0x2a00] sm:$0xff] }
0x1bab   : > { %11745 = vmatprep.subr.bf16.mxu1 %v12411_v5  ;;  %v11791_v43 = vpack.c.bf16 %v5625_v41, %v5624_v36  ;;  %v5899_v36 = vld [vmem:[#allocation6 + $0x2a58] sm:$0xff] }
0x1bac   : > { %10018 = vmatmul.mubr.f32.vlgmr.msra.gmra.mrb[40].mxu0 %v5413_v6  ;;  %v11839_v41 = vpack.c.bf16 %v5899_v36, %v5898_v40  ;;  %v6400_v40 = vld [vmem:[#allocation6 + $0x2eb0] sm:$0xff]  ;;  %v6401_v36 = vld [vmem:[#allocation6 + $0x2eb8] sm:$0xff] }
0x1bad   : > { %10087 = vmatprep.mubr.msk.f32.mxu0 %vm12412_vm0, %v12410_v0  ;;  %11753 = vmatpush3.bf16.msra.mxu0 %v11752_v53  ;;  %v7215_v53 = vld [vmem:[#allocation8 + $0x13] ss:$0 sm:$0xff] }
0x1bae   : > { %11747 = vmatpush3.bf16.msra.mxu1 %v11746_v45  ;;  %11754 = vmatprep.subr.bf16.mxu0 %v12411_v5  ;;  %v5626_v45 = vld [vmem:[#allocation6 + $0x2860] sm:$0xff] }
0x1baf   : > { %11748 = vmatprep.subr.bf16.mxu1 %v12411_v5  ;;  %v11794_v47 = vpack.c.bf16 %v5627_v2, %v5626_v45  ;;  %v5902_v2 = vld [vmem:[#allocation6 + $0x2a70] sm:$0xff] }
0x1bb1   : > { %11756 = vmatpush3.bf16.msra.mxu0 %v11755_v55 }
0x1bb2   : > { %11750 = vmatpush3.bf16.msra.mxu1 %v11749_v48  ;;  %11757 = vmatprep.subr.bf16.mxu0 %v12411_v5  ;;  %v5628_v48 = vld [vmem:[#allocation6 + $0x2870] sm:$0xff] }
0x1bb3   : > { %11775 = vmatprep.subr.bf16.mxu1 %v12411_v5  ;;  %v11797_v50 = vpack.c.bf16 %v5629_v49, %v5628_v48 }
0x1bb5   : > { %11759 = vmatpush3.bf16.msra.mxu0 %v11758_v59 }
0x1bb6   : > { %11760 = vmatprep.subr.bf16.mxu0 %v12411_v5 }
0x1bb9   : > { %11762 = vmatpush3.bf16.msra.mxu0 %v11761_v46  ;;  %v5792_v46 = vld [vmem:[#allocation6 + $0x2910] sm:$0xff] }
0x1bba   : > { %11763 = vmatprep.subr.bf16.mxu0 %v12411_v5  ;;  %v11803_v44 = vpack.c.bf16 %v5793_v26, %v5792_v46  ;;  %v7217_v26 = vld [vmem:[#allocation8 + $0x15] ss:$0 sm:$0xff] }
0x1bbd   : > { %11765 = vmatpush3.bf16.msra.mxu0 %v11764_v14  ;;  %v5794_v14 = vld [vmem:[#allocation6 + $0x2920] sm:$0xff] }
0x1bbe   : > { %11766 = vmatprep.subr.bf16.mxu0 %v12411_v5 }
0x1bc1   : > { %11768 = vmatpush3.bf16.msra.mxu0 %v11767_v33  ;;  %v5893_v33 = vld [vmem:[#allocation6 + $0x2a28] sm:$0xff] }
0x1bc2   : > { %11769 = vmatprep.subr.bf16.mxu0 %v12411_v5  ;;  %v11830_v35 = vpack.c.bf16 %v5893_v33, %v5892_v31  ;;  %v6395_v33 = vld [vmem:[#allocation6 + $0x2e88] sm:$0xff] }
0x1bc5   : > { %11771 = vmatpush3.bf16.msra.mxu0 %v11770_v39  ;;  %v5896_v39 = vld [vmem:[#allocation6 + $0x2a40] sm:$0xff] }
0x1bc6   : > { %11772 = vmatprep.subr.bf16.mxu0 %v12411_v5 }
0x1bc9   : > { %11774 = vmatpush3.bf16.msra.mxu0 %v11773_v42  ;;  %v5900_v42 = vld [vmem:[#allocation6 + $0x2a60] sm:$0xff] }
0x1bca   : > { %11799 = vmatprep.subr.bf16.mxu0 %v12411_v5 }
0x1c5f   : > { %v5339_v15 = vpop.f32.mrb[38].mxu0 }
0x1c60   : > { %v9949_v63 = vpop.f32.mrb[39].mxu0 }
0x1c67   : > { %v5409_v1 = vpop.f32.mrb[50].mxu1 }
0x1c68   : > { %v5410_v4 = vadd.f32 %v5409_v1, %v5339_v15  ;;  %v9984_v6 = vpop.f32.mrb[51].mxu1  ;;  %v5795_v15 = vld [vmem:[#allocation6 + $0x2928] sm:$0xff]  ;;  %v5797_v1 = vld [vmem:[#allocation6 + $0x2938] sm:$0xff] }
0x1c69   : > { %v11806_v63 = vpack.c.bf16 %v5795_v15, %v5794_v14  ;;  %v6096_v14 = vld [vmem:[#allocation6 + $0x2c80] sm:$0xff]  ;;  %v6097_v15 = vld [vmem:[#allocation6 + $0x2c88] sm:$0xff] }
0x1c7f   : > { %v5497_v7 = vpop.f32.mrb[40].mxu0 }
0x1c80   : > { %v5501_v8 = vadd.f32 %v5497_v7, %v5410_v4  ;;  %v10019_v9 = vpop.f32.mrb[41].mxu0  ;;  %v5798_v7 = vld [vmem:[#allocation6 + $0x2940] sm:$0xff] }
0x1c81   : > { %v5800_v9 = vld [vmem:[#allocation6 + $0x2950] sm:$0xff] }
0x1c82   : > { %v5510_v11 = vadd.f32 %v7214_v29, %v5501_v8  ;;  %v5799_v29 = vld [vmem:[#allocation6 + $0x2948] sm:$0xff]  ;;  %v11815_v10 = vpack.c.bf16 %v5801_v60, %v5800_v9  ;;  %v6103_v9 = vld [vmem:[#allocation6 + $0x2cb8] sm:$0xff] }
0x1c83   : > { %v11812_v8 = vpack.c.bf16 %v5799_v29, %v5798_v7  ;;  %v11847_v7 = vpack.c.bf16 %v6097_v15, %v6096_v14  ;;  %v6100_v29 = vld [vmem:[#allocation6 + $0x2ca0] sm:$0xff]  ;;  %v6088_v14 = vld [vmem:[#allocation6 + $0x2c58] sm:$0xff] }
0x1c84   : > { %v5511_v12 = vmax.f32 %v5510_v11, 0.0  ;;  %v5802_v11 = vld [vmem:[#allocation6 + $0x2960] sm:$0xff] }
0x1c86   : > { %10053 = vmatmul.mubr.f32.vlgmr.msra.gmra.mrb[52].mxu1 %v5511_v12 }
0x1c87   : > { %11777 = vmatpush3.bf16.msra.mxu1 %v11776_v3  ;;  %10122 = vmatprep.mubr.msk.f32.mxu1 %vm12412_vm0, %v12410_v0  ;;  %v5803_v3 = vld [vmem:[#allocation6 + $0x2968] sm:$0xff] }
0x1c88   : > { %11778 = vmatprep.subr.bf16.mxu1 %v12411_v5  ;;  %v11818_v12 = vpack.c.bf16 %v5803_v3, %v5802_v11  ;;  %v6106_v3 = vld [vmem:[#allocation6 + $0x2cd0] sm:$0xff] }
0x1c8b   : > { %11780 = vmatpush3.bf16.msra.mxu1 %v11779_v18  ;;  %v11821_v18 = vpack.c.bf16 %v5805_v17, %v5804_v13  ;;  %v6108_v17 = vld [vmem:[#allocation6 + $0x2ce0] sm:$0xff] }
0x1c8c   : > { %11781 = vmatprep.subr.bf16.mxu1 %v12411_v5 }
0x1c8f   : > { %11783 = vmatpush3.bf16.msra.mxu1 %v11782_v23  ;;  %v5889_v23 = vld [vmem:[#allocation6 + $0x2a08] sm:$0xff] }
0x1c90   : > { %11784 = vmatprep.subr.bf16.mxu1 %v12411_v5  ;;  %v11824_v24 = vpack.c.bf16 %v5889_v23, %v5888_v21  ;;  %v6110_v21 = vld [vmem:[#allocation6 + $0x2cf0] sm:$0xff]  ;;  %v6111_v23 = vld [vmem:[#allocation6 + $0x2cf8] sm:$0xff] }
0x1c93   : > { %11786 = vmatpush3.bf16.msra.mxu1 %v11785_v30  ;;  %v5891_v30 = vld [vmem:[#allocation6 + $0x2a18] sm:$0xff] }
0x1c94   : > { %11787 = vmatprep.subr.bf16.mxu1 %v12411_v5  ;;  %v11827_v32 = vpack.c.bf16 %v5891_v30, %v5890_v25  ;;  %v6077_v25 = vld [vmem:[#allocation6 + $0x2c00] sm:$0xff]  ;;  %v6078_v30 = vld [vmem:[#allocation6 + $0x2c08] sm:$0xff] }
0x1c95   : > { %v11879_v31 = vpack.c.bf16 %v6078_v30, %v6077_v25  ;;  %v6277_v25 = vld [vmem:[#allocation6 + $0x2d60] sm:$0xff]  ;;  %v6278_v30 = vld [vmem:[#allocation6 + $0x2d68] sm:$0xff] }
0x1c97   : > { %11789 = vmatpush3.bf16.msra.mxu1 %v11788_v27  ;;  %v5897_v27 = vld [vmem:[#allocation6 + $0x2a48] sm:$0xff] }
0x1c98   : > { %11790 = vmatprep.subr.bf16.mxu1 %v12411_v5  ;;  %v11836_v28 = vpack.c.bf16 %v5897_v27, %v5896_v39  ;;  %v6398_v39 = vld [vmem:[#allocation6 + $0x2ea0] sm:$0xff]  ;;  %v6399_v27 = vld [vmem:[#allocation6 + $0x2ea8] sm:$0xff] }
0x1c9b   : > { %11792 = vmatpush3.bf16.msra.mxu1 %v11791_v43  ;;  %v5901_v43 = vld [vmem:[#allocation6 + $0x2a68] sm:$0xff] }
0x1c9c   : > { %11793 = vmatprep.subr.bf16.mxu1 %v12411_v5  ;;  %v11842_v45 = vpack.c.bf16 %v5901_v43, %v5900_v42  ;;  %v6402_v42 = vld [vmem:[#allocation6 + $0x2ec0] sm:$0xff]  ;;  %v6403_v43 = vld [vmem:[#allocation6 + $0x2ec8] sm:$0xff] }
0x1c9f   : > { %11795 = vmatpush3.bf16.msra.mxu1 %v11794_v47  ;;  %v5903_v47 = vld [vmem:[#allocation6 + $0x2a78] sm:$0xff] }
0x1ca0   : > { %11796 = vmatprep.subr.bf16.mxu1 %v12411_v5  ;;  %v11845_v48 = vpack.c.bf16 %v5903_v47, %v5902_v2  ;;  %v6079_v2 = vld [vmem:[#allocation6 + $0x2c10] sm:$0xff]  ;;  %v6080_v47 = vld [vmem:[#allocation6 + $0x2c18] sm:$0xff] }
0x1ca3   : > { %11798 = vmatpush3.bf16.msra.mxu1 %v11797_v50 }
0x1ca4   : > { %11823 = vmatprep.subr.bf16.mxu1 %v12411_v5 }
0x1d59   : > { %v5603_v54 = vpop.f32.mrb[52].mxu1 }
0x1d5a   : > { %v5604_v20 = vadd.f32 %v7215_v53, %v5603_v54  ;;  %v10054_v55 = vpop.f32.mrb[53].mxu1 }
0x1d5c   : > { %v13257_v59 = vadd.f32 %v5604_v20, %v13211_v58  ;;  %v5796_v58 = vld [vmem:[#allocation6 + $0x2930] sm:$0xff] }
0x1d5d   : > { %v11809_v6 = vpack.c.bf16 %v5797_v1, %v5796_v58  ;;  %v6098_v1 = vld [vmem:[#allocation6 + $0x2c90] sm:$0xff] }
0x1d5e   : > { %v5608_v62 = vmax.f32 %v13257_v59, 0.0 }
0x1d60   : > { %5611 = vst [vmem:[#allocation2 + $0x8] sm:$0xff] %v5608_v62  ;;  %10088 = vmatmul.mubr.f32.vlgmr.msra.gmra.mrb[42].mxu0 %v5608_v62 }
0x1d61   : > { %11801 = vmatpush3.bf16.msra.mxu0 %v11800_v61  ;;  %10157 = vmatprep.mubr.msk.f32.mxu0 %vm12412_vm0, %v12410_v0 }
0x1d62   : > { %11802 = vmatprep.subr.bf16.mxu0 %v12411_v5 }
0x1d65   : > { %11804 = vmatpush3.bf16.msra.mxu0 %v11803_v44 }
0x1d66   : > { %11805 = vmatprep.subr.bf16.mxu0 %v12411_v5 }
0x1d67   : > { %v5612_v4 = vld [vmem:[#allocation2 + $0x7] sm:$0xff] }
0x1d68   : > { %10123 = vmatmul.mubr.f32.vlgmr.msra.gmra.mrb[54].mxu1 %v5612_v4  ;;  %6070 = vst [vmem:[#allocation2 + $0x7] sm:$0x1] %v12410_v0  ;;  %v5788_v19 = vld [vmem:[#allocation2 + $0x9] sm:$0xff]  ;;  %v6099_v4 = vld [vmem:[#allocation6 + $0x2c98] sm:$0xff] }
0x1d69   : > { %11807 = vmatpush3.bf16.msra.mxu0 %v11806_v63  ;;  %10192 = vmatprep.mubr.msk.f32.mxu1 %vm12412_vm0, %v12410_v0  ;;  %vm5989_vm0 = vcmask 64512  }
0x1d6a   : > { %11808 = vmatprep.subr.bf16.mxu0 %v12411_v5  ;;  %11825 = vmatpush3.bf16.msra.mxu1 %v11824_v24  ;;  %v11875_v24 = vpack.c.bf16 %v6111_v23, %v6110_v21  ;;  %v6275_v21 = vld [vmem:[#allocation6 + $0x2d50] sm:$0xff]  ;;  %v6276_v23 = vld [vmem:[#allocation6 + $0x2d58] sm:$0xff] }
0x1d6b   : > { %11826 = vmatprep.subr.bf16.mxu1 %v12411_v5 }
0x1d6d   : > { %11810 = vmatpush3.bf16.msra.mxu0 %v11809_v6 }
0x1d6e   : > { %11811 = vmatprep.subr.bf16.mxu0 %v12411_v5  ;;  %11828 = vmatpush3.bf16.msra.mxu1 %v11827_v32  ;;  %v6394_v32 = vld [vmem:[#allocation6 + $0x2e80] sm:$0xff] }
0x1d6f   : > { %11829 = vmatprep.subr.bf16.mxu1 %v12411_v5  ;;  %v11943_v37 = vpack.c.bf16 %v6395_v33, %v6394_v32  ;;  %v6279_v32 = vld [vmem:[#allocation6 + $0x2d70] sm:$0xff]  ;;  %v6280_v33 = vld [vmem:[#allocation6 + $0x2d78] sm:$0xff] }
0x1d71   : > { %11813 = vmatpush3.bf16.msra.mxu0 %v11812_v8  ;;  %v6102_v8 = vld [vmem:[#allocation6 + $0x2cb0] sm:$0xff] }
0x1d72   : > { %11814 = vmatprep.subr.bf16.mxu0 %v12411_v5  ;;  %11831 = vmatpush3.bf16.msra.mxu1 %v11830_v35  ;;  %v11859_v60 = vpack.c.bf16 %v6103_v9, %v6102_v8  ;;  %v6396_v35 = vld [vmem:[#allocation6 + $0x2e90] sm:$0xff] }
0x1d73   : > { %11832 = vmatprep.subr.bf16.mxu1 %v12411_v5 }
0x1d75   : > { %11816 = vmatpush3.bf16.msra.mxu0 %v11815_v10  ;;  %v6105_v10 = vld [vmem:[#allocation6 + $0x2cc8] sm:$0xff] }
0x1d76   : > { %11817 = vmatprep.subr.bf16.mxu0 %v12411_v5  ;;  %11834 = vmatpush3.bf16.msra.mxu1 %v11833_v38  ;;  %v11947_v38 = vpack.c.bf16 %v6397_v34, %v6396_v35  ;;  %v11939_v35 = vpack.c.bf16 %v6280_v33, %v6279_v32  ;;  %v6405_v34 = vld [vmem:[#allocation6 + $0x2ed8] sm:$0xff]  ;;  %v6567_v33 = vld [vmem:[#allocation6 + $0x2f20] sm:$0xff] }
0x1d77   : > { %11835 = vmatprep.subr.bf16.mxu1 %v12411_v5 }
0x1d79   : > { %11819 = vmatpush3.bf16.msra.mxu0 %v11818_v12  ;;  %v6107_v12 = vld [vmem:[#allocation6 + $0x2cd8] sm:$0xff] }
0x1d7a   : > { %11820 = vmatprep.subr.bf16.mxu0 %v12411_v5  ;;  %11837 = vmatpush3.bf16.msra.mxu1 %v11836_v28  ;;  %v11867_v13 = vpack.c.bf16 %v6107_v12, %v6106_v3  ;;  %v11951_v28 = vpack.c.bf16 %v6399_v27, %v6398_v39  ;;  %v6271_v3 = vld [vmem:[#allocation6 + $0x2d30] sm:$0xff]  ;;  %v6272_v12 = vld [vmem:[#allocation6 + $0x2d38] sm:$0xff]  ;;  %v6406_v39 = vld [vmem:[#allocation6 + $0x2ee0] sm:$0xff] }
0x1d7b   : > { %11838 = vmatprep.subr.bf16.mxu1 %v12411_v5  ;;  %v6407_v27 = vld [vmem:[#allocation6 + $0x2ee8] sm:$0xff] }
0x1d7d   : > { %11822 = vmatpush3.bf16.msra.mxu0 %v11821_v18  ;;  %v6109_v18 = vld [vmem:[#allocation6 + $0x2ce8] sm:$0xff] }
0x1d7e   : > { %11840 = vmatpush3.bf16.msra.mxu1 %v11839_v41  ;;  %v11955_v41 = vpack.c.bf16 %v6401_v36, %v6400_v40  ;;  %v6408_v40 = vld [vmem:[#allocation6 + $0x2ef0] sm:$0xff]  ;;  %v6409_v36 = vld [vmem:[#allocation6 + $0x2ef8] sm:$0xff] }
0x1d7f   : > { %11841 = vmatprep.subr.bf16.mxu1 %v12411_v5 }
0x1d80   : > { %10158 = vmatmul.mubr.f32.vlgmr.msra.gmra.mrb[44].mxu0 %v5788_v19  ;;  %v11871_v19 = vpack.c.bf16 %v6109_v18, %v6108_v17  ;;  %v6273_v17 = vld [vmem:[#allocation6 + $0x2d40] sm:$0xff]  ;;  %v6274_v18 = vld [vmem:[#allocation6 + $0x2d48] sm:$0xff] }
0x1d81   : > { %10197 = vmatprep.mubr.msk.f32.mxu0 %vm5989_vm0, %v13162_v22 }
0x1d82   : > { %11843 = vmatpush3.bf16.msra.mxu1 %v11842_v45  ;;  %v11959_v45 = vpack.c.bf16 %v6403_v43, %v6402_v42  ;;  %v6375_v42 = vld [vmem:[#allocation6 + $0x2e00] sm:$0xff]  ;;  %v6376_v43 = vld [vmem:[#allocation6 + $0x2e08] sm:$0xff] }
0x1d83   : > { %11844 = vmatprep.subr.bf16.mxu1 %v12411_v5  ;;  %v5983_v5 = vadd.s32 8, %v12647_v16  ;;  %v11851_v16 = vpack.c.bf16 %v6099_v4, %v6098_v1  ;;  %v6091_v4 = vld [vmem:[#allocation6 + $0x2c70] sm:$0xff] }
0x1d85   : > { %vm5984_vm9 = vcmp.eq.s32.totalorder %v5983_v5, %v13151_v51  ;;  %vm5985_vm10 = vcmp.eq.s32.totalorder %v5983_v5, %v13154_v52  ;;  %v6101_v51 = vld [vmem:[#allocation6 + $0x2ca8] sm:$0xff] }
0x1d86   : > { %11846 = vmatpush3.bf16.msra.mxu1 %v11845_v48  ;;  %vm5986_vm11 = vmor %vm5984_vm9, %vm5985_vm10  ;;  %v11855_v52 = vpack.c.bf16 %v6101_v51, %v6100_v29  ;;  %v6086_v5 = vld [vmem:[#allocation6 + $0x2c48] sm:$0xff]  ;;  %v6267_v51 = vld [vmem:[#allocation6 + $0x2d10] sm:$0xff] }
0x1d87   : > { %v7218_v22 = vsel %vm5986_vm11, 1.0, %v12410_v0  ;;  %11944 = vmatprep.subr.bf16.mxu1 %v11943_v37 }
0x1e33   : > { %v5714_v49 = vpop.f32.mrb[42].mxu0 }
0x1e34   : > { %v10089_v50 = vpop.f32.mrb[43].mxu0 }
0x1e35   : > { %v11883_v50 = vpack.c.bf16 %v6080_v47, %v6079_v2  ;;  %v6694_v2 = vld [vmem:[#allocation6 + $0x3080] sm:$0xff]  ;;  %v6695_v47 = vld [vmem:[#allocation6 + $0x3088] sm:$0xff] }
0x1e3b   : > { %v5784_v53 = vpop.f32.mrb[54].mxu1 }
0x1e3c   : > { %v5785_v54 = vadd.f32 %v5784_v53, %v5714_v49  ;;  %v10124_v20 = vpop.f32.mrb[55].mxu1  ;;  %v6081_v53 = vld [vmem:[#allocation6 + $0x2c20] sm:$0xff] }
0x1e53   : > { %v5872_v55 = vpop.f32.mrb[44].mxu0 }
0x1e54   : > { %v5876_v57 = vadd.f32 %v5872_v55, %v5785_v54  ;;  %v10159_v61 = vpop.f32.mrb[45].mxu0  ;;  %v6082_v54 = vld [vmem:[#allocation6 + $0x2c28] sm:$0xff]  ;;  %v6083_v55 = vld [vmem:[#allocation6 + $0x2c30] sm:$0xff] }
0x1e55   : > { %v11887_v20 = vpack.c.bf16 %v6082_v54, %v6081_v53  ;;  %v6698_v54 = vld [vmem:[#allocation6 + $0x30a0] sm:$0xff] }
0x1e56   : > { %v5885_v62 = vadd.f32 %v7216_v56, %v5876_v57  ;;  %v6084_v56 = vld [vmem:[#allocation6 + $0x2c38] sm:$0xff] }
0x1e58   : > { %v5886_v46 = vmax.f32 %v5885_v62, 0.0  ;;  %v11891_v62 = vpack.c.bf16 %v6084_v56, %v6083_v55  ;;  %v6700_v56 = vld [vmem:[#allocation6 + $0x30b0] sm:$0xff] }
0x1e5a   : > { %10193 = vmatmul.mubr.f32.vlgmr.msra.gmra.mrb[56].mxu1 %v5886_v46  ;;  %v6085_v46 = vld [vmem:[#allocation6 + $0x2c40] sm:$0xff] }
0x1e5b   : > { %11946 = vmatpush3.bf16.msra.mxu1 %v11943_v37  ;;  %v6404_v37 = vld [vmem:[#allocation6 + $0x2ed0] sm:$0xff] }
0x1e5c   : > { %11948 = vmatprep.subr.bf16.mxu1 %v11947_v38 }
0x1e5f   : > { %11950 = vmatpush3.bf16.msra.mxu1 %v11947_v38  ;;  %v11963_v38 = vpack.c.bf16 %v6405_v34, %v6404_v37 }
0x1e60   : > { %11952 = vmatprep.subr.bf16.mxu1 %v11951_v28 }
0x1e63   : > { %11954 = vmatpush3.bf16.msra.mxu1 %v11951_v28  ;;  %v11967_v28 = vpack.c.bf16 %v6407_v27, %v6406_v39  ;;  %v6570_v39 = vld [vmem:[#allocation6 + $0x2f38] sm:$0xff] }
0x1e64   : > { %11956 = vmatprep.subr.bf16.mxu1 %v11955_v41 }
0x1e67   : > { %11958 = vmatpush3.bf16.msra.mxu1 %v11955_v41  ;;  %v11971_v41 = vpack.c.bf16 %v6409_v36, %v6408_v40  ;;  %v6572_v40 = vld [vmem:[#allocation6 + $0x2f48] sm:$0xff] }
0x1e68   : > { %11960 = vmatprep.subr.bf16.mxu1 %v11959_v45 }
0x1e6b   : > { %11962 = vmatpush3.bf16.msra.mxu1 %v11959_v45  ;;  %v11975_v45 = vpack.c.bf16 %v6376_v43, %v6375_v42  ;;  %v6574_v42 = vld [vmem:[#allocation6 + $0x2f58] sm:$0xff] }
0x1e6c   : > { %11964 = vmatprep.subr.bf16.mxu1 %v11963_v38 }
0x1e6f   : > { %11966 = vmatpush3.bf16.msra.mxu1 %v11963_v38  ;;  %v6569_v38 = vld [vmem:[#allocation6 + $0x2f30] sm:$0xff] }
0x1e70   : > { %11968 = vmatprep.subr.bf16.mxu1 %v11967_v28  ;;  %v12019_v27 = vpack.c.bf16 %v6570_v39, %v6569_v38  ;;  %v6868_v38 = vld [vmem:[#allocation6 + $0x3128] sm:$0xff] }
0x1e73   : > { %11970 = vmatpush3.bf16.msra.mxu1 %v11967_v28  ;;  %v6571_v28 = vld [vmem:[#allocation6 + $0x2f40] sm:$0xff] }
0x1e74   : > { %11972 = vmatprep.subr.bf16.mxu1 %v11971_v41  ;;  %v12023_v36 = vpack.c.bf16 %v6572_v40, %v6571_v28  ;;  %v6869_v28 = vld [vmem:[#allocation6 + $0x3130] sm:$0xff]  ;;  %v6870_v40 = vld [vmem:[#allocation6 + $0x3138] sm:$0xff] }
0x1e77   : > { %11974 = vmatpush3.bf16.msra.mxu1 %v11971_v41  ;;  %v6573_v41 = vld [vmem:[#allocation6 + $0x2f50] sm:$0xff] }
0x1e78   : > { %11976 = vmatprep.subr.bf16.mxu1 %v11975_v45  ;;  %v12027_v43 = vpack.c.bf16 %v6574_v42, %v6573_v41  ;;  %v6871_v41 = vld [vmem:[#allocation6 + $0x3140] sm:$0xff]  ;;  %v6872_v42 = vld [vmem:[#allocation6 + $0x3148] sm:$0xff] }
0x1f2d   : > { %v5978_v44 = vpop.f32.mrb[56].mxu1 }
0x1f2e   : > { %v5979_v63 = vadd.f32 %v7217_v26, %v5978_v44  ;;  %v10194_v58 = vpop.f32.mrb[57].mxu1  ;;  %v11895_v26 = vpack.c.bf16 %v6086_v5, %v6085_v46  ;;  %v6087_v44 = vld [vmem:[#allocation6 + $0x2c50] sm:$0xff]  ;;  %v6703_v46 = vld [vmem:[#allocation6 + $0x30c8] sm:$0xff] }
0x1f2f   : > { %v11899_v15 = vpack.c.bf16 %v6088_v14, %v6087_v44  ;;  %v6090_v58 = vld [vmem:[#allocation6 + $0x2c68] sm:$0xff]  ;;  %v6377_v14 = vld [vmem:[#allocation6 + $0x2e10] sm:$0xff] }
0x1f30   : > { %v5982_v6 = vadd.f32 %v5979_v63, %v13257_v59  ;;  %v6104_v59 = vld [vmem:[#allocation6 + $0x2cc0] sm:$0xff] }
0x1f31   : > { %v11863_v11 = vpack.c.bf16 %v6105_v10, %v6104_v59  ;;  %v6089_v63 = vld [vmem:[#allocation6 + $0x2c60] sm:$0xff]  ;;  %v6270_v59 = vld [vmem:[#allocation6 + $0x2d28] sm:$0xff] }
0x1f32   : > { %10195 = vmatprep.subr.mxu0 %v5982_v6  ;;  %v11903_v1 = vpack.c.bf16 %v6090_v58, %v6089_v63 }
0x1f33   : > { %10196 = vmatpush3.msra.mxu0 %v5982_v6  ;;  %v6092_v6 = vld [vmem:[#allocation6 + $0x2c78] sm:$0xff] }
0x1f34   : > { %10198 = vmatmul.mubr.msk.f32.vlgmr.msra.gmra.mrb[46].mxu0 %vm5989_vm0, %v7218_v22  ;;  %11848 = vmatprep.subr.bf16.mxu0 %v11847_v7  ;;  %v6265_v22 = vld [vmem:[#allocation6 + $0x2d00] sm:$0xff] }
0x1f35   : > { %11850 = vmatpush3.bf16.msra.mxu0 %v11847_v7  ;;  %v11907_v7 = vpack.c.bf16 %v6092_v6, %v6091_v4  ;;  %v6379_v6 = vld [vmem:[#allocation6 + $0x2e20] sm:$0xff] }
0x1f36   : > { %11852 = vmatprep.subr.bf16.mxu0 %v11851_v16 }
0x1f39   : > { %11854 = vmatpush3.bf16.msra.mxu0 %v11851_v16  ;;  %v6266_v16 = vld [vmem:[#allocation6 + $0x2d08] sm:$0xff] }
0x1f3a   : > { %11856 = vmatprep.subr.bf16.mxu0 %v11855_v52  ;;  %v11911_v29 = vpack.c.bf16 %v6266_v16, %v6265_v22  ;;  %v6381_v16 = vld [vmem:[#allocation6 + $0x2e30] sm:$0xff] }
0x1f3d   : > { %11858 = vmatpush3.bf16.msra.mxu0 %v11855_v52  ;;  %v6268_v52 = vld [vmem:[#allocation6 + $0x2d18] sm:$0xff] }
0x1f3e   : > { %11860 = vmatprep.subr.bf16.mxu0 %v11859_v60  ;;  %v11915_v8 = vpack.c.bf16 %v6268_v52, %v6267_v51 }
0x1f41   : > { %11862 = vmatpush3.bf16.msra.mxu0 %v11859_v60  ;;  %v6269_v60 = vld [vmem:[#allocation6 + $0x2d20] sm:$0xff] }
0x1f42   : > { %11864 = vmatprep.subr.bf16.mxu0 %v11863_v11 }
0x1f45   : > { %11866 = vmatpush3.bf16.msra.mxu0 %v11863_v11  ;;  %v11919_v11 = vpack.c.bf16 %v6270_v59, %v6269_v60  ;;  %v6384_v60 = vld [vmem:[#allocation6 + $0x2e48] sm:$0xff] }
0x1f46   : > { %11868 = vmatprep.subr.bf16.mxu0 %v11867_v13 }
0x1f49   : > { %11870 = vmatpush3.bf16.msra.mxu0 %v11867_v13  ;;  %v11923_v13 = vpack.c.bf16 %v6272_v12, %v6271_v3  ;;  %v6387_v12 = vld [vmem:[#allocation6 + $0x2e60] sm:$0xff] }
0x1f4a   : > { %11872 = vmatprep.subr.bf16.mxu0 %v11871_v19 }
0x1f4d   : > { %11874 = vmatpush3.bf16.msra.mxu0 %v11871_v19  ;;  %v11927_v19 = vpack.c.bf16 %v6274_v18, %v6273_v17  ;;  %v6389_v18 = vld [vmem:[#allocation6 + $0x2e70] sm:$0xff] }
0x1f4e   : > { %11876 = vmatprep.subr.bf16.mxu0 %v11875_v24 }
0x1f51   : > { %11878 = vmatpush3.bf16.msra.mxu0 %v11875_v24  ;;  %v11931_v24 = vpack.c.bf16 %v6276_v23, %v6275_v21  ;;  %v6563_v21 = vld [vmem:[#allocation6 + $0x2f00] sm:$0xff]  ;;  %v6564_v23 = vld [vmem:[#allocation6 + $0x2f08] sm:$0xff] }
0x1f52   : > { %11880 = vmatprep.subr.bf16.mxu0 %v11879_v31 }
0x2007   : > { %v10199_v48 = vpop.f32.mrb[46].mxu0 }
0x2008   : > { %6073 = vst [vmem:[#allocation2 + $0x10] sm:$0xff] %v10199_v48  ;;  %v6061_v49 = vpop.f32.mrb[47].mxu0 }
0x2009   : > { %6072 = vst [vmem:[#allocation2 + $0x8] sm:$0xff] %v6061_v49  ;;  %10232 = vmatprep.mubr.f32.mxu0 %v6061_v49  ;;  %v12039_v49 = vpack.c.bf16 %v6695_v47, %v6694_v2  ;;  %v6576_v2 = vld [vmem:[#allocation6 + $0x2f68] sm:$0xff] }
0x200a   : > { %10233 = vmatmul.mubr.f32.vlgmr.msra.gmra.mrb[48].mxu0 %v10199_v48  ;;  %v6696_v48 = vld [vmem:[#allocation6 + $0x3090] sm:$0xff] }
0x200b   : > { %11882 = vmatpush3.bf16.msra.mxu0 %v11879_v31  ;;  %v11935_v31 = vpack.c.bf16 %v6278_v30, %v6277_v25  ;;  %v6565_v25 = vld [vmem:[#allocation6 + $0x2f10] sm:$0xff]  ;;  %v6566_v30 = vld [vmem:[#allocation6 + $0x2f18] sm:$0xff] }
0x200c   : > { %11884 = vmatprep.subr.bf16.mxu0 %v11883_v50 }
0x200f   : > { %11886 = vmatpush3.bf16.msra.mxu0 %v11883_v50  ;;  %v13287_v57 = vld [vmem:[#allocation2 + $0x11] sm:$0xff] }
0x2010   : > { %v6074_v61 = vld [vmem:[#allocation2 + $0x7] sm:$0xff]  ;;  %11888 = vmatprep.subr.bf16.mxu0 %v11887_v20  ;;  %6369 = vst [vmem:[#allocation2 + $0x18] sm:$0x1] %v12410_v0  ;;  %v6075_v9 = vld [vmem:[#allocation2 + $0xf] sm:$0xff]  ;;  %v6697_v50 = vld [vmem:[#allocation6 + $0x3098] sm:$0xff] }
0x2011   : > { %10267 = vmatprep.mubr.f32.mxu0 %v6074_v61  ;;  %6368 = vst [vmem:[#allocation2 + $0x7] sm:$0x1] %v12410_v0  ;;  %v6262_v10 = vld [vmem:[#allocation2 + $0x9] sm:$0xff]  ;;  %v12043_v53 = vpack.c.bf16 %v6697_v50, %v6696_v48 }
0x2012   : > { %v6577_v48 = vld [vmem:[#allocation6 + $0x2f70] sm:$0xff] }
0x2013   : > { %11890 = vmatpush3.bf16.msra.mxu0 %v11887_v20  ;;  %v6699_v20 = vld [vmem:[#allocation6 + $0x30a8] sm:$0xff] }
0x2014   : > { %11892 = vmatprep.subr.bf16.mxu0 %v11891_v62  ;;  %v12047_v55 = vpack.c.bf16 %v6699_v20, %v6698_v54  ;;  %v6705_v54 = vld [vmem:[#allocation6 + $0x30d8] sm:$0xff] }
0x2017   : > { %11894 = vmatpush3.bf16.msra.mxu0 %v11891_v62  ;;  %v6702_v62 = vld [vmem:[#allocation6 + $0x30c0] sm:$0xff] }
0x2018   : > { %11896 = vmatprep.subr.bf16.mxu0 %v11895_v26  ;;  %v12055_v5 = vpack.c.bf16 %v6703_v46, %v6702_v62  ;;  %v6709_v62 = vld [vmem:[#allocation6 + $0x30f8] sm:$0xff] }
0x201b   : > { %11898 = vmatpush3.bf16.msra.mxu0 %v11895_v26  ;;  %v7221_v26 = vld [vmem:[#allocation8 + $0x16] ss:$0 sm:$0xff] }
0x201c   : > { %11900 = vmatprep.subr.bf16.mxu0 %v11899_v15 }
0x201f   : > { %11902 = vmatpush3.bf16.msra.mxu0 %v11899_v15  ;;  %v6378_v15 = vld [vmem:[#allocation6 + $0x2e18] sm:$0xff] }
0x2020   : > { %11904 = vmatprep.subr.bf16.mxu0 %v11903_v1  ;;  %v11979_v4 = vpack.c.bf16 %v6378_v15, %v6377_v14  ;;  %v7222_v14 = vld [vmem:[#allocation8 + $0x17] ss:$0 sm:$0xff] }
0x2023   : > { %11906 = vmatpush3.bf16.msra.mxu0 %v11903_v1 }
0x2024   : > { %11908 = vmatprep.subr.bf16.mxu0 %v11907_v7 }
0x2027   : > { %11910 = vmatpush3.bf16.msra.mxu0 %v11907_v7  ;;  %v6380_v7 = vld [vmem:[#allocation6 + $0x2e28] sm:$0xff] }
0x2028   : > { %11912 = vmatprep.subr.bf16.mxu0 %v11911_v29  ;;  %v11983_v22 = vpack.c.bf16 %v6380_v7, %v6379_v6  ;;  %v6678_v6 = vld [vmem:[#allocation6 + $0x3018] sm:$0xff] }
0x202a   : > { %10268 = vmatmul.mubr.f32.vlgmr.msra.gmra.mrb[48].mxu0 %v6075_v9  ;;  %v6383_v9 = vld [vmem:[#allocation6 + $0x2e40] sm:$0xff] }
0x202b   : > { %11914 = vmatpush3.bf16.msra.mxu0 %v11911_v29  ;;  %10302 = vmatprep.mubr.f32.mxu0 %v6262_v10  ;;  %v6382_v29 = vld [vmem:[#allocation6 + $0x2e38] sm:$0xff]  ;;  %v11991_v59 = vpack.c.bf16 %v6384_v60, %v6383_v9  ;;  %v6385_v10 = vld [vmem:[#allocation6 + $0x2e50] sm:$0xff] }
0x202c   : > { %11916 = vmatprep.subr.bf16.mxu0 %v11915_v8  ;;  %v6682_v9 = vld [vmem:[#allocation6 + $0x3038] sm:$0xff] }
0x202f   : > { %11918 = vmatpush3.bf16.msra.mxu0 %v11915_v8  ;;  %v11987_v8 = vpack.c.bf16 %v6382_v29, %v6381_v16  ;;  %v6679_v29 = vld [vmem:[#allocation6 + $0x3020] sm:$0xff] }
0x2030   : > { %11920 = vmatprep.subr.bf16.mxu0 %v11919_v11 }
0x2033   : > { %11922 = vmatpush3.bf16.msra.mxu0 %v11919_v11  ;;  %v6386_v11 = vld [vmem:[#allocation6 + $0x2e58] sm:$0xff] }
0x2034   : > { %11924 = vmatprep.subr.bf16.mxu0 %v11923_v13  ;;  %v11995_v3 = vpack.c.bf16 %v6386_v11, %v6385_v10  ;;  %v6683_v10 = vld [vmem:[#allocation6 + $0x3040] sm:$0xff]  ;;  %v6684_v11 = vld [vmem:[#allocation6 + $0x3048] sm:$0xff] }
0x2037   : > { %11926 = vmatpush3.bf16.msra.mxu0 %v11923_v13  ;;  %v6388_v13 = vld [vmem:[#allocation6 + $0x2e68] sm:$0xff] }
0x2038   : > { %11928 = vmatprep.subr.bf16.mxu0 %v11927_v19  ;;  %v11999_v17 = vpack.c.bf16 %v6388_v13, %v6387_v12  ;;  %v6685_v12 = vld [vmem:[#allocation6 + $0x3050] sm:$0xff]  ;;  %v6686_v13 = vld [vmem:[#allocation6 + $0x3058] sm:$0xff] }
0x203b   : > { %11930 = vmatpush3.bf16.msra.mxu0 %v11927_v19  ;;  %v6390_v19 = vld [vmem:[#allocation6 + $0x2e78] sm:$0xff] }
0x203c   : > { %11932 = vmatprep.subr.bf16.mxu0 %v11931_v24 }
0x203f   : > { %11934 = vmatpush3.bf16.msra.mxu0 %v11931_v24  ;;  %v12007_v24 = vpack.c.bf16 %v6564_v23, %v6563_v21  ;;  %v6689_v21 = vld [vmem:[#allocation6 + $0x3070] sm:$0xff]  ;;  %v6690_v23 = vld [vmem:[#allocation6 + $0x3078] sm:$0xff] }
0x2040   : > { %11936 = vmatprep.subr.bf16.mxu0 %v11935_v31 }
0x2043   : > { %11938 = vmatpush3.bf16.msra.mxu0 %v11935_v31  ;;  %v12011_v31 = vpack.c.bf16 %v6566_v30, %v6565_v25  ;;  %v6863_v25 = vld [vmem:[#allocation6 + $0x3100] sm:$0xff]  ;;  %v6864_v30 = vld [vmem:[#allocation6 + $0x3108] sm:$0xff] }
0x2044   : > { %11940 = vmatprep.subr.bf16.mxu0 %v11939_v35 }
0x2047   : > { %11942 = vmatpush3.bf16.msra.mxu0 %v11939_v35  ;;  %v6568_v35 = vld [vmem:[#allocation6 + $0x2f28] sm:$0xff] }
0x2048   : > { %12040 = vmatprep.subr.bf16.mxu0 %v12039_v49  ;;  %v12015_v34 = vpack.c.bf16 %v6568_v35, %v6567_v33  ;;  %v6866_v33 = vld [vmem:[#allocation6 + $0x3118] sm:$0xff] }
0x204a   : > { %10303 = vmatmul.mubr.f32.vlgmr.msra.gmra.mrb[48].mxu0 %v13287_v57  ;;  %v6701_v57 = vld [vmem:[#allocation6 + $0x30b8] sm:$0xff] }
0x204b   : > { %12042 = vmatpush3.bf16.msra.mxu0 %v12039_v49  ;;  %v12051_v61 = vpack.c.bf16 %v6701_v57, %v6700_v56  ;;  %v6578_v49 = vld [vmem:[#allocation6 + $0x2f78] sm:$0xff]  ;;  %v6707_v56 = vld [vmem:[#allocation6 + $0x30e8] sm:$0xff] }
0x204c   : > { %12044 = vmatprep.subr.bf16.mxu0 %v12043_v53  ;;  %v12035_v50 = vpack.c.bf16 %v6578_v49, %v6577_v48  ;;  %v6875_v48 = vld [vmem:[#allocation6 + $0x3160] sm:$0xff]  ;;  %v6876_v49 = vld [vmem:[#allocation6 + $0x3168] sm:$0xff] }
0x204f   : > { %12046 = vmatpush3.bf16.msra.mxu0 %v12043_v53  ;;  %v6704_v53 = vld [vmem:[#allocation6 + $0x30d0] sm:$0xff] }
0x2050   : > { %12048 = vmatprep.subr.bf16.mxu0 %v12047_v55  ;;  %v12059_v20 = vpack.c.bf16 %v6705_v54, %v6704_v53  ;;  %v6877_v53 = vld [vmem:[#allocation6 + $0x3170] sm:$0xff]  ;;  %v6878_v54 = vld [vmem:[#allocation6 + $0x3178] sm:$0xff] }
0x2053   : > { %12050 = vmatpush3.bf16.msra.mxu0 %v12047_v55  ;;  %v6706_v55 = vld [vmem:[#allocation6 + $0x30e0] sm:$0xff] }
0x2054   : > { %12052 = vmatprep.subr.bf16.mxu0 %v12051_v61  ;;  %v12063_v57 = vpack.c.bf16 %v6707_v56, %v6706_v55  ;;  %v7223_v56 = vld [vmem:[#allocation8 + $0x18] ss:$0 sm:$0xff] }
0x2057   : > { %12054 = vmatpush3.bf16.msra.mxu0 %v12051_v61  ;;  %v6708_v61 = vld [vmem:[#allocation6 + $0x30f0] sm:$0xff] }
0x2058   : > { %12056 = vmatprep.subr.bf16.mxu0 %v12055_v5  ;;  %v12067_v46 = vpack.c.bf16 %v6709_v62, %v6708_v61 }
0x205b   : > { %12058 = vmatpush3.bf16.msra.mxu0 %v12055_v5  ;;  %v6675_v5 = vld [vmem:[#allocation6 + $0x3000] sm:$0xff] }
0x205c   : > { %12060 = vmatprep.subr.bf16.mxu0 %v12059_v20 }
0x205f   : > { %12062 = vmatpush3.bf16.msra.mxu0 %v12059_v20  ;;  %v12131_v20 = vpack.c.bf16 %v6878_v54, %v6877_v53 }
0x2060   : > { %12064 = vmatprep.subr.bf16.mxu0 %v12063_v57 }
0x2063   : > { %12066 = vmatpush3.bf16.msra.mxu0 %v12063_v57 }
0x2064   : > { %12068 = vmatprep.subr.bf16.mxu0 %v12067_v46 }
0x2067   : > { %12070 = vmatpush3.bf16.msra.mxu0 %v12067_v46 }
0x211d   : > { %v10304_v44 = vpop.f32.mrb[48].mxu0 }
0x211e   : > { %v6367_v63 = vadd.f32 %v10304_v44, %v7221_v26  ;;  %v6347_v58 = vpop.f32.mrb[49].mxu0 }
0x211f   : > { %v6366_v1 = vadd.f32 %v7221_v26, %v6347_v58  ;;  %v6676_v26 = vld [vmem:[#allocation6 + $0x3008] sm:$0xff] }
0x2120   : > { %6371 = vst [vmem:[#allocation2 + $0x10] sm:$0xff] %v6367_v63  ;;  %v12071_v44 = vpack.c.bf16 %v6676_v26, %v6675_v5 }
0x2121   : > { %6370 = vst [vmem:[#allocation2 + $0x8] sm:$0xff] %v6366_v1  ;;  %10337 = vmatprep.mubr.f32.mxu1 %v6366_v1 }
0x2122   : > { %10338 = vmatmul.mubr.f32.vlgmr.msra.gmra.mrb[58].mxu1 %v6367_v63  ;;  %12072 = vmatprep.subr.bf16.mxu0 %v12071_v44 }
0x2123   : > { %11978 = vmatpush3.bf16.msra.mxu1 %v11975_v45  ;;  %v6575_v45 = vld [vmem:[#allocation6 + $0x2f60] sm:$0xff] }
0x2124   : > { %11980 = vmatprep.subr.bf16.mxu1 %v11979_v4  ;;  %v12031_v47 = vpack.c.bf16 %v6576_v2, %v6575_v45  ;;  %v6873_v45 = vld [vmem:[#allocation6 + $0x3150] sm:$0xff]  ;;  %v6874_v2 = vld [vmem:[#allocation6 + $0x3158] sm:$0xff] }
0x2127   : > { %11982 = vmatpush3.bf16.msra.mxu1 %v11979_v4  ;;  %v13292_v51 = vld [vmem:[#allocation2 + $0x11] sm:$0xff] }
0x2128   : > { %v6372_v52 = vld [vmem:[#allocation2 + $0x7] sm:$0xff]  ;;  %11984 = vmatprep.subr.bf16.mxu1 %v11983_v22  ;;  %6669 = vst [vmem:[#allocation2 + $0x18] sm:$0x1] %v12410_v0  ;;  %v6373_v32 = vld [vmem:[#allocation2 + $0xf] sm:$0xff] }
0x2129   : > { %10372 = vmatprep.mubr.f32.mxu1 %v6372_v52  ;;  %6668 = vst [vmem:[#allocation2 + $0x7] sm:$0x1] %v12410_v0  ;;  %v12003_v0 = vpack.c.bf16 %v6390_v19, %v6389_v18  ;;  %v6560_v37 = vld [vmem:[#allocation2 + $0x9] sm:$0xff]  ;;  %v6687_v18 = vld [vmem:[#allocation6 + $0x3060] sm:$0xff] }
0x212a   : > { %v6677_v4 = vld [vmem:[#allocation6 + $0x3010] sm:$0xff]  ;;  %v6688_v19 = vld [vmem:[#allocation6 + $0x3068] sm:$0xff] }
0x212b   : > { %11986 = vmatpush3.bf16.msra.mxu1 %v11983_v22  ;;  %v12075_v16 = vpack.c.bf16 %v6678_v6, %v6677_v4 }
0x212c   : > { %11988 = vmatprep.subr.bf16.mxu1 %v11987_v8 }
0x212f   : > { %11990 = vmatpush3.bf16.msra.mxu1 %v11987_v8  ;;  %v6681_v8 = vld [vmem:[#allocation6 + $0x3030] sm:$0xff] }
0x2130   : > { %11992 = vmatprep.subr.bf16.mxu1 %v11991_v59 }
0x2133   : > { %11994 = vmatpush3.bf16.msra.mxu1 %v11991_v59  ;;  %v12083_v59 = vpack.c.bf16 %v6682_v9, %v6681_v8 }
0x2134   : > { %11996 = vmatprep.subr.bf16.mxu1 %v11995_v3 }
0x2137   : > { %11998 = vmatpush3.bf16.msra.mxu1 %v11995_v3  ;;  %v12087_v3 = vpack.c.bf16 %v6684_v11, %v6683_v10 }
0x2138   : > { %12000 = vmatprep.subr.bf16.mxu1 %v11999_v17 }
0x213b   : > { %12002 = vmatpush3.bf16.msra.mxu1 %v11999_v17  ;;  %v12091_v17 = vpack.c.bf16 %v6686_v13, %v6685_v12 }
0x213c   : > { %12004 = vmatprep.subr.bf16.mxu1 %v12003_v0 }
0x213f   : > { %12006 = vmatpush3.bf16.msra.mxu1 %v12003_v0  ;;  %v12095_v0 = vpack.c.bf16 %v6688_v19, %v6687_v18 }
0x2140   : > { %12008 = vmatprep.subr.bf16.mxu1 %v12007_v24 }
0x2142   : > { %10373 = vmatmul.mubr.f32.vlgmr.msra.gmra.mrb[58].mxu1 %v6373_v32  ;;  %v6865_v32 = vld [vmem:[#allocation6 + $0x3110] sm:$0xff] }
0x2143   : > { %12010 = vmatpush3.bf16.msra.mxu1 %v12007_v24  ;;  %10407 = vmatprep.mubr.f32.mxu1 %v6560_v37  ;;  %v12099_v24 = vpack.c.bf16 %v6690_v23, %v6689_v21  ;;  %v12107_v35 = vpack.c.bf16 %v6866_v33, %v6865_v32 }
0x2144   : > { %12012 = vmatprep.subr.bf16.mxu1 %v12011_v31 }
0x2147   : > { %12014 = vmatpush3.bf16.msra.mxu1 %v12011_v31  ;;  %v12103_v31 = vpack.c.bf16 %v6864_v30, %v6863_v25 }
0x2148   : > { %12016 = vmatprep.subr.bf16.mxu1 %v12015_v34 }
0x214b   : > { %12018 = vmatpush3.bf16.msra.mxu1 %v12015_v34  ;;  %v6867_v34 = vld [vmem:[#allocation6 + $0x3120] sm:$0xff] }
0x214c   : > { %12020 = vmatprep.subr.bf16.mxu1 %v12019_v27 }
0x214f   : > { %12022 = vmatpush3.bf16.msra.mxu1 %v12019_v27  ;;  %v12111_v27 = vpack.c.bf16 %v6868_v38, %v6867_v34 }
0x2150   : > { %12024 = vmatprep.subr.bf16.mxu1 %v12023_v36 }
0x2153   : > { %12026 = vmatpush3.bf16.msra.mxu1 %v12023_v36  ;;  %v12115_v36 = vpack.c.bf16 %v6870_v40, %v6869_v28 }
0x2154   : > { %12028 = vmatprep.subr.bf16.mxu1 %v12027_v43 }
0x2157   : > { %12030 = vmatpush3.bf16.msra.mxu1 %v12027_v43  ;;  %v12119_v43 = vpack.c.bf16 %v6872_v42, %v6871_v41 }
0x2158   : > { %12032 = vmatprep.subr.bf16.mxu1 %v12031_v47 }
0x215b   : > { %12034 = vmatpush3.bf16.msra.mxu1 %v12031_v47  ;;  %v12123_v47 = vpack.c.bf16 %v6874_v2, %v6873_v45 }
0x215c   : > { %12036 = vmatprep.subr.bf16.mxu1 %v12035_v50 }
0x215f   : > { %12038 = vmatpush3.bf16.msra.mxu1 %v12035_v50  ;;  %v12127_v50 = vpack.c.bf16 %v6876_v49, %v6875_v48 }
0x2162   : > { %10408 = vmatmul.mubr.f32.vlgmr.msra.gmra.mrb[58].mxu1 %v13292_v51  ;;  %v6680_v51 = vld [vmem:[#allocation6 + $0x3028] sm:$0xff] }
0x2163   : > { %v12079_v52 = vpack.c.bf16 %v6680_v51, %v6679_v29 }
0x2235   : > { %v10409_v15 = vpop.f32.mrb[58].mxu1 }
0x2236   : > { %v6665_v63 = vadd.f32 %v10409_v15, %v7222_v14  ;;  %v6645_v58 = vpop.f32.mrb[59].mxu1 }
0x2237   : > { %v6664_v1 = vadd.f32 %v7222_v14, %v6645_v58 }
0x2238   : > { %v6667_v7 = vmax.f32 %v6665_v63, 0.0 }
0x2239   : > { %v6666_v22 = vmax.f32 %v6664_v1, 0.0 }
0x223a   : > { %6671 = vst [vmem:[#allocation2 + $0x10] sm:$0xff] %v6667_v7 }
0x223b   : > { %6670 = vst [vmem:[#allocation2 + $0x8] sm:$0xff] %v6666_v22  ;;  %10442 = vmatprep.mubr.f32.mxu0 %v6666_v22 }
0x223c   : > { %10443 = vmatmul.mubr.f32.vlgmr.msra.gmra.mrb[50].mxu0 %v6667_v7 }
0x223d   : > { %12074 = vmatpush3.bf16.msra.mxu0 %v12071_v44 }
0x223e   : > { %12076 = vmatprep.subr.bf16.mxu0 %v12075_v16 }
0x2241   : > { %12078 = vmatpush3.bf16.msra.mxu0 %v12075_v16  ;;  %v6861_v55 = vld [vmem:[#allocation2 + $0x11] sm:$0xff] }
0x2242   : > { %v6672_v60 = vld [vmem:[#allocation2 + $0x7] sm:$0xff]  ;;  %12080 = vmatprep.subr.bf16.mxu0 %v12079_v52  ;;  %v6673_v37 = vld [vmem:[#allocation2 + $0xf] sm:$0xff] }
0x2243   : > { %10477 = vmatprep.mubr.f32.mxu0 %v6672_v60  ;;  %v6860_v39 = vld [vmem:[#allocation2 + $0x9] sm:$0xff] }
0x2245   : > { %12082 = vmatpush3.bf16.msra.mxu0 %v12079_v52 }
0x2246   : > { %12084 = vmatprep.subr.bf16.mxu0 %v12083_v59 }
0x2249   : > { %12086 = vmatpush3.bf16.msra.mxu0 %v12083_v59 }
0x224a   : > { %12088 = vmatprep.subr.bf16.mxu0 %v12087_v3 }
0x224d   : > { %12090 = vmatpush3.bf16.msra.mxu0 %v12087_v3 }
0x224e   : > { %12092 = vmatprep.subr.bf16.mxu0 %v12091_v17 }
0x2251   : > { %12094 = vmatpush3.bf16.msra.mxu0 %v12091_v17 }
0x2252   : > { %12096 = vmatprep.subr.bf16.mxu0 %v12095_v0 }
0x2255   : > { %12098 = vmatpush3.bf16.msra.mxu0 %v12095_v0 }
0x2256   : > { %12100 = vmatprep.subr.bf16.mxu0 %v12099_v24 }
0x2259   : > { %12102 = vmatpush3.bf16.msra.mxu0 %v12099_v24 }
0x225a   : > { %12104 = vmatprep.subr.bf16.mxu0 %v12103_v31 }
0x225c   : > { %10478 = vmatmul.mubr.f32.vlgmr.msra.gmra.mrb[50].mxu0 %v6673_v37 }
0x225d   : > { %12106 = vmatpush3.bf16.msra.mxu0 %v12103_v31  ;;  %10512 = vmatprep.mubr.f32.mxu0 %v6860_v39 }
0x225e   : > { %12108 = vmatprep.subr.bf16.mxu0 %v12107_v35 }
0x2261   : > { %12110 = vmatpush3.bf16.msra.mxu0 %v12107_v35 }
0x2262   : > { %12112 = vmatprep.subr.bf16.mxu0 %v12111_v27 }
0x2265   : > { %12114 = vmatpush3.bf16.msra.mxu0 %v12111_v27 }
0x2266   : > { %12116 = vmatprep.subr.bf16.mxu0 %v12115_v36 }
0x2269   : > { %12118 = vmatpush3.bf16.msra.mxu0 %v12115_v36 }
0x226a   : > { %12120 = vmatprep.subr.bf16.mxu0 %v12119_v43 }
0x226d   : > { %12122 = vmatpush3.bf16.msra.mxu0 %v12119_v43 }
0x226e   : > { %12124 = vmatprep.subr.bf16.mxu0 %v12123_v47 }
0x2271   : > { %12126 = vmatpush3.bf16.msra.mxu0 %v12123_v47 }
0x2272   : > { %12128 = vmatprep.subr.bf16.mxu0 %v12127_v50 }
0x2275   : > { %12130 = vmatpush3.bf16.msra.mxu0 %v12127_v50 }
0x2276   : > { %12132 = vmatprep.subr.bf16.mxu0 %v12131_v20 }
0x2279   : > { %12134 = vmatpush3.bf16.msra.mxu0 %v12131_v20 }
0x227c   : > { %10513 = vmatmul.mubr.f32.vlgmr.msra.gmra.mrb[50].mxu0 %v6861_v55 }
0x234f   : > { %v10514_v57 = vpop.f32.mrb[50].mxu0 }
0x2350   : > { %v6965_v61 = vadd.f32 %v10514_v57, %v7223_v56  ;;  %v6945_v62 = vpop.f32.mrb[51].mxu0 }
0x2351   : > { %v6964_v46 = vadd.f32 %v7223_v56, %v6945_v62 }
0x2352   : > { %6967 = vst [vmem:[%s316_s9 + $0x8] sm:$0xff] %v6965_v61 }
0x2353   : > { %6966 = vst [vmem:[%s316_s9] sm:$0xff] %v6964_v46 }
0x2354   : > { %12344 = shalt.err (!%p12341_p9)
}
0x2355   : > { %s12345_s21 = scalar_lea.hbm %s13304_s14, 256  ;;  %s12349_s30 = scalar_lea.hbm %s13351_s4, 512 }
0x2356   : > { %p12346_p2 = scmp.ne.s32.totalorder %s13304_s14, %s12345_s21  ;;  %p12350_p5 = scmp.lt.u32.totalorder %s13304_s14, %s13351_s4 }
0x2357   : > { %p12351_p10 = scmp.lt.u32.totalorder %s12349_s30, %s12345_s21  ;;  %p12353_p12 = scmp.lt.u32.totalorder %s12345_s21, %s13304_s14 }
0x2358   : > { %p12347_p0 = pnand %p12346_p2, %p13374_p7 }
0x2359   : > { %p12352_p4 = por %p12351_p10, %p12350_p5 }
0x235a   : > { %p12348_p3 = pneg %p12347_p0 }
0x235b   : > { %p12354_p8 = por %p12353_p12, %p12352_p4 }
0x235d   : > { %p12355_p11 = pnand %p12354_p8, %p12348_p3 }
0x235f   : > { %12358 = shalt.err (!%p12355_p11)
}
0x2360   : > { %s12415_s20 = smov 128   ;;  %s12416_s9 = smov 8  }
0x2361   : > { %12179 = dma.vmem_to_hbm [thread:$0]  (%p13374_p7), %s13299_s10, 256, %s13304_s14, %s13306_s17, %s12415_s20, %s12415_s20, %s12416_s9  }
0x2362 PF: > { %p12201_p13 = scmp.ge.s32.totalorder %s12401_s27, 2  ;;  %s7018_s23 = sand.u32 1, %s12389_s24  }
0x2363   : > { %p13375_p1 = scmp.ne.s32.totalorder %s13365_s12, 0  ;;  %s7019_s29 = scalar_lea.sflag [#allocation5], %s7018_s23 }
0x2365   : > { %p12192_p6 = pnand %p12201_p13, %p13375_p1 }
0x2367   : > { %12384 = dma.done.wait (!%p12192_p6), %s7019_s29, 256  }
0x2368   : > { %12386 = vsyncadd (!%p12192_p6), %s7019_s29, 4294967040  ;;  %s13376_s27 = sld [smem:[#allocation14_spill]]  ;;  %s13377_s8 = sld [smem:[#allocation13_spill]] }
0x2369   : > { %s13378_s26 = sld [smem:[#allocation15_spill]]  ;;  %s13379_s24 = smov %s12393_s25 }
0x236e   : > { %p20_p9 = scmp.ge.s32.totalorder %s13376_s27, 4   ;;  %s13380_s25 = smov %s13377_s8 }
0x2370   :  { %22 = sbr.rel (!%p20_p9) target bundleno = 5 (0x5), region = 205 }
0x2377   :  { %7045 = vsyncpa [#allocation4], 1 }
0x2378   :  { %7047 = vsyncpa [#allocation4 + $0x1], 1 }
0x2379   :  { %7048 = vsyncpa [#allocation7], 1 }
0x237a   :  { %7049 = vsyncpa [#allocation5], 1 }
0x237b   :  { %7051 = vsyncpa [#allocation5 + $0x1], 1 }

</bundles_post_ra>
